<compile_context>
chip_gen: v7x
topology: tpu7x:2x2x1
jax: 0.10.0
libtpu: 0.0.40
codegen_flags: <defaults>
</compile_context>

<pallas_src>
import functools

import jax
import jax.numpy as jnp
from jax import lax
from jax.experimental import pallas as pl
from jax.experimental.pallas import tpu as pltpu


def _round_up(x, m):
    return (x + m - 1) // m * m


# ----------------------------------------------------------------------------
# Fused kernel: one grid step = B_TILE images stacked along the sublane axis.
# ----------------------------------------------------------------------------
def _stable_upsampling_kernel(x_ref, t_ref, linw_ref, linb_ref,
                              w1_ref, b1_ref, w2_ref, b2_ref,
                              wt_ref, bt_ref, o_ref,
                              pad1_ref, pad2_ref, shift_ref, acc_ref,
                              *, H, W, Cin, Cout, BH):
    f32, bf16 = jnp.float32, jnp.bfloat16
    WCo = W * Cout

    # Rows of the stacked plane whose "row above"/"row below" belongs to the
    # neighbouring image -> per-image vertical zero padding of the taps.
    py = lax.broadcasted_iota(jnp.int32, (BH, 1), 0) % H
    top_ok = py != 0
    bot_ok = py != (H - 1)

    def build_shifted(pad_ref, c):
        # Hoisted lane shifts + f32->bf16 casts: 3 dx-shifted copies per conv,
        # reused across the 3 row taps (row taps are cheap sublane slices).
        wc = W * c
        for dx in range(3):
            shift_ref[dx, :, :wc] = pad_ref[:, dx * c:dx * c + wc].astype(bf16)

    def accum(d, part, hi, first):
        if d == 0:          # contribution from the row above
            part = jnp.where(top_ok, part, 0.0)
        elif d == 2:        # contribution from the row below
            part = jnp.where(bot_ok, part, 0.0)
        if first:
            acc_ref[:, :hi] = part
        else:
            acc_ref[:, :hi] += part

    def conv3x3(pad_ref, w_ref_, c):
        # 3x3 / s1 / p1 conv on the stacked plane -> acc_ref[:, :WCo] (f32).
        wc = W * c
        build_shifted(pad_ref, c)
        for dy in range(3):
            part = jnp.dot(shift_ref[0, dy:dy + BH, :wc], w_ref_[dy, 0],
                           preferred_element_type=f32)
            for dx in range(1, 3):
                part += jnp.dot(shift_ref[dx, dy:dy + BH, :wc], w_ref_[dy, dx],
                                preferred_element_type=f32)
            accum(dy, part, WCo, first=(dy == 0))

    # Fresh per-image zero halos (interiors are rewritten below; re-zeroed every
    # step so the grid axis is safe under "parallel"/megacore execution).
    pad1_ref[...] = jnp.zeros_like(pad1_ref)
    pad2_ref[...] = jnp.zeros_like(pad2_ref)

    # ---- conv1 (3x3, s1, p1) + bias + ReLU ----------------------------------
    pad1_ref[1:BH + 1, Cin:(W + 1) * Cin] = x_ref[...]
    conv3x3(pad1_ref, w1_ref, Cin)

    # ---- time_mlp: Linear + ReLU (weight lane-tiled to W*Cout) ---------------
    temb = jnp.dot(t_ref[...].astype(bf16), linw_ref[...],
                   preferred_element_type=f32)
    temb = jnp.maximum(temb + linb_ref[...], 0.0)
    h1 = jnp.maximum(acc_ref[:, :WCo] + b1_ref[...], 0.0) + temb

    # ---- conv2 (3x3, s1, p1) + bias + ReLU ----------------------------------
    pad2_ref[1:BH + 1, Cout:(W + 1) * Cout] = h1
    conv3x3(pad2_ref, w2_ref, Cout)
    h2 = jnp.maximum(acc_ref[:, :WCo] + b2_ref[...], 0.0)

    # ---- ConvTranspose2d(4x4, s2, p1) ----------------------------------------
    # Row parity ry -> two lane-dense (BH, 2*W*Cout) slabs stored side by side;
    # column parity rx is interleaved by the packed weights, so output lanes are
    # already in (ry, px, rx, c) order and the wrapper reshape is free.
    pad2_ref[1:BH + 1, Cout:(W + 1) * Cout] = h2
    build_shifted(pad2_ref, Cout)
    for ry in range(2):
        for a in range(2):
            d = ry + a
            part = jnp.dot(shift_ref[0, d:d + BH, :], wt_ref[ry, a, 0],
                           preferred_element_type=f32)
            for sx in range(1, 3):
                part += jnp.dot(shift_ref[sx, d:d + BH, :], wt_ref[ry, a, sx],
                                preferred_element_type=f32)
            accum(d, part, 2 * WCo, first=(a == 0))
        o_ref[:, ry * 2 * WCo:(ry + 1) * 2 * WCo] = (
            acc_ref[...] + bt_ref[...]).astype(o_ref.dtype)


# ----------------------------------------------------------------------------
# One-time weight packing (hoisted out of the per-forward path).
# ----------------------------------------------------------------------------
def prepare_params(params, *, width):
    """Pack PyTorch-layout weights into the kernel's lane-blocked, bf16 form.

    Expected raw layouts (PyTorch conventions):
      lin_w   (Cout, Tdim)         nn.Linear.weight
      conv*_w (Cout, Cin, 3, 3)    nn.Conv2d.weight (OIHW)
      up_w    (Cout, Cout, 4, 4)   nn.ConvTranspose2d.weight (in, out, kH, kW)
    """
    W = width
    f32, bf16 = jnp.float32, jnp.bfloat16
    lin_w = jnp.asarray(params["lin_w"], f32)
    lin_b = jnp.asarray(params["lin_b"], f32)
    c1w = jnp.asarray(params["conv1_w"], f32)
    c1b = jnp.asarray(params["conv1_b"], f32)
    c2w = jnp.asarray(params["conv2_w"], f32)
    c2b = jnp.asarray(params["conv2_b"], f32)
    upw = jnp.asarray(params["up_w"], f32)
    upb = jnp.asarray(params["up_b"], f32)
    Cout = c1w.shape[0]

    eye_w = jnp.eye(W, dtype=f32)
    bd = lambda m: jnp.kron(eye_w, m)          # (ci, co) -> block-diag (W*ci, W*co)

    def conv_bd(w_oihw):                       # OIHW -> (3, 3, W*ci, W*co) bf16
        w = jnp.transpose(w_oihw, (2, 3, 1, 0))
        return jnp.stack([jnp.stack([bd(w[dy, dx]) for dx in range(3)])
                          for dy in range(3)]).astype(bf16)

    # ConvTranspose2d(4, s=2, p=1) == conv over the 2x-dilated input (pad 2) with
    # the spatially flipped, in/out-swapped kernel (HWIO).
    w_eq = jnp.transpose(jnp.flip(upw, axis=(2, 3)), (2, 3, 0, 1))
    zc = jnp.zeros((Cout, Cout), f32)
    kx_even = {0: 0, 1: 2}     # rx = 0: source column shift sx -> kernel tap kx
    kx_odd = {1: 1, 2: 3}      # rx = 1

    def wcomb(ry, a, sx):
        # Both column parities are packed side by side per px block (Cout -> 2*Cout
        # columns), so the kernel's output columns come out already interleaved.
        ky = 2 * a + ry
        left = w_eq[ky, kx_even[sx]] if sx in kx_even else zc
        right = w_eq[ky, kx_odd[sx]] if sx in kx_odd else zc
        return bd(jnp.concatenate([left, right], axis=1))

    wtbd = jnp.stack([jnp.stack([jnp.stack([wcomb(ry, a, sx) for sx in range(3)])
                                 for a in range(2)])
                      for ry in range(2)]).astype(bf16)

    return {
        "linw": jnp.tile(lin_w.T, (1, W)).astype(bf16),   # (Tdim, W*Cout)
        "linb": jnp.tile(lin_b, W)[None, :],              # (1, W*Cout) f32
        "w1": conv_bd(c1w),                               # (3,3,W*Cin,W*Cout) bf16
        "b1": jnp.tile(c1b, W)[None, :],
        "w2": conv_bd(c2w),                               # (3,3,W*Cout,W*Cout) bf16
        "b2": jnp.tile(c2b, W)[None, :],
        "wt": wtbd,                                       # (2,2,3,W*Cout,2*W*Cout) bf16
        "bt": jnp.tile(upb, 2 * W)[None, :],              # (1, 2*W*Cout) f32
    }


def _weight_spec(shape, imap):
    # Weights never change across the grid -> single-buffer them (saves VMEM).
    try:
        return pl.BlockSpec(shape, imap, pipeline_mode=pl.Buffered(1))
    except TypeError:                      # older BlockSpec signature
        return pl.BlockSpec(shape, imap)


# ----------------------------------------------------------------------------
# Forward wrapper (hot path: reshape x, repeat t, pallas_call, free reshape).
# ----------------------------------------------------------------------------
def stable_upsampling_forward(packed, x, t, *, b_tile=None):
    """x: (N, H, W, Cin) NHWC, t: (N, Tdim)  ->  (N, 2H, 2W, Cout)."""
    N, H, W, Cin = x.shape
    Tdim = t.shape[-1]
    WCo = packed["b1"].shape[-1]
    Cout = WCo // W
    WCi = W * Cin

    if b_tile is None:
        # M = b_tile*H MXU rows per matmul: 128 is the v5e floor, 256 matches the
        # v6e/v7x 256-wide MXU; prefer >= 2 grid steps so the pipeline overlaps.
        cands = [d for d in (16, 8, 4, 2, 1) if N % d == 0 and d * H <= 256]
        multi = [d for d in cands if N // d >= 2]
        b_tile = (multi or cands)[0]
    BH = b_tile * H
    assert N % b_tile == 0 and BH % 8 == 0

    lp1 = _round_up((W + 2) * Cin, 128)        # lane-aligned halo plane widths
    lp2 = _round_up((W + 2) * Cout, 128)
    shw = _round_up(max(WCi, WCo), 128)

    x_rows = x.reshape(N * H, WCi)             # free reshape: lane-packed rows
    t_rows = jnp.repeat(t, H, axis=0)          # (N*H, Tdim), tiny

    kernel = functools.partial(_stable_upsampling_kernel,
                               H=H, W=W, Cin=Cin, Cout=Cout, BH=BH)
    c2 = lambda n: (0, 0)
    c4 = lambda n: (0, 0, 0, 0)
    c5 = lambda n: (0, 0, 0, 0, 0)

    out = pl.pallas_call(
        kernel,
        out_shape=jax.ShapeDtypeStruct((N * H, 4 * WCo), jnp.float32),
        grid=(N // b_tile,),
        in_specs=[
            pl.BlockSpec((BH, WCi), lambda n: (n, 0)),
            pl.BlockSpec((BH, Tdim), lambda n: (n, 0)),
            _weight_spec((Tdim, WCo), c2),
            _weight_spec((1, WCo), c2),
            _weight_spec((3, 3, WCi, WCo), c4),
            _weight_spec((1, WCo), c2),
            _weight_spec((3, 3, WCo, WCo), c4),
            _weight_spec((1, WCo), c2),
            _weight_spec((2, 2, 3, WCo, 2 * WCo), c5),
            _weight_spec((1, 2 * WCo), c2),
        ],
        out_specs=pl.BlockSpec((BH, 4 * WCo), lambda n: (n, 0)),
        scratch_shapes=[
            pltpu.VMEM((BH + 2, lp1), jnp.float32),       # padded x plane
            pltpu.VMEM((BH + 2, lp2), jnp.float32),       # padded h1 / h2 plane
            pltpu.VMEM((3, BH + 2, shw), jnp.bfloat16),   # hoisted dx-shifted copies
            pltpu.VMEM((BH, 2 * WCo), jnp.float32),       # matmul accumulator
        ],
        compiler_params=pltpu.CompilerParams(
            dimension_semantics=("parallel",),            # megacore-shard the batch
            vmem_limit_bytes=32 * 1024 * 1024),           # actual use ~2.5 MiB
    )(x_rows, t_rows, packed["linw"], packed["linb"],
      packed["w1"], packed["b1"], packed["w2"], packed["b2"],
      packed["wt"], packed["bt"])

    # Lanes are ordered (ry, px, rx, c) and rows (n, py), so this is a pure
    # row-major reshape -- no transpose pass over the 2x-upsampled output.
    return out.reshape(N, 2 * H, 2 * W, Cout)


# ----------------------------------------------------------------------------
# Parameters + pure-JAX f32 reference (for correctness check)
# ----------------------------------------------------------------------------
def init_params(key, cin, cout, tdim):
    ks = jax.random.split(key, 8)

    def w(k, shape):
        v = jax.random.normal(k, shape, jnp.float32) * 0.1
        # keep weights bf16-representable (kernel streams matmul operands in bf16)
        return v.astype(jnp.bfloat16).astype(jnp.float32)

    return {
        "lin_w": w(ks[0], (cout, tdim)), "lin_b": w(ks[1], (cout,)),
        "conv1_w": w(ks[2], (cout, cin, 3, 3)), "conv1_b": w(ks[3], (cout,)),
        "conv2_w": w(ks[4], (cout, cout, 3, 3)), "conv2_b": w(ks[5], (cout,)),
        "up_w": w(ks[6], (cout, cout, 4, 4)), "up_b": w(ks[7], (cout,)),
    }


def _ref_forward(params, x, t):
    hp = lax.Precision.HIGHEST

    def conv(a, w_oihw, b):
        w = jnp.transpose(w_oihw, (2, 3, 1, 0))
        y = lax.conv_general_dilated(
            a, w, (1, 1), [(1, 1), (1, 1)],
            dimension_numbers=("NHWC", "HWIO", "NHWC"), precision=hp)
        return y + b

    temb = jnp.maximum(jnp.dot(t, params["lin_w"].T, precision=hp)
                       + params["lin_b"], 0.0)
    h1 = jnp.maximum(conv(x, params["conv1_w"], params["conv1_b"]), 0.0)
    h1 = h1 + temb[:, None, None, :]
    h2 = jnp.maximum(conv(h1, params["conv2_w"], params["conv2_b"]), 0.0)
    w_eq = jnp.transpose(jnp.flip(params["up_w"], axis=(2, 3)), (2, 3, 0, 1))
    y = lax.conv_general_dilated(
        h2, w_eq, (1, 1), [(2, 2), (2, 2)], lhs_dilation=(2, 2),
        dimension_numbers=("NHWC", "HWIO", "NHWC"), precision=hp)
    return y + params["up_b"]


if __name__ == "__main__":
    key = jax.random.PRNGKey(0)
    # N=16 so the batch-tiled grid has 2 steps of M = 8*16 = 128 MXU rows each.
    N, Cin, Cout, Tdim = 16, 4, 8, 32
    H = W = 16

    k0, k1, k2 = jax.random.split(key, 3)
    x = jax.random.normal(k0, (N, H, W, Cin), jnp.float32)
    t = jax.random.normal(k1, (N, Tdim), jnp.float32)
    params = init_params(k2, Cin, Cout, Tdim)

    packed = prepare_params(params, width=W)       # one-time packing (not per call)
    fwd = jax.jit(stable_upsampling_forward)
    out = fwd(packed, x, t)
    jax.block_until_ready(out)

    ref = _ref_forward(params, x, t)
    assert out.shape == (N, 2 * H, 2 * W, Cout), out.shape
    max_err = float(jnp.max(jnp.abs(out - ref)))
    # bf16 matmul operands (f32 accumulation) vs f32-HIGHEST reference.
    assert jnp.allclose(out, ref, rtol=5e-2, atol=6e-2), max_err

    print("KERNEL_OK")
</pallas_src>

<mosaic_0001>
module attributes {stable_mosaic.version = 11 : i64} {
  func.func @_stable_upsampling_kernel(%arg0: i32, %arg1: memref<128x64xf32, #tpu.memory_space<vmem>>, %arg2: memref<128x32xf32, #tpu.memory_space<vmem>>, %arg3: memref<32x128xbf16, #tpu.memory_space<vmem>>, %arg4: memref<1x128xf32, #tpu.memory_space<vmem>>, %arg5: memref<3x3x64x128xbf16, #tpu.memory_space<vmem>>, %arg6: memref<1x128xf32, #tpu.memory_space<vmem>>, %arg7: memref<3x3x128x128xbf16, #tpu.memory_space<vmem>>, %arg8: memref<1x128xf32, #tpu.memory_space<vmem>>, %arg9: memref<2x2x3x128x256xbf16, #tpu.memory_space<vmem>>, %arg10: memref<1x256xf32, #tpu.memory_space<vmem>>, %arg11: memref<128x512xf32, #tpu.memory_space<vmem>>, %arg12: memref<130x128xf32, #tpu.memory_space<vmem>>, %arg13: memref<130x256xf32, #tpu.memory_space<vmem>>, %arg14: memref<3x130x128xbf16, #tpu.memory_space<vmem>>, %arg15: memref<128x256xf32, #tpu.memory_space<vmem>>) attributes {dimension_semantics = [#tpu.dimension_semantics<parallel>], iteration_bounds = array<i64: 2>, scalar_prefetch = 0 : i64, scratch_operands = 4 : i64, tpu.core_type = #tpu.core_type<tc>, window_params = [{transform_indices = @transform_0, window_bounds = array<i64: 128, 64>}, {transform_indices = @transform_1, window_bounds = array<i64: 128, 32>}, {pipeline_mode = #tpu.pipeline_mode<synchronous>, transform_indices = @transform_2, window_bounds = array<i64: 32, 128>}, {pipeline_mode = #tpu.pipeline_mode<synchronous>, transform_indices = @transform_3, window_bounds = array<i64: 1, 128>}, {pipeline_mode = #tpu.pipeline_mode<synchronous>, transform_indices = @transform_4, window_bounds = array<i64: 3, 3, 64, 128>}, {pipeline_mode = #tpu.pipeline_mode<synchronous>, transform_indices = @transform_5, window_bounds = array<i64: 1, 128>}, {pipeline_mode = #tpu.pipeline_mode<synchronous>, transform_indices = @transform_6, window_bounds = array<i64: 3, 3, 128, 128>}, {pipeline_mode = #tpu.pipeline_mode<synchronous>, transform_indices = @transform_7, window_bounds = array<i64: 1, 128>}, {pipeline_mode = #tpu.pipeline_mode<synchronous>, transform_indices = @transform_8, window_bounds = array<i64: 2, 2, 3, 128, 256>}, {pipeline_mode = #tpu.pipeline_mode<synchronous>, transform_indices = @transform_9, window_bounds = array<i64: 1, 256>}, {transform_indices = @transform_10, window_bounds = array<i64: 128, 512>}]} {
    %0 = tpu.iota {dimensions = array<i32: 0>} : vector<128x1xi32>
    %c16_i32 = arith.constant 16 : i32
    %c0_i32 = arith.constant 0 : i32
    %1 = arith.cmpi eq, %c16_i32, %c0_i32 : i32
    %c1_i32 = arith.constant 1 : i32
    %2 = arith.select %1, %c1_i32, %c16_i32 : i32
    %3 = vector.broadcast %2 : i32 to vector<128x1xi32>
    %4 = arith.remsi %0, %3 : vector<128x1xi32>
    %c0_i32_0 = arith.constant 0 : i32
    %5 = vector.broadcast %c0_i32_0 : i32 to vector<128x1xi32>
    %6 = arith.cmpi ne, %4, %5 : vector<128x1xi32>
    %c0_i32_1 = arith.constant 0 : i32
    %7 = vector.broadcast %c0_i32_1 : i32 to vector<128x1xi32>
    %8 = arith.cmpi slt, %4, %7 : vector<128x1xi32>
    %c0_i32_2 = arith.constant 0 : i32
    %9 = arith.cmpi slt, %2, %c0_i32_2 : i32
    %10 = vector.broadcast %9 : i1 to vector<128x1xi1>
    %11 = vector.broadcast %10 : vector<128x1xi1> to vector<128x1xi1>
    %12 = arith.xori %8, %11 : vector<128x1xi1>
    %13 = arith.andi %12, %6 : vector<128x1xi1>
    %14 = vector.broadcast %2 : i32 to vector<128x1xi32>
    %15 = arith.addi %4, %14 : vector<128x1xi32>
    %16 = arith.select %13, %15, %4 : vector<128x1xi1>, vector<128x1xi32>
    %c0_i32_3 = arith.constant 0 : i32
    %17 = vector.broadcast %c0_i32_3 : i32 to vector<128x1xi32>
    %18 = arith.cmpi ne, %16, %17 : vector<128x1xi32>
    %c15_i32 = arith.constant 15 : i32
    %19 = vector.broadcast %c15_i32 : i32 to vector<128x1xi32>
    %20 = arith.cmpi ne, %16, %19 : vector<128x1xi32>
    %cst = arith.constant 0.000000e+00 : f32
    %21 = vector.broadcast %cst : f32 to vector<130x128xf32>
    %c0 = arith.constant 0 : index
    %c0_4 = arith.constant 0 : index
    %22 = vector.load %arg12[%c0, %c0_4] : memref<130x128xf32, #tpu.memory_space<vmem>>, vector<130x128xf32>
    tpu.vector_store %arg12[%c0, %c0_4], %21 {strides = array<i32>} : memref<130x128xf32, #tpu.memory_space<vmem>>, vector<130x128xf32>,
    %cst_5 = arith.constant 0.000000e+00 : f32
    %23 = vector.broadcast %cst_5 : f32 to vector<130x256xf32>
    %c0_6 = arith.constant 0 : index
    %c0_7 = arith.constant 0 : index
    %24 = vector.load %arg13[%c0_6, %c0_7] : memref<130x256xf32, #tpu.memory_space<vmem>>, vector<130x256xf32>
    tpu.vector_store %arg13[%c0_6, %c0_7], %23 {strides = array<i32>} : memref<130x256xf32, #tpu.memory_space<vmem>>, vector<130x256xf32>,
    %c0_8 = arith.constant 0 : index
    %c0_9 = arith.constant 0 : index
    %25 = vector.load %arg1[%c0_8, %c0_9] : memref<128x64xf32, #tpu.memory_space<vmem>>, vector<128x64xf32>
    %c1 = arith.constant 1 : index
    %c4 = arith.constant 4 : index
    %26 = vector.load %arg12[%c1, %c4] : memref<130x128xf32, #tpu.memory_space<vmem>>, vector<128x64xf32>
    tpu.vector_store %arg12[%c1, %c4], %25 {strides = array<i32>} : memref<130x128xf32, #tpu.memory_space<vmem>>, vector<128x64xf32>,
    %c0_10 = arith.constant 0 : index
    %c0_11 = arith.constant 0 : index
    %27 = vector.load %arg12[%c0_10, %c0_11] : memref<130x128xf32, #tpu.memory_space<vmem>>, vector<130x64xf32>
    %28 = arith.truncf %27 : vector<130x64xf32> to vector<130x64xbf16>
    %c0_12 = arith.constant 0 : index
    %c0_13 = arith.constant 0 : index
    %c0_14 = arith.constant 0 : index
    %29 = vector.load %arg14[%c0_12, %c0_13, %c0_14] : memref<3x130x128xbf16, #tpu.memory_space<vmem>>, vector<1x130x64xbf16>
    %30 = vector.shape_cast %29 : vector<1x130x64xbf16> to vector<130x64xbf16>
    %31 = vector.shape_cast %28 : vector<130x64xbf16> to vector<1x130x64xbf16>
    tpu.vector_store %arg14[%c0_12, %c0_13, %c0_14], %31 {strides = array<i32>} : memref<3x130x128xbf16, #tpu.memory_space<vmem>>, vector<1x130x64xbf16>,
    %c0_15 = arith.constant 0 : index
    %c4_16 = arith.constant 4 : index
    %32 = vector.load %arg12[%c0_15, %c4_16] : memref<130x128xf32, #tpu.memory_space<vmem>>, vector<130x64xf32>
    %33 = arith.truncf %32 : vector<130x64xf32> to vector<130x64xbf16>
    %c1_17 = arith.constant 1 : index
    %c0_18 = arith.constant 0 : index
    %c0_19 = arith.constant 0 : index
    %34 = vector.load %arg14[%c1_17, %c0_18, %c0_19] : memref<3x130x128xbf16, #tpu.memory_space<vmem>>, vector<1x130x64xbf16>
    %35 = vector.shape_cast %34 : vector<1x130x64xbf16> to vector<130x64xbf16>
    %36 = vector.shape_cast %33 : vector<130x64xbf16> to vector<1x130x64xbf16>
    tpu.vector_store %arg14[%c1_17, %c0_18, %c0_19], %36 {strides = array<i32>} : memref<3x130x128xbf16, #tpu.memory_space<vmem>>, vector<1x130x64xbf16>,
    %c0_20 = arith.constant 0 : index
    %c8 = arith.constant 8 : index
    %37 = vector.load %arg12[%c0_20, %c8] : memref<130x128xf32, #tpu.memory_space<vmem>>, vector<130x64xf32>
    %38 = arith.truncf %37 : vector<130x64xf32> to vector<130x64xbf16>
    %c2 = arith.constant 2 : index
    %c0_21 = arith.constant 0 : index
    %c0_22 = arith.constant 0 : index
    %39 = vector.load %arg14[%c2, %c0_21, %c0_22] : memref<3x130x128xbf16, #tpu.memory_space<vmem>>, vector<1x130x64xbf16>
    %40 = vector.shape_cast %39 : vector<1x130x64xbf16> to vector<130x64xbf16>
    %41 = vector.shape_cast %38 : vector<130x64xbf16> to vector<1x130x64xbf16>
    tpu.vector_store %arg14[%c2, %c0_21, %c0_22], %41 {strides = array<i32>} : memref<3x130x128xbf16, #tpu.memory_space<vmem>>, vector<1x130x64xbf16>,
    %c0_23 = arith.constant 0 : index
    %c0_24 = arith.constant 0 : index
    %c0_25 = arith.constant 0 : index
    %42 = vector.load %arg14[%c0_23, %c0_24, %c0_25] : memref<3x130x128xbf16, #tpu.memory_space<vmem>>, vector<1x128x64xbf16>
    %43 = vector.shape_cast %42 : vector<1x128x64xbf16> to vector<128x64xbf16>
    %c0_26 = arith.constant 0 : index
    %c0_27 = arith.constant 0 : index
    %c0_28 = arith.constant 0 : index
    %c0_29 = arith.constant 0 : index
    %44 = vector.load %arg5[%c0_26, %c0_27, %c0_28, %c0_29] : memref<3x3x64x128xbf16, #tpu.memory_space<vmem>>, vector<1x1x64x128xbf16>
    %45 = vector.shape_cast %44 : vector<1x1x64x128xbf16> to vector<64x128xbf16>
    %cst_30 = arith.constant dense<0.000000e+00> : vector<128x128xf32>
    %46 = tpu.matmul %43, %45, %cst_30 {dimension_numbers = #tpu.dot_dimension_numbers<[1], [0], [0], [1], [0, 0, 1, 1], [], []>} : vector<128x64xbf16>, vector<64x128xbf16>, vector<128x128xf32> -> vector<128x128xf32>
    %c1_31 = arith.constant 1 : index
    %c0_32 = arith.constant 0 : index
    %c0_33 = arith.constant 0 : index
    %47 = vector.load %arg14[%c1_31, %c0_32, %c0_33] : memref<3x130x128xbf16, #tpu.memory_space<vmem>>, vector<1x128x64xbf16>
    %48 = vector.shape_cast %47 : vector<1x128x64xbf16> to vector<128x64xbf16>
    %c0_34 = arith.constant 0 : index
    %c1_35 = arith.constant 1 : index
    %c0_36 = arith.constant 0 : index
    %c0_37 = arith.constant 0 : index
    %49 = vector.load %arg5[%c0_34, %c1_35, %c0_36, %c0_37] : memref<3x3x64x128xbf16, #tpu.memory_space<vmem>>, vector<1x1x64x128xbf16>
    %50 = vector.shape_cast %49 : vector<1x1x64x128xbf16> to vector<64x128xbf16>
    %cst_38 = arith.constant dense<0.000000e+00> : vector<128x128xf32>
    %51 = tpu.matmul %48, %50, %cst_38 {dimension_numbers = #tpu.dot_dimension_numbers<[1], [0], [0], [1], [0, 0, 1, 1], [], []>} : vector<128x64xbf16>, vector<64x128xbf16>, vector<128x128xf32> -> vector<128x128xf32>
    %52 = arith.addf %46, %51 : vector<128x128xf32>
    %c2_39 = arith.constant 2 : index
    %c0_40 = arith.constant 0 : index
    %c0_41 = arith.constant 0 : index
    %53 = vector.load %arg14[%c2_39, %c0_40, %c0_41] : memref<3x130x128xbf16, #tpu.memory_space<vmem>>, vector<1x128x64xbf16>
    %54 = vector.shape_cast %53 : vector<1x128x64xbf16> to vector<128x64xbf16>
    %c0_42 = arith.constant 0 : index
    %c2_43 = arith.constant 2 : index
    %c0_44 = arith.constant 0 : index
    %c0_45 = arith.constant 0 : index
    %55 = vector.load %arg5[%c0_42, %c2_43, %c0_44, %c0_45] : memref<3x3x64x128xbf16, #tpu.memory_space<vmem>>, vector<1x1x64x128xbf16>
    %56 = vector.shape_cast %55 : vector<1x1x64x128xbf16> to vector<64x128xbf16>
    %cst_46 = arith.constant dense<0.000000e+00> : vector<128x128xf32>
    %57 = tpu.matmul %54, %56, %cst_46 {dimension_numbers = #tpu.dot_dimension_numbers<[1], [0], [0], [1], [0, 0, 1, 1], [], []>} : vector<128x64xbf16>, vector<64x128xbf16>, vector<128x128xf32> -> vector<128x128xf32>
    %58 = arith.addf %52, %57 : vector<128x128xf32>
    %cst_47 = arith.constant 0.000000e+00 : f32
    %59 = vector.shape_cast %18 : vector<128x1xi1> to vector<128x1xi1>
    %60 = vector.broadcast %59 : vector<128x1xi1> to vector<128x128xi1>
    %61 = vector.broadcast %cst_47 : f32 to vector<128x128xf32>
    %62 = arith.select %60, %58, %61 : vector<128x128xi1>, vector<128x128xf32>
    %c0_48 = arith.constant 0 : index
    %c0_49 = arith.constant 0 : index
    %63 = vector.load %arg15[%c0_48, %c0_49] : memref<128x256xf32, #tpu.memory_space<vmem>>, vector<128x128xf32>
    tpu.vector_store %arg15[%c0_48, %c0_49], %62 {strides = array<i32>} : memref<128x256xf32, #tpu.memory_space<vmem>>, vector<128x128xf32>,
    %c0_50 = arith.constant 0 : index
    %c1_51 = arith.constant 1 : index
    %c0_52 = arith.constant 0 : index
    %64 = vector.load %arg14[%c0_50, %c1_51, %c0_52] : memref<3x130x128xbf16, #tpu.memory_space<vmem>>, vector<1x128x64xbf16>
    %65 = vector.shape_cast %64 : vector<1x128x64xbf16> to vector<128x64xbf16>
    %c1_53 = arith.constant 1 : index
    %c0_54 = arith.constant 0 : index
    %c0_55 = arith.constant 0 : index
    %c0_56 = arith.constant 0 : index
    %66 = vector.load %arg5[%c1_53, %c0_54, %c0_55, %c0_56] : memref<3x3x64x128xbf16, #tpu.memory_space<vmem>>, vector<1x1x64x128xbf16>
    %67 = vector.shape_cast %66 : vector<1x1x64x128xbf16> to vector<64x128xbf16>
    %cst_57 = arith.constant dense<0.000000e+00> : vector<128x128xf32>
    %68 = tpu.matmul %65, %67, %cst_57 {dimension_numbers = #tpu.dot_dimension_numbers<[1], [0], [0], [1], [0, 0, 1, 1], [], []>} : vector<128x64xbf16>, vector<64x128xbf16>, vector<128x128xf32> -> vector<128x128xf32>
    %c1_58 = arith.constant 1 : index
    %c1_59 = arith.constant 1 : index
    %c0_60 = arith.constant 0 : index
    %69 = vector.load %arg14[%c1_58, %c1_59, %c0_60] : memref<3x130x128xbf16, #tpu.memory_space<vmem>>, vector<1x128x64xbf16>
    %70 = vector.shape_cast %69 : vector<1x128x64xbf16> to vector<128x64xbf16>
    %c1_61 = arith.constant 1 : index
    %c1_62 = arith.constant 1 : index
    %c0_63 = arith.constant 0 : index
    %c0_64 = arith.constant 0 : index
    %71 = vector.load %arg5[%c1_61, %c1_62, %c0_63, %c0_64] : memref<3x3x64x128xbf16, #tpu.memory_space<vmem>>, vector<1x1x64x128xbf16>
    %72 = vector.shape_cast %71 : vector<1x1x64x128xbf16> to vector<64x128xbf16>
    %cst_65 = arith.constant dense<0.000000e+00> : vector<128x128xf32>
    %73 = tpu.matmul %70, %72, %cst_65 {dimension_numbers = #tpu.dot_dimension_numbers<[1], [0], [0], [1], [0, 0, 1, 1], [], []>} : vector<128x64xbf16>, vector<64x128xbf16>, vector<128x128xf32> -> vector<128x128xf32>
    %74 = arith.addf %68, %73 : vector<128x128xf32>
    %c2_66 = arith.constant 2 : index
    %c1_67 = arith.constant 1 : index
    %c0_68 = arith.constant 0 : index
    %75 = vector.load %arg14[%c2_66, %c1_67, %c0_68] : memref<3x130x128xbf16, #tpu.memory_space<vmem>>, vector<1x128x64xbf16>
    %76 = vector.shape_cast %75 : vector<1x128x64xbf16> to vector<128x64xbf16>
    %c1_69 = arith.constant 1 : index
    %c2_70 = arith.constant 2 : index
    %c0_71 = arith.constant 0 : index
    %c0_72 = arith.constant 0 : index
    %77 = vector.load %arg5[%c1_69, %c2_70, %c0_71, %c0_72] : memref<3x3x64x128xbf16, #tpu.memory_space<vmem>>, vector<1x1x64x128xbf16>
    %78 = vector.shape_cast %77 : vector<1x1x64x128xbf16> to vector<64x128xbf16>
    %cst_73 = arith.constant dense<0.000000e+00> : vector<128x128xf32>
    %79 = tpu.matmul %76, %78, %cst_73 {dimension_numbers = #tpu.dot_dimension_numbers<[1], [0], [0], [1], [0, 0, 1, 1], [], []>} : vector<128x64xbf16>, vector<64x128xbf16>, vector<128x128xf32> -> vector<128x128xf32>
    %80 = arith.addf %74, %79 : vector<128x128xf32>
    %c0_74 = arith.constant 0 : index
    %c0_75 = arith.constant 0 : index
    %81 = vector.load %arg15[%c0_74, %c0_75] : memref<128x256xf32, #tpu.memory_space<vmem>>, vector<128x128xf32>
    %82 = arith.addf %81, %80 : vector<128x128xf32>
    %c0_76 = arith.constant 0 : index
    %c0_77 = arith.constant 0 : index
    %83 = vector.load %arg15[%c0_76, %c0_77] : memref<128x256xf32, #tpu.memory_space<vmem>>, vector<128x128xf32>
    tpu.vector_store %arg15[%c0_76, %c0_77], %82 {strides = array<i32>} : memref<128x256xf32, #tpu.memory_space<vmem>>, vector<128x128xf32>,
    %c0_78 = arith.constant 0 : index
    %c2_79 = arith.constant 2 : index
    %c0_80 = arith.constant 0 : index
    %84 = vector.load %arg14[%c0_78, %c2_79, %c0_80] : memref<3x130x128xbf16, #tpu.memory_space<vmem>>, vector<1x128x64xbf16>
    %85 = vector.shape_cast %84 : vector<1x128x64xbf16> to vector<128x64xbf16>
    %c2_81 = arith.constant 2 : index
    %c0_82 = arith.constant 0 : index
    %c0_83 = arith.constant 0 : index
    %c0_84 = arith.constant 0 : index
    %86 = vector.load %arg5[%c2_81, %c0_82, %c0_83, %c0_84] : memref<3x3x64x128xbf16, #tpu.memory_space<vmem>>, vector<1x1x64x128xbf16>
    %87 = vector.shape_cast %86 : vector<1x1x64x128xbf16> to vector<64x128xbf16>
    %cst_85 = arith.constant dense<0.000000e+00> : vector<128x128xf32>
    %88 = tpu.matmul %85, %87, %cst_85 {dimension_numbers = #tpu.dot_dimension_numbers<[1], [0], [0], [1], [0, 0, 1, 1], [], []>} : vector<128x64xbf16>, vector<64x128xbf16>, vector<128x128xf32> -> vector<128x128xf32>
    %c1_86 = arith.constant 1 : index
    %c2_87 = arith.constant 2 : index
    %c0_88 = arith.constant 0 : index
    %89 = vector.load %arg14[%c1_86, %c2_87, %c0_88] : memref<3x130x128xbf16, #tpu.memory_space<vmem>>, vector<1x128x64xbf16>
    %90 = vector.shape_cast %89 : vector<1x128x64xbf16> to vector<128x64xbf16>
    %c2_89 = arith.constant 2 : index
    %c1_90 = arith.constant 1 : index
    %c0_91 = arith.constant 0 : index
    %c0_92 = arith.constant 0 : index
    %91 = vector.load %arg5[%c2_89, %c1_90, %c0_91, %c0_92] : memref<3x3x64x128xbf16, #tpu.memory_space<vmem>>, vector<1x1x64x128xbf16>
    %92 = vector.shape_cast %91 : vector<1x1x64x128xbf16> to vector<64x128xbf16>
    %cst_93 = arith.constant dense<0.000000e+00> : vector<128x128xf32>
    %93 = tpu.matmul %90, %92, %cst_93 {dimension_numbers = #tpu.dot_dimension_numbers<[1], [0], [0], [1], [0, 0, 1, 1], [], []>} : vector<128x64xbf16>, vector<64x128xbf16>, vector<128x128xf32> -> vector<128x128xf32>
    %94 = arith.addf %88, %93 : vector<128x128xf32>
    %c2_94 = arith.constant 2 : index
    %c2_95 = arith.constant 2 : index
    %c0_96 = arith.constant 0 : index
    %95 = vector.load %arg14[%c2_94, %c2_95, %c0_96] : memref<3x130x128xbf16, #tpu.memory_space<vmem>>, vector<1x128x64xbf16>
    %96 = vector.shape_cast %95 : vector<1x128x64xbf16> to vector<128x64xbf16>
    %c2_97 = arith.constant 2 : index
    %c2_98 = arith.constant 2 : index
    %c0_99 = arith.constant 0 : index
    %c0_100 = arith.constant 0 : index
    %97 = vector.load %arg5[%c2_97, %c2_98, %c0_99, %c0_100] : memref<3x3x64x128xbf16, #tpu.memory_space<vmem>>, vector<1x1x64x128xbf16>
    %98 = vector.shape_cast %97 : vector<1x1x64x128xbf16> to vector<64x128xbf16>
    %cst_101 = arith.constant dense<0.000000e+00> : vector<128x128xf32>
    %99 = tpu.matmul %96, %98, %cst_101 {dimension_numbers = #tpu.dot_dimension_numbers<[1], [0], [0], [1], [0, 0, 1, 1], [], []>} : vector<128x64xbf16>, vector<64x128xbf16>, vector<128x128xf32> -> vector<128x128xf32>
    %100 = arith.addf %94, %99 : vector<128x128xf32>
    %cst_102 = arith.constant 0.000000e+00 : f32
    %101 = vector.shape_cast %20 : vector<128x1xi1> to vector<128x1xi1>
    %102 = vector.broadcast %101 : vector<128x1xi1> to vector<128x128xi1>
    %103 = vector.broadcast %cst_102 : f32 to vector<128x128xf32>
    %104 = arith.select %102, %100, %103 : vector<128x128xi1>, vector<128x128xf32>
    %c0_103 = arith.constant 0 : index
    %c0_104 = arith.constant 0 : index
    %105 = vector.load %arg15[%c0_103, %c0_104] : memref<128x256xf32, #tpu.memory_space<vmem>>, vector<128x128xf32>
    %106 = arith.addf %105, %104 : vector<128x128xf32>
    %c0_105 = arith.constant 0 : index
    %c0_106 = arith.constant 0 : index
    %107 = vector.load %arg15[%c0_105, %c0_106] : memref<128x256xf32, #tpu.memory_space<vmem>>, vector<128x128xf32>
    tpu.vector_store %arg15[%c0_105, %c0_106], %106 {strides = array<i32>} : memref<128x256xf32, #tpu.memory_space<vmem>>, vector<128x128xf32>,
    %c0_107 = arith.constant 0 : index
    %c0_108 = arith.constant 0 : index
    %108 = vector.load %arg2[%c0_107, %c0_108] : memref<128x32xf32, #tpu.memory_space<vmem>>, vector<128x32xf32>
    %109 = arith.truncf %108 : vector<128x32xf32> to vector<128x32xbf16>
    %c0_109 = arith.constant 0 : index
    %c0_110 = arith.constant 0 : index
    %110 = vector.load %arg3[%c0_109, %c0_110] : memref<32x128xbf16, #tpu.memory_space<vmem>>, vector<32x128xbf16>
    %cst_111 = arith.constant dense<0.000000e+00> : vector<128x128xf32>
    %111 = tpu.matmul %109, %110, %cst_111 {dimension_numbers = #tpu.dot_dimension_numbers<[1], [0], [0], [1], [0, 0, 1, 1], [], []>} : vector<128x32xbf16>, vector<32x128xbf16>, vector<128x128xf32> -> vector<128x128xf32>
    %c0_112 = arith.constant 0 : index
    %c0_113 = arith.constant 0 : index
    %112 = vector.load %arg4[%c0_112, %c0_113] : memref<1x128xf32, #tpu.memory_space<vmem>>, vector<1x128xf32>
    %113 = vector.broadcast %112 : vector<1x128xf32> to vector<128x128xf32>
    %114 = arith.addf %111, %113 : vector<128x128xf32>
    %cst_114 = arith.constant 0.000000e+00 : f32
    %115 = vector.broadcast %cst_114 : f32 to vector<128x128xf32>
    %116 = arith.maximumf %114, %115 : vector<128x128xf32>
    %c0_115 = arith.constant 0 : index
    %c0_116 = arith.constant 0 : index
    %117 = vector.load %arg15[%c0_115, %c0_116] : memref<128x256xf32, #tpu.memory_space<vmem>>, vector<128x128xf32>
    %c0_117 = arith.constant 0 : index
    %c0_118 = arith.constant 0 : index
    %118 = vector.load %arg6[%c0_117, %c0_118] : memref<1x128xf32, #tpu.memory_space<vmem>>, vector<1x128xf32>
    %119 = vector.broadcast %118 : vector<1x128xf32> to vector<128x128xf32>
    %120 = arith.addf %117, %119 : vector<128x128xf32>
    %cst_119 = arith.constant 0.000000e+00 : f32
    %121 = vector.broadcast %cst_119 : f32 to vector<128x128xf32>
    %122 = arith.maximumf %120, %121 : vector<128x128xf32>
    %123 = arith.addf %122, %116 : vector<128x128xf32>
    %c1_120 = arith.constant 1 : index
    %c8_121 = arith.constant 8 : index
    %124 = vector.load %arg13[%c1_120, %c8_121] : memref<130x256xf32, #tpu.memory_space<vmem>>, vector<128x128xf32>
    tpu.vector_store %arg13[%c1_120, %c8_121], %123 {strides = array<i32>} : memref<130x256xf32, #tpu.memory_space<vmem>>, vector<128x128xf32>,
    %c0_122 = arith.constant 0 : index
    %c0_123 = arith.constant 0 : index
    %125 = vector.load %arg13[%c0_122, %c0_123] : memref<130x256xf32, #tpu.memory_space<vmem>>, vector<130x128xf32>
    %126 = arith.truncf %125 : vector<130x128xf32> to vector<130x128xbf16>
    %c0_124 = arith.constant 0 : index
    %c0_125 = arith.constant 0 : index
    %c0_126 = arith.constant 0 : index
    %127 = vector.load %arg14[%c0_124, %c0_125, %c0_126] : memref<3x130x128xbf16, #tpu.memory_space<vmem>>, vector<1x130x128xbf16>
    %128 = vector.shape_cast %127 : vector<1x130x128xbf16> to vector<130x128xbf16>
    %129 = vector.shape_cast %126 : vector<130x128xbf16> to vector<1x130x128xbf16>
    tpu.vector_store %arg14[%c0_124, %c0_125, %c0_126], %129 {strides = array<i32>} : memref<3x130x128xbf16, #tpu.memory_space<vmem>>, vector<1x130x128xbf16>,
    %c0_127 = arith.constant 0 : index
    %c8_128 = arith.constant 8 : index
    %130 = vector.load %arg13[%c0_127, %c8_128] : memref<130x256xf32, #tpu.memory_space<vmem>>, vector<130x128xf32>
    %131 = arith.truncf %130 : vector<130x128xf32> to vector<130x128xbf16>
    %c1_129 = arith.constant 1 : index
    %c0_130 = arith.constant 0 : index
    %c0_131 = arith.constant 0 : index
    %132 = vector.load %arg14[%c1_129, %c0_130, %c0_131] : memref<3x130x128xbf16, #tpu.memory_space<vmem>>, vector<1x130x128xbf16>
    %133 = vector.shape_cast %132 : vector<1x130x128xbf16> to vector<130x128xbf16>
    %134 = vector.shape_cast %131 : vector<130x128xbf16> to vector<1x130x128xbf16>
    tpu.vector_store %arg14[%c1_129, %c0_130, %c0_131], %134 {strides = array<i32>} : memref<3x130x128xbf16, #tpu.memory_space<vmem>>, vector<1x130x128xbf16>,
    %c0_132 = arith.constant 0 : index
    %c16 = arith.constant 16 : index
    %135 = vector.load %arg13[%c0_132, %c16] : memref<130x256xf32, #tpu.memory_space<vmem>>, vector<130x128xf32>
    %136 = arith.truncf %135 : vector<130x128xf32> to vector<130x128xbf16>
    %c2_133 = arith.constant 2 : index
    %c0_134 = arith.constant 0 : index
    %c0_135 = arith.constant 0 : index
    %137 = vector.load %arg14[%c2_133, %c0_134, %c0_135] : memref<3x130x128xbf16, #tpu.memory_space<vmem>>, vector<1x130x128xbf16>
    %138 = vector.shape_cast %137 : vector<1x130x128xbf16> to vector<130x128xbf16>
    %139 = vector.shape_cast %136 : vector<130x128xbf16> to vector<1x130x128xbf16>
    tpu.vector_store %arg14[%c2_133, %c0_134, %c0_135], %139 {strides = array<i32>} : memref<3x130x128xbf16, #tpu.memory_space<vmem>>, vector<1x130x128xbf16>,
    %c0_136 = arith.constant 0 : index
    %c0_137 = arith.constant 0 : index
    %c0_138 = arith.constant 0 : index
    %140 = vector.load %arg14[%c0_136, %c0_137, %c0_138] : memref<3x130x128xbf16, #tpu.memory_space<vmem>>, vector<1x128x128xbf16>
    %141 = vector.shape_cast %140 : vector<1x128x128xbf16> to vector<128x128xbf16>
    %c0_139 = arith.constant 0 : index
    %c0_140 = arith.constant 0 : index
    %c0_141 = arith.constant 0 : index
    %c0_142 = arith.constant 0 : index
    %142 = vector.load %arg7[%c0_139, %c0_140, %c0_141, %c0_142] : memref<3x3x128x128xbf16, #tpu.memory_space<vmem>>, vector<1x1x128x128xbf16>
    %143 = vector.shape_cast %142 : vector<1x1x128x128xbf16> to vector<128x128xbf16>
    %cst_143 = arith.constant dense<0.000000e+00> : vector<128x128xf32>
    %144 = tpu.matmul %141, %143, %cst_143 {dimension_numbers = #tpu.dot_dimension_numbers<[1], [0], [0], [1], [0, 0, 1, 1], [], []>} : vector<128x128xbf16>, vector<128x128xbf16>, vector<128x128xf32> -> vector<128x128xf32>
    %c1_144 = arith.constant 1 : index
    %c0_145 = arith.constant 0 : index
    %c0_146 = arith.constant 0 : index
    %145 = vector.load %arg14[%c1_144, %c0_145, %c0_146] : memref<3x130x128xbf16, #tpu.memory_space<vmem>>, vector<1x128x128xbf16>
    %146 = vector.shape_cast %145 : vector<1x128x128xbf16> to vector<128x128xbf16>
    %c0_147 = arith.constant 0 : index
    %c1_148 = arith.constant 1 : index
    %c0_149 = arith.constant 0 : index
    %c0_150 = arith.constant 0 : index
    %147 = vector.load %arg7[%c0_147, %c1_148, %c0_149, %c0_150] : memref<3x3x128x128xbf16, #tpu.memory_space<vmem>>, vector<1x1x128x128xbf16>
    %148 = vector.shape_cast %147 : vector<1x1x128x128xbf16> to vector<128x128xbf16>
    %cst_151 = arith.constant dense<0.000000e+00> : vector<128x128xf32>
    %149 = tpu.matmul %146, %148, %cst_151 {dimension_numbers = #tpu.dot_dimension_numbers<[1], [0], [0], [1], [0, 0, 1, 1], [], []>} : vector<128x128xbf16>, vector<128x128xbf16>, vector<128x128xf32> -> vector<128x128xf32>
    %150 = arith.addf %144, %149 : vector<128x128xf32>
    %c2_152 = arith.constant 2 : index
    %c0_153 = arith.constant 0 : index
    %c0_154 = arith.constant 0 : index
    %151 = vector.load %arg14[%c2_152, %c0_153, %c0_154] : memref<3x130x128xbf16, #tpu.memory_space<vmem>>, vector<1x128x128xbf16>
    %152 = vector.shape_cast %151 : vector<1x128x128xbf16> to vector<128x128xbf16>
    %c0_155 = arith.constant 0 : index
    %c2_156 = arith.constant 2 : index
    %c0_157 = arith.constant 0 : index
    %c0_158 = arith.constant 0 : index
    %153 = vector.load %arg7[%c0_155, %c2_156, %c0_157, %c0_158] : memref<3x3x128x128xbf16, #tpu.memory_space<vmem>>, vector<1x1x128x128xbf16>
    %154 = vector.shape_cast %153 : vector<1x1x128x128xbf16> to vector<128x128xbf16>
    %cst_159 = arith.constant dense<0.000000e+00> : vector<128x128xf32>
    %155 = tpu.matmul %152, %154, %cst_159 {dimension_numbers = #tpu.dot_dimension_numbers<[1], [0], [0], [1], [0, 0, 1, 1], [], []>} : vector<128x128xbf16>, vector<128x128xbf16>, vector<128x128xf32> -> vector<128x128xf32>
    %156 = arith.addf %150, %155 : vector<128x128xf32>
    %cst_160 = arith.constant 0.000000e+00 : f32
    %157 = vector.shape_cast %18 : vector<128x1xi1> to vector<128x1xi1>
    %158 = vector.broadcast %157 : vector<128x1xi1> to vector<128x128xi1>
    %159 = vector.broadcast %cst_160 : f32 to vector<128x128xf32>
    %160 = arith.select %158, %156, %159 : vector<128x128xi1>, vector<128x128xf32>
    %c0_161 = arith.constant 0 : index
    %c0_162 = arith.constant 0 : index
    %161 = vector.load %arg15[%c0_161, %c0_162] : memref<128x256xf32, #tpu.memory_space<vmem>>, vector<128x128xf32>
    tpu.vector_store %arg15[%c0_161, %c0_162], %160 {strides = array<i32>} : memref<128x256xf32, #tpu.memory_space<vmem>>, vector<128x128xf32>,
    %c0_163 = arith.constant 0 : index
    %c1_164 = arith.constant 1 : index
    %c0_165 = arith.constant 0 : index
    %162 = vector.load %arg14[%c0_163, %c1_164, %c0_165] : memref<3x130x128xbf16, #tpu.memory_space<vmem>>, vector<1x128x128xbf16>
    %163 = vector.shape_cast %162 : vector<1x128x128xbf16> to vector<128x128xbf16>
    %c1_166 = arith.constant 1 : index
    %c0_167 = arith.constant 0 : index
    %c0_168 = arith.constant 0 : index
    %c0_169 = arith.constant 0 : index
    %164 = vector.load %arg7[%c1_166, %c0_167, %c0_168, %c0_169] : memref<3x3x128x128xbf16, #tpu.memory_space<vmem>>, vector<1x1x128x128xbf16>
    %165 = vector.shape_cast %164 : vector<1x1x128x128xbf16> to vector<128x128xbf16>
    %cst_170 = arith.constant dense<0.000000e+00> : vector<128x128xf32>
    %166 = tpu.matmul %163, %165, %cst_170 {dimension_numbers = #tpu.dot_dimension_numbers<[1], [0], [0], [1], [0, 0, 1, 1], [], []>} : vector<128x128xbf16>, vector<128x128xbf16>, vector<128x128xf32> -> vector<128x128xf32>
    %c1_171 = arith.constant 1 : index
    %c1_172 = arith.constant 1 : index
    %c0_173 = arith.constant 0 : index
    %167 = vector.load %arg14[%c1_171, %c1_172, %c0_173] : memref<3x130x128xbf16, #tpu.memory_space<vmem>>, vector<1x128x128xbf16>
    %168 = vector.shape_cast %167 : vector<1x128x128xbf16> to vector<128x128xbf16>
    %c1_174 = arith.constant 1 : index
    %c1_175 = arith.constant 1 : index
    %c0_176 = arith.constant 0 : index
    %c0_177 = arith.constant 0 : index
    %169 = vector.load %arg7[%c1_174, %c1_175, %c0_176, %c0_177] : memref<3x3x128x128xbf16, #tpu.memory_space<vmem>>, vector<1x1x128x128xbf16>
    %170 = vector.shape_cast %169 : vector<1x1x128x128xbf16> to vector<128x128xbf16>
    %cst_178 = arith.constant dense<0.000000e+00> : vector<128x128xf32>
    %171 = tpu.matmul %168, %170, %cst_178 {dimension_numbers = #tpu.dot_dimension_numbers<[1], [0], [0], [1], [0, 0, 1, 1], [], []>} : vector<128x128xbf16>, vector<128x128xbf16>, vector<128x128xf32> -> vector<128x128xf32>
    %172 = arith.addf %166, %171 : vector<128x128xf32>
    %c2_179 = arith.constant 2 : index
    %c1_180 = arith.constant 1 : index
    %c0_181 = arith.constant 0 : index
    %173 = vector.load %arg14[%c2_179, %c1_180, %c0_181] : memref<3x130x128xbf16, #tpu.memory_space<vmem>>, vector<1x128x128xbf16>
    %174 = vector.shape_cast %173 : vector<1x128x128xbf16> to vector<128x128xbf16>
    %c1_182 = arith.constant 1 : index
    %c2_183 = arith.constant 2 : index
    %c0_184 = arith.constant 0 : index
    %c0_185 = arith.constant 0 : index
    %175 = vector.load %arg7[%c1_182, %c2_183, %c0_184, %c0_185] : memref<3x3x128x128xbf16, #tpu.memory_space<vmem>>, vector<1x1x128x128xbf16>
    %176 = vector.shape_cast %175 : vector<1x1x128x128xbf16> to vector<128x128xbf16>
    %cst_186 = arith.constant dense<0.000000e+00> : vector<128x128xf32>
    %177 = tpu.matmul %174, %176, %cst_186 {dimension_numbers = #tpu.dot_dimension_numbers<[1], [0], [0], [1], [0, 0, 1, 1], [], []>} : vector<128x128xbf16>, vector<128x128xbf16>, vector<128x128xf32> -> vector<128x128xf32>
    %178 = arith.addf %172, %177 : vector<128x128xf32>
    %c0_187 = arith.constant 0 : index
    %c0_188 = arith.constant 0 : index
    %179 = vector.load %arg15[%c0_187, %c0_188] : memref<128x256xf32, #tpu.memory_space<vmem>>, vector<128x128xf32>
    %180 = arith.addf %179, %178 : vector<128x128xf32>
    %c0_189 = arith.constant 0 : index
    %c0_190 = arith.constant 0 : index
    %181 = vector.load %arg15[%c0_189, %c0_190] : memref<128x256xf32, #tpu.memory_space<vmem>>, vector<128x128xf32>
    tpu.vector_store %arg15[%c0_189, %c0_190], %180 {strides = array<i32>} : memref<128x256xf32, #tpu.memory_space<vmem>>, vector<128x128xf32>,
    %c0_191 = arith.constant 0 : index
    %c2_192 = arith.constant 2 : index
    %c0_193 = arith.constant 0 : index
    %182 = vector.load %arg14[%c0_191, %c2_192, %c0_193] : memref<3x130x128xbf16, #tpu.memory_space<vmem>>, vector<1x128x128xbf16>
    %183 = vector.shape_cast %182 : vector<1x128x128xbf16> to vector<128x128xbf16>
    %c2_194 = arith.constant 2 : index
    %c0_195 = arith.constant 0 : index
    %c0_196 = arith.constant 0 : index
    %c0_197 = arith.constant 0 : index
    %184 = vector.load %arg7[%c2_194, %c0_195, %c0_196, %c0_197] : memref<3x3x128x128xbf16, #tpu.memory_space<vmem>>, vector<1x1x128x128xbf16>
    %185 = vector.shape_cast %184 : vector<1x1x128x128xbf16> to vector<128x128xbf16>
    %cst_198 = arith.constant dense<0.000000e+00> : vector<128x128xf32>
    %186 = tpu.matmul %183, %185, %cst_198 {dimension_numbers = #tpu.dot_dimension_numbers<[1], [0], [0], [1], [0, 0, 1, 1], [], []>} : vector<128x128xbf16>, vector<128x128xbf16>, vector<128x128xf32> -> vector<128x128xf32>
    %c1_199 = arith.constant 1 : index
    %c2_200 = arith.constant 2 : index
    %c0_201 = arith.constant 0 : index
    %187 = vector.load %arg14[%c1_199, %c2_200, %c0_201] : memref<3x130x128xbf16, #tpu.memory_space<vmem>>, vector<1x128x128xbf16>
    %188 = vector.shape_cast %187 : vector<1x128x128xbf16> to vector<128x128xbf16>
    %c2_202 = arith.constant 2 : index
    %c1_203 = arith.constant 1 : index
    %c0_204 = arith.constant 0 : index
    %c0_205 = arith.constant 0 : index
    %189 = vector.load %arg7[%c2_202, %c1_203, %c0_204, %c0_205] : memref<3x3x128x128xbf16, #tpu.memory_space<vmem>>, vector<1x1x128x128xbf16>
    %190 = vector.shape_cast %189 : vector<1x1x128x128xbf16> to vector<128x128xbf16>
    %cst_206 = arith.constant dense<0.000000e+00> : vector<128x128xf32>
    %191 = tpu.matmul %188, %190, %cst_206 {dimension_numbers = #tpu.dot_dimension_numbers<[1], [0], [0], [1], [0, 0, 1, 1], [], []>} : vector<128x128xbf16>, vector<128x128xbf16>, vector<128x128xf32> -> vector<128x128xf32>
    %192 = arith.addf %186, %191 : vector<128x128xf32>
    %c2_207 = arith.constant 2 : index
    %c2_208 = arith.constant 2 : index
    %c0_209 = arith.constant 0 : index
    %193 = vector.load %arg14[%c2_207, %c2_208, %c0_209] : memref<3x130x128xbf16, #tpu.memory_space<vmem>>, vector<1x128x128xbf16>
    %194 = vector.shape_cast %193 : vector<1x128x128xbf16> to vector<128x128xbf16>
    %c2_210 = arith.constant 2 : index
    %c2_211 = arith.constant 2 : index
    %c0_212 = arith.constant 0 : index
    %c0_213 = arith.constant 0 : index
    %195 = vector.load %arg7[%c2_210, %c2_211, %c0_212, %c0_213] : memref<3x3x128x128xbf16, #tpu.memory_space<vmem>>, vector<1x1x128x128xbf16>
    %196 = vector.shape_cast %195 : vector<1x1x128x128xbf16> to vector<128x128xbf16>
    %cst_214 = arith.constant dense<0.000000e+00> : vector<128x128xf32>
    %197 = tpu.matmul %194, %196, %cst_214 {dimension_numbers = #tpu.dot_dimension_numbers<[1], [0], [0], [1], [0, 0, 1, 1], [], []>} : vector<128x128xbf16>, vector<128x128xbf16>, vector<128x128xf32> -> vector<128x128xf32>
    %198 = arith.addf %192, %197 : vector<128x128xf32>
    %cst_215 = arith.constant 0.000000e+00 : f32
    %199 = vector.shape_cast %20 : vector<128x1xi1> to vector<128x1xi1>
    %200 = vector.broadcast %199 : vector<128x1xi1> to vector<128x128xi1>
    %201 = vector.broadcast %cst_215 : f32 to vector<128x128xf32>
    %202 = arith.select %200, %198, %201 : vector<128x128xi1>, vector<128x128xf32>
    %c0_216 = arith.constant 0 : index
    %c0_217 = arith.constant 0 : index
    %203 = vector.load %arg15[%c0_216, %c0_217] : memref<128x256xf32, #tpu.memory_space<vmem>>, vector<128x128xf32>
    %204 = arith.addf %203, %202 : vector<128x128xf32>
    %c0_218 = arith.constant 0 : index
    %c0_219 = arith.constant 0 : index
    %205 = vector.load %arg15[%c0_218, %c0_219] : memref<128x256xf32, #tpu.memory_space<vmem>>, vector<128x128xf32>
    tpu.vector_store %arg15[%c0_218, %c0_219], %204 {strides = array<i32>} : memref<128x256xf32, #tpu.memory_space<vmem>>, vector<128x128xf32>,
    %c0_220 = arith.constant 0 : index
    %c0_221 = arith.constant 0 : index
    %206 = vector.load %arg15[%c0_220, %c0_221] : memref<128x256xf32, #tpu.memory_space<vmem>>, vector<128x128xf32>
    %c0_222 = arith.constant 0 : index
    %c0_223 = arith.constant 0 : index
    %207 = vector.load %arg8[%c0_222, %c0_223] : memref<1x128xf32, #tpu.memory_space<vmem>>, vector<1x128xf32>
    %208 = vector.broadcast %207 : vector<1x128xf32> to vector<128x128xf32>
    %209 = arith.addf %206, %208 : vector<128x128xf32>
    %cst_224 = arith.constant 0.000000e+00 : f32
    %210 = vector.broadcast %cst_224 : f32 to vector<128x128xf32>
    %211 = arith.maximumf %209, %210 : vector<128x128xf32>
    %c1_225 = arith.constant 1 : index
    %c8_226 = arith.constant 8 : index
    %212 = vector.load %arg13[%c1_225, %c8_226] : memref<130x256xf32, #tpu.memory_space<vmem>>, vector<128x128xf32>
    tpu.vector_store %arg13[%c1_225, %c8_226], %211 {strides = array<i32>} : memref<130x256xf32, #tpu.memory_space<vmem>>, vector<128x128xf32>,
    %c0_227 = arith.constant 0 : index
    %c0_228 = arith.constant 0 : index
    %213 = vector.load %arg13[%c0_227, %c0_228] : memref<130x256xf32, #tpu.memory_space<vmem>>, vector<130x128xf32>
    %214 = arith.truncf %213 : vector<130x128xf32> to vector<130x128xbf16>
    %c0_229 = arith.constant 0 : index
    %c0_230 = arith.constant 0 : index
    %c0_231 = arith.constant 0 : index
    %215 = vector.load %arg14[%c0_229, %c0_230, %c0_231] : memref<3x130x128xbf16, #tpu.memory_space<vmem>>, vector<1x130x128xbf16>
    %216 = vector.shape_cast %215 : vector<1x130x128xbf16> to vector<130x128xbf16>
    %217 = vector.shape_cast %214 : vector<130x128xbf16> to vector<1x130x128xbf16>
    tpu.vector_store %arg14[%c0_229, %c0_230, %c0_231], %217 {strides = array<i32>} : memref<3x130x128xbf16, #tpu.memory_space<vmem>>, vector<1x130x128xbf16>,
    %c0_232 = arith.constant 0 : index
    %c8_233 = arith.constant 8 : index
    %218 = vector.load %arg13[%c0_232, %c8_233] : memref<130x256xf32, #tpu.memory_space<vmem>>, vector<130x128xf32>
    %219 = arith.truncf %218 : vector<130x128xf32> to vector<130x128xbf16>
    %c1_234 = arith.constant 1 : index
    %c0_235 = arith.constant 0 : index
    %c0_236 = arith.constant 0 : index
    %220 = vector.load %arg14[%c1_234, %c0_235, %c0_236] : memref<3x130x128xbf16, #tpu.memory_space<vmem>>, vector<1x130x128xbf16>
    %221 = vector.shape_cast %220 : vector<1x130x128xbf16> to vector<130x128xbf16>
    %222 = vector.shape_cast %219 : vector<130x128xbf16> to vector<1x130x128xbf16>
    tpu.vector_store %arg14[%c1_234, %c0_235, %c0_236], %222 {strides = array<i32>} : memref<3x130x128xbf16, #tpu.memory_space<vmem>>, vector<1x130x128xbf16>,
    %c0_237 = arith.constant 0 : index
    %c16_238 = arith.constant 16 : index
    %223 = vector.load %arg13[%c0_237, %c16_238] : memref<130x256xf32, #tpu.memory_space<vmem>>, vector<130x128xf32>
    %224 = arith.truncf %223 : vector<130x128xf32> to vector<130x128xbf16>
    %c2_239 = arith.constant 2 : index
    %c0_240 = arith.constant 0 : index
    %c0_241 = arith.constant 0 : index
    %225 = vector.load %arg14[%c2_239, %c0_240, %c0_241] : memref<3x130x128xbf16, #tpu.memory_space<vmem>>, vector<1x130x128xbf16>
    %226 = vector.shape_cast %225 : vector<1x130x128xbf16> to vector<130x128xbf16>
    %227 = vector.shape_cast %224 : vector<130x128xbf16> to vector<1x130x128xbf16>
    tpu.vector_store %arg14[%c2_239, %c0_240, %c0_241], %227 {strides = array<i32>} : memref<3x130x128xbf16, #tpu.memory_space<vmem>>, vector<1x130x128xbf16>,
    %c0_242 = arith.constant 0 : index
    %c0_243 = arith.constant 0 : index
    %c0_244 = arith.constant 0 : index
    %228 = vector.load %arg14[%c0_242, %c0_243, %c0_244] : memref<3x130x128xbf16, #tpu.memory_space<vmem>>, vector<1x128x128xbf16>
    %229 = vector.shape_cast %228 : vector<1x128x128xbf16> to vector<128x128xbf16>
    %c0_245 = arith.constant 0 : index
    %c0_246 = arith.constant 0 : index
    %c0_247 = arith.constant 0 : index
    %c0_248 = arith.constant 0 : index
    %c0_249 = arith.constant 0 : index
    %230 = vector.load %arg9[%c0_245, %c0_246, %c0_247, %c0_248, %c0_249] : memref<2x2x3x128x256xbf16, #tpu.memory_space<vmem>>, vector<1x1x1x128x256xbf16>
    %231 = vector.shape_cast %230 : vector<1x1x1x128x256xbf16> to vector<128x256xbf16>
    %cst_250 = arith.constant dense<0.000000e+00> : vector<128x256xf32>
    %232 = tpu.matmul %229, %231, %cst_250 {dimension_numbers = #tpu.dot_dimension_numbers<[1], [0], [0], [1], [0, 0, 1, 1], [], []>} : vector<128x128xbf16>, vector<128x256xbf16>, vector<128x256xf32> -> vector<128x256xf32>
    %c1_251 = arith.constant 1 : index
    %c0_252 = arith.constant 0 : index
    %c0_253 = arith.constant 0 : index
    %233 = vector.load %arg14[%c1_251, %c0_252, %c0_253] : memref<3x130x128xbf16, #tpu.memory_space<vmem>>, vector<1x128x128xbf16>
    %234 = vector.shape_cast %233 : vector<1x128x128xbf16> to vector<128x128xbf16>
    %c0_254 = arith.constant 0 : index
    %c0_255 = arith.constant 0 : index
    %c1_256 = arith.constant 1 : index
    %c0_257 = arith.constant 0 : index
    %c0_258 = arith.constant 0 : index
    %235 = vector.load %arg9[%c0_254, %c0_255, %c1_256, %c0_257, %c0_258] : memref<2x2x3x128x256xbf16, #tpu.memory_space<vmem>>, vector<1x1x1x128x256xbf16>
    %236 = vector.shape_cast %235 : vector<1x1x1x128x256xbf16> to vector<128x256xbf16>
    %cst_259 = arith.constant dense<0.000000e+00> : vector<128x256xf32>
    %237 = tpu.matmul %234, %236, %cst_259 {dimension_numbers = #tpu.dot_dimension_numbers<[1], [0], [0], [1], [0, 0, 1, 1], [], []>} : vector<128x128xbf16>, vector<128x256xbf16>, vector<128x256xf32> -> vector<128x256xf32>
    %238 = arith.addf %232, %237 : vector<128x256xf32>
    %c2_260 = arith.constant 2 : index
    %c0_261 = arith.constant 0 : index
    %c0_262 = arith.constant 0 : index
    %239 = vector.load %arg14[%c2_260, %c0_261, %c0_262] : memref<3x130x128xbf16, #tpu.memory_space<vmem>>, vector<1x128x128xbf16>
    %240 = vector.shape_cast %239 : vector<1x128x128xbf16> to vector<128x128xbf16>
    %c0_263 = arith.constant 0 : index
    %c0_264 = arith.constant 0 : index
    %c2_265 = arith.constant 2 : index
    %c0_266 = arith.constant 0 : index
    %c0_267 = arith.constant 0 : index
    %241 = vector.load %arg9[%c0_263, %c0_264, %c2_265, %c0_266, %c0_267] : memref<2x2x3x128x256xbf16, #tpu.memory_space<vmem>>, vector<1x1x1x128x256xbf16>
    %242 = vector.shape_cast %241 : vector<1x1x1x128x256xbf16> to vector<128x256xbf16>
    %cst_268 = arith.constant dense<0.000000e+00> : vector<128x256xf32>
    %243 = tpu.matmul %240, %242, %cst_268 {dimension_numbers = #tpu.dot_dimension_numbers<[1], [0], [0], [1], [0, 0, 1, 1], [], []>} : vector<128x128xbf16>, vector<128x256xbf16>, vector<128x256xf32> -> vector<128x256xf32>
    %244 = arith.addf %238, %243 : vector<128x256xf32>
    %cst_269 = arith.constant 0.000000e+00 : f32
    %245 = vector.shape_cast %18 : vector<128x1xi1> to vector<128x1xi1>
    %246 = vector.broadcast %245 : vector<128x1xi1> to vector<128x256xi1>
    %247 = vector.broadcast %cst_269 : f32 to vector<128x256xf32>
    %248 = arith.select %246, %244, %247 : vector<128x256xi1>, vector<128x256xf32>
    %c0_270 = arith.constant 0 : index
    %c0_271 = arith.constant 0 : index
    %249 = vector.load %arg15[%c0_270, %c0_271] : memref<128x256xf32, #tpu.memory_space<vmem>>, vector<128x256xf32>
    tpu.vector_store %arg15[%c0_270, %c0_271], %248 {strides = array<i32>} : memref<128x256xf32, #tpu.memory_space<vmem>>, vector<128x256xf32>,
    %c0_272 = arith.constant 0 : index
    %c1_273 = arith.constant 1 : index
    %c0_274 = arith.constant 0 : index
    %250 = vector.load %arg14[%c0_272, %c1_273, %c0_274] : memref<3x130x128xbf16, #tpu.memory_space<vmem>>, vector<1x128x128xbf16>
    %251 = vector.shape_cast %250 : vector<1x128x128xbf16> to vector<128x128xbf16>
    %c0_275 = arith.constant 0 : index
    %c1_276 = arith.constant 1 : index
    %c0_277 = arith.constant 0 : index
    %c0_278 = arith.constant 0 : index
    %c0_279 = arith.constant 0 : index
    %252 = vector.load %arg9[%c0_275, %c1_276, %c0_277, %c0_278, %c0_279] : memref<2x2x3x128x256xbf16, #tpu.memory_space<vmem>>, vector<1x1x1x128x256xbf16>
    %253 = vector.shape_cast %252 : vector<1x1x1x128x256xbf16> to vector<128x256xbf16>
    %cst_280 = arith.constant dense<0.000000e+00> : vector<128x256xf32>
    %254 = tpu.matmul %251, %253, %cst_280 {dimension_numbers = #tpu.dot_dimension_numbers<[1], [0], [0], [1], [0, 0, 1, 1], [], []>} : vector<128x128xbf16>, vector<128x256xbf16>, vector<128x256xf32> -> vector<128x256xf32>
    %c1_281 = arith.constant 1 : index
    %c1_282 = arith.constant 1 : index
    %c0_283 = arith.constant 0 : index
    %255 = vector.load %arg14[%c1_281, %c1_282, %c0_283] : memref<3x130x128xbf16, #tpu.memory_space<vmem>>, vector<1x128x128xbf16>
    %256 = vector.shape_cast %255 : vector<1x128x128xbf16> to vector<128x128xbf16>
    %c0_284 = arith.constant 0 : index
    %c1_285 = arith.constant 1 : index
    %c1_286 = arith.constant 1 : index
    %c0_287 = arith.constant 0 : index
    %c0_288 = arith.constant 0 : index
    %257 = vector.load %arg9[%c0_284, %c1_285, %c1_286, %c0_287, %c0_288] : memref<2x2x3x128x256xbf16, #tpu.memory_space<vmem>>, vector<1x1x1x128x256xbf16>
    %258 = vector.shape_cast %257 : vector<1x1x1x128x256xbf16> to vector<128x256xbf16>
    %cst_289 = arith.constant dense<0.000000e+00> : vector<128x256xf32>
    %259 = tpu.matmul %256, %258, %cst_289 {dimension_numbers = #tpu.dot_dimension_numbers<[1], [0], [0], [1], [0, 0, 1, 1], [], []>} : vector<128x128xbf16>, vector<128x256xbf16>, vector<128x256xf32> -> vector<128x256xf32>
    %260 = arith.addf %254, %259 : vector<128x256xf32>
    %c2_290 = arith.constant 2 : index
    %c1_291 = arith.constant 1 : index
    %c0_292 = arith.constant 0 : index
    %261 = vector.load %arg14[%c2_290, %c1_291, %c0_292] : memref<3x130x128xbf16, #tpu.memory_space<vmem>>, vector<1x128x128xbf16>
    %262 = vector.shape_cast %261 : vector<1x128x128xbf16> to vector<128x128xbf16>
    %c0_293 = arith.constant 0 : index
    %c1_294 = arith.constant 1 : index
    %c2_295 = arith.constant 2 : index
    %c0_296 = arith.constant 0 : index
    %c0_297 = arith.constant 0 : index
    %263 = vector.load %arg9[%c0_293, %c1_294, %c2_295, %c0_296, %c0_297] : memref<2x2x3x128x256xbf16, #tpu.memory_space<vmem>>, vector<1x1x1x128x256xbf16>
    %264 = vector.shape_cast %263 : vector<1x1x1x128x256xbf16> to vector<128x256xbf16>
    %cst_298 = arith.constant dense<0.000000e+00> : vector<128x256xf32>
    %265 = tpu.matmul %262, %264, %cst_298 {dimension_numbers = #tpu.dot_dimension_numbers<[1], [0], [0], [1], [0, 0, 1, 1], [], []>} : vector<128x128xbf16>, vector<128x256xbf16>, vector<128x256xf32> -> vector<128x256xf32>
    %266 = arith.addf %260, %265 : vector<128x256xf32>
    %c0_299 = arith.constant 0 : index
    %c0_300 = arith.constant 0 : index
    %267 = vector.load %arg15[%c0_299, %c0_300] : memref<128x256xf32, #tpu.memory_space<vmem>>, vector<128x256xf32>
    %268 = arith.addf %267, %266 : vector<128x256xf32>
    %c0_301 = arith.constant 0 : index
    %c0_302 = arith.constant 0 : index
    %269 = vector.load %arg15[%c0_301, %c0_302] : memref<128x256xf32, #tpu.memory_space<vmem>>, vector<128x256xf32>
    tpu.vector_store %arg15[%c0_301, %c0_302], %268 {strides = array<i32>} : memref<128x256xf32, #tpu.memory_space<vmem>>, vector<128x256xf32>,
    %c0_303 = arith.constant 0 : index
    %c0_304 = arith.constant 0 : index
    %270 = vector.load %arg15[%c0_303, %c0_304] : memref<128x256xf32, #tpu.memory_space<vmem>>, vector<128x256xf32>
    %c0_305 = arith.constant 0 : index
    %c0_306 = arith.constant 0 : index
    %271 = vector.load %arg10[%c0_305, %c0_306] : memref<1x256xf32, #tpu.memory_space<vmem>>, vector<1x256xf32>
    %272 = vector.broadcast %271 : vector<1x256xf32> to vector<128x256xf32>
    %273 = arith.addf %270, %272 : vector<128x256xf32>
    %c0_307 = arith.constant 0 : index
    %c0_308 = arith.constant 0 : index
    %274 = vector.load %arg11[%c0_307, %c0_308] : memref<128x512xf32, #tpu.memory_space<vmem>>, vector<128x256xf32>
    tpu.vector_store %arg11[%c0_307, %c0_308], %273 {strides = array<i32>} : memref<128x512xf32, #tpu.memory_space<vmem>>, vector<128x256xf32>,
    %c0_309 = arith.constant 0 : index
    %c1_310 = arith.constant 1 : index
    %c0_311 = arith.constant 0 : index
    %275 = vector.load %arg14[%c0_309, %c1_310, %c0_311] : memref<3x130x128xbf16, #tpu.memory_space<vmem>>, vector<1x128x128xbf16>
    %276 = vector.shape_cast %275 : vector<1x128x128xbf16> to vector<128x128xbf16>
    %c1_312 = arith.constant 1 : index
    %c0_313 = arith.constant 0 : index
    %c0_314 = arith.constant 0 : index
    %c0_315 = arith.constant 0 : index
    %c0_316 = arith.constant 0 : index
    %277 = vector.load %arg9[%c1_312, %c0_313, %c0_314, %c0_315, %c0_316] : memref<2x2x3x128x256xbf16, #tpu.memory_space<vmem>>, vector<1x1x1x128x256xbf16>
    %278 = vector.shape_cast %277 : vector<1x1x1x128x256xbf16> to vector<128x256xbf16>
    %cst_317 = arith.constant dense<0.000000e+00> : vector<128x256xf32>
    %279 = tpu.matmul %276, %278, %cst_317 {dimension_numbers = #tpu.dot_dimension_numbers<[1], [0], [0], [1], [0, 0, 1, 1], [], []>} : vector<128x128xbf16>, vector<128x256xbf16>, vector<128x256xf32> -> vector<128x256xf32>
    %c1_318 = arith.constant 1 : index
    %c1_319 = arith.constant 1 : index
    %c0_320 = arith.constant 0 : index
    %280 = vector.load %arg14[%c1_318, %c1_319, %c0_320] : memref<3x130x128xbf16, #tpu.memory_space<vmem>>, vector<1x128x128xbf16>
    %281 = vector.shape_cast %280 : vector<1x128x128xbf16> to vector<128x128xbf16>
    %c1_321 = arith.constant 1 : index
    %c0_322 = arith.constant 0 : index
    %c1_323 = arith.constant 1 : index
    %c0_324 = arith.constant 0 : index
    %c0_325 = arith.constant 0 : index
    %282 = vector.load %arg9[%c1_321, %c0_322, %c1_323, %c0_324, %c0_325] : memref<2x2x3x128x256xbf16, #tpu.memory_space<vmem>>, vector<1x1x1x128x256xbf16>
    %283 = vector.shape_cast %282 : vector<1x1x1x128x256xbf16> to vector<128x256xbf16>
    %cst_326 = arith.constant dense<0.000000e+00> : vector<128x256xf32>
    %284 = tpu.matmul %281, %283, %cst_326 {dimension_numbers = #tpu.dot_dimension_numbers<[1], [0], [0], [1], [0, 0, 1, 1], [], []>} : vector<128x128xbf16>, vector<128x256xbf16>, vector<128x256xf32> -> vector<128x256xf32>
    %285 = arith.addf %279, %284 : vector<128x256xf32>
    %c2_327 = arith.constant 2 : index
    %c1_328 = arith.constant 1 : index
    %c0_329 = arith.constant 0 : index
    %286 = vector.load %arg14[%c2_327, %c1_328, %c0_329] : memref<3x130x128xbf16, #tpu.memory_space<vmem>>, vector<1x128x128xbf16>
    %287 = vector.shape_cast %286 : vector<1x128x128xbf16> to vector<128x128xbf16>
    %c1_330 = arith.constant 1 : index
    %c0_331 = arith.constant 0 : index
    %c2_332 = arith.constant 2 : index
    %c0_333 = arith.constant 0 : index
    %c0_334 = arith.constant 0 : index
    %288 = vector.load %arg9[%c1_330, %c0_331, %c2_332, %c0_333, %c0_334] : memref<2x2x3x128x256xbf16, #tpu.memory_space<vmem>>, vector<1x1x1x128x256xbf16>
    %289 = vector.shape_cast %288 : vector<1x1x1x128x256xbf16> to vector<128x256xbf16>
    %cst_335 = arith.constant dense<0.000000e+00> : vector<128x256xf32>
    %290 = tpu.matmul %287, %289, %cst_335 {dimension_numbers = #tpu.dot_dimension_numbers<[1], [0], [0], [1], [0, 0, 1, 1], [], []>} : vector<128x128xbf16>, vector<128x256xbf16>, vector<128x256xf32> -> vector<128x256xf32>
    %291 = arith.addf %285, %290 : vector<128x256xf32>
    %c0_336 = arith.constant 0 : index
    %c0_337 = arith.constant 0 : index
    %292 = vector.load %arg15[%c0_336, %c0_337] : memref<128x256xf32, #tpu.memory_space<vmem>>, vector<128x256xf32>
    tpu.vector_store %arg15[%c0_336, %c0_337], %291 {strides = array<i32>} : memref<128x256xf32, #tpu.memory_space<vmem>>, vector<128x256xf32>,
    %c0_338 = arith.constant 0 : index
    %c2_339 = arith.constant 2 : index
    %c0_340 = arith.constant 0 : index
    %293 = vector.load %arg14[%c0_338, %c2_339, %c0_340] : memref<3x130x128xbf16, #tpu.memory_space<vmem>>, vector<1x128x128xbf16>
    %294 = vector.shape_cast %293 : vector<1x128x128xbf16> to vector<128x128xbf16>
    %c1_341 = arith.constant 1 : index
    %c1_342 = arith.constant 1 : index
    %c0_343 = arith.constant 0 : index
    %c0_344 = arith.constant 0 : index
    %c0_345 = arith.constant 0 : index
    %295 = vector.load %arg9[%c1_341, %c1_342, %c0_343, %c0_344, %c0_345] : memref<2x2x3x128x256xbf16, #tpu.memory_space<vmem>>, vector<1x1x1x128x256xbf16>
    %296 = vector.shape_cast %295 : vector<1x1x1x128x256xbf16> to vector<128x256xbf16>
    %cst_346 = arith.constant dense<0.000000e+00> : vector<128x256xf32>
    %297 = tpu.matmul %294, %296, %cst_346 {dimension_numbers = #tpu.dot_dimension_numbers<[1], [0], [0], [1], [0, 0, 1, 1], [], []>} : vector<128x128xbf16>, vector<128x256xbf16>, vector<128x256xf32> -> vector<128x256xf32>
    %c1_347 = arith.constant 1 : index
    %c2_348 = arith.constant 2 : index
    %c0_349 = arith.constant 0 : index
    %298 = vector.load %arg14[%c1_347, %c2_348, %c0_349] : memref<3x130x128xbf16, #tpu.memory_space<vmem>>, vector<1x128x128xbf16>
    %299 = vector.shape_cast %298 : vector<1x128x128xbf16> to vector<128x128xbf16>
    %c1_350 = arith.constant 1 : index
    %c1_351 = arith.constant 1 : index
    %c1_352 = arith.constant 1 : index
    %c0_353 = arith.constant 0 : index
    %c0_354 = arith.constant 0 : index
    %300 = vector.load %arg9[%c1_350, %c1_351, %c1_352, %c0_353, %c0_354] : memref<2x2x3x128x256xbf16, #tpu.memory_space<vmem>>, vector<1x1x1x128x256xbf16>
    %301 = vector.shape_cast %300 : vector<1x1x1x128x256xbf16> to vector<128x256xbf16>
    %cst_355 = arith.constant dense<0.000000e+00> : vector<128x256xf32>
    %302 = tpu.matmul %299, %301, %cst_355 {dimension_numbers = #tpu.dot_dimension_numbers<[1], [0], [0], [1], [0, 0, 1, 1], [], []>} : vector<128x128xbf16>, vector<128x256xbf16>, vector<128x256xf32> -> vector<128x256xf32>
    %303 = arith.addf %297, %302 : vector<128x256xf32>
    %c2_356 = arith.constant 2 : index
    %c2_357 = arith.constant 2 : index
    %c0_358 = arith.constant 0 : index
    %304 = vector.load %arg14[%c2_356, %c2_357, %c0_358] : memref<3x130x128xbf16, #tpu.memory_space<vmem>>, vector<1x128x128xbf16>
    %305 = vector.shape_cast %304 : vector<1x128x128xbf16> to vector<128x128xbf16>
    %c1_359 = arith.constant 1 : index
    %c1_360 = arith.constant 1 : index
    %c2_361 = arith.constant 2 : index
    %c0_362 = arith.constant 0 : index
    %c0_363 = arith.constant 0 : index
    %306 = vector.load %arg9[%c1_359, %c1_360, %c2_361, %c0_362, %c0_363] : memref<2x2x3x128x256xbf16, #tpu.memory_space<vmem>>, vector<1x1x1x128x256xbf16>
    %307 = vector.shape_cast %306 : vector<1x1x1x128x256xbf16> to vector<128x256xbf16>
    %cst_364 = arith.constant dense<0.000000e+00> : vector<128x256xf32>
    %308 = tpu.matmul %305, %307, %cst_364 {dimension_numbers = #tpu.dot_dimension_numbers<[1], [0], [0], [1], [0, 0, 1, 1], [], []>} : vector<128x128xbf16>, vector<128x256xbf16>, vector<128x256xf32> -> vector<128x256xf32>
    %309 = arith.addf %303, %308 : vector<128x256xf32>
    %cst_365 = arith.constant 0.000000e+00 : f32
    %310 = vector.shape_cast %20 : vector<128x1xi1> to vector<128x1xi1>
    %311 = vector.broadcast %310 : vector<128x1xi1> to vector<128x256xi1>
    %312 = vector.broadcast %cst_365 : f32 to vector<128x256xf32>
    %313 = arith.select %311, %309, %312 : vector<128x256xi1>, vector<128x256xf32>
    %c0_366 = arith.constant 0 : index
    %c0_367 = arith.constant 0 : index
    %314 = vector.load %arg15[%c0_366, %c0_367] : memref<128x256xf32, #tpu.memory_space<vmem>>, vector<128x256xf32>
    %315 = arith.addf %314, %313 : vector<128x256xf32>
    %c0_368 = arith.constant 0 : index
    %c0_369 = arith.constant 0 : index
    %316 = vector.load %arg15[%c0_368, %c0_369] : memref<128x256xf32, #tpu.memory_space<vmem>>, vector<128x256xf32>
    tpu.vector_store %arg15[%c0_368, %c0_369], %315 {strides = array<i32>} : memref<128x256xf32, #tpu.memory_space<vmem>>, vector<128x256xf32>,
    %c0_370 = arith.constant 0 : index
    %c0_371 = arith.constant 0 : index
    %317 = vector.load %arg15[%c0_370, %c0_371] : memref<128x256xf32, #tpu.memory_space<vmem>>, vector<128x256xf32>
    %c0_372 = arith.constant 0 : index
    %c0_373 = arith.constant 0 : index
    %318 = vector.load %arg10[%c0_372, %c0_373] : memref<1x256xf32, #tpu.memory_space<vmem>>, vector<1x256xf32>
    %319 = vector.broadcast %318 : vector<1x256xf32> to vector<128x256xf32>
    %320 = arith.addf %317, %319 : vector<128x256xf32>
    %c0_374 = arith.constant 0 : index
    %c256 = arith.constant 256 : index
    %321 = vector.load %arg11[%c0_374, %c256] : memref<128x512xf32, #tpu.memory_space<vmem>>, vector<128x256xf32>
    tpu.vector_store %arg11[%c0_374, %c256], %320 {strides = array<i32>} : memref<128x512xf32, #tpu.memory_space<vmem>>, vector<128x256xf32>,
    return
  }
  func.func @transform_0(%arg0: i32) -> (i32, i32) {
    %c0_i32 = arith.constant 0 : i32
    %c0_i32_0 = arith.constant 0 : i32
    return %arg0, %c0_i32 : i32, i32
  }
  func.func @transform_1(%arg0: i32) -> (i32, i32) {
    %c0_i32 = arith.constant 0 : i32
    %c0_i32_0 = arith.constant 0 : i32
    return %arg0, %c0_i32 : i32, i32
  }
  func.func @transform_2(%arg0: i32) -> (i32, i32) {
    %c0_i32 = arith.constant 0 : i32
    %c0_i32_0 = arith.constant 0 : i32
    %c0_i32_1 = arith.constant 0 : i32
    return %c0_i32, %c0_i32_0 : i32, i32
  }
  func.func @transform_3(%arg0: i32) -> (i32, i32) {
    %c0_i32 = arith.constant 0 : i32
    %c0_i32_0 = arith.constant 0 : i32
    %c0_i32_1 = arith.constant 0 : i32
    return %c0_i32, %c0_i32_0 : i32, i32
  }
  func.func @transform_4(%arg0: i32) -> (i32, i32, i32, i32) {
    %c0_i32 = arith.constant 0 : i32
    %c0_i32_0 = arith.constant 0 : i32
    %c0_i32_1 = arith.constant 0 : i32
    %c0_i32_2 = arith.constant 0 : i32
    %c0_i32_3 = arith.constant 0 : i32
    return %c0_i32, %c0_i32_0, %c0_i32_1, %c0_i32_2 : i32, i32, i32, i32
  }
  func.func @transform_5(%arg0: i32) -> (i32, i32) {
    %c0_i32 = arith.constant 0 : i32
    %c0_i32_0 = arith.constant 0 : i32
    %c0_i32_1 = arith.constant 0 : i32
    return %c0_i32, %c0_i32_0 : i32, i32
  }
  func.func @transform_6(%arg0: i32) -> (i32, i32, i32, i32) {
    %c0_i32 = arith.constant 0 : i32
    %c0_i32_0 = arith.constant 0 : i32
    %c0_i32_1 = arith.constant 0 : i32
    %c0_i32_2 = arith.constant 0 : i32
    %c0_i32_3 = arith.constant 0 : i32
    return %c0_i32, %c0_i32_0, %c0_i32_1, %c0_i32_2 : i32, i32, i32, i32
  }
  func.func @transform_7(%arg0: i32) -> (i32, i32) {
    %c0_i32 = arith.constant 0 : i32
    %c0_i32_0 = arith.constant 0 : i32
    %c0_i32_1 = arith.constant 0 : i32
    return %c0_i32, %c0_i32_0 : i32, i32
  }
  func.func @transform_8(%arg0: i32) -> (i32, i32, i32, i32, i32) {
    %c0_i32 = arith.constant 0 : i32
    %c0_i32_0 = arith.constant 0 : i32
    %c0_i32_1 = arith.constant 0 : i32
    %c0_i32_2 = arith.constant 0 : i32
    %c0_i32_3 = arith.constant 0 : i32
    %c0_i32_4 = arith.constant 0 : i32
    return %c0_i32, %c0_i32_0, %c0_i32_1, %c0_i32_2, %c0_i32_3 : i32, i32, i32, i32, i32
  }
  func.func @transform_9(%arg0: i32) -> (i32, i32) {
    %c0_i32 = arith.constant 0 : i32
    %c0_i32_0 = arith.constant 0 : i32
    %c0_i32_1 = arith.constant 0 : i32
    return %c0_i32, %c0_i32_0 : i32, i32
  }
  func.func @transform_10(%arg0: i32) -> (i32, i32) {
    %c0_i32 = arith.constant 0 : i32
    %c0_i32_0 = arith.constant 0 : i32
    return %arg0, %c0_i32 : i32, i32
  }
}

</mosaic_0001>

<bundles_post_ra>
// kernel: stable_upsampling_forward.1
= control target key start
LH: loop header
LB: loop body
LE: loop exit
PB: predicated region body
PF: predicated region fallthrough
CT: control target
= control target key end

     0   :  { %s17704_s0 = inlined_call_operand.vmem [shape: f32[256,64], index: 0, kind: input, shape index: {}]   ;;  %s17705_s1 = inlined_call_operand.vmem [shape: f32[256,32], index: 1, kind: input, shape index: {}]   ;;  %s17706_s2 = inlined_call_operand.hbm [shape: bf16[32,128], index: 2, kind: input, shape index: {}]   ;;  %s17707_s3 = inlined_call_operand.hbm [shape: f32[1,128], index: 3, kind: input, shape index: {}]   ;;  %s17708_s4 = inlined_call_operand.hbm [shape: bf16[3,3,64,128], index: 4, kind: input, shape index: {}]   ;;  %s17709_s5 = inlined_call_operand.hbm [shape: f32[1,128], index: 5, kind: input, shape index: {}]   ;;  %s17710_s6 = inlined_call_operand.hbm [shape: bf16[3,3,128,128], index: 6, kind: input, shape index: {}]   ;;  %s17711_s7 = inlined_call_operand.hbm [shape: f32[1,128], index: 7, kind: input, shape index: {}]   ;;  %s17712_s8 = inlined_call_operand.hbm [shape: bf16[2,2,3,128,256], index: 8, kind: input, shape index: {}]   ;;  %s17713_s9 = inlined_call_operand.hbm [shape: f32[1,256], index: 9, kind: input, shape index: {}]   ;;  %s17714_s10 = inlined_call_operand.vmem [shape: f32[256,512], index: 10, kind: output, shape index: {}]  }
   0x1   :  { %17750 = sst [smem:[#allocation26_spill]] %s17707_s3 }
   0x2   :  { %15 = vsyncpa [#allocation7], 0 }
   0x3   :  { %16 = vsyncpa [#allocation9], 0 }
   0x4   :  { %17 = vsyncpa [#allocation12], 0 }
   0x5   :  { %18 = vsyncpa [#allocation15], 0 }
   0x6   :  { %19 = vsyncpa [#allocation18], 0  ;;  %s15879_s13 = smov 0  }
   0x7 LB: > { %s15805_s14 = smov [#allocation8]   ;;  %s17715_s16 = sadd.s32 4294967295, %s15803_s13   ;;  %s15803_s13 = sphi %s15879_s13, %s25_s13  }
   0x8   : > { %s302_s15 = sshll.u32 %s15805_s14, 4  ;;  %p12477_p0 = scmp.ge.s32.totalorder %s15803_s13, 1  ;;  %s15893_s15 = int_to_ptr.vmem [resolvable:$true] %s302_s15 }
   0x9   : > { %p276_p1 = scmp.lt.s32.totalorder %s15803_s13, 3  ;;  %p15889_p2 = scmp.eq.s32.totalorder %s17715_s16, 0 }
   0xa   : > { %s15806_s19 = smov [#allocation11]   ;;  %s15807_s21 = smov [#allocation14]  }
   0xb   : > { %s17751_s17 = scalar_select %p15889_p2, 1, 0 }
   0xc   : > { %p15895_p3 = pnand %p12477_p0, %p276_p1  ;;  %s326_s20 = sshll.u32 %s15806_s19, 4  ;;  %s15901_s20 = int_to_ptr.vmem [resolvable:$true] %s326_s20 }
   0xd   : > { %s350_s22 = sshll.u32 %s15807_s21, 4  ;;  %s15808_s24 = smov [#allocation6]   ;;  %s15909_s22 = int_to_ptr.vmem [resolvable:$true] %s350_s22 }
   0xe   : > { %s17752_s18 = scalar_select %p15895_p3, 1, 0 }
   0xf   : > { %p14826_p4 = pneg %p15895_p3  ;;  %s288_s25 = sshll.u32 %s15808_s24, 4  ;;  %s15911_s25 = int_to_ptr.vmem [resolvable:$true] %s288_s25 }
  0x10   : > { %s17754_s3 = sld [smem:[#allocation26_spill]] }
  0x11   : > { %p15905_p5 = pnand %p15889_p2, %p14826_p4 }
  0x13   : > { %p15921_p7 = pneg %p15905_p5 }
  0x16   : > { %s15553_s28 = scalar_lea.hbm %s17754_s3, 16 }
  0x17   : > { %p15554_p6 = scmp.ne.s32.totalorder %s17754_s3, %s15553_s28  ;;  %p15560_p10 = scmp.lt.u32.totalorder %s15553_s28, %s17754_s3 }
  0x19   : > { %p15556_p8 = pnand %p15921_p7, %p15554_p6 }
  0x1b   : > { %p15557_p9 = pneg %p15556_p8 }
  0x1d   : > { %p15562_p11 = pnand %p15560_p10, %p15557_p9 }
  0x1f   : > { %15565 = shalt.err (!%p15562_p11)
}
  0x20   : > { %s15566_s19 = scalar_lea.vmem %s15893_s15, 16  ;;  %s15573_s21 = scalar_lea.vmem %s15893_s15, 32 }
  0x21   : > { %p15567_p12 = scmp.ne.s32.totalorder %s15893_s15, %s15566_s19  ;;  %p15574_p1 = scmp.lt.s32.totalorder %s15893_s15, %s15893_s15 }
  0x22   : > { %p15575_p4 = scmp.lt.s32.totalorder %s15573_s21, %s15566_s19 }
  0x23   : > { %p15569_p13 = pnand %p15567_p12, %p15921_p7 }
  0x24   : > { %p15576_p6 = por %p15575_p4, %p15574_p1 }
  0x25   : > { %p15570_p0 = pneg %p15569_p13 }
  0x27   : > { %p15577_p8 = pnand %p15576_p6, %p15570_p0 }
  0x29   : > { %15580 = shalt.err (!%p15577_p8)
}
  0x2a   : > { %14832 = dma.hbm_to_vmem [thread:$0]  (!%p15905_p5), %s17754_s3, 16, %s15893_s15, [#allocation9]  }
  0x2b   : > { %s15581_s29 = scalar_lea.hbm %s17709_s5, 16 }
  0x2c   : > { %p15582_p9 = scmp.ne.s32.totalorder %s17709_s5, %s15581_s29  ;;  %p15588_p12 = scmp.lt.u32.totalorder %s15581_s29, %s17709_s5 }
  0x2e   : > { %p15584_p10 = pnand %p15582_p9, %p15921_p7 }
  0x30   : > { %p15585_p11 = pneg %p15584_p10 }
  0x32   : > { %p15590_p13 = pnand %p15588_p12, %p15585_p11 }
  0x34   : > { %15593 = shalt.err (!%p15590_p13)
}
  0x35   : > { %s15594_s15 = scalar_lea.vmem %s15901_s20, 16  ;;  %s15601_s21 = scalar_lea.vmem %s15901_s20, 32 }
  0x36   : > { %p15595_p0 = scmp.ne.s32.totalorder %s15901_s20, %s15594_s15  ;;  %p15602_p6 = scmp.lt.s32.totalorder %s15901_s20, %s15901_s20 }
  0x37   : > { %p15603_p8 = scmp.lt.s32.totalorder %s15601_s21, %s15594_s15 }
  0x38   : > { %p15597_p1 = pnand %p15595_p0, %p15921_p7 }
  0x39   : > { %p15604_p9 = por %p15603_p8, %p15602_p6 }
  0x3a   : > { %p15598_p4 = pneg %p15597_p1 }
  0x3c   : > { %p15605_p10 = pnand %p15604_p9, %p15598_p4 }
  0x3e   : > { %15608 = shalt.err (!%p15605_p10)
}
  0x3f   : > { %14838 = dma.hbm_to_vmem [thread:$0]  (!%p15905_p5), %s17709_s5, 16, %s15901_s20, [#allocation12]  }
  0x40   : > { %s15609_s29 = scalar_lea.hbm %s17711_s7, 16 }
  0x41   : > { %p15610_p11 = scmp.ne.s32.totalorder %s17711_s7, %s15609_s29  ;;  %p15616_p0 = scmp.lt.u32.totalorder %s15609_s29, %s17711_s7 }
  0x43   : > { %p15612_p12 = pnand %p15610_p11, %p15921_p7 }
  0x45   : > { %p15613_p13 = pneg %p15612_p12 }
  0x47   : > { %p15618_p1 = pnand %p15616_p0, %p15613_p13 }
  0x49   : > { %15621 = shalt.err (!%p15618_p1)
}
  0x4a   : > { %s15622_s20 = scalar_lea.vmem %s15909_s22, 16  ;;  %s15629_s15 = scalar_lea.vmem %s15909_s22, 32 }
  0x4b   : > { %p15623_p4 = scmp.ne.s32.totalorder %s15909_s22, %s15622_s20  ;;  %p15630_p9 = scmp.lt.s32.totalorder %s15909_s22, %s15909_s22 }
  0x4c   : > { %p15631_p10 = scmp.lt.s32.totalorder %s15629_s15, %s15622_s20 }
  0x4d   : > { %p15625_p6 = pnand %p15623_p4, %p15921_p7 }
  0x4e   : > { %p15632_p11 = por %p15631_p10, %p15630_p9 }
  0x4f   : > { %p15626_p8 = pneg %p15625_p6 }
  0x51   : > { %p15633_p12 = pnand %p15632_p11, %p15626_p8 }
  0x53   : > { %15636 = shalt.err (!%p15633_p12)
}
  0x54   : > { %14844 = dma.hbm_to_vmem [thread:$0]  (!%p15905_p5), %s17711_s7, 16, %s15909_s22, [#allocation15]  }
  0x55   : > { %s15637_s28 = scalar_lea.hbm %s17706_s2, 256 }
  0x56   : > { %p15638_p13 = scmp.ne.s32.totalorder %s17706_s2, %s15637_s28  ;;  %p15644_p4 = scmp.lt.u32.totalorder %s15637_s28, %s17706_s2 }
  0x58   : > { %p15640_p0 = pnand %p15638_p13, %p15921_p7 }
  0x5a   : > { %p15641_p1 = pneg %p15640_p0 }
  0x5c   : > { %p15646_p6 = pnand %p15644_p4, %p15641_p1 }
  0x5e   : > { %15649 = shalt.err (!%p15646_p6)
}
  0x5f   : > { %s15650_s22 = scalar_lea.vmem %s15911_s25, 256  ;;  %p15658_p11 = scmp.lt.s32.totalorder %s15911_s25, %s15911_s25 }
  0x60   : > { %p15651_p8 = scmp.ne.s32.totalorder %s15911_s25, %s15650_s22  ;;  %p15659_p12 = scmp.lt.s32.totalorder %s15650_s22, %s15650_s22 }
  0x62   : > { %p15653_p9 = pnand %p15651_p8, %p15921_p7  ;;  %p15660_p13 = por %p15659_p12, %p15658_p11 }
  0x64   : > { %p15654_p10 = pneg %p15653_p9 }
  0x66   : > { %p15661_p0 = pnand %p15660_p13, %p15654_p10 }
  0x68   : > { %15664 = shalt.err (!%p15661_p0)
}
  0x69   : > { %s15809_s19 = smov 64   ;;  %s15810_s20 = smov 4  }
  0x6a   : > { %14829 = dma.hbm_to_vmem [thread:$0]  (!%p15905_p5), %s17706_s2, 256, %s15911_s25, [#allocation7], %s15809_s19, %s15809_s19, %s15810_s20  }
  0x6b   : > { %s15811_s24 = smov [#allocation10]   ;;  %s15812_s27 = smov [#allocation13]  }
  0x6c   : > { %s312_s26 = sshll.u32 %s15811_s24, 4  ;;  %s336_s28 = sshll.u32 %s15812_s27, 4  ;;  %s313_s26 = int_to_ptr.vmem [resolvable:$true] %s312_s26  ;;  %s337_s28 = int_to_ptr.vmem [resolvable:$true] %s336_s28 }
  0x6d   : > { %s15665_s12 = scalar_lea.hbm %s17708_s4, 4608 }
  0x6e   : > { %p15666_p1 = scmp.ne.s32.totalorder %s17708_s4, %s15665_s12  ;;  %p15672_p8 = scmp.lt.u32.totalorder %s15665_s12, %s17708_s4 }
  0x70   : > { %p15668_p4 = pnand %p15666_p1, %p15921_p7 }
  0x72   : > { %p15669_p6 = pneg %p15668_p4 }
  0x74   : > { %p15674_p9 = pnand %p15672_p8, %p15669_p6 }
  0x76   : > { %15677 = shalt.err (!%p15674_p9)
}
  0x77   : > { %s15678_s25 = scalar_lea.vmem %s313_s26, 4608  ;;  %p15686_p13 = scmp.lt.s32.totalorder %s313_s26, %s313_s26 }
  0x78   : > { %p15679_p10 = scmp.ne.s32.totalorder %s313_s26, %s15678_s25  ;;  %p15687_p0 = scmp.lt.s32.totalorder %s15678_s25, %s15678_s25 }
  0x7a   : > { %p15681_p11 = pnand %p15679_p10, %p15921_p7  ;;  %p15688_p2 = por %p15687_p0, %p15686_p13 }
  0x7c   : > { %p15682_p12 = pneg %p15681_p11 }
  0x7e   : > { %p15689_p3 = pnand %p15688_p2, %p15682_p12 }
  0x80   : > { %15692 = shalt.err (!%p15689_p3)
}
  0x81   : > { %14835 = dma.hbm_to_vmem [thread:$0]  (!%p15905_p5), %s17708_s4, 4608, %s313_s26, [#allocation9], %s15809_s19, %s15809_s19, %s15810_s20  }
  0x82   : > { %s15693_s24 = scalar_lea.hbm %s17710_s6, 9216 }
  0x83   : > { %p15694_p2 = scmp.ne.s32.totalorder %s17710_s6, %s15693_s24  ;;  %p15700_p4 = scmp.lt.u32.totalorder %s15693_s24, %s17710_s6 }
  0x85   : > { %p15696_p3 = pnand %p15694_p2, %p15921_p7 }
  0x87   : > { %p15697_p1 = pneg %p15696_p3 }
  0x89   : > { %p15702_p6 = pnand %p15700_p4, %p15697_p1 }
  0x8b   : > { %15705 = shalt.err (!%p15702_p6)
}
  0x8c   : > { %s15706_s14 = scalar_lea.vmem %s337_s28, 9216  ;;  %p15714_p11 = scmp.lt.s32.totalorder %s337_s28, %s337_s28 }
  0x8d   : > { %p15707_p8 = scmp.ne.s32.totalorder %s337_s28, %s15706_s14  ;;  %p15715_p12 = scmp.lt.s32.totalorder %s15706_s14, %s15706_s14 }
  0x8f   : > { %p15709_p9 = pnand %p15707_p8, %p15921_p7  ;;  %p15716_p13 = por %p15715_p12, %p15714_p11 }
  0x91   : > { %p15710_p10 = pneg %p15709_p9 }
  0x93   : > { %p15717_p0 = pnand %p15716_p13, %p15710_p10 }
  0x95   : > { %15720 = shalt.err (!%p15717_p0)
}
  0x96   : > { %14841 = dma.hbm_to_vmem [thread:$0]  (!%p15905_p5), %s17710_s6, 9216, %s337_s28, [#allocation12], %s15809_s19, %s15809_s19, %s15810_s20  }
  0x97   : > { %s15813_s25 = smov [#allocation16]   ;;  %s15721_s21 = scalar_lea.hbm %s17712_s8, 24576 }
  0x98   : > { %s360_s3 = sshll.u32 %s15813_s25, 4  ;;  %p15722_p2 = scmp.ne.s32.totalorder %s17712_s8, %s15721_s21  ;;  %s361_s3 = int_to_ptr.vmem [resolvable:$true] %s360_s3 }
  0x99   : > { %p15728_p4 = scmp.lt.u32.totalorder %s15721_s21, %s17712_s8 }
  0x9a   : > { %p15724_p3 = pnand %p15722_p2, %p15921_p7 }
  0x9c   : > { %p15725_p1 = pneg %p15724_p3 }
  0x9e   : > { %p15730_p6 = pnand %p15728_p4, %p15725_p1 }
  0xa0   : > { %15733 = shalt.err (!%p15730_p6)
}
  0xa1   : > { %s15734_s19 = scalar_lea.vmem %s361_s3, 24576  ;;  %p15742_p11 = scmp.lt.s32.totalorder %s361_s3, %s361_s3 }
  0xa2   : > { %p15735_p8 = scmp.ne.s32.totalorder %s361_s3, %s15734_s19  ;;  %p15743_p12 = scmp.lt.s32.totalorder %s15734_s19, %s15734_s19 }
  0xa4   : > { %p15737_p9 = pnand %p15735_p8, %p15921_p7  ;;  %p15744_p13 = por %p15743_p12, %p15742_p11 }
  0xa6   : > { %p15738_p10 = pneg %p15737_p9 }
  0xa8   : > { %p15745_p0 = pnand %p15744_p13, %p15738_p10 }
  0xaa   : > { %15748 = shalt.err (!%p15745_p0)
}
  0xab   : > { %s15814_s20 = smov 128   ;;  %s15815_s28 = smov 8  }
  0xac   : > { %14847 = dma.hbm_to_vmem [thread:$0]  (!%p15905_p5), %s17712_s8, 24576, %s361_s3, [#allocation15], %s15814_s20, %s15814_s20, %s15815_s28  }
  0xad   : > { %s15816_s26 = smov [#allocation17]   ;;  %s15749_s15 = scalar_lea.hbm %s17713_s9, 32 }
  0xae   : > { %s374_s22 = sshll.u32 %s15816_s26, 4  ;;  %p15750_p2 = scmp.ne.s32.totalorder %s17713_s9, %s15749_s15  ;;  %s375_s22 = int_to_ptr.vmem [resolvable:$true] %s374_s22 }
  0xaf   : > { %p15756_p4 = scmp.lt.u32.totalorder %s15749_s15, %s17713_s9 }
  0xb0   : > { %p15752_p3 = pnand %p15750_p2, %p15921_p7 }
  0xb2   : > { %p15753_p1 = pneg %p15752_p3 }
  0xb4   : > { %p15758_p6 = pnand %p15756_p4, %p15753_p1 }
  0xb6   : > { %15761 = shalt.err (!%p15758_p6)
}
  0xb7   : > { %s15762_s3 = scalar_lea.vmem %s375_s22, 32  ;;  %p15770_p11 = scmp.lt.s32.totalorder %s375_s22, %s375_s22 }
  0xb8   : > { %p15763_p8 = scmp.ne.s32.totalorder %s375_s22, %s15762_s3  ;;  %p15771_p12 = scmp.lt.s32.totalorder %s15762_s3, %s15762_s3 }
  0xba   : > { %p15765_p9 = pnand %p15763_p8, %p15921_p7  ;;  %p15772_p13 = por %p15771_p12, %p15770_p11 }
  0xbc   : > { %p15766_p10 = pneg %p15765_p9 }
  0xbe   : > { %p15773_p0 = pnand %p15772_p13, %p15766_p10 }
  0xc0   : > { %15776 = shalt.err (!%p15773_p0)
}
  0xc1   : > { %14850 = dma.hbm_to_vmem [thread:$0]  (!%p15905_p5), %s17713_s9, 32, %s375_s22, [#allocation18]  }
  0xc2   : > { %p17756_p2 = scmp.ne.s32.totalorder %s17752_s18, 0 }
  0xc4   : > { %405 = sbr.rel (%p17756_p2) target bundleno = 2421 (0x975), region = 60 }
  0xcb   : > { %p17757_p3 = scmp.ne.s32.totalorder %s17751_s17, 0 }
  0xcd   : > { %15782 = dma.done.wait (%p17757_p3), [#allocation7], 256  }
  0xce   : > { %15784 = vsyncadd (%p17757_p3), [#allocation7], 4294967040 }
  0xcf   : > { %15786 = dma.done.wait (%p17757_p3), [#allocation9], 4624  }
  0xd0   : > { %15788 = vsyncadd (%p17757_p3), [#allocation9], 4294962672 }
  0xd1   : > { %15790 = dma.done.wait (%p17757_p3), [#allocation12], 9232  }
  0xd2   : > { %15792 = vsyncadd (%p17757_p3), [#allocation12], 4294958064 }
  0xd3   : > { %15794 = dma.done.wait (%p17757_p3), [#allocation15], 24592  }
  0xd4   : > { %15796 = vsyncadd (%p17757_p3), [#allocation15], 4294942704 }
  0xd5   : > { %15798 = dma.done.wait (%p17757_p3), [#allocation18], 32  }
  0xd6   : > { %15800 = vsyncadd (%p17757_p3), [#allocation18], 4294967264  ;;  %s17758_s18 = sadd.s32 4294967295, %s15803_s13   ;;  %v15817_v0 = vmov 0.0   ;;  %s15818_s12 = smov 4   ;;  %v14894_v17 = vld [vmem:[#allocation10 + $0x20] sm:$0xff]  }
  0xd7   : > { %s16119_s23 = sshll.u32 %s17758_s18, 4  ;;  %740 = vst [vmem:[#allocation2 + $0x10] sm:$0xff] %v15817_v0  ;;  %741 = vst [vmem:[#allocation2 + $0x18] sm:$0xff] %v15817_v0  ;;  %vm869_vm0 = vcmask 556064   ;;  %13814 = vmatprep.subr.bf16.mxu0 %v14894_v17  ;;  %v14895_v20 = vld [vmem:[#allocation10 + $0x28] sm:$0xff]   ;;  %v14896_v23 = vld [vmem:[#allocation10 + $0x30] sm:$0xff]  }
  0xd8   : > { %p478_p5 = scmp.lt.s32.totalorder %s16119_s23, 31  ;;  %738 = vst [vmem:[#allocation2] sm:$0xff] %v15817_v0  ;;  %739 = vst [vmem:[#allocation2 + $0x8] sm:$0xff] %v15817_v0  ;;  %13815 = vmatpush3.bf16.msra.mxu0 %v14894_v17  ;;  %vm972_vm1 = vcmask 519168   ;;  %v14897_v28 = vld [vmem:[#allocation10 + $0x38] sm:$0xff]   ;;  %s15819_s14 = smov 124  }
  0xd9   : > { %742 = vst [vmem:[#allocation2 + $0x20] sm:$0xff] %v15817_v0  ;;  %743 = vst [vmem:[#allocation2 + $0x28] sm:$0xff] %v15817_v0  ;;  %13816 = vmatprep.subr.bf16.mxu0 %v14895_v20  ;;  %v16153_v37 = vld [vmem:[#allocation10] sm:$0xff]   ;;  %v16200_v57 = vld [vmem:[#allocation10 + $0x88] sm:$0xff]   ;;  %vm989_vm2 = vcmask 516096   ;;  %s15820_s26 = smov 120  }
  0xda   : > { %744 = vst [vmem:[#allocation2 + $0x30] sm:$0xff] %v15817_v0  ;;  %745 = vst [vmem:[#allocation2 + $0x38] sm:$0xff] %v15817_v0  ;;  %s17972_s23 = smov (!%p478_p5, %s16119_s23), 31  ;;  %v16186_v50 = vld [vmem:[#allocation10 + $0x80] sm:$0xff]   ;;  %vm1380_vm3 = vcmask 523264   ;;  %vm17723_vm5 = vcmask 1046528  }
  0xdb   : > { %746 = vst [vmem:[#allocation2 + $0x40] sm:$0xff] %v15817_v0  ;;  %747 = vst [vmem:[#allocation2 + $0x48] sm:$0xff] %v15817_v0  ;;  %s12497_s17 = sshll.u32 %s17972_s23, 3  ;;  %14338 = vmatprep.subr.bf16.mxu1 %v16186_v50  ;;  %vm17724_vm4 = vsmask.f32 7424  ;;  %vm3741_vm6 = vcmask 261120  }
  0xdc   : > { %748 = vst [vmem:[#allocation2 + $0x50] sm:$0xff] %v15817_v0  ;;  %749 = vst [vmem:[#allocation2 + $0x58] sm:$0xff] %v15817_v0  ;;  %s481_s28 = scalar_lea.vmem %s17704_s0, %s12497_s17  ;;  %13817 = vmatpush3.bf16.msra.mxu0 %v14895_v20  ;;  %14342 = vmatpush3.bf16.msra.mxu1 %v16186_v50  ;;  %s16423_s16 = scalar_lea.vmem %s17705_s1, %s12497_s17 }
  0xdd   : > { %750 = vst [vmem:[#allocation2 + $0x60] sm:$0xff] %v15817_v0  ;;  %751 = vst [vmem:[#allocation2 + $0x68] sm:$0xff] %v15817_v0  ;;  %v791_v1 = vld [vmem:[%s481_s28 + $0x10] sm:$0xff]  ;;  %v789_v2 = vld [vmem:[%s481_s28] sm:$0xff]  ;;  %13818 = vmatprep.subr.bf16.mxu0 %v14896_v23  ;;  %14339 = vmatprep.subr.bf16.mxu1 %v16200_v57  ;;  %s15821_s15 = smov 8   ;;  %s15822_s21 = smov 112  }
  0xde   : > { %752 = vst [vmem:[#allocation2 + $0x70] sm:$0xff] %v15817_v0  ;;  %753 = vst [vmem:[#allocation2 + $0x78] sm:$0xff] %v15817_v0  ;;  %825 = vrot.lane.b32.xlu1 %v791_v1, %s15818_s12  ;;  %821 = vrot.lane.b32.xlu0 %v789_v2, %s15818_s12  ;;  %v792_v3 = vld [vmem:[%s481_s28 + $0x18] sm:$0xff]  ;;  %v790_v4 = vld [vmem:[%s481_s28 + $0x8] sm:$0xff]  ;;  %s13304_s24 = sshll.u32 %s17972_s23, 5 }
  0xdf   : > { %754 = vst [vmem:[#allocation2 + $0x80] sm:$0x3] %v15817_v0  ;;  %755 = vst [vmem:[#allocation3] sm:$0xff] %v15817_v0  ;;  %v794_v5 = vld [vmem:[%s481_s28 + $0x28] sm:$0xff]  ;;  %v793_v6 = vld [vmem:[%s481_s28 + $0x20] sm:$0xff]  ;;  %s17474_s3 = scalar_lea.vmem %s17714_s10, %s13304_s24 }
  0xe0   : > { %756 = vst [vmem:[#allocation3 + $0x8] sm:$0xff] %v15817_v0  ;;  %757 = vst [vmem:[#allocation3 + $0x10] sm:$0xff] %v15817_v0  ;;  %v796_v7 = vld [vmem:[%s481_s28 + $0x38] sm:$0xff]  ;;  %v795_v8 = vld [vmem:[%s481_s28 + $0x30] sm:$0xff]  ;;  %13819 = vmatpush3.bf16.msra.mxu0 %v14896_v23  ;;  %14343 = vmatpush3.bf16.msra.mxu1 %v16200_v57 }
  0xe1   : > { %758 = vst [vmem:[#allocation3 + $0x18] sm:$0xff] %v15817_v0  ;;  %759 = vst [vmem:[#allocation3 + $0x20] sm:$0xff] %v15817_v0  ;;  %v798_v9 = vld [vmem:[%s481_s28 + $0x48] sm:$0xff]  ;;  %v797_v10 = vld [vmem:[%s481_s28 + $0x40] sm:$0xff]  ;;  %13820 = vmatprep.subr.bf16.mxu0 %v14897_v28 }
  0xe2   : > { %760 = vst [vmem:[#allocation3 + $0x28] sm:$0xff] %v15817_v0  ;;  %761 = vst [vmem:[#allocation3 + $0x30] sm:$0xff] %v15817_v0  ;;  %827 = vrot.lane.b32.xlu1 %v792_v3, %s15818_s12  ;;  %823 = vrot.lane.b32.xlu0 %v790_v4, %s15818_s12  ;;  %v800_v11 = vld [vmem:[%s481_s28 + $0x58] sm:$0xff]  ;;  %v799_v12 = vld [vmem:[%s481_s28 + $0x50] sm:$0xff] }
  0xe3   : > { %762 = vst [vmem:[#allocation3 + $0x38] sm:$0xff] %v15817_v0  ;;  %763 = vst [vmem:[#allocation3 + $0x40] sm:$0xff] %v15817_v0  ;;  %v802_v13 = vld [vmem:[%s481_s28 + $0x68] sm:$0xff]  ;;  %v801_v14 = vld [vmem:[%s481_s28 + $0x60] sm:$0xff] }
  0xe4   : > { %764 = vst [vmem:[#allocation3 + $0x48] sm:$0xff] %v15817_v0  ;;  %765 = vst [vmem:[#allocation3 + $0x50] sm:$0xff] %v15817_v0  ;;  %v804_v15 = vld [vmem:[%s481_s28 + $0x78] sm:$0xff]  ;;  %v803_v16 = vld [vmem:[%s481_s28 + $0x70] sm:$0xff]  ;;  %13821 = vmatpush3.bf16.msra.mxu0 %v14897_v28 }
  0xe5   : > { %766 = vst [vmem:[#allocation3 + $0x58] sm:$0xff] %v15817_v0  ;;  %767 = vst [vmem:[#allocation3 + $0x60] sm:$0xff] %v15817_v0  ;;  %13838 = vmatprep.subr.bf16.mxu0 %v16153_v37 }
  0xe6   : > { %768 = vst [vmem:[#allocation3 + $0x68] sm:$0xff] %v15817_v0  ;;  %769 = vst [vmem:[#allocation3 + $0x70] sm:$0xff] %v15817_v0  ;;  %831 = vrot.lane.b32.xlu1 %v794_v5, %s15818_s12  ;;  %829 = vrot.lane.b32.xlu0 %v793_v6, %s15818_s12  ;;  %v16219_v5 = vld [vmem:[#allocation10 + $0x98] sm:$0xff]  }
  0xe7   : > { %770 = vst [vmem:[#allocation3 + $0x78] sm:$0xff] %v15817_v0  ;;  %771 = vst [vmem:[#allocation3 + $0x80] sm:$0xff] %v15817_v0 }
  0xe8   : > { %772 = vst [vmem:[#allocation3 + $0x88] sm:$0xff] %v15817_v0  ;;  %773 = vst [vmem:[#allocation3 + $0x90] sm:$0xff] %v15817_v0 }
  0xe9   : > { %774 = vst [vmem:[#allocation3 + $0x98] sm:$0xff] %v15817_v0  ;;  %775 = vst [vmem:[#allocation3 + $0xa0] sm:$0xff] %v15817_v0 }
  0xea   : > { %776 = vst [vmem:[#allocation3 + $0xa8] sm:$0xff] %v15817_v0  ;;  %777 = vst [vmem:[#allocation3 + $0xb0] sm:$0xff] %v15817_v0  ;;  %835 = vrot.lane.b32.xlu1 %v796_v7, %s15818_s12  ;;  %833 = vrot.lane.b32.xlu0 %v795_v8, %s15818_s12 }
  0xeb   : > { %778 = vst [vmem:[#allocation3 + $0xb8] sm:$0xff] %v15817_v0  ;;  %779 = vst [vmem:[#allocation3 + $0xc0] sm:$0xff] %v15817_v0 }
  0xec   : > { %780 = vst [vmem:[#allocation3 + $0xc8] sm:$0xff] %v15817_v0  ;;  %781 = vst [vmem:[#allocation3 + $0xd0] sm:$0xff] %v15817_v0 }
  0xed   : > { %782 = vst [vmem:[#allocation3 + $0xd8] sm:$0xff] %v15817_v0  ;;  %783 = vst [vmem:[#allocation3 + $0xe0] sm:$0xff] %v15817_v0 }
  0xee   : > { %784 = vst [vmem:[#allocation3 + $0xe8] sm:$0xff] %v15817_v0  ;;  %785 = vst [vmem:[#allocation3 + $0xf0] sm:$0xff] %v15817_v0  ;;  %839 = vrot.lane.b32.xlu1 %v798_v9, %s15818_s12  ;;  %837 = vrot.lane.b32.xlu0 %v797_v10, %s15818_s12 }
  0xef   : > { %786 = vst [vmem:[#allocation3 + $0xf8] sm:$0xff] %v15817_v0  ;;  %787 = vst [vmem:[#allocation3 + $0x100] sm:$0x3] %v15817_v0 }
  0xf0   : > { %788 = vst [vmem:[#allocation3 + $0x108] sm:$0x3] %v15817_v0  ;;  %v16211_v0 = vld [vmem:[#allocation10 + $0x90] sm:$0xff]  }
  0xf1   : > { %14340 = vmatprep.subr.bf16.mxu1 %v16211_v0 }
  0xf2   : > { %843 = vrot.lane.b32.xlu1 %v800_v11, %s15818_s12  ;;  %841 = vrot.lane.b32.xlu0 %v799_v12, %s15818_s12  ;;  %v16252_v12 = vld [vmem:[#allocation10 + $0x60] sm:$0xff]  }
  0xf3   : > { %14344 = vmatpush3.bf16.msra.mxu1 %v16211_v0 }
  0xf4   : > { %14341 = vmatprep.subr.bf16.mxu1 %v16219_v5 }
  0xf6   : > { %847 = vrot.lane.b32.xlu1 %v802_v13, %s15818_s12  ;;  %845 = vrot.lane.b32.xlu0 %v801_v14, %s15818_s12 }
  0xf7   : > { %14345 = vmatpush3.bf16.msra.mxu1 %v16219_v5 }
  0xf8   : > { %13910 = vmatprep.subr.bf16.mxu1 %v16252_v12 }
  0xfa   : > { %851 = vrot.lane.b32.xlu1 %v804_v15, %s15818_s12  ;;  %849 = vrot.lane.b32.xlu0 %v803_v16, %s15818_s12 }
 0x150   : > { %v826_v18 = vpop.permute.xlu1 %825  ;;  %v822_v19 = vpop.permute.xlu0 %821 }
 0x151   : > { %872 = vst.msk [vmem:[#allocation2 + $0x11] sm:$0xff] %vm869_vm0, %v826_v18  ;;  %870 = vst.msk [vmem:[#allocation2 + $0x1] sm:$0xff] %vm869_vm0, %v822_v19 }
 0x154   : > { %v828_v21 = vpop.permute.xlu1 %827  ;;  %v824_v22 = vpop.permute.xlu0 %823 }
 0x155   : > { %873 = vst.msk [vmem:[#allocation2 + $0x19] sm:$0xff] %vm869_vm0, %v828_v21  ;;  %871 = vst.msk [vmem:[#allocation2 + $0x9] sm:$0xff] %vm869_vm0, %v824_v22 }
 0x158   : > { %v886_v24 = vld [vmem:[#allocation2] sm:$0xff]  ;;  %v832_v25 = vpop.permute.xlu1 %831  ;;  %v830_v26 = vpop.permute.xlu0 %829 }
 0x159   : > { %v16137_v27 = vpack.c.bf16 %v886_v24, %v886_v24  ;;  %875 = vst.msk [vmem:[#allocation2 + $0x29] sm:$0xff] %vm869_vm0, %v832_v25  ;;  %874 = vst.msk [vmem:[#allocation2 + $0x21] sm:$0xff] %vm869_vm0, %v830_v26  ;;  %v14902_v25 = vld [vmem:[#allocation10 + $0x8] sm:$0xff]  }
 0x15b   : > { %973 = vst.msk [vmem:[#allocation4] sm:$0xf] %vm972_vm1, %v16137_v27  ;;  %1060 = vrot.lane.b32.xlu0 %v16137_v27, %s15819_s14 }
 0x15c   : > { %v889_v29 = vld [vmem:[#allocation2 + $0x18] sm:$0xff]  ;;  %v887_v30 = vld [vmem:[#allocation2 + $0x8] sm:$0xff]  ;;  %v888_v31 = vld [vmem:[#allocation2 + $0x10] sm:$0xff]  ;;  %v836_v32 = vpop.permute.xlu1 %835  ;;  %v834_v33 = vpop.permute.xlu0 %833 }
 0x15d   : > { %v16145_v34 = vpack.c.bf16 %v889_v29, %v889_v29  ;;  %v16147_v35 = vpack.c.bf16 %v887_v30, %v887_v30  ;;  %v16149_v36 = vpack.c.bf16 %v888_v31, %v888_v31  ;;  %877 = vst.msk [vmem:[#allocation2 + $0x39] sm:$0xff] %vm869_vm0, %v836_v32  ;;  %876 = vst.msk [vmem:[#allocation2 + $0x31] sm:$0xff] %vm869_vm0, %v834_v33  ;;  %v14907_v29 = vld [vmem:[#allocation10 + $0x10] sm:$0xff]   ;;  %v14914_v33 = vld [vmem:[#allocation10 + $0x18] sm:$0xff]  }
 0x15f   : > { %976 = vst.msk [vmem:[#allocation4 + $0xc] sm:$0xf] %vm972_vm1, %v16145_v34  ;;  %975 = vst.msk [vmem:[#allocation4 + $0x8] sm:$0xf] %vm972_vm1, %v16149_v36  ;;  %1062 = vrot.lane.b32.xlu1 %v16147_v35, %s15819_s14  ;;  %1064 = vrot.lane.b32.xlu0 %v16149_v36, %s15819_s14 }
 0x160   : > { %974 = vst.msk [vmem:[#allocation4 + $0x4] sm:$0xf] %vm972_vm1, %v16147_v35  ;;  %v890_v38 = vld [vmem:[#allocation2 + $0x20] sm:$0xff]  ;;  %v891_v39 = vld [vmem:[#allocation2 + $0x28] sm:$0xff]  ;;  %v840_v40 = vpop.permute.xlu1 %839  ;;  %v838_v41 = vpop.permute.xlu0 %837 }
 0x161   : > { %v16166_v42 = vpack.c.bf16 %v890_v38, %v890_v38  ;;  %v16168_v43 = vpack.c.bf16 %v891_v39, %v891_v39  ;;  %879 = vst.msk [vmem:[#allocation2 + $0x49] sm:$0xff] %vm869_vm0, %v840_v40  ;;  %878 = vst.msk [vmem:[#allocation2 + $0x41] sm:$0xff] %vm869_vm0, %v838_v41 }
 0x163   : > { %977 = vst.msk [vmem:[#allocation4 + $0x10] sm:$0xf] %vm972_vm1, %v16166_v42  ;;  %978 = vst.msk [vmem:[#allocation4 + $0x14] sm:$0xf] %vm972_vm1, %v16168_v43  ;;  %1066 = vrot.lane.b32.xlu1 %v16145_v34, %s15819_s14  ;;  %1068 = vrot.lane.b32.xlu0 %v16166_v42, %s15819_s14 }
 0x164   : > { %v892_v44 = vld [vmem:[#allocation2 + $0x30] sm:$0xff]  ;;  %v893_v45 = vld [vmem:[#allocation2 + $0x38] sm:$0xff]  ;;  %v844_v46 = vpop.permute.xlu1 %843  ;;  %v842_v47 = vpop.permute.xlu0 %841 }
 0x165   : > { %v16180_v48 = vpack.c.bf16 %v892_v44, %v892_v44  ;;  %v16182_v49 = vpack.c.bf16 %v893_v45, %v893_v45  ;;  %881 = vst.msk [vmem:[#allocation2 + $0x59] sm:$0xff] %vm869_vm0, %v844_v46  ;;  %880 = vst.msk [vmem:[#allocation2 + $0x51] sm:$0xff] %vm869_vm0, %v842_v47 }
 0x167   : > { %979 = vst.msk [vmem:[#allocation4 + $0x18] sm:$0xf] %vm972_vm1, %v16180_v48  ;;  %980 = vst.msk [vmem:[#allocation4 + $0x1c] sm:$0xf] %vm972_vm1, %v16182_v49  ;;  %1070 = vrot.lane.b32.xlu1 %v16168_v43, %s15819_s14  ;;  %1072 = vrot.lane.b32.xlu0 %v16180_v48, %s15819_s14 }
 0x168   : > { %v894_v51 = vld [vmem:[#allocation2 + $0x40] sm:$0xff]  ;;  %v895_v52 = vld [vmem:[#allocation2 + $0x48] sm:$0xff]  ;;  %v848_v53 = vpop.permute.xlu1 %847  ;;  %v846_v54 = vpop.permute.xlu0 %845 }
 0x169   : > { %v13313_v55 = vpack.c.bf16 %v894_v51, %v894_v51  ;;  %v13314_v56 = vpack.c.bf16 %v895_v52, %v895_v52  ;;  %883 = vst.msk [vmem:[#allocation2 + $0x69] sm:$0xff] %vm869_vm0, %v848_v53  ;;  %882 = vst.msk [vmem:[#allocation2 + $0x61] sm:$0xff] %vm869_vm0, %v846_v54 }
 0x16b   : > { %981 = vst.msk [vmem:[#allocation4 + $0x20] sm:$0xf] %vm972_vm1, %v13313_v55  ;;  %982 = vst.msk [vmem:[#allocation4 + $0x24] sm:$0xf] %vm972_vm1, %v13314_v56  ;;  %1074 = vrot.lane.b32.xlu1 %v16182_v49, %s15819_s14  ;;  %1076 = vrot.lane.b32.xlu0 %v13313_v55, %s15819_s14 }
 0x16c   : > { %v896_v58 = vld [vmem:[#allocation2 + $0x50] sm:$0xff]  ;;  %v897_v59 = vld [vmem:[#allocation2 + $0x58] sm:$0xff]  ;;  %v852_v60 = vpop.permute.xlu1 %851  ;;  %v850_v61 = vpop.permute.xlu0 %849 }
 0x16d   : > { %v13315_v62 = vpack.c.bf16 %v896_v58, %v896_v58  ;;  %v13316_v63 = vpack.c.bf16 %v897_v59, %v897_v59  ;;  %885 = vst.msk [vmem:[#allocation2 + $0x79] sm:$0xff] %vm869_vm0, %v852_v60  ;;  %884 = vst.msk [vmem:[#allocation2 + $0x71] sm:$0xff] %vm869_vm0, %v850_v61  ;;  %v14917_v61 = vld [vmem:[#allocation4] sm:$0xff]  }
 0x16f   : > { %983 = vst.msk [vmem:[#allocation4 + $0x28] sm:$0xf] %vm972_vm1, %v13315_v62  ;;  %984 = vst.msk [vmem:[#allocation4 + $0x2c] sm:$0xf] %vm972_vm1, %v13316_v63  ;;  %1078 = vrot.lane.b32.xlu1 %v13314_v56, %s15819_s14  ;;  %1080 = vrot.lane.b32.xlu0 %v13315_v62, %s15819_s14 }
 0x170   : > { %v898_v1 = vld [vmem:[#allocation2 + $0x60] sm:$0xff]  ;;  %v899_v2 = vld [vmem:[#allocation2 + $0x68] sm:$0xff] }
 0x171   : > { %v13317_v3 = vpack.c.bf16 %v898_v1, %v898_v1  ;;  %v13318_v4 = vpack.c.bf16 %v899_v2, %v899_v2 }
 0x173   : > { %985 = vst.msk [vmem:[#allocation4 + $0x30] sm:$0xf] %vm972_vm1, %v13317_v3  ;;  %986 = vst.msk [vmem:[#allocation4 + $0x34] sm:$0xf] %vm972_vm1, %v13318_v4  ;;  %1082 = vrot.lane.b32.xlu1 %v13316_v63, %s15819_s14  ;;  %1084 = vrot.lane.b32.xlu0 %v13317_v3, %s15819_s14 }
 0x174   : > { %v900_v6 = vld [vmem:[#allocation2 + $0x70] sm:$0xff]  ;;  %v901_v7 = vld [vmem:[#allocation2 + $0x78] sm:$0xff]  ;;  %v902_v10 = vld [vmem:[#allocation2 + $0x80] sm:$0x3] }
 0x175   : > { %v13319_v8 = vpack.c.bf16 %v900_v6, %v900_v6  ;;  %v13320_v9 = vpack.c.bf16 %v901_v7, %v901_v7  ;;  %v13321_v11 = vpack.c.bf16 %v902_v10, %v902_v10  ;;  %v1007_v13 = vld [vmem:[#allocation2 + $0x80] sm:$0x3] }
 0x176   : > { %v13338_v14 = vpack.c.bf16 %v1007_v13, %v1007_v13  ;;  %v1145_v15 = vld [vmem:[#allocation2 + $0x80] sm:$0x3] }
 0x177   : > { %987 = vst.msk [vmem:[#allocation4 + $0x38] sm:$0xf] %vm972_vm1, %v13319_v8  ;;  %988 = vst.msk [vmem:[#allocation4 + $0x3c] sm:$0xf] %vm972_vm1, %v13320_v9  ;;  %1086 = vrot.lane.b32.xlu1 %v13318_v4, %s15819_s14  ;;  %1088 = vrot.lane.b32.xlu0 %v13319_v8, %s15819_s14  ;;  %v13355_v16 = vpack.c.bf16 %v1145_v15, %v1145_v15  ;;  %v14932_v6 = vld [vmem:[#allocation10 + $0x68] sm:$0xff]   ;;  %v14934_v15 = vld [vmem:[#allocation10 + $0x70] sm:$0xff]  }
 0x178   : > { %990 = vst.msk [vmem:[#allocation4 + $0x40] sm:$0x1] %vm989_vm2, %v13321_v11 }
 0x17b   : > { %1090 = vrot.lane.b32.xlu1 %v13320_v9, %s15819_s14  ;;  %1198 = vrot.lane.b32.xlu0 %v16137_v27, %s15820_s26 }
 0x17f   : > { %1200 = vrot.lane.b32.xlu1 %v16147_v35, %s15820_s26  ;;  %1202 = vrot.lane.b32.xlu0 %v16149_v36, %s15820_s26 }
 0x183   : > { %1204 = vrot.lane.b32.xlu1 %v16145_v34, %s15820_s26  ;;  %1206 = vrot.lane.b32.xlu0 %v16166_v42, %s15820_s26 }
 0x187   : > { %1208 = vrot.lane.b32.xlu1 %v16168_v43, %s15820_s26  ;;  %1210 = vrot.lane.b32.xlu0 %v16180_v48, %s15820_s26 }
 0x18b   : > { %1212 = vrot.lane.b32.xlu1 %v16182_v49, %s15820_s26  ;;  %1214 = vrot.lane.b32.xlu0 %v13313_v55, %s15820_s26 }
 0x18f   : > { %1216 = vrot.lane.b32.xlu1 %v13314_v56, %s15820_s26  ;;  %1218 = vrot.lane.b32.xlu0 %v13315_v62, %s15820_s26 }
 0x193   : > { %1220 = vrot.lane.b32.xlu1 %v13316_v63, %s15820_s26  ;;  %1222 = vrot.lane.b32.xlu0 %v13317_v3, %s15820_s26 }
 0x197   : > { %1224 = vrot.lane.b32.xlu1 %v13318_v4, %s15820_s26  ;;  %1226 = vrot.lane.b32.xlu0 %v13319_v8, %s15820_s26 }
 0x19b   : > { %1228 = vrot.lane.b32.xlu1 %v13320_v9, %s15820_s26  ;;  %1092 = vrot.lane.b32.xlu0 %v13338_v14, %s15819_s14 }
 0x19f   : > { %1230 = vrot.lane.b32.xlu1 %v13355_v16, %s15820_s26 }
 0x1cd   : > { %v1061_v17 = vpop.permute.xlu0 %1060 }
 0x1ce   : > { %1112 = vst.msk [vmem:[#allocation4 + $0x44] sm:$0xf] %vm972_vm1, %v1061_v17  ;;  %v14920_v17 = vld [vmem:[#allocation4 + $0x8] sm:$0xff]  }
 0x1d1   : > { %v1063_v18 = vpop.permute.xlu1 %1062  ;;  %v1065_v19 = vpop.permute.xlu0 %1064 }
 0x1d2   : > { %1113 = vst.msk [vmem:[#allocation4 + $0x48] sm:$0xf] %vm972_vm1, %v1063_v18  ;;  %1114 = vst.msk [vmem:[#allocation4 + $0x4c] sm:$0xf] %vm972_vm1, %v1065_v19 }
 0x1d5   : > { %v1067_v20 = vpop.permute.xlu1 %1066  ;;  %v1069_v21 = vpop.permute.xlu0 %1068 }
 0x1d6   : > { %1115 = vst.msk [vmem:[#allocation4 + $0x50] sm:$0xf] %vm972_vm1, %v1067_v20  ;;  %1116 = vst.msk [vmem:[#allocation4 + $0x54] sm:$0xf] %vm972_vm1, %v1069_v21  ;;  %v14922_v20 = vld [vmem:[#allocation10 + $0x48] sm:$0xff]   ;;  %v14921_v21 = vld [vmem:[#allocation4 + $0x10] sm:$0xff]  }
 0x1d9   : > { %v1071_v22 = vpop.permute.xlu1 %1070  ;;  %v1073_v23 = vpop.permute.xlu0 %1072  ;;  %v14898_v24 = vld [vmem:[#allocation4 + $0x44] sm:$0xff]  }
 0x1da   : > { %1117 = vst.msk [vmem:[#allocation4 + $0x58] sm:$0xf] %vm972_vm1, %v1071_v22  ;;  %1118 = vst.msk [vmem:[#allocation4 + $0x5c] sm:$0xf] %vm972_vm1, %v1073_v23  ;;  %13822 = vmatprep.mubr.msk.bf16.mxu0 %vm1380_vm3, %v14898_v24  ;;  %v14925_v24 = vld [vmem:[#allocation10 + $0x50] sm:$0xff]  }
 0x1dd   : > { %v1075_v26 = vpop.permute.xlu1 %1074  ;;  %v1077_v27 = vpop.permute.xlu0 %1076  ;;  %v14900_v28 = vld [vmem:[#allocation4 + $0x4c] sm:$0xff]  }
 0x1de   : > { %1119 = vst.msk [vmem:[#allocation4 + $0x60] sm:$0xf] %vm972_vm1, %v1075_v26  ;;  %1120 = vst.msk [vmem:[#allocation4 + $0x64] sm:$0xf] %vm972_vm1, %v1077_v27  ;;  %13823 = vmatmul.mubr.msk.bf16.vlgmr.msra.gmra.mrb[0].mxu0 %vm1380_vm3, %v14900_v28  ;;  %v14923_v26 = vld [vmem:[#allocation4 + $0x18] sm:$0xff]  }
 0x1df   : > { %13839 = vmatpush3.bf16.msra.mxu0 %v16153_v37  ;;  %v16280_v37 = vld [vmem:[#allocation10 + $0x40] sm:$0xff]  }
 0x1e0   : > { %13840 = vmatprep.subr.bf16.mxu0 %v14902_v25 }
 0x1e1   : > { %v1079_v30 = vpop.permute.xlu1 %1078  ;;  %v1081_v31 = vpop.permute.xlu0 %1080  ;;  %v14901_v32 = vld [vmem:[#allocation4 + $0x54] sm:$0xff]  }
 0x1e2   : > { %1121 = vst.msk [vmem:[#allocation4 + $0x68] sm:$0xf] %vm972_vm1, %v1079_v30  ;;  %1122 = vst.msk [vmem:[#allocation4 + $0x6c] sm:$0xf] %vm972_vm1, %v1081_v31  ;;  %13826 = vmatprep.mubr.msk.bf16.mxu0 %vm1380_vm3, %v14901_v32  ;;  %v14924_v30 = vld [vmem:[#allocation4 + $0x20] sm:$0xff]  }
 0x1e3   : > { %13841 = vmatpush3.bf16.msra.mxu0 %v14902_v25  ;;  %v16321_v25 = vld [vmem:[#allocation10 + $0xa0] sm:$0xff]  }
 0x1e4   : > { %13842 = vmatprep.subr.bf16.mxu0 %v14907_v29 }
 0x1e5   : > { %v1083_v34 = vpop.permute.xlu1 %1082  ;;  %v1085_v35 = vpop.permute.xlu0 %1084  ;;  %v14903_v36 = vld [vmem:[#allocation4 + $0x5c] sm:$0xff]  }
 0x1e6   : > { %1123 = vst.msk [vmem:[#allocation4 + $0x70] sm:$0xf] %vm972_vm1, %v1083_v34  ;;  %1124 = vst.msk [vmem:[#allocation4 + $0x74] sm:$0xf] %vm972_vm1, %v1085_v35  ;;  %13827 = vmatmul.mubr.msk.bf16.gmra.mrb[4].mxu0 %vm1380_vm3, %v14903_v36  ;;  %v14926_v36 = vld [vmem:[#allocation4 + $0x28] sm:$0xff]  }
 0x1e7   : > { %13843 = vmatpush3.bf16.msra.mxu0 %v14907_v29  ;;  %v14929_v29 = vld [vmem:[#allocation10 + $0x58] sm:$0xff]  }
 0x1e8   : > { %13844 = vmatprep.subr.bf16.mxu0 %v14914_v33 }
 0x1e9   : > { %v1087_v38 = vpop.permute.xlu1 %1086  ;;  %v1089_v39 = vpop.permute.xlu0 %1088  ;;  %v14905_v40 = vld [vmem:[#allocation4 + $0x64] sm:$0xff]  }
 0x1ea   : > { %1125 = vst.msk [vmem:[#allocation4 + $0x78] sm:$0xf] %vm972_vm1, %v1087_v38  ;;  %1126 = vst.msk [vmem:[#allocation4 + $0x7c] sm:$0xf] %vm972_vm1, %v1089_v39  ;;  %v14912_v41 = vld [vmem:[#allocation4 + $0x64] sm:$0xff]   ;;  %13830 = vmatprep.mubr.msk.bf16.mxu0 %vm1380_vm3, %v14905_v40 }
 0x1eb   : > { %v2105_v42 = vshll.u32 %v14912_v41, 16  ;;  %13845 = vmatpush3.bf16.msra.mxu0 %v14914_v33  ;;  %v2109_v48 = vshrl.u32 %v14912_v41, 16  ;;  %v14935_v33 = vld [vmem:[#allocation4] sm:$0xff]   ;;  %v14936_v40 = vld [vmem:[#allocation4 + $0x8] sm:$0xff]  }
 0x1ec   : > { %13862 = vmatprep.subr.bf16.mxu0 %v16280_v37  ;;  %v2332_v38 = vshll.u32 %v14935_v33, 16  ;;  %v2330_v41 = vshrl.u32 %v14935_v33, 16 }
 0x1ed   : > { %v1091_v43 = vpop.permute.xlu1 %1090  ;;  %v1199_v44 = vpop.permute.xlu0 %1198  ;;  %v14908_v45 = vld [vmem:[#allocation4 + $0x6c] sm:$0xff]   ;;  %v16288_v47 = vrot.slane %v2105_v42, 1 }
 0x1ee   : > { %1127 = vst.msk [vmem:[#allocation4 + $0x80] sm:$0xf] %vm972_vm1, %v1091_v43  ;;  %1250 = vst.msk [vmem:[#allocation4 + $0x88] sm:$0xf] %vm972_vm1, %v1199_v44  ;;  %v14913_v46 = vld [vmem:[#allocation4 + $0x6c] sm:$0xff]   ;;  %13831 = vmatmul.mubr.msk.bf16.gmra.mrb[8].mxu0 %vm1380_vm3, %v14908_v45  ;;  %v2334_v42 = vrot.slane %v2332_v38, 1 }
 0x1ef   : > { %v2113_v49 = vshll.u32 %v14913_v46, 16  ;;  %v2111_v54 = vor.u32 %v2109_v48, %v16288_v47  ;;  %v2117_v59 = vshrl.u32 %v14913_v46, 16  ;;  %v14940_v43 = vld [vmem:[#allocation4 + $0x10] sm:$0xff]   ;;  %v14930_v44 = vld [vmem:[#allocation4 + $0x38] sm:$0xff]   ;;  %v2337_v48 = vshll.u32 %v14936_v40, 16 }
 0x1f0   : > { %v14955_v38 = vld [vmem:[#allocation4 + $0x40] ss:$0 sps:$4 sm:$0x11]  }
 0x1f1   : > { %v1201_v51 = vpop.permute.xlu1 %1200  ;;  %v1203_v52 = vpop.permute.xlu0 %1202  ;;  %v14910_v53 = vld [vmem:[#allocation4 + $0x74] sm:$0xff]   ;;  %v2115_v55 = vrot.slane %v2113_v49, 1 }
 0x1f2   : > { %1251 = vst.msk [vmem:[#allocation4 + $0x8c] sm:$0xf] %vm972_vm1, %v1201_v51  ;;  %1252 = vst.msk [vmem:[#allocation4 + $0x90] sm:$0xf] %vm972_vm1, %v1203_v52  ;;  %v14916_v56 = vld [vmem:[#allocation4 + $0x74] sm:$0xff]   ;;  %13834 = vmatprep.mubr.msk.bf16.mxu0 %vm1380_vm3, %v14910_v53  ;;  %v2335_v52 = vor.u32 %v2334_v42, %v2330_v41 }
 0x1f3   : > { %v2116_v58 = vsel %vm17724_vm4, %v2111_v54, %v2115_v55  ;;  %v2121_v60 = vshll.u32 %v14916_v56, 16  ;;  %v2119_v2 = vor.u32 %v2117_v59, %v2115_v55  ;;  %v2125_v8 = vshrl.u32 %v14916_v56, 16  ;;  %v14941_v53 = vld [vmem:[#allocation4 + $0x18] sm:$0xff]  }
 0x1f4   : > { %13902 = vmatprep.mubr.msk.bf16.mxu1 %vm1380_vm3, %v2116_v58  ;;  %v2339_v56 = vrot.slane %v2337_v48, 1  ;;  %v2345_v58 = vshll.u32 %v14940_v43, 16 }
 0x1f5   : > { %v1205_v62 = vpop.permute.xlu1 %1204  ;;  %v1207_v63 = vpop.permute.xlu0 %1206  ;;  %v14915_v1 = vld [vmem:[#allocation4 + $0x7c] sm:$0xff]   ;;  %v2123_v3 = vrot.slane %v2121_v60, 1 }
 0x1f6   : > { %1253 = vst.msk [vmem:[#allocation4 + $0x94] sm:$0xf] %vm972_vm1, %v1205_v62  ;;  %1254 = vst.msk [vmem:[#allocation4 + $0x98] sm:$0xf] %vm972_vm1, %v1207_v63  ;;  %v16299_v4 = vld [vmem:[#allocation4 + $0x7c] sm:$0xff]   ;;  %13835 = vmatmul.mubr.msk.bf16.gmra.mrb[12].mxu0 %vm1380_vm3, %v14915_v1  ;;  %v2340_v60 = vsel %vm17724_vm4, %v2335_v52, %v2339_v56  ;;  %v2347_v1 = vrot.slane %v2345_v58, 1 }
 0x1f7   : > { %v2124_v7 = vsel %vm17724_vm4, %v2119_v2, %v2123_v3  ;;  %13846 = vmatprep.mubr.msk.bf16.mxu0 %vm1380_vm3, %v14917_v61  ;;  %v2129_v9 = vshll.u32 %v16299_v4, 16  ;;  %v2127_v13 = vor.u32 %v2125_v8, %v2123_v3  ;;  %v2133_v49 = vshrl.u32 %v16299_v4, 16  ;;  %v14944_v2 = vld [vmem:[#allocation4 + $0x20] sm:$0xff]  }
 0x1f8   : > { %13903 = vmatmul.mubr.msk.bf16.vlgmr.msra.gmra.mrb[0].mxu1 %vm1380_vm3, %v2124_v7  ;;  %v2353_v61 = vshll.u32 %v14941_v53, 16  ;;  %v2341_v3 = vshrl.u32 %v14936_v40, 16  ;;  %v2349_v4 = vshrl.u32 %v14940_v43, 16  ;;  %v14945_v7 = vld [vmem:[#allocation4 + $0x28] sm:$0xff]   ;;  %v2393_v52 = vshll.u32 %v14955_v38, 16 }
 0x1f9   : > { %v1209_v10 = vpop.permute.xlu1 %1208  ;;  %v1211_v11 = vpop.permute.xlu0 %1210  ;;  %v16308_v14 = vrot.slane %v2129_v9, 1  ;;  %13911 = vmatpush3.bf16.msra.mxu1 %v16252_v12  ;;  %v14939_v12 = vld [vmem:[#allocation10 + $0x78] sm:$0xff]   ;;  %v14931_v46 = vld [vmem:[#allocation4 + $0x88] sm:$0xff]  }
 0x1fa   : > { %1255 = vst.msk [vmem:[#allocation4 + $0x9c] sm:$0xf] %vm972_vm1, %v1209_v10  ;;  %1256 = vst.msk [vmem:[#allocation4 + $0xa0] sm:$0xf] %vm972_vm1, %v1211_v11  ;;  %13912 = vmatprep.subr.bf16.mxu1 %v14932_v6  ;;  %v2343_v8 = vor.u32 %v2341_v3, %v2339_v56  ;;  %v2351_v9 = vor.u32 %v2349_v4, %v2347_v1  ;;  %v2361_v10 = vshll.u32 %v14944_v2, 16 }
 0x1fb   : > { %v2132_v16 = vsel %vm17724_vm4, %v2127_v13, %v16308_v14  ;;  %v2135_v54 = vor.u32 %v2133_v49, %v16308_v14  ;;  %v14954_v13 = vld [vmem:[#allocation10 + $0xa8] sm:$0xff]  }
 0x1fc   : > { %13906 = vmatprep.mubr.msk.bf16.mxu1 %vm1380_vm3, %v2132_v16  ;;  %v2348_v11 = vsel %vm17724_vm4, %v2343_v8, %v2347_v1 }
 0x1fd   : > { %v1213_v18 = vpop.permute.xlu1 %1212  ;;  %v1215_v19 = vpop.permute.xlu0 %1214  ;;  %13913 = vmatpush3.bf16.msra.mxu1 %v14932_v6  ;;  %v14937_v62 = vld [vmem:[#allocation4 + $0x90] sm:$0xff]   ;;  %v2355_v6 = vrot.slane %v2353_v61, 1 }
 0x1fe   : > { %1257 = vst.msk [vmem:[#allocation4 + $0xa4] sm:$0xf] %vm972_vm1, %v1213_v18  ;;  %1258 = vst.msk [vmem:[#allocation4 + $0xa8] sm:$0xf] %vm972_vm1, %v1215_v19  ;;  %13847 = vmatmul.mubr.msk.bf16.vlgmr.msra.gmra.mrb[0].mxu0 %vm1380_vm3, %v14920_v17  ;;  %13914 = vmatprep.subr.bf16.mxu1 %v14934_v15  ;;  %v2363_v17 = vrot.slane %v2361_v10, 1  ;;  %v14948_v18 = vld [vmem:[#allocation4 + $0x30] sm:$0xff]  }
 0x1ff   : > { %13863 = vmatpush3.bf16.msra.mxu0 %v16280_v37  ;;  %13850 = vmatprep.mubr.msk.bf16.mxu0 %vm1380_vm3, %v14921_v21  ;;  %v14927_v37 = vld [vmem:[#allocation4 + $0x30] sm:$0xff]   ;;  %v2356_v14 = vsel %vm17724_vm4, %v2351_v9, %v2355_v6  ;;  %v2357_v19 = vshrl.u32 %v14941_v53, 16  ;;  %v2365_v21 = vshrl.u32 %v14944_v2, 16  ;;  %v14961_v53 = vld [vmem:[#allocation4 + $0x5c] sm:$0xff]   ;;  %v2395_v2 = vrot.slane %v2393_v52, 1 }
 0x200   : > { %13864 = vmatprep.subr.bf16.mxu0 %v14922_v20  ;;  %v14958_v41 = vld [vmem:[#allocation4 + $0x90] sm:$0xff]   ;;  %v2097_v3 = vshll.u32 %v14961_v53, 16  ;;  %v14972_v52 = vld [vmem:[#allocation10 + $0xc0] sm:$0xff]  }
 0x201   : > { %v1217_v22 = vpop.permute.xlu1 %1216  ;;  %v1219_v23 = vpop.permute.xlu0 %1218  ;;  %13915 = vmatpush3.bf16.msra.mxu1 %v14934_v15  ;;  %v14938_v63 = vld [vmem:[#allocation4 + $0x98] sm:$0xff]  }
 0x202   : > { %1259 = vst.msk [vmem:[#allocation4 + $0xac] sm:$0xf] %vm972_vm1, %v1217_v22  ;;  %1260 = vst.msk [vmem:[#allocation4 + $0xb0] sm:$0xf] %vm972_vm1, %v1219_v23  ;;  %13916 = vmatprep.subr.bf16.mxu1 %v14939_v12  ;;  %v2359_v22 = vor.u32 %v2357_v19, %v2355_v6  ;;  %v14952_v23 = vld [vmem:[#allocation4 + $0x44] sm:$0xff]  }
 0x203   : > { %13865 = vmatpush3.bf16.msra.mxu0 %v14922_v20  ;;  %v14956_v20 = vld [vmem:[#allocation10 + $0xb0] sm:$0xff]   ;;  %v2074_v49 = vshrl.u32 %v14952_v23, 16  ;;  %v14963_v19 = vld [vmem:[#allocation10 + $0xe8] sm:$0xff]  }
 0x204   : > { %13866 = vmatprep.subr.bf16.mxu0 %v14925_v24 }
 0x205   : > { %v1221_v27 = vpop.permute.xlu1 %1220  ;;  %v1223_v28 = vpop.permute.xlu0 %1222  ;;  %13917 = vmatpush3.bf16.msra.mxu1 %v14939_v12  ;;  %v14942_v15 = vld [vmem:[#allocation4 + $0xa0] sm:$0xff]   ;;  %v14950_v12 = vld [vmem:[#allocation4 + $0x38] sm:$0xff]  }
 0x206   : > { %1261 = vst.msk [vmem:[#allocation4 + $0xb4] sm:$0xf] %vm972_vm1, %v1221_v27  ;;  %1262 = vst.msk [vmem:[#allocation4 + $0xb8] sm:$0xf] %vm972_vm1, %v1223_v28  ;;  %13851 = vmatmul.mubr.msk.bf16.gmra.mrb[4].mxu0 %vm1380_vm3, %v14923_v26  ;;  %13934 = vmatprep.subr.bf16.mxu1 %v16321_v25  ;;  %v2367_v26 = vor.u32 %v2365_v21, %v2363_v17  ;;  %v2364_v27 = vsel %vm17724_vm4, %v2359_v22, %v2363_v17  ;;  %v16362_v28 = vld [vmem:[#allocation4 + $0x4c] sm:$0xff]  }
 0x207   : > { %13854 = vmatprep.mubr.msk.bf16.mxu0 %vm1380_vm3, %v14924_v30  ;;  %13867 = vmatpush3.bf16.msra.mxu0 %v14925_v24  ;;  %v16359_v24 = vld [vmem:[#allocation10 + $0xe0] sm:$0xff]   ;;  %v2385_v30 = vshll.u32 %v14950_v12, 16  ;;  %v2085_v9 = vshrl.u32 %v16362_v28, 16 }
 0x208   : > { %13868 = vmatprep.subr.bf16.mxu0 %v14929_v29 }
 0x209   : > { %v1225_v31 = vpop.permute.xlu1 %1224  ;;  %v1227_v32 = vpop.permute.xlu0 %1226  ;;  %v14943_v16 = vld [vmem:[#allocation4 + $0xa8] sm:$0xff]   ;;  %v2387_v40 = vrot.slane %v2385_v30, 1 }
 0x20a   : > { %1263 = vst.msk [vmem:[#allocation4 + $0xbc] sm:$0xf] %vm972_vm1, %v1225_v31  ;;  %1264 = vst.msk [vmem:[#allocation4 + $0xc0] sm:$0xf] %vm972_vm1, %v1227_v32  ;;  %v2076_v32 = vshll.u32 %v14952_v23, 16  ;;  %v14968_v23 = vld [vmem:[#allocation4 + $0x4c] sm:$0xff]  }
 0x20b   : > { %13869 = vmatpush3.bf16.msra.mxu0 %v14929_v29  ;;  %v14962_v29 = vld [vmem:[#allocation10 + $0xb8] sm:$0xff]  }
 0x20c   : > { %13886 = vmatprep.subr.bf16.mxu0 %v16186_v50  ;;  %v2078_v43 = vrot.slane %v2076_v32, 1 }
 0x20d   : > { %v1229_v34 = vpop.permute.xlu1 %1228  ;;  %v1093_v35 = vpop.permute.xlu0 %1092  ;;  %v14946_v31 = vld [vmem:[#allocation4 + $0xb0] sm:$0xff]  }
 0x20e   : > { %1265 = vst.msk [vmem:[#allocation4 + $0xc4] sm:$0xf] %vm972_vm1, %v1229_v34  ;;  %13855 = vmatmul.mubr.msk.bf16.gmra.mrb[8].mxu0 %vm1380_vm3, %v14926_v36  ;;  %v2373_v36 = vshrl.u32 %v14945_v7, 16  ;;  %v2079_v58 = vor.u32 %v2078_v43, %v2074_v49 }
 0x20f   : > { %1128 = vst.msk [vmem:[#allocation4 + $0x84] sm:$0x1] %vm989_vm2, %v1093_v35  ;;  %13858 = vmatprep.mubr.msk.bf16.mxu0 %vm1380_vm3, %v14927_v37  ;;  %v14957_v35 = vld [vmem:[#allocation4 + $0x88] sm:$0xff]   ;;  %v2081_v37 = vshll.u32 %v16362_v28, 16 }
 0x210   : > { %v2612_v4 = vshrl.u32 %v14957_v35, 16 }
 0x211   : > { %v1231_v39 = vpop.permute.xlu1 %1230  ;;  %v14947_v33 = vld [vmem:[#allocation4 + $0xb8] sm:$0xff]  }
 0x212   : > { %1266 = vst.msk [vmem:[#allocation4 + $0xc8] sm:$0x1] %vm989_vm2, %v1231_v39  ;;  %v16371_v39 = vld [vmem:[#allocation6] sm:$0xff]   ;;  %v14975_v43 = vld [vmem:[#allocation4 + $0xb8] sm:$0xff]  }
 0x215   : > { %v14951_v56 = vld [vmem:[#allocation4 + $0xc0] sm:$0xff]  }
 0x216   : > { %v14933_v45 = vld [vmem:[#allocation4 + $0x84] ss:$0 sps:$4 sm:$0x11]   ;;  %13859 = vmatmul.mubr.msk.bf16.gmra.mrb[12].mxu0 %vm1380_vm3, %v14930_v44  ;;  %v14960_v44 = vld [vmem:[#allocation4 + $0x54] sm:$0xff]  }
 0x217   : > { %v2137_v51 = vshll.u32 %v14933_v45, 16  ;;  %13870 = vmatprep.mubr.msk.bf16.mxu0 %vm1380_vm3, %v14931_v46  ;;  %v2614_v46 = vshll.u32 %v14957_v35, 16  ;;  %v14998_v35 = vld [vmem:[#allocation6 + $0x8] sm:$0xff]  }
 0x219   : > { %v2139_v55 = vrot.slane %v2137_v51, 1  ;;  %v2083_v51 = vrot.slane %v2081_v37, 1  ;;  %v2616_v61 = vrot.slane %v2614_v46, 1  ;;  %v14974_v46 = vld [vmem:[#allocation4 + $0x5c] sm:$0xff]  }
 0x21b   : > { %v2140_v59 = vsel %vm17724_vm4, %v2135_v54, %v2139_v55  ;;  %v2619_v55 = vshll.u32 %v14958_v41, 16  ;;  %v2617_v10 = vor.u32 %v2616_v61, %v2612_v4  ;;  %v14980_v4 = vld [vmem:[#allocation4 + $0xc8] ss:$0 sps:$4 sm:$0x11]  }
 0x21c   : > { %13907 = vmatmul.mubr.msk.bf16.gmra.mrb[4].mxu1 %vm1380_vm3, %v2140_v59  ;;  %v2389_v59 = vshrl.u32 %v14950_v12, 16  ;;  %v2623_v12 = vshrl.u32 %v14958_v41, 16 }
 0x21d   : > { %13918 = vmatprep.mubr.msk.bf16.mxu1 %vm1380_vm3, %v2340_v60  ;;  %v2089_v60 = vshll.u32 %v14960_v44, 16  ;;  %v2621_v6 = vrot.slane %v2619_v55, 1 }
 0x21e   : > { %13871 = vmatmul.mubr.msk.bf16.vlgmr.msra.gmra.mrb[0].mxu0 %vm1380_vm3, %v14937_v62  ;;  %v14964_v62 = vld [vmem:[#allocation4 + $0x98] sm:$0xff]   ;;  %v2391_v1 = vor.u32 %v2389_v59, %v2387_v40 }
 0x21f   : > { %13887 = vmatpush3.bf16.msra.mxu0 %v16186_v50  ;;  %13874 = vmatprep.mubr.msk.bf16.mxu0 %vm1380_vm3, %v14938_v63  ;;  %v2369_v50 = vshll.u32 %v14945_v7, 16  ;;  %v2084_v63 = vsel %vm17724_vm4, %v2079_v58, %v2083_v51  ;;  %v16382_v7 = vld [vmem:[#allocation4 + $0xa0] sm:$0xff]   ;;  %v2091_v8 = vrot.slane %v2089_v60, 1  ;;  %v2625_v28 = vor.u32 %v2623_v12, %v2621_v6 }
 0x220   : > { %13888 = vmatprep.subr.bf16.mxu0 %v16200_v57  ;;  %v2635_v17 = vshll.u32 %v16382_v7, 16  ;;  %v14977_v60 = vld [vmem:[#allocation10 + $0xc8] sm:$0xff]  }
 0x223   : > { %13889 = vmatpush3.bf16.msra.mxu0 %v16200_v57  ;;  %v2371_v57 = vrot.slane %v2369_v50, 1  ;;  %v2099_v50 = vrot.slane %v2097_v3, 1  ;;  %v14979_v3 = vld [vmem:[#allocation4 + $0x6c] sm:$0xff]  }
 0x224   : > { %13919 = vmatmul.mubr.msk.bf16.vlgmr.msra.gmra.mrb[8].mxu1 %vm1380_vm3, %v2348_v11  ;;  %13890 = vmatprep.subr.bf16.mxu0 %v16211_v0  ;;  %v2627_v11 = vshll.u32 %v14964_v62, 16 }
 0x225   : > { %13922 = vmatprep.mubr.msk.bf16.mxu1 %vm1380_vm3, %v2356_v14  ;;  %13935 = vmatpush3.bf16.msra.mxu1 %v16321_v25  ;;  %v2377_v25 = vshll.u32 %v14948_v18, 16  ;;  %v2375_v42 = vor.u32 %v2373_v36, %v2371_v57  ;;  %v2093_v14 = vshrl.u32 %v14960_v44, 16 }
 0x226   : > { %13875 = vmatmul.mubr.msk.bf16.gmra.mrb[4].mxu0 %vm1380_vm3, %v14942_v15  ;;  %13936 = vmatprep.subr.bf16.mxu1 %v14954_v13  ;;  %v2087_v15 = vor.u32 %v2085_v9, %v2083_v51  ;;  %v2629_v21 = vrot.slane %v2627_v11, 1  ;;  %v14981_v9 = vld [vmem:[#allocation10 + $0xd0] sm:$0xff]  }
 0x227   : > { %13878 = vmatprep.mubr.msk.bf16.mxu0 %vm1380_vm3, %v14943_v16  ;;  %13891 = vmatpush3.bf16.msra.mxu0 %v16211_v0  ;;  %v2372_v0 = vsel %vm17724_vm4, %v2367_v26, %v2371_v57  ;;  %v2379_v34 = vrot.slane %v2377_v25, 1  ;;  %v2622_v16 = vsel %vm17724_vm4, %v2617_v10, %v2621_v6  ;;  %v14970_v57 = vld [vmem:[#allocation4 + $0xa8] sm:$0xff]   ;;  %v2631_v26 = vshrl.u32 %v14964_v62, 16 }
 0x228   : > { %13892 = vmatprep.subr.bf16.mxu0 %v16219_v5  ;;  %v2637_v25 = vrot.slane %v2635_v17, 1  ;;  %v2643_v32 = vshll.u32 %v14970_v57, 16  ;;  %v2663_v6 = vshrl.u32 %v14975_v43, 16 }
 0x229   : > { %13937 = vmatpush3.bf16.msra.mxu1 %v14954_v13  ;;  %v2380_v48 = vsel %vm17724_vm4, %v2375_v42, %v2379_v34  ;;  %v2396_v13 = vsel %vm17724_vm4, %v2391_v1, %v2395_v2  ;;  %v2633_v30 = vor.u32 %v2631_v26, %v2629_v21  ;;  %v14973_v42 = vld [vmem:[#allocation4 + $0x54] sm:$0xff]   ;;  %v14988_v26 = vld [vmem:[#allocation10 + $0x100] sm:$0xff]  }
 0x22a   : > { %13938 = vmatprep.subr.bf16.mxu1 %v14956_v20  ;;  %v2645_v41 = vrot.slane %v2643_v32, 1  ;;  %v14985_v32 = vld [vmem:[#allocation4 + $0x84] ss:$0 sps:$4 sm:$0x11]  }
 0x22b   : > { %13893 = vmatpush3.bf16.msra.mxu0 %v16219_v5  ;;  %v2381_v5 = vshrl.u32 %v14948_v18, 16  ;;  %v2095_v18 = vor.u32 %v2093_v14, %v2091_v8  ;;  %v2993_v14 = vrot.slane %v14979_v3, 1 }
 0x22c   : > { %13923 = vmatmul.mubr.msk.bf16.gmra.mrb[12].mxu1 %vm1380_vm3, %v2364_v27  ;;  %13958 = vmatprep.subr.bf16.mxu0 %v16359_v24  ;;  %v16395_v27 = vld [vmem:[#allocation4 + $0xb0] sm:$0xff]  }
 0x22d   : > { %13926 = vmatprep.mubr.msk.bf16.mxu1 %vm1380_vm3, %v2372_v0  ;;  %13939 = vmatpush3.bf16.msra.mxu1 %v14956_v20  ;;  %v2383_v45 = vor.u32 %v2381_v5, %v2379_v34  ;;  %v2092_v20 = vsel %vm17724_vm4, %v2087_v15, %v2091_v8  ;;  %v2100_v22 = vsel %vm17724_vm4, %v2095_v18, %v2099_v50  ;;  %v14967_v0 = vld [vmem:[#allocation4 + $0x44] sm:$0xfe]   ;;  %v2985_v34 = vrot.slane %v14968_v23, 1  ;;  %v14969_v5 = vld [vmem:[#allocation10 + $0xf8] sm:$0xff]  }
 0x22e   : > { %13879 = vmatmul.mubr.msk.bf16.gmra.mrb[8].mxu0 %vm1380_vm3, %v14946_v31  ;;  %13940 = vmatprep.subr.bf16.mxu1 %v14962_v29  ;;  %v2101_v31 = vshrl.u32 %v14961_v53, 16  ;;  %v2651_v37 = vshll.u32 %v16395_v27, 16  ;;  %v2984_v38 = vrot.slane %v14967_v0, 1  ;;  %v2655_v2 = vshrl.u32 %v16395_v27, 16  ;;  %v14982_v18 = vld [vmem:[#allocation4 + $0x74] sm:$0xff]  }
 0x22f   : > { %13882 = vmatprep.mubr.msk.bf16.mxu0 %vm1380_vm3, %v14947_v33  ;;  %v2388_v54 = vsel %vm17724_vm4, %v2383_v45, %v2387_v40  ;;  %v2630_v33 = vsel %vm17724_vm4, %v2625_v28, %v2629_v21  ;;  %v2639_v45 = vshrl.u32 %v16382_v7, 16  ;;  %v2995_v27 = vrot.slane %v14982_v18, 1  ;;  %v3696_v0 = vld [vmem:[%s16423_s16 + $0x10] sm:$0xff]  ;;  %v15000_v18 = vld [vmem:[#allocation4 + $0x40] ss:$0 sps:$4 sm:$0x11]  }
 0x230   : > { %v2103_v36 = vor.u32 %v2101_v31, %v2099_v50  ;;  %v2986_v44 = vsel %vm17723_vm5, %v2984_v38, %v2985_v34  ;;  %v2653_v49 = vrot.slane %v2651_v37, 1  ;;  %v2675_v50 = vshll.u32 %v14980_v4, 16 }
 0x231   : > { %13941 = vmatpush3.bf16.msra.mxu1 %v14962_v29  ;;  %v14966_v29 = vld [vmem:[#allocation10 + $0xf0] sm:$0xff]   ;;  %v2641_v51 = vor.u32 %v2639_v45, %v2637_v25  ;;  %v2996_v31 = vsel %vm17723_vm5, %v2993_v14, %v2995_v27 }
 0x232   : > { %14030 = vmatprep.subr.bf16.mxu1 %v16371_v39  ;;  %v2108_v40 = vsel %vm17724_vm4, %v2103_v36, %v16288_v47  ;;  %v14976_v47 = vld [vmem:[#allocation4 + $0xc0] sm:$0xff]   ;;  %v2657_v8 = vor.u32 %v2655_v2, %v2653_v49  ;;  %v2677_v12 = vrot.slane %v2675_v50, 1  ;;  %v14987_v36 = vld [vmem:[#allocation4 + $0x8] sm:$0xff]   ;;  %v14989_v45 = vld [vmem:[#allocation4 + $0x10] sm:$0xff]  }
 0x233   : > { %v2646_v55 = vsel %vm17724_vm4, %v2641_v51, %v2645_v41  ;;  %v2667_v59 = vshll.u32 %v14976_v47, 16  ;;  %v14995_v2 = vld [vmem:[#allocation10 + $0x110] sm:$0xff]  }
 0x234   : > { %13927 = vmatmul.mubr.msk.bf16.gmra.mrb[0].mxu1 %vm1380_vm3, %v2380_v48  ;;  %v2647_v48 = vshrl.u32 %v14970_v57, 16  ;;  %v2671_v57 = vshrl.u32 %v14976_v47, 16  ;;  %v14990_v47 = vld [vmem:[#allocation4 + $0x18] sm:$0xff]  }
 0x235   : > { %13930 = vmatprep.mubr.msk.bf16.mxu1 %vm1380_vm3, %v2388_v54  ;;  %v2987_v54 = vrot.slane %v14973_v42, 1  ;;  %v2669_v7 = vrot.slane %v2667_v59, 1  ;;  %v3700_v42 = vld [vmem:[%s16423_s16 + $0x30] sm:$0xff]  ;;  %v14993_v59 = vld [vmem:[#allocation4 + $0x20] sm:$0xff]  }
 0x236   : > { %13883 = vmatmul.mubr.msk.bf16.gmra.mrb[12].mxu0 %vm1380_vm3, %v14951_v56  ;;  %v2649_v53 = vor.u32 %v2647_v48, %v2645_v41  ;;  %v2989_v56 = vrot.slane %v14974_v46, 1  ;;  %v3190_v41 = vrot.slane %v14987_v36, 1  ;;  %v3702_v46 = vld [vmem:[%s16423_s16 + $0x40] sm:$0xff]  ;;  %v3703_v48 = vld [vmem:[%s16423_s16 + $0x48] sm:$0xff]  ;;  %v3196_v4 = vrot.slane %v14993_v59, 1 }
 0x237   : > { %13894 = vmatprep.mubr.msk.bf16.mxu0 %vm1380_vm3, %v2084_v63  ;;  %v2988_v61 = vsel %vm17723_vm5, %v2985_v34, %v2987_v54  ;;  %v14978_v63 = vld [vmem:[#allocation4 + $0x64] sm:$0xff]   ;;  %v2673_v23 = vor.u32 %v2671_v57, %v2669_v7  ;;  %v3699_v34 = vld [vmem:[%s16423_s16 + $0x28] sm:$0xff]  ;;  %v3204_v57 = vrot.slane %v15000_v18, 1 }
 0x238   : > { %v2654_v58 = vsel %vm17724_vm4, %v2649_v53, %v2653_v49  ;;  %v2990_v1 = vsel %vm17723_vm5, %v2987_v54, %v2989_v56  ;;  %v2991_v11 = vrot.slane %v14978_v63, 1  ;;  %v3192_v53 = vrot.slane %v14989_v45, 1  ;;  %v14994_v63 = vld [vmem:[#allocation4 + $0x28] sm:$0xff]  }
 0x239   : > { %v2678_v28 = vsel %vm17724_vm4, %v2673_v23, %v2677_v12  ;;  %v3194_v54 = vrot.slane %v14990_v47, 1 }
 0x23a   : > { %v2992_v17 = vsel %vm17723_vm5, %v2989_v56, %v2991_v11  ;;  %v2994_v21 = vsel %vm17723_vm5, %v2991_v11, %v2993_v14  ;;  %v3705_v56 = vld [vmem:[%s16423_s16 + $0x58] sm:$0xff]  ;;  %v14996_v11 = vld [vmem:[#allocation4 + $0x30] sm:$0xff]   ;;  %v14997_v14 = vld [vmem:[#allocation4 + $0x38] sm:$0xff]  }
 0x23c   : > { %13931 = vmatmul.mubr.msk.bf16.gmra.mrb[4].mxu1 %vm1380_vm3, %v2396_v13 }
 0x23d   : > { %13942 = vmatprep.mubr.msk.bf16.mxu1 %vm1380_vm3, %v2622_v16  ;;  %v14984_v16 = vld [vmem:[#allocation10 + $0xd8] sm:$0xff]  }
 0x23e   : > { %13895 = vmatmul.mubr.msk.bf16.vlgmr.msra.gmra.mrb[16].mxu0 %vm1380_vm3, %v2092_v20  ;;  %v3695_v20 = vld [vmem:[%s16423_s16 + $0x8] sm:$0xff] }
 0x23f   : > { %13959 = vmatpush3.bf16.msra.mxu0 %v16359_v24  ;;  %13898 = vmatprep.mubr.msk.bf16.mxu0 %vm1380_vm3, %v2100_v22  ;;  %v2638_v24 = vsel %vm17724_vm4, %v2633_v30, %v2637_v25  ;;  %v14983_v22 = vld [vmem:[#allocation4 + $0x7c] sm:$0xff]  }
 0x240   : > { %13960 = vmatprep.subr.bf16.mxu0 %v14963_v19  ;;  %v3697_v30 = vld [vmem:[%s16423_s16 + $0x18] sm:$0xff] }
 0x241   : > { %v3711_v37 = vpack.c.bf16 %v3697_v30, %v3696_v0  ;;  %v15005_v30 = vld [vmem:[#allocation4 + $0xa8] sm:$0xff]  }
 0x243   : > { %13961 = vmatpush3.bf16.msra.mxu0 %v14963_v19  ;;  %v3694_v19 = vld [vmem:[%s16423_s16] sm:$0xff] }
 0x244   : > { %13943 = vmatmul.mubr.msk.bf16.vlgmr.msra.gmra.mrb[8].mxu1 %vm1380_vm3, %v2630_v33  ;;  %13962 = vmatprep.subr.bf16.mxu0 %v14966_v29  ;;  %v3710_v25 = vpack.c.bf16 %v3695_v20, %v3694_v19  ;;  %v3698_v33 = vld [vmem:[%s16423_s16 + $0x20] sm:$0xff]  ;;  %v15002_v20 = vld [vmem:[#allocation4 + $0x90] sm:$0xff]  }
 0x245   : > { %13946 = vmatprep.mubr.msk.bf16.mxu1 %vm1380_vm3, %v2638_v24  ;;  %14031 = vmatpush3.bf16.msra.mxu1 %v16371_v39  ;;  %v2659_v39 = vshll.u32 %v14975_v43, 16  ;;  %v14986_v24 = vld [vmem:[#allocation4] sm:$0xfe]   ;;  %v3712_v38 = vpack.c.bf16 %v3699_v34, %v3698_v33  ;;  %v3421_v12 = vrot.slane %v15002_v20, 1  ;;  %v3427_v33 = vrot.slane %v15005_v30, 1 }
 0x246   : > { %13899 = vmatmul.mubr.msk.bf16.gmra.mrb[20].mxu0 %vm1380_vm3, %v2108_v40  ;;  %14032 = vmatprep.subr.bf16.mxu1 %v14998_v35  ;;  %v3189_v40 = vrot.slane %v14986_v24, 1  ;;  %v3701_v43 = vld [vmem:[%s16423_s16 + $0x38] sm:$0xff]  ;;  %v15007_v24 = vld [vmem:[#allocation4 + $0xb8] sm:$0xff]  }
 0x247   : > { %13963 = vmatpush3.bf16.msra.mxu0 %v14966_v29  ;;  %13966 = vmatprep.mubr.msk.bf16.mxu0 %vm1380_vm3, %v2986_v44  ;;  %v2661_v62 = vrot.slane %v2659_v39, 1  ;;  %v2997_v29 = vrot.slane %v14983_v22, 1  ;;  %v3713_v51 = vpack.c.bf16 %v3701_v43, %v3700_v42  ;;  %v14992_v39 = vld [vmem:[#allocation10 + $0x108] sm:$0xff]  }
 0x248   : > { %13964 = vmatprep.subr.bf16.mxu0 %v14969_v5  ;;  %v3191_v49 = vsel %vm17723_vm5, %v3189_v40, %v3190_v41 }
 0x249   : > { %14033 = vmatpush3.bf16.msra.mxu1 %v14998_v35  ;;  %v2665_v10 = vor.u32 %v2663_v6, %v2661_v62  ;;  %v2662_v13 = vsel %vm17724_vm4, %v2657_v8, %v2661_v62  ;;  %v2998_v35 = vsel %vm17723_vm5, %v2995_v27, %v2997_v29  ;;  %v3195_v62 = vsel %vm17723_vm5, %v3192_v53, %v3194_v54  ;;  %v3708_v8 = vld [vmem:[%s16423_s16 + $0x70] sm:$0xff]  ;;  %v15004_v27 = vld [vmem:[#allocation4 + $0xa0] sm:$0xff]  }
 0x24a   : > { %v3198_v6 = vrot.slane %v14994_v63, 1 }
 0x24b   : > { %13965 = vmatpush3.bf16.msra.mxu0 %v14969_v5  ;;  %v2670_v15 = vsel %vm17724_vm4, %v2665_v10, %v2669_v7  ;;  %v2999_v5 = vrot.slane %v14985_v32, 1  ;;  %v14999_v7 = vld [vmem:[#allocation10 + $0x118] sm:$0xff]   ;;  %v3197_v10 = vsel %vm17723_vm5, %v3194_v54, %v3196_v4 }
 0x24c   : > { %13947 = vmatmul.mubr.msk.bf16.gmra.mrb[12].mxu1 %vm1380_vm3, %v2646_v55  ;;  %13982 = vmatprep.subr.bf16.mxu0 %v14972_v52  ;;  %v3704_v55 = vld [vmem:[%s16423_s16 + $0x50] sm:$0xff]  ;;  %v15006_v32 = vld [vmem:[#allocation4 + $0xb0] sm:$0xff]  }
 0x24d   : > { %13950 = vmatprep.mubr.msk.bf16.mxu1 %vm1380_vm3, %v2654_v58  ;;  %v3000_v44 = vsel %vm17723_vm5, %v2997_v29, %v2999_v5  ;;  %v3193_v58 = vsel %vm17723_vm5, %v3190_v41, %v3192_v53  ;;  %v3425_v29 = vrot.slane %v15004_v27, 1  ;;  %v3429_v34 = vrot.slane %v15006_v32, 1  ;;  %v15009_v41 = vld [vmem:[#allocation4 + $0xc8] ss:$0 sps:$4 sm:$0x11]  }
 0x24e   : > { %13967 = vmatmul.mubr.msk.bf16.vlgmr.msra.gmra.mrb[24].mxu0 %vm1380_vm3, %v2988_v61  ;;  %v3707_v61 = vld [vmem:[%s16423_s16 + $0x68] sm:$0xff]  ;;  %v3435_v43 = vrot.slane %v15009_v41, 1 }
 0x24f   : > { %13983 = vmatpush3.bf16.msra.mxu0 %v14972_v52  ;;  %13970 = vmatprep.mubr.msk.bf16.mxu0 %vm1380_vm3, %v2990_v1  ;;  %v3714_v52 = vpack.c.bf16 %v3703_v48, %v3702_v46  ;;  %v3715_v1 = vpack.c.bf16 %v3705_v56, %v3704_v55  ;;  %v3430_v36 = vsel %vm17723_vm5, %v3427_v33, %v3429_v34 }
 0x250   : > { %13984 = vmatprep.subr.bf16.mxu0 %v14977_v60 }
 0x253   : > { %13985 = vmatpush3.bf16.msra.mxu0 %v14977_v60  ;;  %v3706_v60 = vld [vmem:[%s16423_s16 + $0x60] sm:$0xff] }
 0x254   : > { %13951 = vmatmul.mubr.msk.bf16.gmra.mrb[0].mxu1 %vm1380_vm3, %v2662_v13  ;;  %13986 = vmatprep.subr.bf16.mxu0 %v14981_v9  ;;  %v3716_v3 = vpack.c.bf16 %v3707_v61, %v3706_v60  ;;  %v3199_v13 = vsel %vm17723_vm5, %v3196_v4, %v3198_v6 }
 0x255   : > { %13954 = vmatprep.mubr.msk.bf16.mxu1 %vm1380_vm3, %v2670_v15  ;;  %v3200_v15 = vrot.slane %v14996_v11, 1 }
 0x256   : > { %13971 = vmatmul.mubr.msk.bf16.gmra.mrb[28].mxu0 %vm1380_vm3, %v2992_v17 }
 0x257   : > { %13974 = vmatprep.mubr.msk.bf16.mxu0 %vm1380_vm3, %v2994_v21  ;;  %13987 = vmatpush3.bf16.msra.mxu0 %v14981_v9  ;;  %v3709_v9 = vld [vmem:[%s16423_s16 + $0x78] sm:$0xff]  ;;  %v3201_v17 = vsel %vm17723_vm5, %v3198_v6, %v3200_v15  ;;  %v15001_v21 = vld [vmem:[#allocation4 + $0x88] sm:$0xfe]  }
 0x258   : > { %13988 = vmatprep.subr.bf16.mxu0 %v14984_v16  ;;  %v3717_v50 = vpack.c.bf16 %v3709_v9, %v3708_v8  ;;  %v3420_v22 = vrot.slane %v15001_v21, 1 }
 0x25b   : > { %13989 = vmatpush3.bf16.msra.mxu0 %v14984_v16  ;;  %v3202_v16 = vrot.slane %v14997_v14, 1 }
 0x25c   : > { %13955 = vmatmul.mubr.msk.bf16.gmra.mrb[4].mxu1 %vm1380_vm3, %v2678_v28  ;;  %14006 = vmatprep.subr.bf16.mxu0 %v14988_v26 }
 0x25d   : > { %14034 = vmatprep.mubr.msk.bf16.mxu1 %vm3741_vm6, %v3710_v25  ;;  %v3203_v19 = vsel %vm17723_vm5, %v3200_v15, %v3202_v16  ;;  %v3205_v23 = vsel %vm17723_vm5, %v3202_v16, %v3204_v57  ;;  %v3422_v25 = vsel %vm17723_vm5, %v3420_v22, %v3421_v12 }
 0x25e   : > { %13975 = vmatmul.mubr.msk.bf16.gmra.mrb[32].mxu0 %vm1380_vm3, %v2996_v31 }
 0x25f   : > { %13978 = vmatprep.mubr.msk.bf16.mxu0 %vm1380_vm3, %v2998_v35  ;;  %v3428_v35 = vsel %vm17723_vm5, %v3425_v29, %v3427_v33 }
 0x264   : > { %14035 = vmatmul.mubr.msk.bf16.vlgmr.msra.gmra.mrb[16].mxu1 %vm3741_vm6, %v3711_v37  ;;  %v15008_v37 = vld [vmem:[#allocation4 + $0xc0] sm:$0xff]  }
 0x265   : > { %14038 = vmatprep.mubr.msk.bf16.mxu1 %vm3741_vm6, %v3712_v38  ;;  %v3431_v38 = vrot.slane %v15007_v24, 1  ;;  %v3433_v5 = vrot.slane %v15008_v37, 1 }
 0x266   : > { %13979 = vmatmul.mubr.msk.bf16.gmra.mrb[36].mxu0 %vm1380_vm3, %v3000_v44 }
 0x267   : > { %13990 = vmatprep.mubr.msk.bf16.mxu0 %vm1380_vm3, %v3191_v49  ;;  %v3432_v40 = vsel %vm17723_vm5, %v3429_v34, %v3431_v38  ;;  %v3434_v42 = vsel %vm17723_vm5, %v3431_v38, %v3433_v5  ;;  %v3436_v44 = vsel %vm17723_vm5, %v3433_v5, %v3435_v43 }
 0x26c   : > { %14039 = vmatmul.mubr.msk.bf16.gmra.mrb[20].mxu1 %vm3741_vm6, %v3713_v51 }
 0x26d   : > { %14042 = vmatprep.mubr.msk.bf16.mxu1 %vm3741_vm6, %v3714_v52 }
 0x26e   : > { %13991 = vmatmul.mubr.msk.bf16.vlgmr.msra.gmra.mrb[24].mxu0 %vm1380_vm3, %v3193_v58  ;;  %v497_v58 = vlaneseq }
 0x26f   : > { %14007 = vmatpush3.bf16.msra.mxu0 %v14988_v26  ;;  %13994 = vmatprep.mubr.msk.bf16.mxu0 %vm1380_vm3, %v3195_v62  ;;  %v15003_v26 = vld [vmem:[#allocation4 + $0x98] sm:$0xff]  }
 0x270   : > { %14008 = vmatprep.subr.bf16.mxu0 %v14992_v39  ;;  %v3423_v28 = vrot.slane %v15003_v26, 1  ;;  %v16509_v59 = vshrl.u32 %v497_v58, 7 }
 0x272   : > { %v3424_v0 = vsel %vm17723_vm5, %v3421_v12, %v3423_v28  ;;  %v3426_v31 = vsel %vm17723_vm5, %v3423_v28, %v3425_v29  ;;  %17759 = vst [vmem:[#allocation24_spill] sm:$0xff] %v16509_v59  ;;  %v518_v4 = vand.u32 15, %v16509_v59  ;;  %v508_v28 = vadd.s32 80, %v16509_v59 }
 0x273   : > { %14009 = vmatpush3.bf16.msra.mxu0 %v14992_v39  ;;  %v506_v30 = vadd.s32 64, %v16509_v59  ;;  %v512_v58 = vadd.s32 112, %v16509_v59 }
 0x274   : > { %14043 = vmatmul.mubr.msk.bf16.gmra.mrb[24].mxu1 %vm3741_vm6, %v3715_v1  ;;  %14010 = vmatprep.subr.bf16.mxu0 %v14995_v2  ;;  %v500_v1 = vadd.s32 16, %v16509_v59  ;;  %vm16526_vm8 = vcmp.ne.s32.totalorder %v518_v4, 0  ;;  %v588_v24 = vand.u32 15, %v508_v28 }
 0x275   : > { %14046 = vmatprep.mubr.msk.bf16.mxu1 %vm3741_vm6, %v3716_v3  ;;  %v574_v5 = vand.u32 15, %v506_v30 }
 0x276   : > { %13995 = vmatmul.mubr.msk.bf16.gmra.mrb[28].mxu0 %vm1380_vm3, %v3197_v10  ;;  %v504_v10 = vadd.s32 48, %v16509_v59  ;;  %vm16561_vm11 = vcmp.ne.s32.totalorder %v588_v24, 0 }
 0x277   : > { %13998 = vmatprep.mubr.msk.bf16.mxu0 %vm1380_vm3, %v3199_v13  ;;  %14011 = vmatpush3.bf16.msra.mxu0 %v14995_v2  ;;  %v532_v2 = vand.u32 15, %v500_v1  ;;  %v502_v13 = vadd.s32 32, %v16509_v59  ;;  %vm16569_vm12 = vcmp.ne.s32.totalorder %v574_v5, 0  ;;  %v501_v5 = vadd.s32 24, %v16509_v59 }
 0x278   : > { %14012 = vmatprep.subr.bf16.mxu0 %v14999_v7  ;;  %v560_v20 = vand.u32 15, %v504_v10 }
 0x279   : > { %vm16521_vm7 = vcmp.ne.s32.totalorder %v532_v2, 0 }
 0x27a   : > { %vm16545_vm9 = vcmp.ne.s32.totalorder %v560_v20, 0 }
 0x27b   : > { %14013 = vmatpush3.bf16.msra.mxu0 %v14999_v7 }
 0x27c   : > { %14047 = vmatmul.mubr.msk.bf16.gmra.mrb[28].mxu1 %vm3741_vm6, %v3717_v50 }
 0x27e   : > { %13999 = vmatmul.mubr.msk.bf16.gmra.mrb[32].mxu0 %vm1380_vm3, %v3201_v17 }
 0x27f   : > { %14002 = vmatprep.mubr.msk.bf16.mxu0 %vm1380_vm3, %v3203_v19 }
 0x286   : > { %14003 = vmatmul.mubr.msk.bf16.gmra.mrb[36].mxu0 %vm1380_vm3, %v3205_v23  ;;  %v546_v23 = vand.u32 15, %v502_v13 }
 0x287   : > { %14014 = vmatprep.mubr.msk.bf16.mxu0 %vm1380_vm3, %v3422_v25 }
 0x288   : > { %vm16549_vm10 = vcmp.ne.s32.totalorder %v546_v23, 0 }
 0x28e   : > { %14015 = vmatmul.mubr.msk.bf16.vlgmr.msra.gmra.mrb[24].mxu0 %vm1380_vm3, %v3424_v0 }
 0x28f   : > { %14018 = vmatprep.mubr.msk.bf16.mxu0 %vm1380_vm3, %v3426_v31 }
 0x296   : > { %14019 = vmatmul.mubr.msk.bf16.gmra.mrb[28].mxu0 %vm1380_vm3, %v3428_v35 }
 0x297   : > { %14022 = vmatprep.mubr.msk.bf16.mxu0 %vm1380_vm3, %v3430_v36 }
 0x29e   : > { %14023 = vmatmul.mubr.msk.bf16.gmra.mrb[32].mxu0 %vm1380_vm3, %v3432_v40 }
 0x29f   : > { %14026 = vmatprep.mubr.msk.bf16.mxu0 %vm1380_vm3, %v3434_v42 }
 0x2a6   : > { %14027 = vmatmul.mubr.msk.bf16.gmra.mrb[36].mxu0 %vm1380_vm3, %v3436_v44  ;;  %vm17725_vm3 = vcmask 1040384  }
 0x2f1   : > { %v13872_v45 = vpop.f32.mrb[0].mxu0 }
 0x2f2   : > { %v1834_v46 = vpop.f32.mrb[1].mxu0  ;;  %v1947_v16 = vsel %vm16521_vm7, %v13872_v45, 0.0 }
 0x2f3   : > { %v13873_v48 = vpop.f32.mrb[2].mxu0  ;;  %v1945_v19 = vsel %vm16526_vm8, %v1834_v46, 0.0 }
 0x2f4   : > { %v1837_v49 = vpop.f32.mrb[3].mxu0 }
 0x2f9   : > { %v13876_v47 = vpop.f32.mrb[4].mxu0 }
 0x2fa   : > { %v1850_v51 = vpop.f32.mrb[5].mxu0  ;;  %v1951_v38 = vsel %vm16545_vm9, %v13876_v47, 0.0 }
 0x2fb   : > { %v16497_v52 = vpop.f32.mrb[6].mxu0  ;;  %v1949_v42 = vsel %vm16549_vm10, %v1850_v51, 0.0  ;;  %v510_v51 = vadd.s32 96, %v16509_v59 }
 0x2fc   : > { %v16499_v53 = vpop.f32.mrb[7].mxu0 }
 0x2fd   : > { %v602_v10 = vand.u32 15, %v510_v51  ;;  %v509_v51 = vadd.s32 88, %v16509_v59 }
 0x2ff   : > { %vm16597_vm14 = vcmp.ne.s32.totalorder %v602_v10, 0 }
 0x301   : > { %v16501_v54 = vpop.f32.mrb[8].mxu0 }
 0x302   : > { %v16503_v39 = vpop.f32.mrb[9].mxu0 }
 0x303   : > { %v16505_v55 = vpop.f32.mrb[10].mxu0 }
 0x304   : > { %v16507_v56 = vpop.f32.mrb[11].mxu0 }
 0x309   : > { %v16511_v60 = vpop.f32.mrb[12].mxu0 }
 0x30a   : > { %v16513_v61 = vpop.f32.mrb[13].mxu0 }
 0x30b   : > { %v16515_v62 = vpop.f32.mrb[14].mxu0 }
 0x30c   : > { %v16517_v63 = vpop.f32.mrb[15].mxu0 }
 0x311   : > { %v13896_v3 = vpop.f32.mrb[16].mxu0 }
 0x312   : > { %v2223_v6 = vpop.f32.mrb[17].mxu0 }
 0x313   : > { %v13897_v7 = vpop.f32.mrb[18].mxu0 }
 0x314   : > { %v2226_v8 = vpop.f32.mrb[19].mxu0 }
 0x317   : > { %v13944_v14 = vpop.f32.mrb[8].mxu1 }
 0x318   : > { %v14346_v50 = vadd.f32 %v13944_v14, %v13896_v3  ;;  %v2761_v15 = vpop.f32.mrb[9].mxu1  ;;  %v1955_v3 = vsel %vm16561_vm11, %v16501_v54, 0.0  ;;  %v17772_v54 = vmov 0 }
 0x319   : > { %v14347_v17 = vadd.f32 %v2761_v15, %v2223_v6  ;;  %v13945_v18 = vpop.f32.mrb[10].mxu1  ;;  %v13900_v57 = vpop.f32.mrb[20].mxu0  ;;  %v1953_v6 = vsel %vm16569_vm12, %v16503_v39, 0.0  ;;  %v17774_v39 = vmov 0 }
 0x31a   : > { %v14348_v21 = vadd.f32 %v13945_v18, %v13897_v7  ;;  %v2764_v12 = vpop.f32.mrb[11].mxu1  ;;  %v16535_v22 = vadd.f32 %v14346_v50, %v1947_v16  ;;  %v2239_v25 = vpop.f32.mrb[21].mxu0  ;;  %v17775_v39 = vsel %vm16597_vm14, 4294967295, %v17774_v39 }
 0x31b   : > { %v14349_v26 = vadd.f32 %v2764_v12, %v2226_v8  ;;  %v16537_v27 = vadd.f32 %v14347_v17, %v1945_v19  ;;  %v13901_v0 = vpop.f32.mrb[22].mxu0  ;;  %17776 = vst [vmem:[#allocation25_spill] sm:$0xff] %v17775_v39 }
 0x31c   : > { %v16540_v29 = vadd.f32 %v14348_v21, %v13873_v48  ;;  %v2242_v32 = vpop.f32.mrb[23].mxu0 }
 0x31d   : > { %v16543_v31 = vadd.f32 %v14349_v26, %v1837_v49 }
 0x31f   : > { %v13948_v35 = vpop.f32.mrb[12].mxu1 }
 0x320   : > { %v14350_v36 = vadd.f32 %v13948_v35, %v13900_v57  ;;  %v2777_v37 = vpop.f32.mrb[13].mxu1 }
 0x321   : > { %v14351_v40 = vadd.f32 %v2777_v37, %v2239_v25  ;;  %v13949_v41 = vpop.f32.mrb[14].mxu1 }
 0x322   : > { %v14352_v43 = vadd.f32 %v13949_v41, %v13901_v0  ;;  %v2780_v44 = vpop.f32.mrb[15].mxu1  ;;  %v16557_v45 = vadd.f32 %v14350_v36, %v1951_v38  ;;  %v505_v41 = vadd.s32 56, %v16509_v59 }
 0x323   : > { %v14353_v46 = vadd.f32 %v2780_v44, %v2242_v32  ;;  %v16559_v48 = vadd.f32 %v14351_v40, %v1949_v42  ;;  %v499_v40 = vadd.s32 8, %v16509_v59  ;;  %v503_v42 = vadd.s32 40, %v16509_v59 }
 0x324   : > { %v16567_v47 = vadd.f32 %v14352_v43, %v16497_v52  ;;  %v616_v52 = vand.u32 15, %v512_v58  ;;  %v16639_v43 = vld [vmem:[#allocation8] ss:$0 sm:$0xff]  ;;  %v539_v44 = vand.u32 15, %v501_v5  ;;  %v567_v58 = vand.u32 15, %v505_v41 }
 0x325   : > { %v16575_v2 = vadd.f32 %v14353_v46, %v16499_v53  ;;  %v525_v46 = vand.u32 15, %v499_v40 }
 0x326   : > { %vm16593_vm13 = vcmp.ne.s32.totalorder %v616_v52, 0  ;;  %vm16647_vm15 = vcmp.ne.s32.totalorder %v539_v44, 15  ;;  %vm16655_vm1 = vcmp.ne.s32.totalorder %v567_v58, 15 }
 0x327   : > { %v13952_v4 = vpop.f32.mrb[0].mxu1  ;;  %v17773_v54 = vsel %vm16593_vm13, 4294967295, %v17772_v54  ;;  %v1959_v16 = vsel %vm16593_vm13, %v16511_v60, 0.0  ;;  %vm16651_vm0 = vcmp.ne.s32.totalorder %v525_v46, 15 }
 0x328   : > { %v16583_v7 = vadd.f32 %v13952_v4, %v1955_v3  ;;  %v2793_v8 = vpop.f32.mrb[1].mxu1  ;;  %v553_v3 = vand.u32 15, %v503_v42  ;;  %v507_v4 = vadd.s32 72, %v16509_v59 }
 0x329   : > { %v16585_v13 = vadd.f32 %v2793_v8, %v1953_v6  ;;  %v13953_v14 = vpop.f32.mrb[2].mxu1  ;;  %v16645_v8 = vld [vmem:[#allocation11] ss:$0 sm:$0xff] }
 0x32a   : > { %v16588_v53 = vadd.f32 %v13953_v14, %v16505_v55  ;;  %v2796_v50 = vpop.f32.mrb[3].mxu1  ;;  %v1957_v55 = vsel %vm16597_vm14, %v16513_v61, 0.0  ;;  %vm16660_vm2 = vcmp.ne.s32.totalorder %v553_v3, 15  ;;  %vm17793_vm14 = vcmask 1040384  }
 0x32b   : > { %v16591_v15 = vadd.f32 %v2796_v50, %v16507_v56  ;;  %vm17794_vm13 = vmmov %vm17793_vm14 }
 0x32f   : > { %v13956_v17 = vpop.f32.mrb[4].mxu1 }
 0x330   : > { %v16607_v18 = vadd.f32 %v13956_v17, %v1959_v16  ;;  %v2809_v56 = vpop.f32.mrb[5].mxu1  ;;  %v17781_v16 = vmov 0  ;;  %v595_v17 = vand.u32 15, %v509_v51 }
 0x331   : > { %v16609_v19 = vadd.f32 %v2809_v56, %v1957_v55  ;;  %v13957_v20 = vpop.f32.mrb[6].mxu1  ;;  %v17782_v16 = vsel %vm16655_vm1, 4294967295, %v17781_v16 }
 0x332   : > { %v16612_v21 = vadd.f32 %v13957_v20, %v16515_v62  ;;  %v2812_v57 = vpop.f32.mrb[7].mxu1  ;;  %v17783_v20 = vmov 0  ;;  %vm16692_vm6 = vcmp.ne.s32.totalorder %v595_v17, 15 }
 0x333   : > { %v16615_v12 = vadd.f32 %v2812_v57, %v16517_v63  ;;  %v17784_v20 = vsel %vm16660_vm2, 4294967295, %v17783_v20  ;;  %v581_v57 = vand.u32 15, %v507_v4 }
 0x335   : > { %vm16702_vm5 = vcmp.ne.s32.totalorder %v581_v57, 15 }
 0x337   : > { %v14036_v23 = vpop.f32.mrb[16].mxu1 }
 0x338   : > { %v3800_v60 = vpop.f32.mrb[17].mxu1  ;;  %v3809_v6 = vadd.f32 %v14036_v23, %v16639_v43  ;;  %v16665_v23 = vadd.s32 120, %v16509_v59 }
 0x339   : > { %v14037_v26 = vpop.f32.mrb[18].mxu1  ;;  %v3801_v52 = vadd.f32 %v16639_v43, %v3800_v60  ;;  %v16668_v60 = vadd.s32 104, %v16509_v59 }
 0x33a   : > { %v3803_v25 = vpop.f32.mrb[19].mxu1  ;;  %v3865_v5 = vmax.f32 %v3809_v6, 0.0  ;;  %v3812_v42 = vadd.f32 %v14037_v26, %v16639_v43 }
 0x33b   : > { %v3863_v40 = vmax.f32 %v3801_v52, 0.0  ;;  %v3804_v58 = vadd.f32 %v16639_v43, %v3803_v25  ;;  %v623_v25 = vand.u32 15, %v16665_v23  ;;  %v17785_v23 = vmov 0 }
 0x33c   : > { %v17786_v23 = vsel %vm16692_vm6, 4294967295, %v17785_v23 }
 0x33d   : > { %vm16731_vm4 = vcmp.ne.s32.totalorder %v623_v25, 15 }
 0x33f   : > { %v14040_v28 = vpop.f32.mrb[20].mxu1 }
 0x340   : > { %v3816_v0 = vpop.f32.mrb[21].mxu1  ;;  %v3825_v3 = vadd.f32 %v14040_v28, %v16639_v43  ;;  %v3866_v28 = vmax.f32 %v3812_v42, 0.0 }
 0x341   : > { %v14041_v61 = vpop.f32.mrb[22].mxu1  ;;  %v3817_v26 = vadd.f32 %v16639_v43, %v3816_v0 }
 0x342   : > { %v16617_v30 = vpop.f32.mrb[23].mxu1  ;;  %v3869_v59 = vmax.f32 %v3825_v3, 0.0  ;;  %v17787_v3 = vmov 0 }
 0x343   : > { %v3867_v39 = vmax.f32 %v3817_v26, 0.0  ;;  %v17788_v3 = vsel %vm16702_vm5, 4294967295, %v17787_v3 }
 0x347   : > { %v16619_v32 = vpop.f32.mrb[24].mxu1 }
 0x348   : > { %v16621_v35 = vpop.f32.mrb[25].mxu1 }
 0x349   : > { %v16623_v24 = vpop.f32.mrb[26].mxu1 }
 0x34a   : > { %v16625_v62 = vpop.f32.mrb[27].mxu1 }
 0x34f   : > { %v16627_v36 = vpop.f32.mrb[28].mxu1 }
 0x350   : > { %v16629_v63 = vpop.f32.mrb[29].mxu1 }
 0x351   : > { %v16631_v37 = vpop.f32.mrb[30].mxu1 }
 0x352   : > { %v16633_v38 = vpop.f32.mrb[31].mxu1 }
 0x361   : > { %v14016_v10 = vpop.f32.mrb[24].mxu0 }
 0x362   : > { %v3664_v55 = vadd.f32 %v14016_v10, %v16535_v22  ;;  %v3519_v56 = vpop.f32.mrb[25].mxu0 }
 0x363   : > { %v3662_v41 = vadd.f32 %v3519_v56, %v16537_v27  ;;  %v14017_v44 = vpop.f32.mrb[26].mxu0 }
 0x364   : > { %v3904_v22 = vadd.f32 %v16645_v8, %v3664_v55  ;;  %v3633_v46 = vsel %vm16647_vm15, %v14017_v44, 0.0  ;;  %v3522_v51 = vpop.f32.mrb[27].mxu0  ;;  %v16684_v55 = vadd.f32 %v14041_v61, %v16639_v43 }
 0x365   : > { %v3902_v4 = vadd.f32 %v16645_v8, %v3662_v41  ;;  %v3665_v6 = vadd.f32 %v3633_v46, %v16540_v29  ;;  %v3631_v27 = vsel %vm16651_vm0, %v3522_v51, 0.0  ;;  %v609_v41 = vand.u32 15, %v16668_v60 }
 0x366   : > { %v3920_v52 = vmax.f32 %v3904_v22, 0.0  ;;  %v3663_v10 = vadd.f32 %v3631_v27, %v16543_v31  ;;  %v3864_v46 = vmax.f32 %v3804_v58, 0.0  ;;  %v3820_v31 = vadd.f32 %v16639_v43, %v16617_v30 }
 0x367   : > { %v3918_v56 = vmax.f32 %v3902_v4, 0.0  ;;  %v3905_v44 = vadd.f32 %v16645_v8, %v3665_v6  ;;  %v16700_v58 = vadd.f32 %v16619_v32, %v16639_v43  ;;  %v16709_v27 = vadd.f32 %v16639_v43, %v16621_v35 }
 0x368   : > { %v3936_v29 = vadd.f32 %v3920_v52, %v3865_v5  ;;  %v3903_v51 = vadd.f32 %v16645_v8, %v3663_v10  ;;  %v3870_v5 = vmax.f32 %v16684_v55, 0.0 }
 0x369   : > { %v3921_v0 = vmax.f32 %v3905_v44, 0.0  ;;  %v14020_v22 = vpop.f32.mrb[28].mxu0  ;;  %v3934_v61 = vadd.f32 %v3918_v56, %v3863_v40 }
 0x36a   : > { %v3919_v42 = vmax.f32 %v3903_v51, 0.0  ;;  %v3668_v4 = vadd.f32 %v14020_v22, %v16557_v45  ;;  %v3535_v60 = vpop.f32.mrb[29].mxu0  ;;  %v3970_v45 = vrot.slane %v3936_v29, 7 }
 0x36b   : > { %v3937_v30 = vadd.f32 %v3921_v0, %v3866_v28  ;;  %v3666_v17 = vadd.f32 %v3535_v60, %v16559_v48  ;;  %v14021_v40 = vpop.f32.mrb[30].mxu0  ;;  %v3967_v6 = vrot.slane %v3934_v61, 7  ;;  %v3868_v28 = vmax.f32 %v3820_v31, 0.0 }
 0x36c   : > { %v3935_v26 = vadd.f32 %v3919_v42, %v3864_v46  ;;  %v3908_v52 = vadd.f32 %v16645_v8, %v3668_v4  ;;  %v3637_v32 = vsel %vm16655_vm1, %v14021_v40, 0.0  ;;  %v3538_v57 = vpop.f32.mrb[31].mxu0  ;;  %v3873_v0 = vmax.f32 %v16700_v58, 0.0 }
 0x36d   : > { %v3906_v10 = vadd.f32 %v16645_v8, %v3666_v17  ;;  %v3669_v55 = vadd.f32 %v3637_v32, %v16567_v47  ;;  %v3635_v48 = vsel %vm16660_vm2, %v3538_v57, 0.0  ;;  %3998 = vrot.lane.b32.xlu0 %v3967_v6, %s15821_s15  ;;  %v3972_v35 = vrot.slane %v3937_v30, 7 }
 0x36e   : > { %v3924_v56 = vmax.f32 %v3908_v52, 0.0  ;;  %v3667_v44 = vadd.f32 %v3635_v48, %v16575_v2  ;;  %v3968_v29 = vrot.slane %v3935_v26, 7  ;;  %v3871_v31 = vmax.f32 %v16709_v27, 0.0 }
 0x36f   : > { %v3922_v46 = vmax.f32 %v3906_v10, 0.0  ;;  %v3909_v51 = vadd.f32 %v16645_v8, %v3669_v55  ;;  %v3973_v22 = vsel %vm17725_vm3, %v3970_v45, %v3972_v35  ;;  %v3844_v58 = vadd.f32 %v16623_v24, %v16639_v43 }
 0x370   : > { %v3940_v47 = vadd.f32 %v3924_v56, %v3869_v59  ;;  %v3907_v61 = vadd.f32 %v16645_v8, %v3667_v44  ;;  %v3971_v42 = vsel %vm17725_vm3, %v3968_v29, %v3970_v45  ;;  %v3969_v4 = vsel %vm17725_vm3, %v3967_v6, %v3968_v29 }
 0x371   : > { %v3938_v60 = vadd.f32 %v3922_v46, %v3867_v39  ;;  %v3925_v30 = vmax.f32 %v3909_v51, 0.0  ;;  %4002 = vrot.lane.b32.xlu0 %v3971_v42, %s15821_s15  ;;  %4000 = vrot.lane.b32.xlu1 %v3969_v4, %s15821_s15  ;;  %v14024_v2 = vpop.f32.mrb[32].mxu0  ;;  %v17789_v59 = vmov 0  ;;  %v3836_v39 = vadd.f32 %v16639_v43, %v16625_v62 }
 0x372   : > { %v17790_v59 = vsel %vm16731_vm4, 4294967295, %v17789_v59  ;;  %v3923_v17 = vmax.f32 %v3907_v61, 0.0  ;;  %v3672_v40 = vadd.f32 %v14024_v2, %v16583_v7  ;;  %v3551_v6 = vpop.f32.mrb[33].mxu0  ;;  %v16740_v27 = vadd.f32 %v16627_v36, %v16639_v43 }
 0x373   : > { %vm16742_vm3 = vcmp.ne.s32.totalorder %v609_v41, 15  ;;  %v17791_v45 = vmov 0  ;;  %v3974_v24 = vrot.slane %v3938_v60, 7  ;;  %v3941_v25 = vadd.f32 %v3925_v30, %v3870_v5  ;;  %v14025_v52 = vpop.f32.mrb[34].mxu0 }
 0x374   : > { %v17792_v45 = vsel %vm16742_vm3, 4294967295, %v17791_v45  ;;  %v3670_v26 = vadd.f32 %v3551_v6, %v16585_v13  ;;  %v16749_v7 = vadd.f32 %v16639_v43, %v16629_v63  ;;  %v3978_v32 = vrot.slane %v3940_v47, 7  ;;  %v3554_v41 = vpop.f32.mrb[35].mxu0 }
 0x375   : > { %v3939_v57 = vadd.f32 %v3923_v17, %v3868_v28  ;;  %v3912_v62 = vadd.f32 %v16645_v8, %v3672_v40  ;;  %v3641_v36 = vsel %vm16692_vm6, %v14025_v52, 0.0  ;;  %v3639_v13 = vsel %vm16702_vm5, %v3554_v41, 0.0  ;;  %4004 = vrot.lane.b32.xlu1 %v3973_v22, %s15821_s15  ;;  %vm17795_vm5 = vmmov %vm17794_vm13 }
 0x376   : > { %v3910_v10 = vadd.f32 %v16645_v8, %v3670_v26  ;;  %v3673_v55 = vadd.f32 %v3641_v36, %v16588_v53  ;;  %v3975_v63 = vsel %vm17793_vm14, %v3972_v35, %v3974_v24  ;;  %v3671_v48 = vadd.f32 %v3639_v13, %v16591_v15  ;;  %vm17796_vm14 = vmmov %vm17795_vm5 }
 0x377   : > { %v3928_v5 = vmax.f32 %v3912_v62, 0.0  ;;  %4006 = vrot.lane.b32.xlu0 %v3975_v63, %s15821_s15  ;;  %v3976_v56 = vrot.slane %v3939_v57, 7  ;;  %v3980_v28 = vrot.slane %v3941_v25, 7  ;;  %v3874_v29 = vmax.f32 %v3844_v58, 0.0 }
 0x378   : > { %v3926_v44 = vmax.f32 %v3910_v10, 0.0  ;;  %v3913_v46 = vadd.f32 %v16645_v8, %v3673_v55  ;;  %v3872_v51 = vmax.f32 %v3836_v39, 0.0  ;;  %v3911_v47 = vadd.f32 %v16645_v8, %v3671_v48 }
 0x379   : > { %v3944_v53 = vadd.f32 %v3928_v5, %v3873_v0  ;;  %v3977_v61 = vsel %vm17794_vm13, %v3974_v24, %v3976_v56  ;;  %v3979_v22 = vsel %vm17795_vm5, %v3976_v56, %v3978_v32  ;;  %v3877_v15 = vmax.f32 %v16740_v27, 0.0  ;;  %v14028_v4 = vpop.f32.mrb[36].mxu0  ;;  %vm17797_vm13 = vmmov %vm17795_vm5 }
 0x37a   : > { %v3942_v35 = vadd.f32 %v3926_v44, %v3871_v31  ;;  %v3929_v42 = vmax.f32 %v3913_v46, 0.0  ;;  %4008 = vrot.lane.b32.xlu1 %v3977_v61, %s15821_s15  ;;  %v3981_v60 = vsel %vm17796_vm14, %v3978_v32, %v3980_v28  ;;  %v3927_v30 = vmax.f32 %v3911_v47, 0.0  ;;  %v3567_v58 = vpop.f32.mrb[37].mxu0  ;;  %vm17798_vm14 = vmmov %vm17795_vm5 }
 0x37b   : > { %v3676_v2 = vadd.f32 %v14028_v4, %v16607_v18  ;;  %v3875_v0 = vmax.f32 %v16749_v7, 0.0  ;;  %v3860_v17 = vadd.f32 %v16631_v37, %v16639_v43  ;;  %4010 = vrot.lane.b32.xlu0 %v3979_v22, %s15821_s15  ;;  %v3674_v6 = vadd.f32 %v3567_v58, %v16609_v19  ;;  %v14029_v39 = vpop.f32.mrb[38].mxu0  ;;  %v15013_v4 = vld [vmem:[#allocation13 + $0x100] sm:$0xff]  }
 0x37c   : > { %v3982_v31 = vrot.slane %v3942_v35, 7  ;;  %v3945_v40 = vadd.f32 %v3929_v42, %v3874_v29  ;;  %v3852_v27 = vadd.f32 %v16639_v43, %v16633_v38  ;;  %v3986_v24 = vrot.slane %v3944_v53, 7  ;;  %v3570_v52 = vpop.f32.mrb[39].mxu0  ;;  %v15010_v42 = vld [vmem:[#allocation13 + $0x40] sm:$0xff]   ;;  %14146 = vmatprep.subr.bf16.mxu0 %v15013_v4 }
 0x37d   : > { %v3943_v25 = vadd.f32 %v3927_v30, %v3872_v51  ;;  %v3916_v18 = vadd.f32 %v16645_v8, %v3676_v2  ;;  %v3645_v26 = vsel %vm16731_vm4, %v14029_v39, 0.0  ;;  %v3914_v37 = vadd.f32 %v16645_v8, %v3674_v6  ;;  %14050 = vmatprep.subr.bf16.mxu1 %v15010_v42  ;;  %14147 = vmatpush3.bf16.msra.mxu0 %v15013_v4  ;;  %v15014_v2 = vld [vmem:[#allocation13 + $0x58] sm:$0xff]   ;;  %v16855_v4 = vld [vmem:[#allocation13] sm:$0xff]  }
 0x37e   : > { %v3677_v7 = vadd.f32 %v3645_v26, %v16612_v21  ;;  %v3643_v32 = vsel %vm16742_vm3, %v3570_v52, 0.0  ;;  %4012 = vrot.lane.b32.xlu1 %v3981_v60, %s15821_s15  ;;  %v3983_v19 = vsel %vm17795_vm5, %v3980_v28, %v3982_v31  ;;  %v3988_v62 = vrot.slane %v3945_v40, 7  ;;  %vm17801_vm3 = vmmov %vm17795_vm5  ;;  %14051 = vmatpush3.bf16.msra.mxu1 %v15010_v42  ;;  %v15012_v60 = vld [vmem:[#allocation13 + $0x50] sm:$0xff]   ;;  %v15019_v26 = vld [vmem:[#allocation13 + $0x118] sm:$0xff]  }
 0x37f   : > { %v3932_v38 = vmax.f32 %v3916_v18, 0.0  ;;  %v3675_v43 = vadd.f32 %v3643_v32, %v16615_v12  ;;  %4014 = vrot.lane.b32.xlu0 %v3983_v19, %s15821_s15  ;;  %v3984_v57 = vrot.slane %v3943_v25, 7  ;;  %v3930_v36 = vmax.f32 %v3914_v37, 0.0  ;;  %v15017_v40 = vld [vmem:[#allocation13 + $0x110] sm:$0xff]   ;;  %v15018_v18 = vld [vmem:[#allocation13 + $0x68] sm:$0xff]  }
 0x380   : > { %v3917_v41 = vadd.f32 %v16645_v8, %v3677_v7  ;;  %v3878_v5 = vmax.f32 %v3860_v17, 0.0  ;;  %v3989_v12 = vsel %vm17795_vm5, %v3986_v24, %v3988_v62  ;;  %v3876_v56 = vmax.f32 %v3852_v27, 0.0 }
 0x381   : > { %v3948_v10 = vadd.f32 %v3932_v38, %v3877_v15  ;;  %v3915_v21 = vadd.f32 %v16645_v8, %v3675_v43  ;;  %v3985_v55 = vsel %vm17797_vm13, %v3982_v31, %v3984_v57  ;;  %v3987_v13 = vsel %vm17798_vm14, %v3984_v57, %v3986_v24  ;;  %vm17799_vm13 = vmmov %vm17795_vm5  ;;  %v15011_v15 = vld [vmem:[#allocation13 + $0x48] sm:$0xff]   ;;  %v15016_v31 = vld [vmem:[#allocation13 + $0x60] sm:$0xff]  }
 0x382   : > { %v3946_v63 = vadd.f32 %v3930_v36, %v3875_v0  ;;  %v3933_v48 = vmax.f32 %v3917_v41, 0.0  ;;  %4016 = vrot.lane.b32.xlu1 %v3985_v55, %s15821_s15  ;;  %vm17800_vm14 = vmmov %vm17795_vm5  ;;  %14052 = vmatprep.subr.bf16.mxu1 %v15011_v15  ;;  %v15015_v0 = vld [vmem:[#allocation13 + $0x108] sm:$0xff]   ;;  %v15020_v36 = vld [vmem:[#allocation13 + $0x70] sm:$0xff]   ;;  %vm17743_vm4 = vcmask 916480  }
 0x383   : > { %v3931_v28 = vmax.f32 %v3915_v21, 0.0  ;;  %4018 = vrot.lane.b32.xlu0 %v3987_v13, %s15821_s15  ;;  %v3994_v51 = vrot.slane %v3948_v10, 7  ;;  %vm17802_vm5 = vmmov %vm17801_vm3  ;;  %14053 = vmatpush3.bf16.msra.mxu1 %v15011_v15  ;;  %v15021_v41 = vld [vmem:[#allocation13 + $0x120] sm:$0xff]  }
 0x384   : > { %v3990_v44 = vrot.slane %v3946_v63, 7  ;;  %v16795_v29 = vadd.f32 %v3933_v48, %v3878_v5  ;;  %14054 = vmatprep.subr.bf16.mxu1 %v15012_v60  ;;  %14148 = vmatprep.subr.bf16.mxu0 %v15015_v0 }
 0x385   : > { %v3947_v46 = vadd.f32 %v3931_v28, %v3876_v56  ;;  %14149 = vmatpush3.bf16.msra.mxu0 %v15015_v0  ;;  %v15022_v28 = vld [vmem:[#allocation13 + $0x78] sm:$0xff]  }
 0x386   : > { %4020 = vrot.lane.b32.xlu1 %v3989_v12, %s15821_s15  ;;  %v3991_v8 = vsel %vm17799_vm13, %v3988_v62, %v3990_v44  ;;  %v3996_v22 = vrot.slane %v16795_v29, 7  ;;  %vm17736_vm13 = vcmask 64513   ;;  %14150 = vmatprep.subr.bf16.mxu0 %v15017_v40 }
 0x387   : > { %4022 = vrot.lane.b32.xlu0 %v3991_v8, %s15821_s15  ;;  %v3992_v53 = vrot.slane %v3947_v46, 7  ;;  %14055 = vmatpush3.bf16.msra.mxu1 %v15012_v60  ;;  %v15027_v60 = vld [vmem:[#allocation13 + $0x130] sm:$0xff]  }
 0x388   : > { %v3997_v35 = vsel %vm17802_vm5, %v3994_v51, %v3996_v22  ;;  %vm17734_vm5 = vcmask 64512   ;;  %14056 = vmatprep.subr.bf16.mxu1 %v15014_v2 }
 0x389   : > { %v3993_v47 = vsel %vm17800_vm14, %v3990_v44, %v3992_v53  ;;  %v3995_v61 = vsel %vm17801_vm3, %v3992_v53, %v3994_v51  ;;  %vm17737_vm3 = vcmask 1047617   ;;  %vm17735_vm14 = vcmask 1047616   ;;  %14151 = vmatpush3.bf16.msra.mxu0 %v15017_v40  ;;  %v15024_v44 = vld [vmem:[#allocation13 + $0x128] sm:$0xff]  }
 0x38a   : > { %4024 = vrot.lane.b32.xlu1 %v3993_v47, %s15821_s15  ;;  %14152 = vmatprep.subr.bf16.mxu0 %v15019_v26 }
 0x38b   : > { %4026 = vrot.lane.b32.xlu0 %v3995_v61, %s15821_s15  ;;  %14057 = vmatpush3.bf16.msra.mxu1 %v15014_v2 }
 0x38c   : > { %14058 = vmatprep.subr.bf16.mxu1 %v15016_v31 }
 0x38d   : > { %14153 = vmatpush3.bf16.msra.mxu0 %v15019_v26 }
 0x38e   : > { %4028 = vrot.lane.b32.xlu1 %v3997_v35, %s15821_s15  ;;  %14154 = vmatprep.subr.bf16.mxu0 %v15021_v41 }
 0x38f   : > { %14059 = vmatpush3.bf16.msra.mxu1 %v15016_v31 }
 0x390   : > { %14060 = vmatprep.subr.bf16.mxu1 %v15018_v18 }
 0x391   : > { %14155 = vmatpush3.bf16.msra.mxu0 %v15021_v41 }
 0x392   : > { %14156 = vmatprep.subr.bf16.mxu0 %v15024_v44 }
 0x393   : > { %14061 = vmatpush3.bf16.msra.mxu1 %v15018_v18 }
 0x394   : > { %14062 = vmatprep.subr.bf16.mxu1 %v15020_v36 }
 0x395   : > { %14157 = vmatpush3.bf16.msra.mxu0 %v15024_v44 }
 0x396   : > { %14158 = vmatprep.subr.bf16.mxu0 %v15027_v60 }
 0x397   : > { %14063 = vmatpush3.bf16.msra.mxu1 %v15020_v36 }
 0x398   : > { %14064 = vmatprep.subr.bf16.mxu1 %v15022_v28 }
 0x399   : > { %14159 = vmatpush3.bf16.msra.mxu0 %v15027_v60 }
 0x39b   : > { %14065 = vmatpush3.bf16.msra.mxu1 %v15022_v28 }
 0x39c   : > { %14082 = vmatprep.subr.bf16.mxu1 %v16855_v4 }
 0x3df   : > { %v3999_v30 = vpop.permute.xlu0 %3998 }
 0x3e0   : > { %4050 = vst.msk [vmem:[#allocation3] sm:$0xfe] %vm17737_vm3, %v3999_v30  ;;  %vm17740_vm3 = vcmask 57344  }
 0x3e1   : > { %4052 = vst.msk [vmem:[#allocation3 + $0x8] sm:$0xfe] %vm17736_vm13, %v3999_v30  ;;  %vm17804_vm13 = vsmask.f32 7424 }
 0x3e3   : > { %v4003_v58 = vpop.permute.xlu0 %4002  ;;  %v4001_v17 = vpop.permute.xlu1 %4000 }
 0x3e4   : > { %4057 = vst.msk [vmem:[#allocation3 + $0x20] sm:$0xff] %vm17735_vm14, %v4003_v58  ;;  %4054 = vst.msk [vmem:[#allocation3 + $0x10] sm:$0xff] %vm17735_vm14, %v4001_v17 }
 0x3e5   : > { %4058 = vst.msk [vmem:[#allocation3 + $0x28] sm:$0xff] %vm17734_vm5, %v4003_v58  ;;  %4056 = vst.msk [vmem:[#allocation3 + $0x18] sm:$0xff] %vm17734_vm5, %v4001_v17 }
 0x3e7   : > { %v4089_v6 = vld [vmem:[#allocation3] sm:$0xff]  ;;  %v4005_v39 = vpop.permute.xlu1 %4004 }
 0x3e8   : > { %v4193_v27 = vld [vmem:[#allocation3 + $0x8] sm:$0xff]  ;;  %4059 = vst.msk [vmem:[#allocation3 + $0x30] sm:$0xff] %vm17735_vm14, %v4005_v39 }
 0x3e9   : > { %4060 = vst.msk [vmem:[#allocation3 + $0x38] sm:$0xff] %vm17734_vm5, %v4005_v39  ;;  %v4007_v24 = vpop.permute.xlu0 %4006  ;;  %v16817_v25 = vpack.c.bf16 %v4193_v27, %v4089_v6  ;;  %v15030_v27 = vld [vmem:[#allocation13 + $0x138] sm:$0xff]  }
 0x3ea   : > { %4061 = vst.msk [vmem:[#allocation3 + $0x40] sm:$0xff] %vm17735_vm14, %v4007_v24  ;;  %14160 = vmatprep.subr.bf16.mxu0 %v15030_v27 }
 0x3eb   : > { %4062 = vst.msk [vmem:[#allocation3 + $0x48] sm:$0xff] %vm17734_vm5, %v4007_v24  ;;  %4313 = vrot.lane.b32.xlu0 %v16817_v25, %s15820_s26  ;;  %v4091_v52 = vld [vmem:[#allocation3 + $0x20] sm:$0xff]  ;;  %v4090_v37 = vld [vmem:[#allocation3 + $0x10] sm:$0xff]  ;;  %14161 = vmatpush3.bf16.msra.mxu0 %v15030_v27 }
 0x3ec   : > { %v4009_v7 = vpop.permute.xlu1 %4008  ;;  %v4197_v32 = vld [vmem:[#allocation3 + $0x28] sm:$0xff]  ;;  %v13461_v19 = vpack.c.bf16 %v4090_v37, %v4089_v6  ;;  %v4195_v57 = vld [vmem:[#allocation3 + $0x18] sm:$0xff] }
 0x3ed   : > { %4063 = vst.msk [vmem:[#allocation3 + $0x50] sm:$0xff] %vm17735_vm14, %v4009_v7  ;;  %v4011_v38 = vpop.permute.xlu0 %4010  ;;  %v16825_v43 = vpack.c.bf16 %v4197_v32, %v4091_v52  ;;  %v16829_v62 = vpack.c.bf16 %v4195_v57, %v4090_v37 }
 0x3ee   : > { %4064 = vst.msk [vmem:[#allocation3 + $0x58] sm:$0xff] %vm17734_vm5, %v4009_v7  ;;  %4066 = vst.msk [vmem:[#allocation3 + $0x68] sm:$0xff] %vm17734_vm5, %v4011_v38 }
 0x3ef   : > { %4065 = vst.msk [vmem:[#allocation3 + $0x60] sm:$0xff] %vm17735_vm14, %v4011_v38  ;;  %13462 = vst [vmem:[#allocation4] sm:$0xff] %v13461_v19   ;;  %4317 = vrot.lane.b32.xlu0 %v16825_v43, %s15820_s26  ;;  %v4092_v10 = vld [vmem:[#allocation3 + $0x30] sm:$0xff]  ;;  %4315 = vrot.lane.b32.xlu1 %v16829_v62, %s15820_s26 }
 0x3f0   : > { %v4013_v21 = vpop.permute.xlu1 %4012  ;;  %v4199_v55 = vld [vmem:[#allocation3 + $0x38] sm:$0xff]  ;;  %v13466_v13 = vpack.c.bf16 %v4092_v10, %v4091_v52 }
 0x3f1   : > { %v4093_v63 = vld [vmem:[#allocation3 + $0x40] sm:$0xff]  ;;  %4067 = vst.msk [vmem:[#allocation3 + $0x70] sm:$0xff] %vm17735_vm14, %v4013_v21  ;;  %v4015_v5 = vpop.permute.xlu0 %4014  ;;  %v16837_v48 = vpack.c.bf16 %v4199_v55, %v4092_v10 }
 0x3f2   : > { %4068 = vst.msk [vmem:[#allocation3 + $0x78] sm:$0xff] %vm17734_vm5, %v4013_v21  ;;  %v4201_v12 = vld [vmem:[#allocation3 + $0x48] sm:$0xff]  ;;  %4070 = vst.msk [vmem:[#allocation3 + $0x88] sm:$0xff] %vm17734_vm5, %v4015_v5 }
 0x3f3   : > { %4069 = vst.msk [vmem:[#allocation3 + $0x80] sm:$0xff] %vm17735_vm14, %v4015_v5  ;;  %v16841_v56 = vpack.c.bf16 %v4201_v12, %v4093_v63  ;;  %13538 = vst [vmem:[#allocation4 + $0x8] sm:$0xff] %v13466_v13   ;;  %4319 = vrot.lane.b32.xlu1 %v16837_v48, %s15820_s26 }
 0x3f4   : > { %v4094_v46 = vld [vmem:[#allocation3 + $0x50] sm:$0xff]  ;;  %v4017_v8 = vpop.permute.xlu1 %4016 }
 0x3f5   : > { %4321 = vrot.lane.b32.xlu0 %v16841_v56, %s15820_s26  ;;  %v4203_v51 = vld [vmem:[#allocation3 + $0x58] sm:$0xff]  ;;  %v13471_v53 = vpack.c.bf16 %v4094_v46, %v4093_v63  ;;  %4071 = vst.msk [vmem:[#allocation3 + $0x90] sm:$0xff] %vm17735_vm14, %v4017_v8  ;;  %v4019_v61 = vpop.permute.xlu0 %4018  ;;  %v4205_v42 = vld [vmem:[#allocation3 + $0x68] sm:$0xff] }
 0x3f6   : > { %v4095_v47 = vld [vmem:[#allocation3 + $0x60] sm:$0xff]  ;;  %4072 = vst.msk [vmem:[#allocation3 + $0x98] sm:$0xff] %vm17734_vm5, %v4017_v8  ;;  %v16849_v35 = vpack.c.bf16 %v4203_v51, %v4094_v46  ;;  %4074 = vst.msk [vmem:[#allocation3 + $0xa8] sm:$0xff] %vm17734_vm5, %v4019_v61 }
 0x3f7   : > { %4073 = vst.msk [vmem:[#allocation3 + $0xa0] sm:$0xff] %vm17735_vm14, %v4019_v61  ;;  %v16853_v15 = vpack.c.bf16 %v4205_v42, %v4095_v47  ;;  %13539 = vst [vmem:[#allocation4 + $0x10] sm:$0xff] %v13471_v53  }
 0x3f8   : > { %v4096_v30 = vld [vmem:[#allocation3 + $0x70] sm:$0xff]  ;;  %4323 = vrot.lane.b32.xlu1 %v16849_v35, %s15820_s26  ;;  %v4021_v2 = vpop.permute.xlu1 %4020 }
 0x3f9   : > { %4325 = vrot.lane.b32.xlu0 %v16853_v15, %s15820_s26  ;;  %v4207_v0 = vld [vmem:[#allocation3 + $0x78] sm:$0xff]  ;;  %v13476_v58 = vpack.c.bf16 %v4096_v30, %v4095_v47  ;;  %4075 = vst.msk [vmem:[#allocation3 + $0xb0] sm:$0xff] %vm17735_vm14, %v4021_v2  ;;  %v4023_v31 = vpop.permute.xlu0 %4022  ;;  %v4209_v6 = vld [vmem:[#allocation3 + $0x88] sm:$0xff] }
 0x3fa   : > { %v4097_v17 = vld [vmem:[#allocation3 + $0x80] sm:$0xff]  ;;  %4076 = vst.msk [vmem:[#allocation3 + $0xb8] sm:$0xff] %vm17734_vm5, %v4021_v2  ;;  %v16863_v40 = vpack.c.bf16 %v4207_v0, %v4096_v30  ;;  %4078 = vst.msk [vmem:[#allocation3 + $0xc8] sm:$0xff] %vm17734_vm5, %v4023_v31 }
 0x3fb   : > { %4077 = vst.msk [vmem:[#allocation3 + $0xc0] sm:$0xff] %vm17735_vm14, %v4023_v31  ;;  %v13381_v39 = vpack.c.bf16 %v4209_v6, %v4097_v17  ;;  %13540 = vst [vmem:[#allocation4 + $0x18] sm:$0xff] %v13476_v58  }
 0x3fc   : > { %v4098_v24 = vld [vmem:[#allocation3 + $0x90] sm:$0xff]  ;;  %4327 = vrot.lane.b32.xlu1 %v16863_v40, %s15820_s26  ;;  %v4025_v18 = vpop.permute.xlu1 %4024 }
 0x3fd   : > { %4329 = vrot.lane.b32.xlu0 %v13381_v39, %s15820_s26  ;;  %v4211_v26 = vld [vmem:[#allocation3 + $0x98] sm:$0xff]  ;;  %v13481_v52 = vpack.c.bf16 %v4098_v24, %v4097_v17  ;;  %4079 = vst.msk [vmem:[#allocation3 + $0xd0] sm:$0xff] %vm17735_vm14, %v4025_v18  ;;  %v4027_v7 = vpop.permute.xlu0 %4026  ;;  %v4213_v19 = vld [vmem:[#allocation3 + $0xa8] sm:$0xff] }
 0x3fe   : > { %v4099_v37 = vld [vmem:[#allocation3 + $0xa0] sm:$0xff]  ;;  %4080 = vst.msk [vmem:[#allocation3 + $0xd8] sm:$0xff] %vm17734_vm5, %v4025_v18  ;;  %v13382_v32 = vpack.c.bf16 %v4211_v26, %v4098_v24  ;;  %4082 = vst.msk [vmem:[#allocation3 + $0xe8] sm:$0xff] %vm17734_vm5, %v4027_v7 }
 0x3ff   : > { %4081 = vst.msk [vmem:[#allocation3 + $0xe0] sm:$0xff] %vm17735_vm14, %v4027_v7  ;;  %v13383_v38 = vpack.c.bf16 %v4213_v19, %v4099_v37  ;;  %13541 = vst [vmem:[#allocation4 + $0x20] sm:$0xff] %v13481_v52  }
 0x400   : > { %v4100_v57 = vld [vmem:[#allocation3 + $0xb0] sm:$0xff]  ;;  %4331 = vrot.lane.b32.xlu1 %v13382_v32, %s15820_s26  ;;  %v4029_v36 = vpop.permute.xlu1 %4028 }
 0x401   : > { %4333 = vrot.lane.b32.xlu0 %v13383_v38, %s15820_s26  ;;  %v4215_v41 = vld [vmem:[#allocation3 + $0xb8] sm:$0xff]  ;;  %v13486_v10 = vpack.c.bf16 %v4100_v57, %v4099_v37  ;;  %4083 = vst.msk [vmem:[#allocation3 + $0xf0] sm:$0xff] %vm17735_vm14, %v4029_v36  ;;  %v4217_v13 = vld [vmem:[#allocation3 + $0xc8] sm:$0xff]  ;;  %vm17803_vm14 = vsmask.f32 7424 }
 0x402   : > { %v4101_v21 = vld [vmem:[#allocation3 + $0xc0] sm:$0xff]  ;;  %4084 = vst.msk [vmem:[#allocation3 + $0xf8] sm:$0xff] %vm17734_vm5, %v4029_v36  ;;  %v13384_v55 = vpack.c.bf16 %v4215_v41, %v4100_v57  ;;  %vm17742_vm5 = vcmask 982016  }
 0x403   : > { %v13385_v63 = vpack.c.bf16 %v4217_v13, %v4101_v21  ;;  %13542 = vst [vmem:[#allocation4 + $0x28] sm:$0xff] %v13486_v10  }
 0x404   : > { %v4102_v5 = vld [vmem:[#allocation3 + $0xd0] sm:$0xff]  ;;  %4335 = vrot.lane.b32.xlu1 %v13384_v55, %s15820_s26 }
 0x405   : > { %4337 = vrot.lane.b32.xlu0 %v13385_v63, %s15820_s26  ;;  %v4219_v12 = vld [vmem:[#allocation3 + $0xd8] sm:$0xff]  ;;  %v13491_v28 = vpack.c.bf16 %v4102_v5, %v4101_v21  ;;  %v4221_v8 = vld [vmem:[#allocation3 + $0xe8] sm:$0xff] }
 0x406   : > { %v4103_v44 = vld [vmem:[#allocation3 + $0xe0] sm:$0xff]  ;;  %v13386_v46 = vpack.c.bf16 %v4219_v12, %v4102_v5 }
 0x407   : > { %v13387_v51 = vpack.c.bf16 %v4221_v8, %v4103_v44  ;;  %13543 = vst [vmem:[#allocation4 + $0x30] sm:$0xff] %v13491_v28  }
 0x408   : > { %v4104_v53 = vld [vmem:[#allocation3 + $0xf0] sm:$0xff]  ;;  %4339 = vrot.lane.b32.xlu1 %v13386_v46, %s15820_s26 }
 0x409   : > { %4341 = vrot.lane.b32.xlu0 %v13387_v51, %s15820_s26  ;;  %v4223_v47 = vld [vmem:[#allocation3 + $0xf8] sm:$0xff]  ;;  %v13496_v61 = vpack.c.bf16 %v4104_v53, %v4103_v44 }
 0x40a   : > { %v13388_v42 = vpack.c.bf16 %v4223_v47, %v4104_v53 }
 0x40b   : > { %13544 = vst [vmem:[#allocation4 + $0x38] sm:$0xff] %v13496_v61  }
 0x40c   : > { %4343 = vrot.lane.b32.xlu1 %v13388_v42, %s15820_s26 }
 0x40d   : > { %4030 = vrot.lane.b32.xlu0 %v3996_v22, %s15821_s15 }
 0x410   : > { %4537 = vrot.lane.b32.xlu1 %v16817_v25, %s15822_s21 }
 0x411   : > { %4539 = vrot.lane.b32.xlu0 %v16829_v62, %s15822_s21 }
 0x414   : > { %4541 = vrot.lane.b32.xlu1 %v16825_v43, %s15822_s21 }
 0x415   : > { %4543 = vrot.lane.b32.xlu0 %v16837_v48, %s15822_s21 }
 0x418   : > { %4545 = vrot.lane.b32.xlu1 %v16841_v56, %s15822_s21 }
 0x419   : > { %4547 = vrot.lane.b32.xlu0 %v16849_v35, %s15822_s21 }
 0x41c   : > { %4549 = vrot.lane.b32.xlu1 %v16853_v15, %s15822_s21  ;;  %v16913_v15 = vld [vmem:[#allocation13 + $0xc0] sm:$0xff]  }
 0x41d   : > { %4551 = vrot.lane.b32.xlu0 %v16863_v40, %s15822_s21  ;;  %14178 = vmatprep.subr.bf16.mxu0 %v16913_v15 }
 0x420   : > { %4553 = vrot.lane.b32.xlu1 %v13381_v39, %s15822_s21 }
 0x421   : > { %4555 = vrot.lane.b32.xlu0 %v13382_v32, %s15822_s21 }
 0x424   : > { %4557 = vrot.lane.b32.xlu1 %v13383_v38, %s15822_s21  ;;  %v15029_v38 = vld [vmem:[#allocation13 + $0x8] sm:$0xff]  }
 0x425   : > { %4559 = vrot.lane.b32.xlu0 %v13384_v55, %s15822_s21 }
 0x428   : > { %4561 = vrot.lane.b32.xlu1 %v13385_v63, %s15822_s21 }
 0x429   : > { %4563 = vrot.lane.b32.xlu0 %v13386_v46, %s15822_s21  ;;  %v15034_v46 = vld [vmem:[#allocation13 + $0x10] sm:$0xff]  }
 0x42c   : > { %4565 = vrot.lane.b32.xlu1 %v13387_v51, %s15822_s21 }
 0x42d   : > { %4567 = vrot.lane.b32.xlu0 %v13388_v42, %s15822_s21 }
 0x45d   : > { %v4314_v29 = vpop.permute.xlu0 %4313 }
 0x45e   : > { %v4347_v22 = vrot.slane %v4314_v29, 4 }
 0x460   : > { %v4365_v25 = vsel %vm17742_vm5, %v4314_v29, %v4347_v22 }
 0x461   : > { %4399 = vst [vmem:[#allocation4 + $0x44] sm:$0xf] %v4365_v25  ;;  %v4318_v43 = vpop.permute.xlu0 %4317  ;;  %v4316_v48 = vpop.permute.xlu1 %4315 }
 0x462   : > { %v4349_v62 = vrot.slane %v4318_v43, 4  ;;  %v4348_v56 = vrot.slane %v4316_v48, 4 }
 0x464   : > { %v4367_v35 = vsel %vm17742_vm5, %v4318_v43, %v4349_v62  ;;  %v4366_v60 = vsel %vm17742_vm5, %v4316_v48, %v4348_v56  ;;  %v15037_v56 = vld [vmem:[#allocation13 + $0x18] sm:$0xff]  }
 0x465   : > { %4401 = vst [vmem:[#allocation4 + $0x4c] sm:$0xf] %v4367_v35  ;;  %4400 = vst [vmem:[#allocation4 + $0x48] sm:$0xf] %v4366_v60  ;;  %v4320_v30 = vpop.permute.xlu1 %4319 }
 0x466   : > { %v4350_v0 = vrot.slane %v4320_v30, 4 }
 0x467   : > { %v4322_v2 = vpop.permute.xlu0 %4321 }
 0x468   : > { %v4351_v58 = vrot.slane %v4322_v2, 4  ;;  %v4368_v17 = vsel %vm17742_vm5, %v4320_v30, %v4350_v0 }
 0x469   : > { %4402 = vst [vmem:[#allocation4 + $0x50] sm:$0xf] %v4368_v17 }
 0x46a   : > { %v4369_v31 = vsel %vm17742_vm5, %v4322_v2, %v4351_v58  ;;  %v4324_v40 = vpop.permute.xlu1 %4323 }
 0x46b   : > { %4403 = vst [vmem:[#allocation4 + $0x54] sm:$0xf] %v4369_v31  ;;  %v4326_v6 = vpop.permute.xlu0 %4325  ;;  %v4352_v39 = vrot.slane %v4324_v40, 4 }
 0x46c   : > { %v4353_v27 = vrot.slane %v4326_v6, 4  ;;  %v15023_v26 = vld [vmem:[#allocation4 + $0x44] sm:$0xff]  }
 0x46d   : > { %v4370_v24 = vsel %vm17742_vm5, %v4324_v40, %v4352_v39  ;;  %v15031_v7 = vld [vmem:[#allocation4 + $0x44] sm:$0xff]   ;;  %14066 = vmatprep.mubr.bf16.mxu1 %v15023_v26 }
 0x46e   : > { %v4371_v18 = vsel %vm17742_vm5, %v4326_v6, %v4353_v27  ;;  %4404 = vst [vmem:[#allocation4 + $0x58] sm:$0xf] %v4370_v24  ;;  %v4328_v52 = vpop.permute.xlu1 %4327  ;;  %v5479_v57 = vshll.u32 %v15031_v7, 16  ;;  %v5477_v28 = vshrl.u32 %v15031_v7, 16  ;;  %v15093_v39 = vld [vmem:[#allocation13 + $0xc8] sm:$0xff]   ;;  %v15040_v26 = vld [vmem:[#allocation13 + $0x20] sm:$0xff]  }
 0x46f   : > { %4405 = vst [vmem:[#allocation4 + $0x5c] sm:$0xf] %v4371_v18  ;;  %v4330_v37 = vpop.permute.xlu0 %4329  ;;  %v4354_v32 = vrot.slane %v4328_v52, 4 }
 0x470   : > { %v4355_v19 = vrot.slane %v4330_v37, 4  ;;  %v15025_v10 = vld [vmem:[#allocation4 + $0x4c] sm:$0xff]   ;;  %v5481_v63 = vrot.slane %v5479_v57, 1 }
 0x471   : > { %v4372_v36 = vsel %vm17742_vm5, %v4328_v52, %v4354_v32  ;;  %v15032_v13 = vld [vmem:[#allocation4 + $0x4c] sm:$0xff]   ;;  %14067 = vmatmul.mubr.bf16.vlgmr.msra.gmra.mrb[32].mxu1 %v15025_v10 }
 0x472   : > { %v4373_v41 = vsel %vm17742_vm5, %v4330_v37, %v4355_v19  ;;  %4406 = vst [vmem:[#allocation4 + $0x60] sm:$0xf] %v4372_v36  ;;  %v4332_v21 = vpop.permute.xlu1 %4331  ;;  %14083 = vmatpush3.bf16.msra.mxu1 %v16855_v4  ;;  %v5484_v44 = vshll.u32 %v15032_v13, 16  ;;  %v5482_v42 = vor.u32 %v5481_v63, %v5477_v28  ;;  %v5488_v62 = vshrl.u32 %v15032_v13, 16  ;;  %v15043_v13 = vld [vmem:[#allocation13 + $0x28] sm:$0xff]  }
 0x473   : > { %4407 = vst [vmem:[#allocation4 + $0x64] sm:$0xf] %v4373_v41  ;;  %v4334_v55 = vpop.permute.xlu0 %4333  ;;  %v4356_v5 = vrot.slane %v4332_v21, 4  ;;  %14084 = vmatprep.subr.bf16.mxu1 %v15029_v38 }
 0x474   : > { %v4357_v12 = vrot.slane %v4334_v55, 4  ;;  %v5486_v29 = vrot.slane %v5484_v44, 1 }
 0x475   : > { %v4374_v8 = vsel %vm17742_vm5, %v4332_v21, %v4356_v5  ;;  %v15028_v53 = vld [vmem:[#allocation4 + $0x54] sm:$0xff]  }
 0x476   : > { %v4375_v51 = vsel %vm17742_vm5, %v4334_v55, %v4357_v12  ;;  %4408 = vst [vmem:[#allocation4 + $0x68] sm:$0xf] %v4374_v8  ;;  %v4336_v47 = vpop.permute.xlu1 %4335  ;;  %v15035_v22 = vld [vmem:[#allocation4 + $0x54] sm:$0xff]   ;;  %14070 = vmatprep.mubr.bf16.mxu1 %v15028_v53  ;;  %14085 = vmatpush3.bf16.msra.mxu1 %v15029_v38  ;;  %v5487_v4 = vsel %vm17803_vm14, %v5482_v42, %v5486_v29  ;;  %vm17741_vm14 = vcmask 1040448  }
 0x477   : > { %4409 = vst [vmem:[#allocation4 + $0x6c] sm:$0xf] %v4375_v51  ;;  %v4338_v61 = vpop.permute.xlu0 %4337  ;;  %v4358_v25 = vrot.slane %v4336_v47, 4  ;;  %v5492_v48 = vshll.u32 %v15035_v22, 16  ;;  %14162 = vmatprep.mubr.bf16.mxu0 %v5487_v4  ;;  %14086 = vmatprep.subr.bf16.mxu1 %v15034_v46  ;;  %v5490_v2 = vor.u32 %v5488_v62, %v5486_v29  ;;  %v5496_v24 = vshrl.u32 %v15035_v22, 16  ;;  %v15046_v42 = vld [vmem:[#allocation13 + $0x30] sm:$0xff]  }
 0x478   : > { %v4359_v43 = vrot.slane %v4338_v61, 4  ;;  %v15095_v29 = vld [vmem:[#allocation13 + $0xd0] sm:$0xff]  }
 0x479   : > { %v4376_v35 = vsel %vm17742_vm5, %v4336_v47, %v4358_v25  ;;  %v15033_v30 = vld [vmem:[#allocation4 + $0x5c] sm:$0xff]   ;;  %v5494_v17 = vrot.slane %v5492_v48, 1 }
 0x47a   : > { %v4377_v60 = vsel %vm17742_vm5, %v4338_v61, %v4359_v43  ;;  %4410 = vst [vmem:[#allocation4 + $0x70] sm:$0xf] %v4376_v35  ;;  %v4340_v0 = vpop.permute.xlu1 %4339  ;;  %v15038_v31 = vld [vmem:[#allocation4 + $0x5c] sm:$0xff]   ;;  %14071 = vmatmul.mubr.bf16.gmra.mrb[36].mxu1 %v15033_v30 }
 0x47b   : > { %4411 = vst [vmem:[#allocation4 + $0x74] sm:$0xf] %v4377_v60  ;;  %v4342_v58 = vpop.permute.xlu0 %4341  ;;  %v4360_v40 = vrot.slane %v4340_v0, 4  ;;  %14087 = vmatpush3.bf16.msra.mxu1 %v15034_v46  ;;  %v5495_v27 = vsel %vm17804_vm13, %v5490_v2, %v5494_v17  ;;  %v5500_v18 = vshll.u32 %v15038_v31, 16  ;;  %v5498_v38 = vor.u32 %v5496_v24, %v5494_v17  ;;  %v15047_v24 = vld [vmem:[#allocation4] sm:$0xff]  }
 0x47c   : > { %v4361_v6 = vrot.slane %v4342_v58, 4  ;;  %14163 = vmatmul.mubr.bf16.vlgmr.msra.gmra.mrb[40].mxu0 %v5495_v27  ;;  %14088 = vmatprep.subr.bf16.mxu1 %v15037_v56  ;;  %v5504_v21 = vshrl.u32 %v15038_v31, 16 }
 0x47d   : > { %v4378_v52 = vsel %vm17742_vm5, %v4340_v0, %v4360_v40  ;;  %v15036_v7 = vld [vmem:[#allocation4 + $0x64] sm:$0xff]   ;;  %v5502_v57 = vrot.slane %v5500_v18, 1  ;;  %14179 = vmatpush3.bf16.msra.mxu0 %v16913_v15  ;;  %v15049_v40 = vld [vmem:[#allocation13 + $0x38] sm:$0xff]  }
 0x47e   : > { %v4379_v37 = vsel %vm17742_vm5, %v4342_v58, %v4361_v6  ;;  %4412 = vst [vmem:[#allocation4 + $0x78] sm:$0xf] %v4378_v52  ;;  %v4344_v32 = vpop.permute.xlu1 %4343  ;;  %v15041_v36 = vld [vmem:[#allocation4 + $0x64] sm:$0xff]   ;;  %14074 = vmatprep.mubr.bf16.mxu1 %v15036_v7  ;;  %14180 = vmatprep.subr.bf16.mxu0 %v15093_v39 }
 0x47f   : > { %4413 = vst [vmem:[#allocation4 + $0x7c] sm:$0xf] %v4379_v37  ;;  %v4031_v19 = vpop.permute.xlu0 %4030  ;;  %v4362_v41 = vrot.slane %v4344_v32, 4  ;;  %14089 = vmatpush3.bf16.msra.mxu1 %v15037_v56  ;;  %v5503_v10 = vsel %vm17804_vm13, %v5498_v38, %v5502_v57  ;;  %v5508_v55 = vshll.u32 %v15041_v36, 16  ;;  %v5506_v28 = vor.u32 %v5504_v21, %v5502_v57 }
 0x480   : > { %4086 = vst.msk [vmem:[#allocation3 + $0x100] sm:$0x1] %vm17741_vm14, %v4031_v19  ;;  %14166 = vmatprep.mubr.bf16.mxu0 %v5503_v10  ;;  %14090 = vmatprep.subr.bf16.mxu1 %v15040_v26  ;;  %v5512_v47 = vshrl.u32 %v15041_v36, 16 }
 0x481   : > { %4088 = vst.msk [vmem:[#allocation3 + $0x108] sm:$0x1] %vm17740_vm3, %v4031_v19  ;;  %v4380_v63 = vsel %vm17742_vm5, %v4344_v32, %v4362_v41  ;;  %v15039_v5 = vld [vmem:[#allocation4 + $0x6c] sm:$0xff]   ;;  %v5510_v44 = vrot.slane %v5508_v55, 1  ;;  %14181 = vmatpush3.bf16.msra.mxu0 %v15093_v39 }
 0x482   : > { %4414 = vst [vmem:[#allocation4 + $0x80] sm:$0xf] %v4380_v63  ;;  %v4538_v15 = vpop.permute.xlu1 %4537  ;;  %v15044_v46 = vld [vmem:[#allocation4 + $0x6c] sm:$0xff]   ;;  %14075 = vmatmul.mubr.bf16.gmra.mrb[40].mxu1 %v15039_v5  ;;  %14182 = vmatprep.subr.bf16.mxu0 %v15095_v29  ;;  %v15097_v5 = vld [vmem:[#allocation13 + $0xd8] sm:$0xff]  }
 0x483   : > { %v4540_v12 = vpop.permute.xlu0 %4539  ;;  %v4571_v8 = vrot.slane %v4538_v15, 4  ;;  %14091 = vmatpush3.bf16.msra.mxu1 %v15040_v26  ;;  %v5511_v53 = vsel %vm17804_vm13, %v5506_v28, %v5510_v44  ;;  %v5516_v61 = vshll.u32 %v15044_v46, 16  ;;  %v5514_v56 = vor.u32 %v5512_v47, %v5510_v44  ;;  %v15052_v28 = vld [vmem:[#allocation13 + $0x80] sm:$0xff]  }
 0x484   : > { %v4572_v51 = vrot.slane %v4540_v12, 4  ;;  %14167 = vmatmul.mubr.bf16.gmra.mrb[44].mxu0 %v5511_v53  ;;  %14092 = vmatprep.subr.bf16.mxu1 %v15043_v13  ;;  %v5520_v18 = vshrl.u32 %v15044_v46, 16  ;;  %v15099_v53 = vld [vmem:[#allocation13 + $0xe0] sm:$0xff]  }
 0x485   : > { %v4589_v22 = vsel %vm17743_vm4, %v4538_v15, %v4571_v8  ;;  %v15042_v43 = vld [vmem:[#allocation4 + $0x74] sm:$0xff]   ;;  %v5518_v35 = vrot.slane %v5516_v61, 1  ;;  %14183 = vmatpush3.bf16.msra.mxu0 %v15095_v29  ;;  %v15051_v29 = vld [vmem:[#allocation4 + $0x8] sm:$0xff]  }
 0x486   : > { %v4590_v25 = vsel %vm17743_vm4, %v4540_v12, %v4572_v51  ;;  %4623 = vst [vmem:[#allocation4 + $0x88] sm:$0xf] %v4589_v22  ;;  %v4542_v62 = vpop.permute.xlu1 %4541  ;;  %v15048_v30 = vld [vmem:[#allocation4 + $0x74] sm:$0xff]   ;;  %14078 = vmatprep.mubr.bf16.mxu1 %v15042_v43  ;;  %14184 = vmatprep.subr.bf16.mxu0 %v15097_v5  ;;  %v15054_v22 = vld [vmem:[#allocation13 + $0x88] sm:$0xff]  }
 0x487   : > { %v4105_v4 = vld [vmem:[#allocation3 + $0x100] sm:$0x3]  ;;  %4624 = vst [vmem:[#allocation4 + $0x8c] sm:$0xf] %v4590_v25  ;;  %v4544_v48 = vpop.permute.xlu0 %4543  ;;  %v4573_v0 = vrot.slane %v4542_v62, 4  ;;  %14093 = vmatpush3.bf16.msra.mxu1 %v15043_v13  ;;  %v5519_v6 = vsel %vm17804_vm13, %v5514_v56, %v5518_v35  ;;  %v5524_v26 = vshll.u32 %v15048_v30, 16  ;;  %v5522_v57 = vor.u32 %v5520_v18, %v5518_v35 }
 0x488   : > { %v4448_v60 = vld [vmem:[#allocation3 + $0x100] sm:$0x3]  ;;  %v13372_v2 = vpack.c.bf16 %v4105_v4, %v4105_v4  ;;  %v4574_v58 = vrot.slane %v4544_v48, 4  ;;  %v4449_v17 = vld [vmem:[#allocation3 + $0x108] sm:$0x3]  ;;  %14170 = vmatprep.mubr.bf16.mxu0 %v5519_v6  ;;  %14094 = vmatprep.subr.bf16.mxu1 %v15046_v42  ;;  %v5528_v13 = vshrl.u32 %v15048_v30, 16 }
 0x489   : > { %v4224_v31 = vld [vmem:[#allocation3 + $0x100] sm:$0x3]  ;;  %v13406_v39 = vpack.c.bf16 %v4449_v17, %v4448_v60  ;;  %v4225_v27 = vld [vmem:[#allocation3 + $0x108] sm:$0x3]  ;;  %v4591_v52 = vsel %vm17743_vm4, %v4542_v62, %v4573_v0  ;;  %v15045_v32 = vld [vmem:[#allocation4 + $0x7c] sm:$0xff]   ;;  %v5526_v36 = vrot.slane %v5524_v26, 1  ;;  %14185 = vmatpush3.bf16.msra.mxu0 %v15097_v5 }
 0x48a   : > { %4191 = vst [vmem:[#allocation4 + $0x40] sm:$0x1] %v13372_v2  ;;  %v4592_v37 = vsel %vm17743_vm4, %v4544_v48, %v4574_v58  ;;  %v13389_v7 = vpack.c.bf16 %v4225_v27, %v4224_v31  ;;  %4625 = vst [vmem:[#allocation4 + $0x90] sm:$0xf] %v4591_v52  ;;  %v4546_v19 = vpop.permute.xlu1 %4545  ;;  %v16944_v41 = vld [vmem:[#allocation4 + $0x7c] sm:$0xff]   ;;  %14079 = vmatmul.mubr.bf16.gmra.mrb[44].mxu1 %v15045_v32  ;;  %14186 = vmatprep.subr.bf16.mxu0 %v15099_v53  ;;  %v15101_v4 = vld [vmem:[#allocation13 + $0xe8] sm:$0xff]  }
 0x48b   : > { %4626 = vst [vmem:[#allocation4 + $0x94] sm:$0xf] %v4592_v37  ;;  %4569 = vrot.lane.b32.xlu0 %v13406_v39, %s15822_s21  ;;  %v4548_v38 = vpop.permute.xlu0 %4547  ;;  %v4575_v10 = vrot.slane %v4546_v19, 4  ;;  %14095 = vmatpush3.bf16.msra.mxu1 %v15046_v42  ;;  %v5527_v55 = vsel %vm17804_vm13, %v5522_v57, %v5526_v36  ;;  %v5532_v63 = vshll.u32 %v16944_v41, 16  ;;  %v5530_v8 = vor.u32 %v5528_v13, %v5526_v36  ;;  %v15053_v56 = vld [vmem:[#allocation4 + $0x10] sm:$0xff]   ;;  %v15055_v39 = vld [vmem:[#allocation4 + $0x18] sm:$0xff]  }
 0x48c   : > { %4345 = vrot.lane.b32.xlu1 %v13389_v7, %s15820_s26  ;;  %v4576_v21 = vrot.slane %v4548_v38, 4  ;;  %14098 = vmatprep.mubr.bf16.mxu1 %v15047_v24  ;;  %v15104_v30 = vld [vmem:[#allocation13 + $0xf0] sm:$0xff]   ;;  %v15058_v27 = vld [vmem:[#allocation13 + $0x98] sm:$0xff]   ;;  %v15057_v7 = vld [vmem:[#allocation4 + $0x20] sm:$0xff]  }
 0x48d   : > { %v4593_v15 = vsel %vm17743_vm4, %v4546_v19, %v4575_v10  ;;  %14171 = vmatmul.mubr.bf16.gmra.mrb[48].mxu0 %v5527_v55  ;;  %14096 = vmatprep.subr.bf16.mxu1 %v15049_v40  ;;  %v16951_v51 = vrot.slane %v5532_v63, 1  ;;  %v15056_v58 = vld [vmem:[#allocation13 + $0x90] sm:$0xff]   ;;  %v15111_v26 = vld [vmem:[#allocation13 + $0xf8] sm:$0xff]   ;;  %v15060_v10 = vld [vmem:[#allocation13 + $0xa0] sm:$0xff]  }
 0x48e   : > { %v4594_v12 = vsel %vm17743_vm4, %v4548_v38, %v4576_v21  ;;  %4627 = vst [vmem:[#allocation4 + $0x98] sm:$0xf] %v4593_v15  ;;  %v4550_v44 = vpop.permute.xlu1 %4549  ;;  %14187 = vmatpush3.bf16.msra.mxu0 %v15099_v53  ;;  %v16961_v38 = vld [vmem:[#allocation13 + $0x140] sm:$0xff]   ;;  %v15059_v5 = vld [vmem:[#allocation4 + $0x28] sm:$0xff]   ;;  %v15066_v53 = vld [vmem:[#allocation13 + $0xb8] sm:$0xff]  }
 0x48f   : > { %4628 = vst [vmem:[#allocation4 + $0x9c] sm:$0xf] %v4594_v12  ;;  %v4552_v46 = vpop.permute.xlu0 %4551  ;;  %v4577_v47 = vrot.slane %v4550_v44, 4  ;;  %14097 = vmatpush3.bf16.msra.mxu1 %v15049_v40  ;;  %v5535_v42 = vsel %vm17804_vm13, %v5530_v8, %v16951_v51  ;;  %14188 = vmatprep.subr.bf16.mxu0 %v15101_v4  ;;  %v15063_v8 = vld [vmem:[#allocation4 + $0x38] sm:$0xff]   ;;  %vm17805_vm13 = vcmask 1046528  }
 0x490   : > { %v4578_v61 = vrot.slane %v4552_v46, 4  ;;  %14174 = vmatprep.mubr.bf16.mxu0 %v5535_v42  ;;  %14114 = vmatprep.subr.bf16.mxu1 %v15052_v28  ;;  %vm17806_vm3 = vmmov %vm17805_vm13 }
 0x491   : > { %v4595_v25 = vsel %vm17743_vm4, %v4550_v44, %v4577_v47  ;;  %v15061_v44 = vld [vmem:[#allocation4 + $0x30] sm:$0xff]   ;;  %v15065_v47 = vld [vmem:[#allocation4 + $0x88] sm:$0xff]   ;;  %vm17807_vm14 = vmmov %vm17806_vm3 }
 0x492   : > { %v4596_v43 = vsel %vm17743_vm4, %v4552_v46, %v4578_v61  ;;  %4629 = vst [vmem:[#allocation4 + $0xa0] sm:$0xf] %v4595_v25  ;;  %v4554_v62 = vpop.permute.xlu1 %4553  ;;  %14099 = vmatmul.mubr.bf16.vlgmr.msra.gmra.mrb[32].mxu1 %v15051_v29  ;;  %14189 = vmatpush3.bf16.msra.mxu0 %v15101_v4  ;;  %v15064_v46 = vld [vmem:[#allocation13 + $0xb0] sm:$0xff]   ;;  %v15068_v61 = vld [vmem:[#allocation13 + $0x1c0] sm:$0xff]   ;;  %v15070_v29 = vld [vmem:[#allocation13 + $0x1c8] sm:$0xff]  }
 0x493   : > { %4630 = vst [vmem:[#allocation4 + $0xa4] sm:$0xf] %v4596_v43  ;;  %v4556_v48 = vpop.permute.xlu0 %4555  ;;  %v4579_v35 = vrot.slane %v4554_v62, 4  ;;  %14102 = vmatprep.mubr.bf16.mxu1 %v15053_v56  ;;  %14115 = vmatpush3.bf16.msra.mxu1 %v15052_v28  ;;  %v15062_v28 = vld [vmem:[#allocation13 + $0xa8] sm:$0xff]   ;;  %v15067_v42 = vld [vmem:[#allocation4 + $0x90] sm:$0xff]   ;;  %v15074_v4 = vld [vmem:[#allocation13 + $0x1d8] sm:$0xff]  }
 0x494   : > { %v4580_v60 = vrot.slane %v4556_v48, 4  ;;  %14116 = vmatprep.subr.bf16.mxu1 %v15054_v22  ;;  %14190 = vmatprep.subr.bf16.mxu0 %v15104_v30  ;;  %v15072_v25 = vld [vmem:[#allocation13 + $0x1d0] sm:$0xff]   ;;  %vm17809_vm5 = vmmov %vm17806_vm3 }
 0x495   : > { %v4597_v2 = vsel %vm17743_vm4, %v4554_v62, %v4579_v35  ;;  %v15078_v35 = vld [vmem:[#allocation13 + $0x1e8] sm:$0xff]  }
 0x496   : > { %v4598_v0 = vsel %vm17743_vm4, %v4556_v48, %v4580_v60  ;;  %4631 = vst [vmem:[#allocation4 + $0xa8] sm:$0xf] %v4597_v2  ;;  %v4558_v17 = vpop.permute.xlu1 %4557  ;;  %14191 = vmatpush3.bf16.msra.mxu0 %v15104_v30  ;;  %v15076_v48 = vld [vmem:[#allocation13 + $0x1e0] sm:$0xff]   ;;  %v15082_v30 = vld [vmem:[#allocation4 + $0x4c] sm:$0xff]  }
 0x497   : > { %4632 = vst [vmem:[#allocation4 + $0xac] sm:$0xf] %v4598_v0  ;;  %v4560_v31 = vpop.permute.xlu0 %4559  ;;  %v4581_v40 = vrot.slane %v4558_v17, 4  ;;  %14117 = vmatpush3.bf16.msra.mxu1 %v15054_v22  ;;  %14192 = vmatprep.subr.bf16.mxu0 %v15111_v26  ;;  %v15069_v22 = vld [vmem:[#allocation4 + $0x98] sm:$0xff]   ;;  %v15080_v2 = vld [vmem:[#allocation13 + $0x1f0] sm:$0xff]  }
 0x498   : > { %v4582_v6 = vrot.slane %v4560_v31, 4  ;;  %14118 = vmatprep.subr.bf16.mxu1 %v15056_v58  ;;  %v15081_v0 = vld [vmem:[#allocation4 + $0x44] sm:$0xfe]  }
 0x499   : > { %v4599_v24 = vsel %vm17743_vm4, %v4558_v17, %v4581_v40  ;;  %v15083_v40 = vld [vmem:[#allocation13 + $0x1f8] sm:$0xff]  }
 0x49a   : > { %v4600_v18 = vsel %vm17743_vm4, %v4560_v31, %v4582_v6  ;;  %4633 = vst [vmem:[#allocation4 + $0xb0] sm:$0xf] %v4599_v24  ;;  %v4562_v52 = vpop.permute.xlu1 %4561  ;;  %14103 = vmatmul.mubr.bf16.gmra.mrb[36].mxu1 %v15055_v39  ;;  %14193 = vmatpush3.bf16.msra.mxu0 %v15111_v26  ;;  %v15071_v43 = vld [vmem:[#allocation4 + $0xa0] sm:$0xff]   ;;  %v6434_v31 = vrot.slane %v15081_v0, 1  ;;  %v15084_v6 = vld [vmem:[#allocation4 + $0x54] sm:$0xff]  }
 0x49b   : > { %4634 = vst [vmem:[#allocation4 + $0xb4] sm:$0xf] %v4600_v18  ;;  %v4564_v37 = vpop.permute.xlu0 %4563  ;;  %v4583_v32 = vrot.slane %v4562_v52, 4  ;;  %14106 = vmatprep.mubr.bf16.mxu1 %v15057_v7  ;;  %14119 = vmatpush3.bf16.msra.mxu1 %v15056_v58  ;;  %v6435_v58 = vrot.slane %v15082_v30, 1  ;;  %v15090_v24 = vld [vmem:[#allocation13 + $0x180] sm:$0xff]   ;;  %v6437_v18 = vrot.slane %v15084_v6, 1 }
 0x49c   : > { %v4584_v19 = vrot.slane %v4564_v37, 4  ;;  %14120 = vmatprep.subr.bf16.mxu1 %v15058_v27  ;;  %14210 = vmatprep.subr.bf16.mxu0 %v16961_v38  ;;  %v15086_v7 = vld [vmem:[#allocation4 + $0x64] sm:$0xff]  }
 0x49d   : > { %v4601_v57 = vsel %vm17743_vm4, %v4562_v52, %v4583_v32  ;;  %v6436_v39 = vsel %vm17805_vm13, %v6434_v31, %v6435_v58  ;;  %v15092_v52 = vld [vmem:[#allocation13 + $0x188] sm:$0xff]   ;;  %vm17808_vm13 = vmmov %vm17806_vm3 }
 0x49e   : > { %v4602_v36 = vsel %vm17743_vm4, %v4564_v37, %v4584_v19  ;;  %4635 = vst [vmem:[#allocation4 + $0xb8] sm:$0xf] %v4601_v57  ;;  %v4566_v21 = vpop.permute.xlu1 %4565  ;;  %v15073_v62 = vld [vmem:[#allocation4 + $0xa8] sm:$0xff]   ;;  %v6438_v37 = vsel %vm17806_vm3, %v6435_v58, %v6437_v18  ;;  %v15094_v57 = vld [vmem:[#allocation13 + $0x190] sm:$0xff]  }
 0x49f   : > { %4636 = vst [vmem:[#allocation4 + $0xbc] sm:$0xf] %v4602_v36  ;;  %v4568_v55 = vpop.permute.xlu0 %4567  ;;  %v4585_v13 = vrot.slane %v4566_v21, 4  ;;  %14121 = vmatpush3.bf16.msra.mxu1 %v15058_v27  ;;  %v15085_v27 = vld [vmem:[#allocation4 + $0x5c] sm:$0xff]   ;;  %v15087_v19 = vld [vmem:[#allocation4 + $0x6c] sm:$0xff]   ;;  %v6441_v36 = vrot.slane %v15086_v7, 1 }
 0x4a0   : > { %v4586_v63 = vrot.slane %v4568_v55, 4  ;;  %14122 = vmatprep.subr.bf16.mxu1 %v15060_v10  ;;  %v6439_v26 = vrot.slane %v15085_v27, 1 }
 0x4a1   : > { %v4603_v15 = vsel %vm17743_vm4, %v4566_v21, %v4585_v13  ;;  %v15096_v21 = vld [vmem:[#allocation13 + $0x198] sm:$0xff]  }
 0x4a2   : > { %v4604_v12 = vsel %vm17743_vm4, %v4568_v55, %v4586_v63  ;;  %4637 = vst [vmem:[#allocation4 + $0xc0] sm:$0xf] %v4603_v15  ;;  %14107 = vmatmul.mubr.bf16.gmra.mrb[40].mxu1 %v15059_v5  ;;  %v15075_v56 = vld [vmem:[#allocation4 + $0xb0] sm:$0xff]   ;;  %v6440_v32 = vsel %vm17807_vm14, %v6437_v18, %v6439_v26  ;;  %v6442_v55 = vsel %vm17808_vm13, %v6439_v26, %v6441_v36  ;;  %v15089_v5 = vld [vmem:[#allocation4 + $0x7c] sm:$0xff]   ;;  %vm17810_vm14 = vmmov %vm17806_vm3 }
 0x4a3   : > { %4638 = vst [vmem:[#allocation4 + $0xc4] sm:$0xf] %v4604_v12  ;;  %14110 = vmatprep.mubr.bf16.mxu1 %v15061_v44  ;;  %14123 = vmatpush3.bf16.msra.mxu1 %v15060_v10  ;;  %v6443_v10 = vrot.slane %v15087_v19, 1  ;;  %v15088_v13 = vld [vmem:[#allocation4 + $0x74] sm:$0xff]   ;;  %v15098_v15 = vld [vmem:[#allocation13 + $0x1a0] sm:$0xff]   ;;  %v15100_v44 = vld [vmem:[#allocation13 + $0x1a8] sm:$0xff]  }
 0x4a4   : > { %14124 = vmatprep.subr.bf16.mxu1 %v15062_v28  ;;  %v6445_v12 = vrot.slane %v15088_v13, 1  ;;  %vm17812_vm13 = vmmov %vm17806_vm3 }
 0x4a5   : > { %v6444_v63 = vsel %vm17809_vm5, %v6441_v36, %v6443_v10  ;;  %vm17811_vm5 = vcmask 982016  }
 0x4a6   : > { %v15077_v60 = vld [vmem:[#allocation4 + $0xb8] sm:$0xff]  }
 0x4a7   : > { %14125 = vmatpush3.bf16.msra.mxu1 %v15062_v28  ;;  %v6447_v28 = vrot.slane %v15089_v5, 1 }
 0x4a8   : > { %14126 = vmatprep.subr.bf16.mxu1 %v15064_v46 }
 0x4aa   : > { %14111 = vmatmul.mubr.bf16.gmra.mrb[44].mxu1 %v15063_v8  ;;  %v15079_v17 = vld [vmem:[#allocation4 + $0xc0] sm:$0xff]   ;;  %v6448_v8 = vsel %vm17810_vm14, %v6445_v12, %v6447_v28  ;;  %vm17813_vm14 = vsmask.f32 7424 }
 0x4ab   : > { %14127 = vmatpush3.bf16.msra.mxu1 %v15064_v46  ;;  %14130 = vmatprep.mubr.bf16.mxu1 %v15065_v47  ;;  %v6446_v46 = vsel %vm17806_vm3, %v6443_v10, %v6445_v12  ;;  %v15110_v47 = vld [vmem:[#allocation13 + $0x1b8] sm:$0xff]  }
 0x4ac   : > { %14128 = vmatprep.subr.bf16.mxu1 %v15066_v53 }
 0x4af   : > { %14129 = vmatpush3.bf16.msra.mxu1 %v15066_v53  ;;  %v15103_v53 = vld [vmem:[#allocation13 + $0x1b0] sm:$0xff]  }
 0x4b0   : > { %14242 = vmatprep.subr.bf16.mxu1 %v15068_v61 }
 0x4b2   : > { %14131 = vmatmul.mubr.bf16.vlgmr.msra.gmra.mrb[32].mxu1 %v15067_v42 }
 0x4b3   : > { %14134 = vmatprep.mubr.bf16.mxu1 %v15069_v22  ;;  %14243 = vmatpush3.bf16.msra.mxu1 %v15068_v61  ;;  %v15113_v61 = vld [vmem:[#allocation13 + $0x200] sm:$0xff]  }
 0x4b4   : > { %14244 = vmatprep.subr.bf16.mxu1 %v15070_v29 }
 0x4b7   : > { %14245 = vmatpush3.bf16.msra.mxu1 %v15070_v29 }
 0x4b8   : > { %14246 = vmatprep.subr.bf16.mxu1 %v15072_v25 }
 0x4ba   : > { %14135 = vmatmul.mubr.bf16.gmra.mrb[36].mxu1 %v15071_v43 }
 0x4bb   : > { %14138 = vmatprep.mubr.bf16.mxu1 %v15073_v62  ;;  %14247 = vmatpush3.bf16.msra.mxu1 %v15072_v25  ;;  %v15108_v62 = vld [vmem:[#allocation4] sm:$0xff]  }
 0x4bc   : > { %14248 = vmatprep.subr.bf16.mxu1 %v15074_v4  ;;  %v5741_v18 = vshrl.u32 %v15108_v62, 16 }
 0x4bf   : > { %14249 = vmatpush3.bf16.msra.mxu1 %v15074_v4 }
 0x4c0   : > { %14250 = vmatprep.subr.bf16.mxu1 %v15076_v48 }
 0x4c2   : > { %14139 = vmatmul.mubr.bf16.gmra.mrb[40].mxu1 %v15075_v56  ;;  %v15106_v56 = vld [vmem:[#allocation4 + $0x8] sm:$0xff]  }
 0x4c3   : > { %14142 = vmatprep.mubr.bf16.mxu1 %v15077_v60  ;;  %14251 = vmatpush3.bf16.msra.mxu1 %v15076_v48  ;;  %v15109_v48 = vld [vmem:[#allocation4 + $0x8] sm:$0xff]   ;;  %v15105_v60 = vld [vmem:[#allocation4] sm:$0xfe]   ;;  %v6648_v0 = vrot.slane %v15106_v56, 1 }
 0x4c4   : > { %14252 = vmatprep.subr.bf16.mxu1 %v15078_v35  ;;  %v6647_v6 = vrot.slane %v15105_v60, 1  ;;  %v5752_v12 = vshrl.u32 %v15109_v48, 16 }
 0x4c6   : > { %v6649_v7 = vsel %vm17806_vm3, %v6647_v6, %v6648_v0  ;;  %v15128_v6 = vld [vmem:[#allocation4 + $0x30] sm:$0xff]  }
 0x4c7   : > { %14253 = vmatpush3.bf16.msra.mxu1 %v15078_v35  ;;  %v5743_v35 = vshll.u32 %v15108_v62, 16  ;;  %v15121_v62 = vld [vmem:[#allocation13 + $0x210] sm:$0xff]  }
 0x4c8   : > { %14254 = vmatprep.subr.bf16.mxu1 %v15080_v2 }
 0x4c9   : > { %v5745_v31 = vrot.slane %v5743_v35, 1 }
 0x4ca   : > { %14143 = vmatmul.mubr.bf16.gmra.mrb[44].mxu1 %v15079_v17 }
 0x4cb   : > { %14255 = vmatpush3.bf16.msra.mxu1 %v15080_v2  ;;  %14258 = vmatprep.mubr.bf16.mxu1 %v6436_v39  ;;  %v5748_v2 = vshll.u32 %v15109_v48, 16  ;;  %v5536_v39 = vshrl.u32 %v16944_v41, 16  ;;  %v5746_v36 = vor.u32 %v5745_v31, %v5741_v18 }
 0x4cc   : > { %14256 = vmatprep.subr.bf16.mxu1 %v15083_v40 }
 0x4cd   : > { %v5750_v26 = vrot.slane %v5748_v2, 1  ;;  %v15132_v2 = vld [vmem:[#allocation4 + $0x30] sm:$0xff]  }
 0x4cf   : > { %14257 = vmatpush3.bf16.msra.mxu1 %v15083_v40  ;;  %v15116_v40 = vld [vmem:[#allocation4 + $0x10] sm:$0xff]  }
 0x4d0   : > { %14274 = vmatprep.subr.bf16.mxu1 %v15090_v24  ;;  %v5756_v10 = vshll.u32 %v15116_v40, 16 }
 0x4d2   : > { %14259 = vmatmul.mubr.bf16.vlgmr.msra.gmra.mrb[48].mxu1 %v6438_v37  ;;  %v15117_v37 = vld [vmem:[#allocation4 + $0x18] sm:$0xff]   ;;  %v5758_v5 = vrot.slane %v5756_v10, 1  ;;  %v15130_v10 = vld [vmem:[#allocation13 + $0x160] sm:$0xff]  }
 0x4d3   : > { %14262 = vmatprep.mubr.bf16.mxu1 %v6440_v32  ;;  %14275 = vmatpush3.bf16.msra.mxu1 %v15090_v24  ;;  %v5538_v32 = vor.u32 %v5536_v39, %v16951_v51  ;;  %v5764_v13 = vshll.u32 %v15117_v37, 16  ;;  %v16992_v39 = vld [vmem:[#allocation4 + $0x38] sm:$0xff]  }
 0x4d4   : > { %14276 = vmatprep.subr.bf16.mxu1 %v15092_v52 }
 0x4d7   : > { %14277 = vmatpush3.bf16.msra.mxu1 %v15092_v52  ;;  %v15112_v52 = vld [vmem:[#allocation4 + $0x10] sm:$0xff]  }
 0x4d8   : > { %14278 = vmatprep.subr.bf16.mxu1 %v15094_v57 }
 0x4da   : > { %14263 = vmatmul.mubr.bf16.gmra.mrb[52].mxu1 %v6442_v55  ;;  %v6650_v55 = vrot.slane %v15112_v52, 1  ;;  %v5788_v52 = vshll.u32 %v15132_v2, 16 }
 0x4db   : > { %14266 = vmatprep.mubr.bf16.mxu1 %v6444_v63  ;;  %14279 = vmatpush3.bf16.msra.mxu1 %v15094_v57  ;;  %v15115_v57 = vld [vmem:[#allocation4 + $0x18] sm:$0xff]  }
 0x4dc   : > { %14280 = vmatprep.subr.bf16.mxu1 %v15096_v21  ;;  %v6652_v63 = vrot.slane %v15115_v57, 1  ;;  %v5796_v57 = vshll.u32 %v16992_v39, 16 }
 0x4df   : > { %14281 = vmatpush3.bf16.msra.mxu1 %v15096_v21 }
 0x4e0   : > { %14282 = vmatprep.subr.bf16.mxu1 %v15098_v15 }
 0x4e2   : > { %14267 = vmatmul.mubr.bf16.gmra.mrb[56].mxu1 %v6446_v46  ;;  %v5766_v46 = vrot.slane %v5764_v13, 1  ;;  %v5792_v13 = vshrl.u32 %v15132_v2, 16  ;;  %v5800_v2 = vshrl.u32 %v16992_v39, 16 }
 0x4e3   : > { %14270 = vmatprep.mubr.bf16.mxu1 %v6448_v8  ;;  %14283 = vmatpush3.bf16.msra.mxu1 %v15098_v15  ;;  %v15124_v15 = vld [vmem:[#allocation4 + $0x20] sm:$0xff]  }
 0x4e4   : > { %14284 = vmatprep.subr.bf16.mxu1 %v15100_v44  ;;  %v15120_v8 = vld [vmem:[#allocation4 + $0x20] sm:$0xff]  }
 0x4e5   : > { %v6654_v56 = vrot.slane %v15120_v8, 1  ;;  %v17006_v8 = vld [vmem:[#allocation4 + $0x90] sm:$0xff]  }
 0x4e7   : > { %14285 = vmatpush3.bf16.msra.mxu1 %v15100_v44  ;;  %v5760_v44 = vshrl.u32 %v15116_v40, 16  ;;  %v15126_v40 = vld [vmem:[#allocation13 + $0x218] sm:$0xff]  }
 0x4e8   : > { %14286 = vmatprep.subr.bf16.mxu1 %v15103_v53 }
 0x4eb   : > { %14287 = vmatpush3.bf16.msra.mxu1 %v15103_v53  ;;  %v16984_v53 = vld [vmem:[#allocation4 + $0x28] sm:$0xff]  }
 0x4ec   : > { %14288 = vmatprep.subr.bf16.mxu1 %v15110_v47  ;;  %v5780_v35 = vshll.u32 %v16984_v53, 16 }
 0x4ee   : > { %v5782_v31 = vrot.slane %v5780_v35, 1  ;;  %v15138_v35 = vld [vmem:[#allocation13 + $0x170] sm:$0xff]  }
 0x4ef   : > { %14289 = vmatpush3.bf16.msra.mxu1 %v15110_v47  ;;  %v5754_v47 = vor.u32 %v5752_v12, %v5750_v26  ;;  %v15134_v12 = vld [vmem:[#allocation13 + $0x228] sm:$0xff]  }
 0x4f0   : > { %14306 = vmatprep.subr.bf16.mxu1 %v15113_v61 }
 0x4fd   : > { %v4570_v42 = vpop.permute.xlu0 %4569 }
 0x4fe   : > { %v4587_v29 = vrot.slane %v4570_v42, 4  ;;  %v4346_v22 = vpop.permute.xlu1 %4345 }
 0x4ff   : > { %v4363_v25 = vrot.slane %v4346_v22, 4 }
 0x500   : > { %v4605_v43 = vsel %vm17743_vm4, %v4570_v42, %v4587_v29  ;;  %v6653_v42 = vsel %vm17806_vm3, %v6650_v55, %v6652_v63  ;;  %v15123_v29 = vld [vmem:[#allocation4 + $0x28] sm:$0xff]   ;;  %vm17829_vm4 = vmmov %vm17806_vm3 }
 0x501   : > { %4639 = vst [vmem:[#allocation4 + $0xc8] sm:$0x1] %v4605_v43  ;;  %v4381_v4 = vsel %vm17811_vm5, %v4346_v22, %v4363_v25  ;;  %vm17814_vm5 = vmmov %vm17813_vm14  ;;  %v5762_v22 = vor.u32 %v5760_v44, %v5758_v5  ;;  %v15119_v25 = vld [vmem:[#allocation13 + $0x148] sm:$0xff]   ;;  %v5772_v43 = vshll.u32 %v15124_v15, 16  ;;  %v6656_v60 = vrot.slane %v15123_v29, 1 }
 0x502   : > { %4415 = vst [vmem:[#allocation4 + $0x84] sm:$0x1] %v4381_v4  ;;  %v5751_v41 = vsel %vm17814_vm5, %v5746_v36, %v5750_v26  ;;  %v15127_v26 = vld [vmem:[#allocation13 + $0x158] sm:$0xff]  }
 0x503   : > { %v5767_v48 = vsel %vm17814_vm5, %v5762_v22, %v5766_v46  ;;  %v15139_v22 = vld [vmem:[#allocation4 + $0x88] sm:$0xfe]  }
 0x509   : > { %v15102_v30 = vld [vmem:[#allocation4 + $0x84] ss:$0 sps:$4 sm:$0x11]  }
 0x50a   : > { %v15107_v58 = vld [vmem:[#allocation4 + $0x84] ss:$0 sps:$4 sm:$0x11]   ;;  %v6449_v17 = vrot.slane %v15102_v30, 1  ;;  %v5774_v30 = vrot.slane %v5772_v43, 1 }
 0x50b   : > { %v5540_v27 = vshll.u32 %v15107_v58, 16 }
 0x50c   : > { %v6450_v24 = vsel %vm17812_vm13, %v6447_v28, %v6449_v17  ;;  %v15118_v28 = vld [vmem:[#allocation13 + $0x208] sm:$0xff]   ;;  %vm17815_vm13 = vmmov %vm17806_vm3  ;;  %v5776_v17 = vshrl.u32 %v15124_v15, 16  ;;  %v5798_v15 = vrot.slane %v5796_v57, 1 }
 0x50d   : > { %14271 = vmatmul.mubr.bf16.gmra.mrb[60].mxu1 %v6450_v24  ;;  %v5542_v19 = vrot.slane %v5540_v27, 1  ;;  %v6651_v51 = vsel %vm17815_vm13, %v6648_v0, %v6650_v55  ;;  %v5768_v0 = vshrl.u32 %v15117_v37, 16  ;;  %vm17817_vm13 = vmmov %vm17806_vm3  ;;  %v16995_v24 = vld [vmem:[#allocation4 + $0x38] sm:$0xff]   ;;  %v5784_v55 = vshrl.u32 %v16984_v53, 16 }
 0x50e   : > { %14290 = vmatprep.mubr.bf16.mxu1 %v6649_v7  ;;  %v6655_v58 = vsel %vm17817_vm13, %v6652_v63, %v6654_v56  ;;  %v5778_v18 = vor.u32 %v5776_v17, %v5774_v30  ;;  %v6660_v36 = vrot.slane %v16995_v24, 1  ;;  %v15141_v63 = vld [vmem:[#allocation4 + $0x40] ss:$0 sps:$4 sm:$0x11]   ;;  %vm17819_vm13 = vmmov %vm17806_vm3  ;;  %v15146_v24 = vld [vmem:[#allocation4 + $0x98] sm:$0xff]  }
 0x50f   : > { %v5543_v21 = vsel %vm17813_vm14, %v5538_v32, %v5542_v19  ;;  %vm17816_vm14 = vmmov %vm17814_vm5  ;;  %v5770_v27 = vor.u32 %v5768_v0, %v5766_v46  ;;  %v6658_v32 = vrot.slane %v15128_v6, 1  ;;  %v15129_v19 = vld [vmem:[#allocation13 + $0x220] sm:$0xff]   ;;  %v5786_v46 = vor.u32 %v5784_v55, %v5782_v31 }
 0x510   : > { %14175 = vmatmul.mubr.bf16.gmra.mrb[52].mxu0 %v5543_v21  ;;  %v5759_v4 = vsel %vm17816_vm14, %v5754_v47, %v5758_v5  ;;  %vm17818_vm14 = vmmov %vm17814_vm5  ;;  %v5783_v7 = vsel %vm17814_vm5, %v5778_v18, %v5782_v31  ;;  %v5790_v21 = vrot.slane %v5788_v52, 1  ;;  %v15135_v47 = vld [vmem:[#allocation13 + $0x168] sm:$0xff]   ;;  %v15149_v6 = vld [vmem:[#allocation4 + $0xa0] sm:$0xff]  }
 0x511   : > { %14194 = vmatprep.mubr.bf16.mxu0 %v5751_v41  ;;  %v5775_v37 = vsel %vm17818_vm14, %v5770_v27, %v5774_v30  ;;  %v15142_v41 = vld [vmem:[#allocation4 + $0x88] sm:$0xff]   ;;  %v6659_v5 = vsel %vm17819_vm13, %v6656_v60, %v6658_v32  ;;  %v6661_v44 = vsel %vm17806_vm3, %v6658_v32, %v6660_v36  ;;  %vm17820_vm14 = vmmov %vm17814_vm5  ;;  %v6894_v30 = vrot.slane %v15139_v22, 1  ;;  %v15147_v52 = vld [vmem:[#allocation4 + $0xa0] sm:$0xff]  }
 0x512   : > { %v5794_v53 = vor.u32 %v5792_v13, %v5790_v21  ;;  %v5791_v29 = vsel %vm17820_vm14, %v5786_v46, %v5790_v21  ;;  %vm17821_vm13 = vmmov %vm17806_vm3  ;;  %v6039_v17 = vshrl.u32 %v15142_v41, 16  ;;  %v5802_v27 = vor.u32 %v5800_v2, %v5798_v15  ;;  %v15153_v13 = vld [vmem:[#allocation4 + $0xb0] sm:$0xff]   ;;  %v15156_v22 = vld [vmem:[#allocation4 + $0xb8] sm:$0xff]  }
 0x513   : > { %vm17822_vm14 = vmmov %vm17814_vm5  ;;  %v6062_v32 = vshll.u32 %v15149_v6, 16  ;;  %v6899_v57 = vrot.slane %v15147_v52, 1  ;;  %v6086_v2 = vshll.u32 %v15156_v22, 16 }
 0x514   : > { %v5799_v43 = vsel %vm17814_vm5, %v5794_v53, %v5798_v15  ;;  %v15150_v15 = vld [vmem:[#allocation4 + $0xa8] sm:$0xff]   ;;  %v6078_v53 = vshll.u32 %v15153_v13, 16 }
 0x515   : > { %14291 = vmatmul.mubr.bf16.vlgmr.msra.gmra.mrb[48].mxu1 %v6651_v51  ;;  %v17003_v51 = vld [vmem:[#allocation4 + $0x90] sm:$0xff]   ;;  %v6064_v55 = vrot.slane %v6062_v32, 1 }
 0x516   : > { %14294 = vmatprep.mubr.bf16.mxu1 %v6653_v42  ;;  %14307 = vmatpush3.bf16.msra.mxu1 %v15113_v61  ;;  %v15122_v61 = vld [vmem:[#allocation13 + $0x150] sm:$0xff]   ;;  %v6041_v42 = vshll.u32 %v15142_v41, 16  ;;  %v6050_v21 = vshrl.u32 %v17003_v51, 16 }
 0x517   : > { %14308 = vmatprep.subr.bf16.mxu1 %v15118_v28 }
 0x518   : > { %14195 = vmatmul.mubr.bf16.vlgmr.msra.gmra.mrb[40].mxu0 %v5759_v4 }
 0x519   : > { %14211 = vmatpush3.bf16.msra.mxu0 %v16961_v38  ;;  %14198 = vmatprep.mubr.bf16.mxu0 %v5767_v48  ;;  %v6657_v38 = vsel %vm17806_vm3, %v6654_v56, %v6656_v60  ;;  %v6046_v48 = vshll.u32 %v17003_v51, 16  ;;  %v6895_v56 = vrot.slane %v17006_v8, 1  ;;  %v6043_v60 = vrot.slane %v6041_v42, 1 }
 0x51a   : > { %14212 = vmatprep.subr.bf16.mxu0 %v15119_v25  ;;  %14309 = vmatpush3.bf16.msra.mxu1 %v15118_v28  ;;  %v15136_v28 = vld [vmem:[#allocation4 + $0x40] ss:$0 sps:$4 sm:$0x11]  }
 0x51b   : > { %14310 = vmatprep.subr.bf16.mxu1 %v15121_v62  ;;  %v6662_v4 = vrot.slane %v15136_v28, 1  ;;  %v6048_v31 = vrot.slane %v6046_v48, 1  ;;  %v6044_v18 = vor.u32 %v6043_v60, %v6039_v17 }
 0x51d   : > { %14213 = vmatpush3.bf16.msra.mxu0 %v15119_v25  ;;  %14295 = vmatmul.mubr.bf16.gmra.mrb[52].mxu1 %v6655_v58  ;;  %v5804_v25 = vshll.u32 %v15141_v63, 16  ;;  %v6663_v58 = vsel %vm17821_vm13, %v6660_v36, %v6662_v4  ;;  %v6052_v63 = vor.u32 %v6050_v21, %v6048_v31  ;;  %vm17823_vm13 = vmmov %vm17806_vm3  ;;  %v6080_v4 = vrot.slane %v6078_v53, 1 }
 0x51e   : > { %14214 = vmatprep.subr.bf16.mxu0 %v15122_v61  ;;  %14298 = vmatprep.mubr.bf16.mxu1 %v6657_v38  ;;  %v6896_v38 = vsel %vm17806_vm3, %v6894_v30, %v6895_v56  ;;  %v15155_v30 = vld [vmem:[#allocation4 + $0xc0] sm:$0xff]  }
 0x51f   : > { %14311 = vmatpush3.bf16.msra.mxu1 %v15121_v62  ;;  %v15137_v62 = vld [vmem:[#allocation13 + $0x230] sm:$0xff]   ;;  %v5806_v0 = vrot.slane %v5804_v25, 1  ;;  %v6066_v25 = vshrl.u32 %v15149_v6, 16  ;;  %v6088_v6 = vrot.slane %v6086_v2, 1 }
 0x520   : > { %14199 = vmatmul.mubr.bf16.gmra.mrb[44].mxu0 %v5775_v37  ;;  %14312 = vmatprep.subr.bf16.mxu1 %v15126_v40 }
 0x521   : > { %14215 = vmatpush3.bf16.msra.mxu0 %v15122_v61  ;;  %14202 = vmatprep.mubr.bf16.mxu0 %v5783_v7  ;;  %v15148_v61 = vld [vmem:[#allocation4 + $0x98] sm:$0xff]   ;;  %v5807_v37 = vsel %vm17822_vm14, %v5802_v27, %v5806_v0  ;;  %v6049_v7 = vsel %vm17814_vm5, %v6044_v18, %v6048_v31  ;;  %vm17824_vm14 = vmmov %vm17814_vm5  ;;  %v15159_v27 = vld [vmem:[#allocation4 + $0xc8] ss:$0 sps:$4 sm:$0x11]  }
 0x522   : > { %14216 = vmatprep.subr.bf16.mxu0 %v15127_v26  ;;  %v6054_v39 = vshll.u32 %v15148_v61, 16  ;;  %v6058_v41 = vshrl.u32 %v15148_v61, 16 }
 0x523   : > { %14313 = vmatpush3.bf16.msra.mxu1 %v15126_v40  ;;  %v15144_v40 = vld [vmem:[#allocation13 + $0x238] sm:$0xff]  }
 0x524   : > { %14314 = vmatprep.subr.bf16.mxu1 %v15129_v19  ;;  %v6056_v36 = vrot.slane %v6054_v39, 1  ;;  %v15158_v39 = vld [vmem:[#allocation4 + $0xc8] ss:$0 sps:$4 sm:$0x11]  }
 0x525   : > { %14217 = vmatpush3.bf16.msra.mxu0 %v15127_v26  ;;  %14299 = vmatmul.mubr.bf16.gmra.mrb[56].mxu1 %v6659_v5  ;;  %v15145_v26 = vld [vmem:[#allocation13 + $0x178] sm:$0xff]  }
 0x526   : > { %14218 = vmatprep.subr.bf16.mxu0 %v15130_v10  ;;  %14302 = vmatprep.mubr.bf16.mxu1 %v6661_v44  ;;  %v6060_v28 = vor.u32 %v6058_v41, %v6056_v36  ;;  %v15151_v44 = vld [vmem:[#allocation4 + $0xb0] sm:$0xff]   ;;  %v6057_v8 = vsel %vm17824_vm14, %v6052_v63, %v6056_v36  ;;  %vm17826_vm14 = vmmov %vm17814_vm5  ;;  %v6909_v36 = vrot.slane %v15158_v39, 1 }
 0x527   : > { %14315 = vmatpush3.bf16.msra.mxu1 %v15129_v19  ;;  %v6897_v19 = vrot.slane %v15146_v24, 1  ;;  %v6903_v42 = vrot.slane %v15151_v44, 1  ;;  %v6090_v24 = vshrl.u32 %v15156_v22, 16 }
 0x528   : > { %14203 = vmatmul.mubr.bf16.gmra.mrb[48].mxu0 %v5791_v29  ;;  %14316 = vmatprep.subr.bf16.mxu1 %v15134_v12  ;;  %v6065_v51 = vsel %vm17814_vm5, %v6060_v28, %v6064_v55 }
 0x529   : > { %14219 = vmatpush3.bf16.msra.mxu0 %v15130_v10  ;;  %14206 = vmatprep.mubr.bf16.mxu0 %v5799_v43  ;;  %v15152_v10 = vld [vmem:[#allocation4 + $0xa8] sm:$0xff]   ;;  %v6898_v5 = vsel %vm17823_vm13, %v6895_v56, %v6897_v19  ;;  %vm17825_vm13 = vmmov %vm17806_vm3  ;;  %v6068_v56 = vor.u32 %v6066_v25, %v6064_v55 }
 0x52a   : > { %14220 = vmatprep.subr.bf16.mxu0 %v15135_v47  ;;  %v6070_v46 = vshll.u32 %v15152_v10, 16  ;;  %v6074_v43 = vshrl.u32 %v15152_v10, 16 }
 0x52b   : > { %14317 = vmatpush3.bf16.msra.mxu1 %v15134_v12  ;;  %v6900_v12 = vsel %vm17806_vm3, %v6897_v19, %v6899_v57  ;;  %v6102_v19 = vshll.u32 %v15159_v27, 16 }
 0x52c   : > { %14318 = vmatprep.subr.bf16.mxu1 %v15137_v62  ;;  %v6072_v29 = vrot.slane %v6070_v46, 1 }
 0x52d   : > { %14221 = vmatpush3.bf16.msra.mxu0 %v15135_v47  ;;  %14303 = vmatmul.mubr.bf16.gmra.mrb[60].mxu1 %v6663_v58  ;;  %v6901_v47 = vrot.slane %v15150_v15, 1  ;;  %v6104_v21 = vrot.slane %v6102_v19, 1 }
 0x52e   : > { %14222 = vmatprep.subr.bf16.mxu0 %v15138_v35  ;;  %14322 = vmatprep.mubr.bf16.mxu1 %v6896_v38  ;;  %v6076_v61 = vor.u32 %v6074_v43, %v6072_v29  ;;  %v6073_v0 = vsel %vm17826_vm14, %v6068_v56, %v6072_v29  ;;  %v6082_v38 = vshrl.u32 %v15153_v13, 16  ;;  %vm17828_vm14 = vmmov %vm17814_vm5 }
 0x52f   : > { %14319 = vmatpush3.bf16.msra.mxu1 %v15137_v62  ;;  %v15157_v62 = vld [vmem:[#allocation4 + $0xc0] sm:$0xff]   ;;  %v6902_v48 = vsel %vm17825_vm13, %v6899_v57, %v6901_v47  ;;  %v6904_v60 = vsel %vm17806_vm3, %v6901_v47, %v6903_v42  ;;  %vm17827_vm13 = vmmov %vm17806_vm3 }
 0x530   : > { %14207 = vmatmul.mubr.bf16.gmra.mrb[52].mxu0 %v5807_v37  ;;  %14320 = vmatprep.subr.bf16.mxu1 %v15144_v40  ;;  %v6081_v58 = vsel %vm17814_vm5, %v6076_v61, %v6080_v4  ;;  %v6094_v17 = vshll.u32 %v15157_v62, 16  ;;  %v6084_v52 = vor.u32 %v6082_v38, %v6080_v4  ;;  %v6098_v10 = vshrl.u32 %v15157_v62, 16 }
 0x531   : > { %14223 = vmatpush3.bf16.msra.mxu0 %v15138_v35  ;;  %14226 = vmatprep.mubr.bf16.mxu0 %v6049_v7  ;;  %v15154_v35 = vld [vmem:[#allocation4 + $0xb8] sm:$0xff]   ;;  %v6092_v7 = vor.u32 %v6090_v24, %v6088_v6 }
 0x532   : > { %14224 = vmatprep.subr.bf16.mxu0 %v15145_v26  ;;  %v6905_v31 = vrot.slane %v15154_v35, 1  ;;  %v6096_v18 = vrot.slane %v6094_v17, 1  ;;  %v6089_v32 = vsel %vm17828_vm14, %v6084_v52, %v6088_v6 }
 0x533   : > { %14321 = vmatpush3.bf16.msra.mxu1 %v15144_v40  ;;  %v6907_v40 = vrot.slane %v15155_v30, 1 }
 0x534   : > { %v6097_v57 = vsel %vm17814_vm5, %v6092_v7, %v6096_v18  ;;  %v6100_v55 = vor.u32 %v6098_v10, %v6096_v18 }
 0x535   : > { %14225 = vmatpush3.bf16.msra.mxu0 %v15145_v26  ;;  %v6906_v26 = vsel %vm17827_vm13, %v6903_v42, %v6905_v31  ;;  %v6908_v37 = vsel %vm17806_vm3, %v6905_v31, %v6907_v40  ;;  %v6910_v41 = vsel %vm17829_vm4, %v6907_v40, %v6909_v36  ;;  %vm17830_vm13 = vmmov %vm17814_vm5  ;;  %vm17831_vm4 = vcmask 1040384  }
 0x536   : > { %14323 = vmatmul.mubr.bf16.vlgmr.msra.gmra.mrb[48].mxu1 %v6898_v5  ;;  %v6105_v13 = vsel %vm17830_vm13, %v6100_v55, %v6104_v21  ;;  %vm17832_vm3 = vmmov %vm17831_vm4  ;;  %vm17835_vm13 = vnez %v17788_v3 }
 0x537   : > { %14326 = vmatprep.mubr.bf16.mxu1 %v6900_v12  ;;  %vm17833_vm14 = vmmov %vm17832_vm3 }
 0x538   : > { %14227 = vmatmul.mubr.bf16.vlgmr.msra.gmra.mrb[40].mxu0 %v6057_v8  ;;  %vm17834_vm5 = vmmov %vm17832_vm3 }
 0x539   : > { %14230 = vmatprep.mubr.bf16.mxu0 %v6065_v51 }
 0x53e   : > { %14327 = vmatmul.mubr.bf16.gmra.mrb[52].mxu1 %v6902_v48 }
 0x53f   : > { %14330 = vmatprep.mubr.bf16.mxu1 %v6904_v60 }
 0x540   : > { %14231 = vmatmul.mubr.bf16.gmra.mrb[44].mxu0 %v6073_v0  ;;  %v17052_v0 = vld [vmem:[#allocation14] ss:$0 sm:$0xff] }
 0x541   : > { %14234 = vmatprep.mubr.bf16.mxu0 %v6081_v58 }
 0x546   : > { %14331 = vmatmul.mubr.bf16.gmra.mrb[56].mxu1 %v6906_v26 }
 0x547   : > { %14334 = vmatprep.mubr.bf16.mxu1 %v6908_v37 }
 0x548   : > { %14235 = vmatmul.mubr.bf16.gmra.mrb[48].mxu0 %v6089_v32 }
 0x549   : > { %14238 = vmatprep.mubr.bf16.mxu0 %v6097_v57 }
 0x54e   : > { %14335 = vmatmul.mubr.bf16.gmra.mrb[60].mxu1 %v6910_v41 }
 0x550   : > { %14239 = vmatmul.mubr.bf16.gmra.mrb[52].mxu0 %v6105_v13 }
 0x585   : > { %v14132_v63 = vpop.f32.mrb[32].mxu1 }
 0x586   : > { %v5254_v5 = vpop.f32.mrb[33].mxu1  ;;  %v5335_v48 = vsel %vm16521_vm7, %v14132_v63, 0.0 }
 0x587   : > { %v14133_v15 = vpop.f32.mrb[34].mxu1  ;;  %v5333_v60 = vsel %vm16526_vm8, %v5254_v5, 0.0 }
 0x588   : > { %v5257_v12 = vpop.f32.mrb[35].mxu1 }
 0x58d   : > { %v14136_v28 = vpop.f32.mrb[36].mxu1 }
 0x58e   : > { %v5270_v44 = vpop.f32.mrb[37].mxu1  ;;  %v5339_v36 = vsel %vm16545_vm9, %v14136_v28, 0.0 }
 0x58f   : > { %v14137_v46 = vpop.f32.mrb[38].mxu1  ;;  %v5337_v13 = vsel %vm16549_vm10, %v5270_v44, 0.0 }
 0x590   : > { %v5273_v8 = vpop.f32.mrb[39].mxu1 }
 0x595   : > { %v17032_v51 = vpop.f32.mrb[40].mxu1 }
 0x596   : > { %v17034_v53 = vpop.f32.mrb[41].mxu1 }
 0x597   : > { %v17036_v47 = vpop.f32.mrb[42].mxu1 }
 0x598   : > { %v17038_v42 = vpop.f32.mrb[43].mxu1 }
 0x59d   : > { %v17040_v29 = vpop.f32.mrb[44].mxu1 }
 0x59e   : > { %v17042_v22 = vpop.f32.mrb[45].mxu1 }
 0x59f   : > { %v17044_v25 = vpop.f32.mrb[46].mxu1 }
 0x5a0   : > { %v17046_v43 = vpop.f32.mrb[47].mxu1 }
 0x609   : > { %v14324_v4 = vpop.f32.mrb[48].mxu1 }
 0x60a   : > { %v7001_v62 = vpop.f32.mrb[49].mxu1 }
 0x60b   : > { %v14228_v56 = vpop.f32.mrb[40].mxu0  ;;  %v14325_v35 = vpop.f32.mrb[50].mxu1 }
 0x60c   : > { %v6293_v61 = vadd.f32 %v14228_v56, %v5335_v48  ;;  %v6196_v30 = vpop.f32.mrb[41].mxu0  ;;  %v7004_v2 = vpop.f32.mrb[51].mxu1  ;;  %v7083_v38 = vsel %vm16647_vm15, %v14325_v35, 0.0 }
 0x60d   : > { %v6291_v58 = vadd.f32 %v6196_v30, %v5333_v60  ;;  %v14229_v17 = vpop.f32.mrb[42].mxu0  ;;  %v7081_v26 = vsel %vm16651_vm0, %v7004_v2, 0.0 }
 0x60e   : > { %v7114_v31 = vadd.f32 %v14324_v4, %v6293_v61  ;;  %v6294_v40 = vadd.f32 %v14229_v17, %v14133_v15  ;;  %v6199_v6 = vpop.f32.mrb[43].mxu0 }
 0x60f   : > { %v7112_v27 = vadd.f32 %v7001_v62, %v6291_v58  ;;  %v6292_v24 = vadd.f32 %v6199_v6, %v5257_v12 }
 0x610   : > { %v7169_v18 = vadd.f32 %v17052_v0, %v7114_v31  ;;  %v7115_v52 = vadd.f32 %v7083_v38, %v6294_v40 }
 0x611   : > { %v7167_v39 = vadd.f32 %v17052_v0, %v7112_v27  ;;  %v7113_v37 = vadd.f32 %v7081_v26, %v6292_v24  ;;  %v14328_v7 = vpop.f32.mrb[52].mxu1 }
 0x612   : > { %v7185_v32 = vmax.f32 %v7169_v18, 0.0  ;;  %v7170_v19 = vadd.f32 %v17052_v0, %v7115_v52  ;;  %v7017_v57 = vpop.f32.mrb[53].mxu1 }
 0x613   : > { %v7183_v10 = vmax.f32 %v7167_v39, 0.0  ;;  %v7168_v21 = vadd.f32 %v17052_v0, %v7113_v37  ;;  %v14232_v41 = vpop.f32.mrb[44].mxu0  ;;  %v14329_v55 = vpop.f32.mrb[54].mxu1  ;;  %v5343_v37 = vsel %vm16561_vm11, %v17032_v51, 0.0 }
 0x614   : > { %v7186_v63 = vmax.f32 %v7170_v19, 0.0  ;;  %v6297_v5 = vadd.f32 %v14232_v41, %v5339_v36  ;;  %v6212_v15 = vpop.f32.mrb[45].mxu0  ;;  %v7020_v12 = vpop.f32.mrb[55].mxu1  ;;  %v7218_v35 = vrot.slane %v7185_v32, 7  ;;  %v7087_v58 = vsel %vm16655_vm1, %v14329_v55, 0.0 }
 0x615   : > { %v7215_v4 = vrot.slane %v7183_v10, 7  ;;  %v7184_v62 = vmax.f32 %v7168_v21, 0.0  ;;  %v6295_v48 = vadd.f32 %v6212_v15, %v5337_v13  ;;  %v14233_v56 = vpop.f32.mrb[46].mxu0  ;;  %v7085_v40 = vsel %vm16660_vm2, %v7020_v12, 0.0 }
 0x616   : > { %v7220_v60 = vrot.slane %v7186_v63, 7  ;;  %v7118_v61 = vadd.f32 %v14328_v7, %v6297_v5  ;;  %v6298_v28 = vadd.f32 %v14233_v56, %v14137_v46  ;;  %v6215_v30 = vpop.f32.mrb[47].mxu0  ;;  %v5341_v36 = vsel %vm16569_vm12, %v17034_v53, 0.0 }
 0x617   : > { %v7216_v2 = vrot.slane %v7184_v62, 7  ;;  %v7116_v17 = vadd.f32 %v7017_v57, %v6295_v48  ;;  %v6296_v31 = vadd.f32 %v6215_v30, %v5273_v8  ;;  %7246 = vrot.lane.b32.xlu1 %v7215_v4, %s15821_s15 }
 0x618   : > { %v7173_v44 = vadd.f32 %v17052_v0, %v7118_v61  ;;  %v7119_v6 = vadd.f32 %v7087_v58, %v6298_v28  ;;  %v7221_v38 = vsel %vm17831_vm4, %v7218_v35, %v7220_v60  ;;  %vm17836_vm4 = vmmov %vm17832_vm3 }
 0x619   : > { %v7171_v27 = vadd.f32 %v17052_v0, %v7116_v17  ;;  %v7117_v46 = vadd.f32 %v7085_v40, %v6296_v31  ;;  %v14332_v24 = vpop.f32.mrb[56].mxu1  ;;  %v7217_v18 = vsel %vm17832_vm3, %v7215_v4, %v7216_v2  ;;  %v7219_v26 = vsel %vm17833_vm14, %v7216_v2, %v7218_v35  ;;  %vm17837_vm14 = vmmov %vm17832_vm3 }
 0x61a   : > { %v7189_v52 = vmax.f32 %v7173_v44, 0.0  ;;  %v7174_v8 = vadd.f32 %v17052_v0, %v7119_v6  ;;  %v7033_v39 = vpop.f32.mrb[57].mxu1  ;;  %7248 = vrot.lane.b32.xlu0 %v7217_v18, %s15821_s15 }
 0x61b   : > { %v7187_v7 = vmax.f32 %v7171_v27, 0.0  ;;  %v7172_v32 = vadd.f32 %v17052_v0, %v7117_v46  ;;  %v14333_v19 = vpop.f32.mrb[58].mxu1  ;;  %7250 = vrot.lane.b32.xlu1 %v7219_v26, %s15821_s15  ;;  %v14236_v57 = vpop.f32.mrb[48].mxu0 }
 0x61c   : > { %v7190_v10 = vmax.f32 %v7174_v8, 0.0  ;;  %v6301_v21 = vadd.f32 %v14236_v57, %v5343_v37  ;;  %v6228_v41 = vpop.f32.mrb[49].mxu0  ;;  %v7036_v55 = vpop.f32.mrb[59].mxu1  ;;  %v7226_v13 = vrot.slane %v7189_v52, 7  ;;  %v7091_v4 = vsel %vm16692_vm6, %v14333_v19, 0.0  ;;  %v17839_v52 = vld [vmem:[#allocation25_spill] sm:$0xff] }
 0x61d   : > { %v7222_v63 = vrot.slane %v7187_v7, 7  ;;  %v7188_v5 = vmax.f32 %v7172_v32, 0.0  ;;  %v6299_v15 = vadd.f32 %v6228_v41, %v5341_v36  ;;  %v14237_v51 = vpop.f32.mrb[50].mxu0  ;;  %v7089_v2 = vsel %vm17835_vm13, %v7036_v55, 0.0 }
 0x61e   : > { %v7228_v12 = vrot.slane %v7190_v10, 7  ;;  %v7122_v62 = vadd.f32 %v14332_v24, %v6301_v21  ;;  %v6302_v48 = vadd.f32 %v14237_v51, %v17036_v47  ;;  %7252 = vrot.lane.b32.xlu0 %v7221_v38, %s15821_s15  ;;  %v6231_v56 = vpop.f32.mrb[51].mxu0  ;;  %vm17842_vm6 = vnez %v17792_v45 }
 0x61f   : > { %v7224_v53 = vrot.slane %v7188_v5, 7  ;;  %v7120_v35 = vadd.f32 %v7033_v39, %v6299_v15  ;;  %v6300_v61 = vadd.f32 %v6231_v56, %v17038_v42  ;;  %v7223_v28 = vsel %vm17834_vm5, %v7220_v60, %v7222_v63 }
 0x620   : > { %v7177_v30 = vadd.f32 %v17052_v0, %v7122_v62  ;;  %v7123_v58 = vadd.f32 %v7091_v4, %v6302_v48  ;;  %7254 = vrot.lane.b32.xlu1 %v7223_v28, %s15821_s15  ;;  %v7229_v17 = vsel %vm17836_vm4, %v7226_v13, %v7228_v12  ;;  %vm17838_vm5 = vnez %v17773_v54 }
 0x621   : > { %v7175_v47 = vadd.f32 %v17052_v0, %v7120_v35  ;;  %v7121_v31 = vadd.f32 %v7089_v2, %v6300_v61  ;;  %v14336_v44 = vpop.f32.mrb[60].mxu1  ;;  %v7225_v40 = vsel %vm17832_vm3, %v7222_v63, %v7224_v53  ;;  %v7227_v42 = vsel %vm17837_vm14, %v7224_v53, %v7226_v13 }
 0x622   : > { %v7193_v6 = vmax.f32 %v7177_v30, 0.0  ;;  %v7178_v60 = vadd.f32 %v17052_v0, %v7123_v58  ;;  %v7049_v38 = vpop.f32.mrb[61].mxu1  ;;  %7256 = vrot.lane.b32.xlu0 %v7225_v40, %s15821_s15  ;;  %v5347_v27 = vsel %vm17838_vm5, %v17040_v29, 0.0  ;;  %vm17840_vm4 = vnez %v17839_v52 }
 0x623   : > { %v7191_v46 = vmax.f32 %v7175_v47, 0.0  ;;  %v7176_v24 = vadd.f32 %v17052_v0, %v7121_v31  ;;  %v14240_v18 = vpop.f32.mrb[52].mxu0  ;;  %v14337_v26 = vpop.f32.mrb[62].mxu1  ;;  %v5345_v8 = vsel %vm17840_vm4, %v17042_v22, 0.0  ;;  %vm17841_vm3 = vnez %v17790_v59 }
 0x624   : > { %v7194_v39 = vmax.f32 %v7178_v60, 0.0  ;;  %v6305_v37 = vadd.f32 %v14240_v18, %v5347_v27  ;;  %v7052_v7 = vpop.f32.mrb[63].mxu1  ;;  %7258 = vrot.lane.b32.xlu1 %v7227_v42, %s15821_s15  ;;  %v6244_v32 = vpop.f32.mrb[53].mxu0  ;;  %v7234_v19 = vrot.slane %v7193_v6, 7  ;;  %v7095_v55 = vsel %vm17841_vm3, %v14337_v26, 0.0  ;;  %vm17843_vm3 = vmmov %vm17837_vm14 }
 0x625   : > { %v7230_v57 = vrot.slane %v7191_v46, 7  ;;  %v7192_v36 = vmax.f32 %v7176_v24, 0.0  ;;  %v6303_v10 = vadd.f32 %v6244_v32, %v5345_v8  ;;  %v14241_v29 = vpop.f32.mrb[54].mxu0  ;;  %v7093_v62 = vsel %vm17842_vm6, %v7052_v7, 0.0  ;;  %vm17844_vm13 = vmmov %vm17843_vm3  ;;  %v15160_v60 = vld [vmem:[#allocation16 + $0x80] ss:$8 sps:$4 sm:$0xff]  }
 0x626   : > { %v7236_v21 = vrot.slane %v7194_v39, 7  ;;  %v7126_v41 = vadd.f32 %v14336_v44, %v6305_v37  ;;  %v6306_v13 = vadd.f32 %v14241_v29, %v17044_v25  ;;  %7260 = vrot.lane.b32.xlu0 %v7229_v17, %s15821_s15  ;;  %v6247_v22 = vpop.f32.mrb[55].mxu0  ;;  %vm17845_vm1 = vmmov %vm17843_vm3  ;;  %v15165_v27 = vld [vmem:[#allocation16 + $0x94] ss:$8 sps:$4 sm:$0xff]   ;;  %v15169_v46 = vld [vmem:[#allocation16 + $0x200] ss:$8 sps:$4 sm:$0xff]  }
 0x627   : > { %v7232_v63 = vrot.slane %v7192_v36, 7  ;;  %v7124_v5 = vadd.f32 %v7049_v38, %v6303_v10  ;;  %v6304_v15 = vadd.f32 %v6247_v22, %v17046_v43  ;;  %v7231_v51 = vsel %vm17837_vm14, %v7228_v12, %v7230_v57  ;;  %vm17848_vm14 = vmmov %vm17845_vm1  ;;  %v15162_v38 = vld [vmem:[#allocation16 + $0x84] ss:$8 sps:$4 sm:$0xff]   ;;  %v15163_v18 = vld [vmem:[#allocation16 + $0x90] ss:$8 sps:$4 sm:$0xff]  }
 0x628   : > { %v7181_v4 = vadd.f32 %v17052_v0, %v7126_v41  ;;  %v7127_v48 = vadd.f32 %v7095_v55, %v6306_v13  ;;  %7262 = vrot.lane.b32.xlu1 %v7231_v51, %s15821_s15  ;;  %v7237_v56 = vsel %vm17843_vm3, %v7234_v19, %v7236_v21  ;;  %vm17847_vm3 = vmmov %vm17845_vm1  ;;  %8073 = vmatprep.subr.bf16.mxu0 %v15162_v38  ;;  %v15171_v24 = vld [vmem:[#allocation16 + $0x204] ss:$8 sps:$4 sm:$0xff]   ;;  %v15177_v26 = vld [vmem:[#allocation16 + $0x214] ss:$8 sps:$4 sm:$0xff]  }
 0x629   : > { %v7179_v25 = vadd.f32 %v17052_v0, %v7124_v5  ;;  %v7125_v53 = vadd.f32 %v7093_v62, %v6304_v15  ;;  %v7233_v35 = vsel %vm17844_vm13, %v7230_v57, %v7232_v63  ;;  %v7235_v61 = vsel %vm17845_vm1, %v7232_v63, %v7234_v19  ;;  %vm17846_vm13 = vmmov %vm17845_vm1  ;;  %8074 = vmatpush1.bf16.msra.mxu0 %v15160_v60  ;;  %v15168_v8 = vld [vmem:[#allocation16 + $0xa4] ss:$8 sps:$4 sm:$0xff]   ;;  %v15175_v39 = vld [vmem:[#allocation16 + $0x210] ss:$8 sps:$4 sm:$0xff]  }
 0x62a   : > { %v7197_v43 = vmax.f32 %v7181_v4, 0.0  ;;  %v7182_v12 = vadd.f32 %v17052_v0, %v7127_v48  ;;  %7264 = vrot.lane.b32.xlu0 %v7233_v35, %s15821_s15  ;;  %8075 = vmatprep.subr.bf16.mxu0 %v15165_v27  ;;  %v15166_v37 = vld [vmem:[#allocation16 + $0xa0] ss:$8 sps:$4 sm:$0xff]   ;;  %v15174_v7 = vld [vmem:[#allocation16 + $0xb4] ss:$8 sps:$4 sm:$0xff]  }
 0x62b   : > { %v7195_v28 = vmax.f32 %v7179_v25, 0.0  ;;  %v7180_v30 = vadd.f32 %v17052_v0, %v7125_v53  ;;  %9064 = vmatprep.subr.bf16.mxu1 %v15171_v24  ;;  %v15172_v32 = vld [vmem:[#allocation16 + $0xb0] ss:$8 sps:$4 sm:$0xff]   ;;  %v15178_v57 = vld [vmem:[#allocation16 + $0xc0] ss:$8 sps:$4 sm:$0xff]  }
 0x62c   : > { %v7198_v2 = vmax.f32 %v7182_v12, 0.0  ;;  %7266 = vrot.lane.b32.xlu1 %v7235_v61, %s15821_s15  ;;  %v7242_v47 = vrot.slane %v7197_v43, 7  ;;  %9065 = vmatpush1.bf16.msra.mxu1 %v15169_v46  ;;  %v15180_v36 = vld [vmem:[#allocation16 + $0xc4] ss:$8 sps:$4 sm:$0xff]   ;;  %v15181_v10 = vld [vmem:[#allocation16 + $0x220] ss:$8 sps:$4 sm:$0xff]  }
 0x62d   : > { %v7238_v58 = vrot.slane %v7195_v28, 7  ;;  %v7196_v17 = vmax.f32 %v7180_v30, 0.0  ;;  %9066 = vmatprep.subr.bf16.mxu1 %v15177_v26  ;;  %8076 = vmatpush1.bf16.msra.mxu0 %v15163_v18  ;;  %v15183_v29 = vld [vmem:[#allocation16 + $0x224] ss:$8 sps:$4 sm:$0xff]   ;;  %v15184_v55 = vld [vmem:[#allocation16 + $0xd0] ss:$8 sps:$4 sm:$0xff]  }
 0x62e   : > { %v7244_v31 = vrot.slane %v7198_v2, 7  ;;  %7268 = vrot.lane.b32.xlu0 %v7237_v56, %s15821_s15  ;;  %8077 = vmatprep.subr.bf16.mxu0 %v15168_v8  ;;  %v15186_v13 = vld [vmem:[#allocation16 + $0xd4] ss:$8 sps:$4 sm:$0xff]   ;;  %v15187_v22 = vld [vmem:[#allocation16 + $0x230] ss:$8 sps:$4 sm:$0xff]   ;;  %v15823_v26 = vmov 0  }
 0x62f   : > { %v7240_v44 = vrot.slane %v7196_v17, 7  ;;  %v7239_v40 = vsel %vm17846_vm13, %v7236_v21, %v7238_v58  ;;  %vm17849_vm13 = vcmask 1047617   ;;  %v15189_v63 = vld [vmem:[#allocation16 + $0x234] ss:$8 sps:$4 sm:$0xff]   ;;  %v15190_v4 = vld [vmem:[#allocation16 + $0xe0] ss:$8 sps:$4 sm:$0xff]   ;;  %8105 = vmatprep.mubr.bf16.mxu0 %v15823_v26  ;;  %9096 = vmatprep.mubr.bf16.mxu1 %v15823_v26 }
 0x630   : > { %7270 = vrot.lane.b32.xlu1 %v7239_v40, %s15821_s15  ;;  %v7245_v42 = vsel %vm17845_vm1, %v7242_v47, %v7244_v31  ;;  %9067 = vmatpush1.bf16.msra.mxu1 %v15175_v39  ;;  %vm17850_vm1 = vcmask 64513   ;;  %v15192_v56 = vld [vmem:[#allocation16 + $0xe4] ss:$8 sps:$4 sm:$0xff]   ;;  %v15193_v25 = vld [vmem:[#allocation16 + $0x240] ss:$8 sps:$4 sm:$0xff]  }
 0x631   : > { %v7241_v6 = vsel %vm17847_vm3, %v7238_v58, %v7240_v44  ;;  %v7243_v0 = vsel %vm17848_vm14, %v7240_v44, %v7242_v47  ;;  %8078 = vmatpush1.bf16.msra.mxu0 %v15166_v37  ;;  %vm17851_vm3 = vcmask 1047616   ;;  %vm17852_vm14 = vcmask 64512   ;;  %9068 = vmatprep.subr.bf16.mxu1 %v15183_v29  ;;  %v15195_v53 = vld [vmem:[#allocation16 + $0x244] ss:$8 sps:$4 sm:$0xff]   ;;  %v15196_v58 = vld [vmem:[#allocation16 + $0xf0] ss:$8 sps:$4 sm:$0xff]  }
 0x632   : > { %7272 = vrot.lane.b32.xlu0 %v7241_v6, %s15821_s15  ;;  %8079 = vmatprep.subr.bf16.mxu0 %v15174_v7  ;;  %vm17853_vm6 = vmmov %vm17851_vm3  ;;  %v15199_v44 = vld [vmem:[#allocation16 + $0x250] ss:$8 sps:$4 sm:$0xff]   ;;  %v15201_v40 = vld [vmem:[#allocation16 + $0x254] ss:$8 sps:$4 sm:$0xff]  }
 0x633   : > { %vm17854_vm2 = vmmov %vm17852_vm14  ;;  %v15205_v27 = vld [vmem:[#allocation16 + $0x264] ss:$8 sps:$4 sm:$0xff]   ;;  %v15203_v8 = vld [vmem:[#allocation16 + $0x260] ss:$8 sps:$4 sm:$0xff]  }
 0x634   : > { %7274 = vrot.lane.b32.xlu1 %v7243_v0, %s15821_s15  ;;  %9069 = vmatpush1.bf16.msra.mxu1 %v15181_v10  ;;  %v15208_v10 = vld [vmem:[#allocation16 + $0x274] ss:$8 sps:$4 sm:$0xff]  }
 0x635   : > { %8080 = vmatpush1.bf16.msra.mxu0 %v15172_v32  ;;  %9070 = vmatprep.subr.bf16.mxu1 %v15189_v63 }
 0x636   : > { %7276 = vrot.lane.b32.xlu0 %v7245_v42, %s15821_s15  ;;  %8081 = vmatprep.subr.bf16.mxu0 %v15180_v36  ;;  %v15206_v36 = vld [vmem:[#allocation16 + $0x270] ss:$8 sps:$4 sm:$0xff]  }
 0x638   : > { %7278 = vrot.lane.b32.xlu1 %v7244_v31, %s15821_s15  ;;  %9071 = vmatpush1.bf16.msra.mxu1 %v15187_v22  ;;  %v15198_v31 = vld [vmem:[#allocation16 + $0xf4] ss:$8 sps:$4 sm:$0xff]  }
 0x639   : > { %8082 = vmatpush1.bf16.msra.mxu0 %v15178_v57  ;;  %9072 = vmatprep.subr.bf16.mxu1 %v15195_v53  ;;  %v15215_v53 = vld [vmem:[#allocation16 + $0x4] ss:$8 sps:$4 sm:$0xff]  }
 0x63a   : > { %8083 = vmatprep.subr.bf16.mxu0 %v15186_v13 }
 0x63c   : > { %9073 = vmatpush1.bf16.msra.mxu1 %v15193_v25 }
 0x63d   : > { %8084 = vmatpush1.bf16.msra.mxu0 %v15184_v55  ;;  %9074 = vmatprep.subr.bf16.mxu1 %v15201_v40 }
 0x63e   : > { %8085 = vmatprep.subr.bf16.mxu0 %v15192_v56 }
 0x640   : > { %9075 = vmatpush1.bf16.msra.mxu1 %v15199_v44 }
 0x641   : > { %8086 = vmatpush1.bf16.msra.mxu0 %v15190_v4  ;;  %9076 = vmatprep.subr.bf16.mxu1 %v15205_v27 }
 0x642   : > { %8087 = vmatprep.subr.bf16.mxu0 %v15198_v31 }
 0x644   : > { %9077 = vmatpush1.bf16.msra.mxu1 %v15203_v8 }
 0x645   : > { %8088 = vmatpush1.bf16.msra.mxu0 %v15196_v58  ;;  %9078 = vmatprep.subr.bf16.mxu1 %v15208_v10 }
 0x646   : > { %8314 = vmatprep.subr.bf16.mxu0 %v15215_v53 }
 0x648   : > { %9079 = vmatpush1.bf16.msra.mxu1 %v15206_v36 }
 0x689   : > { %v7247_v19 = vpop.permute.xlu1 %7246 }
 0x68a   : > { %7297 = vst.msk [vmem:[#allocation3] sm:$0xfe] %vm17849_vm13, %v7247_v19  ;;  %vm17855_vm13 = vmmov %vm17851_vm3 }
 0x68b   : > { %7298 = vst.msk [vmem:[#allocation3 + $0x8] sm:$0xfe] %vm17850_vm1, %v7247_v19  ;;  %vm17856_vm1 = vmmov %vm17854_vm2 }
 0x68c   : > { %v7249_v21 = vpop.permute.xlu0 %7248 }
 0x68d   : > { %7299 = vst.msk [vmem:[#allocation3 + $0x10] sm:$0xff] %vm17851_vm3, %v7249_v21  ;;  %v7251_v41 = vpop.permute.xlu1 %7250 }
 0x68e   : > { %7300 = vst.msk [vmem:[#allocation3 + $0x18] sm:$0xff] %vm17852_vm14, %v7249_v21  ;;  %vm17860_vm14 = vmmov %vm17856_vm1 }
 0x68f   : > { %7301 = vst.msk [vmem:[#allocation3 + $0x20] sm:$0xff] %vm17853_vm6, %v7251_v41  ;;  %vm17858_vm6 = vmmov %vm17856_vm1 }
 0x690   : > { %7302 = vst.msk [vmem:[#allocation3 + $0x28] sm:$0xff] %vm17854_vm2, %v7251_v41  ;;  %v7253_v5 = vpop.permute.xlu0 %7252  ;;  %vm17857_vm2 = vmmov %vm17851_vm3 }
 0x691   : > { %v7331_v15 = vld [vmem:[#allocation3] sm:$0xff]  ;;  %7303 = vst.msk [vmem:[#allocation3 + $0x30] sm:$0xff] %vm17855_vm13, %v7253_v5  ;;  %vm17859_vm3 = vmmov %vm17857_vm2 }
 0x692   : > { %7304 = vst.msk [vmem:[#allocation3 + $0x38] sm:$0xff] %vm17856_vm1, %v7253_v5  ;;  %v7435_v51 = vld [vmem:[#allocation3 + $0x8] sm:$0xff]  ;;  %v7255_v62 = vpop.permute.xlu1 %7254  ;;  %vm17861_vm13 = vmmov %vm17857_vm2 }
 0x693   : > { %v17146_v48 = vpack.c.bf16 %v7435_v51, %v7331_v15  ;;  %7305 = vst.msk [vmem:[#allocation3 + $0x40] sm:$0xff] %vm17857_vm2, %v7255_v62  ;;  %v15212_v51 = vld [vmem:[#allocation16 + $0x184] ss:$8 sps:$4 sm:$0xff]  }
 0x694   : > { %7306 = vst.msk [vmem:[#allocation3 + $0x48] sm:$0xff] %vm17858_vm6, %v7255_v62  ;;  %v7332_v35 = vld [vmem:[#allocation3 + $0x10] sm:$0xff]  ;;  %v7257_v61 = vpop.permute.xlu0 %7256  ;;  %vm17862_vm6 = vmmov %vm17856_vm1  ;;  %9376 = vmatprep.subr.bf16.mxu1 %v15212_v51 }
 0x695   : > { %7555 = vrot.lane.b32.xlu0 %v17146_v48, %s15820_s26  ;;  %v7437_v43 = vld [vmem:[#allocation3 + $0x18] sm:$0xff]  ;;  %v13501_v12 = vpack.c.bf16 %v7332_v35, %v7331_v15  ;;  %7307 = vst.msk [vmem:[#allocation3 + $0x50] sm:$0xff] %vm17859_vm3, %v7257_v61  ;;  %vm17863_vm3 = vmmov %vm17857_vm2 }
 0x696   : > { %v7333_v28 = vld [vmem:[#allocation3 + $0x20] sm:$0xff]  ;;  %7308 = vst.msk [vmem:[#allocation3 + $0x58] sm:$0xff] %vm17860_vm14, %v7257_v61  ;;  %v17154_v30 = vpack.c.bf16 %v7437_v43, %v7332_v35  ;;  %v7259_v17 = vpop.permute.xlu1 %7258  ;;  %vm17864_vm14 = vmmov %vm17856_vm1 }
 0x697   : > { %v7439_v2 = vld [vmem:[#allocation3 + $0x28] sm:$0xff]  ;;  %13502 = vst [vmem:[#allocation4] sm:$0xff] %v13501_v12   ;;  %7309 = vst.msk [vmem:[#allocation3 + $0x60] sm:$0xff] %vm17861_vm13, %v7259_v17 }
 0x698   : > { %v17156_v47 = vpack.c.bf16 %v7439_v2, %v7333_v28  ;;  %7310 = vst.msk [vmem:[#allocation3 + $0x68] sm:$0xff] %vm17856_vm1, %v7259_v17  ;;  %7557 = vrot.lane.b32.xlu1 %v17154_v30, %s15820_s26  ;;  %v7334_v42 = vld [vmem:[#allocation3 + $0x30] sm:$0xff]  ;;  %v7261_v6 = vpop.permute.xlu0 %7260  ;;  %vm17865_vm13 = vmmov %vm17857_vm2 }
 0x699   : > { %v7441_v0 = vld [vmem:[#allocation3 + $0x38] sm:$0xff]  ;;  %v13506_v60 = vpack.c.bf16 %v7334_v42, %v7333_v28  ;;  %7311 = vst.msk [vmem:[#allocation3 + $0x70] sm:$0xff] %vm17857_vm2, %v7261_v6 }
 0x69a   : > { %7559 = vrot.lane.b32.xlu0 %v17156_v47, %s15820_s26  ;;  %7312 = vst.msk [vmem:[#allocation3 + $0x78] sm:$0xff] %vm17862_vm6, %v7261_v6  ;;  %v17166_v38 = vpack.c.bf16 %v7441_v0, %v7334_v42  ;;  %v7335_v46 = vld [vmem:[#allocation3 + $0x40] sm:$0xff]  ;;  %v7263_v24 = vpop.permute.xlu1 %7262  ;;  %vm17866_vm6 = vmmov %vm17856_vm1 }
 0x69b   : > { %v7443_v18 = vld [vmem:[#allocation3 + $0x48] sm:$0xff]  ;;  %13545 = vst [vmem:[#allocation4 + $0x8] sm:$0xff] %v13506_v60   ;;  %7313 = vst.msk [vmem:[#allocation3 + $0x80] sm:$0xff] %vm17863_vm3, %v7263_v24 }
 0x69c   : > { %7314 = vst.msk [vmem:[#allocation3 + $0x88] sm:$0xff] %vm17864_vm14, %v7263_v24  ;;  %7561 = vrot.lane.b32.xlu1 %v17166_v38, %s15820_s26  ;;  %v17173_v39 = vpack.c.bf16 %v7443_v18, %v7335_v46  ;;  %v7336_v37 = vld [vmem:[#allocation3 + $0x50] sm:$0xff]  ;;  %v7265_v7 = vpop.permute.xlu0 %7264  ;;  %vm17867_vm3 = vmmov %vm17857_vm2 }
 0x69d   : > { %v7445_v32 = vld [vmem:[#allocation3 + $0x58] sm:$0xff]  ;;  %v13511_v19 = vpack.c.bf16 %v7336_v37, %v7335_v46  ;;  %7315 = vst.msk [vmem:[#allocation3 + $0x90] sm:$0xff] %vm17865_vm13, %v7265_v7  ;;  %vm17868_vm14 = vmmov %vm17856_vm1 }
 0x69e   : > { %7316 = vst.msk [vmem:[#allocation3 + $0x98] sm:$0xff] %vm17856_vm1, %v7265_v7  ;;  %7563 = vrot.lane.b32.xlu0 %v17173_v39, %s15820_s26  ;;  %v17180_v57 = vpack.c.bf16 %v7445_v32, %v7336_v37  ;;  %v7337_v29 = vld [vmem:[#allocation3 + $0x60] sm:$0xff]  ;;  %v7267_v21 = vpop.permute.xlu1 %7266  ;;  %vm17869_vm13 = vmmov %vm17857_vm2 }
 0x69f   : > { %v7447_v41 = vld [vmem:[#allocation3 + $0x68] sm:$0xff]  ;;  %13546 = vst [vmem:[#allocation4 + $0x10] sm:$0xff] %v13511_v19   ;;  %7317 = vst.msk [vmem:[#allocation3 + $0xa0] sm:$0xff] %vm17857_vm2, %v7267_v21 }
 0x6a0   : > { %7318 = vst.msk [vmem:[#allocation3 + $0xa8] sm:$0xff] %vm17866_vm6, %v7267_v21  ;;  %7565 = vrot.lane.b32.xlu1 %v17180_v57, %s15820_s26  ;;  %v17186_v55 = vpack.c.bf16 %v7447_v41, %v7337_v29  ;;  %v7338_v13 = vld [vmem:[#allocation3 + $0x70] sm:$0xff]  ;;  %v7269_v22 = vpop.permute.xlu0 %7268  ;;  %vm17870_vm6 = vmmov %vm17856_vm1 }
 0x6a1   : > { %v7449_v63 = vld [vmem:[#allocation3 + $0x78] sm:$0xff]  ;;  %v13516_v5 = vpack.c.bf16 %v7338_v13, %v7337_v29  ;;  %7319 = vst.msk [vmem:[#allocation3 + $0xb0] sm:$0xff] %vm17867_vm3, %v7269_v22  ;;  %vm17871_vm3 = vmmov %vm17857_vm2 }
 0x6a2   : > { %7320 = vst.msk [vmem:[#allocation3 + $0xb8] sm:$0xff] %vm17868_vm14, %v7269_v22  ;;  %7567 = vrot.lane.b32.xlu0 %v17186_v55, %s15820_s26  ;;  %v17192_v15 = vpack.c.bf16 %v7449_v63, %v7338_v13  ;;  %v7339_v4 = vld [vmem:[#allocation3 + $0x80] sm:$0xff]  ;;  %v7271_v62 = vpop.permute.xlu1 %7270  ;;  %vm17872_vm14 = vmmov %vm17856_vm1 }
 0x6a3   : > { %v7451_v56 = vld [vmem:[#allocation3 + $0x88] sm:$0xff]  ;;  %13547 = vst [vmem:[#allocation4 + $0x18] sm:$0xff] %v13516_v5   ;;  %7321 = vst.msk [vmem:[#allocation3 + $0xc0] sm:$0xff] %vm17869_vm13, %v7271_v62 }
 0x6a4   : > { %7322 = vst.msk [vmem:[#allocation3 + $0xc8] sm:$0xff] %vm17856_vm1, %v7271_v62  ;;  %7569 = vrot.lane.b32.xlu1 %v17192_v15, %s15820_s26  ;;  %v17198_v25 = vpack.c.bf16 %v7451_v56, %v7339_v4  ;;  %v7340_v35 = vld [vmem:[#allocation3 + $0x90] sm:$0xff]  ;;  %v7273_v61 = vpop.permute.xlu0 %7272  ;;  %vm17873_vm13 = vmmov %vm17857_vm2 }
 0x6a5   : > { %v7453_v43 = vld [vmem:[#allocation3 + $0x98] sm:$0xff]  ;;  %v13521_v12 = vpack.c.bf16 %v7340_v35, %v7339_v4  ;;  %7323 = vst.msk [vmem:[#allocation3 + $0xd0] sm:$0xff] %vm17857_vm2, %v7273_v61  ;;  %vm17874_vm2 = vcmask 1040448  }
 0x6a6   : > { %7324 = vst.msk [vmem:[#allocation3 + $0xd8] sm:$0xff] %vm17870_vm6, %v7273_v61  ;;  %7571 = vrot.lane.b32.xlu0 %v17198_v25, %s15820_s26  ;;  %v13433_v28 = vpack.c.bf16 %v7453_v43, %v7340_v35  ;;  %v7341_v2 = vld [vmem:[#allocation3 + $0xa0] sm:$0xff]  ;;  %v7275_v58 = vpop.permute.xlu1 %7274  ;;  %vm17875_vm6 = vcmask 57344  }
 0x6a7   : > { %v7455_v17 = vld [vmem:[#allocation3 + $0xa8] sm:$0xff]  ;;  %13548 = vst [vmem:[#allocation4 + $0x20] sm:$0xff] %v13521_v12   ;;  %7325 = vst.msk [vmem:[#allocation3 + $0xe0] sm:$0xff] %vm17871_vm3, %v7275_v58  ;;  %vm17876_vm3 = vcmask 982016  }
 0x6a8   : > { %7326 = vst.msk [vmem:[#allocation3 + $0xe8] sm:$0xff] %vm17872_vm14, %v7275_v58  ;;  %7573 = vrot.lane.b32.xlu1 %v13433_v28, %s15820_s26  ;;  %v13434_v31 = vpack.c.bf16 %v7455_v17, %v7341_v2  ;;  %v7342_v44 = vld [vmem:[#allocation3 + $0xb0] sm:$0xff]  ;;  %v7277_v40 = vpop.permute.xlu0 %7276  ;;  %vm17877_vm14 = vmmov %vm17876_vm3 }
 0x6a9   : > { %v7457_v42 = vld [vmem:[#allocation3 + $0xb8] sm:$0xff]  ;;  %v13526_v6 = vpack.c.bf16 %v7342_v44, %v7341_v2  ;;  %7327 = vst.msk [vmem:[#allocation3 + $0xf0] sm:$0xff] %vm17873_vm13, %v7277_v40  ;;  %vm17878_vm13 = vmmov %vm17876_vm3 }
 0x6aa   : > { %7328 = vst.msk [vmem:[#allocation3 + $0xf8] sm:$0xff] %vm17856_vm1, %v7277_v40  ;;  %7575 = vrot.lane.b32.xlu0 %v13434_v31, %s15820_s26  ;;  %v13435_v0 = vpack.c.bf16 %v7457_v42, %v7342_v44  ;;  %v7343_v60 = vld [vmem:[#allocation3 + $0xc0] sm:$0xff]  ;;  %v7279_v27 = vpop.permute.xlu1 %7278  ;;  %vm17879_vm1 = vmmov %vm17876_vm3 }
 0x6ab   : > { %v7459_v46 = vld [vmem:[#allocation3 + $0xc8] sm:$0xff]  ;;  %13549 = vst [vmem:[#allocation4 + $0x28] sm:$0xff] %v13526_v6   ;;  %7329 = vst.msk [vmem:[#allocation3 + $0x100] sm:$0x1] %vm17874_vm2, %v7279_v27 }
 0x6ac   : > { %7330 = vst.msk [vmem:[#allocation3 + $0x108] sm:$0x1] %vm17875_vm6, %v7279_v27  ;;  %7577 = vrot.lane.b32.xlu1 %v13435_v0, %s15820_s26  ;;  %v13436_v24 = vpack.c.bf16 %v7459_v46, %v7343_v60  ;;  %v7344_v18 = vld [vmem:[#allocation3 + $0xd0] sm:$0xff]  ;;  %vm17880_vm2 = vmmov %vm17879_vm1 }
 0x6ad   : > { %v7461_v8 = vld [vmem:[#allocation3 + $0xd8] sm:$0xff]  ;;  %v13531_v37 = vpack.c.bf16 %v7344_v18, %v7343_v60  ;;  %v15224_v44 = vld [vmem:[#allocation16 + $0x14] ss:$8 sps:$4 sm:$0xff]   ;;  %vm17881_vm6 = vmmov %vm17879_vm1 }
 0x6ae   : > { %7579 = vrot.lane.b32.xlu0 %v13436_v24, %s15820_s26  ;;  %v13437_v7 = vpack.c.bf16 %v7461_v8, %v7344_v18  ;;  %v7345_v32 = vld [vmem:[#allocation3 + $0xe0] sm:$0xff] }
 0x6af   : > { %v7463_v19 = vld [vmem:[#allocation3 + $0xe8] sm:$0xff]  ;;  %13550 = vst [vmem:[#allocation4 + $0x30] sm:$0xff] %v13531_v37   ;;  %v15232_v18 = vld [vmem:[#allocation16 + $0x24] ss:$8 sps:$4 sm:$0xff]  }
 0x6b0   : > { %7581 = vrot.lane.b32.xlu1 %v13437_v7, %s15820_s26  ;;  %v13438_v36 = vpack.c.bf16 %v7463_v19, %v7345_v32  ;;  %v7346_v10 = vld [vmem:[#allocation3 + $0xf0] sm:$0xff] }
 0x6b1   : > { %v7465_v29 = vld [vmem:[#allocation3 + $0xf8] sm:$0xff]  ;;  %v13536_v21 = vpack.c.bf16 %v7346_v10, %v7345_v32 }
 0x6b2   : > { %7583 = vrot.lane.b32.xlu0 %v13438_v36, %s15820_s26  ;;  %v13439_v41 = vpack.c.bf16 %v7465_v29, %v7346_v10  ;;  %v7347_v13 = vld [vmem:[#allocation3 + $0x100] sm:$0x3]  ;;  %v15230_v29 = vld [vmem:[#allocation16 + $0x20] ss:$8 sps:$4 sm:$0xff]  }
 0x6b3   : > { %v7466_v22 = vld [vmem:[#allocation3 + $0x100] sm:$0x3]  ;;  %v7467_v63 = vld [vmem:[#allocation3 + $0x108] sm:$0x3]  ;;  %13551 = vst [vmem:[#allocation4 + $0x38] sm:$0xff] %v13536_v21   ;;  %v13423_v5 = vpack.c.bf16 %v7347_v13, %v7347_v13 }
 0x6b4   : > { %7585 = vrot.lane.b32.xlu1 %v13439_v41, %s15820_s26  ;;  %v13440_v51 = vpack.c.bf16 %v7467_v63, %v7466_v22  ;;  %v15210_v22 = vld [vmem:[#allocation16 + $0x180] ss:$8 sps:$4 sm:$0xff]  }
 0x6b5   : > { %7433 = vst [vmem:[#allocation4 + $0x40] sm:$0x1] %v13423_v5 }
 0x6b6   : > { %7587 = vrot.lane.b32.xlu0 %v13440_v51, %s15820_s26  ;;  %v15240_v51 = vld [vmem:[#allocation16 + $0x34] ss:$8 sps:$4 sm:$0xff]  }
 0x6b8   : > { %7778 = vrot.lane.b32.xlu1 %v17146_v48, %s15822_s21  ;;  %v7689_v48 = vld [vmem:[#allocation3 + $0x100] sm:$0x3] }
 0x6ba   : > { %7780 = vrot.lane.b32.xlu0 %v17154_v30, %s15822_s21  ;;  %v7690_v30 = vld [vmem:[#allocation3 + $0x108] sm:$0x3] }
 0x6bc   : > { %7782 = vrot.lane.b32.xlu1 %v17156_v47, %s15822_s21  ;;  %v13457_v47 = vpack.c.bf16 %v7690_v30, %v7689_v48 }
 0x6be   : > { %7784 = vrot.lane.b32.xlu0 %v17166_v38, %s15822_s21 }
 0x6c0   : > { %7786 = vrot.lane.b32.xlu1 %v17173_v39, %s15822_s21 }
 0x6c2   : > { %7788 = vrot.lane.b32.xlu0 %v17180_v57, %s15822_s21 }
 0x6c4   : > { %7790 = vrot.lane.b32.xlu1 %v17186_v55, %s15822_s21 }
 0x6c6   : > { %7792 = vrot.lane.b32.xlu0 %v17192_v15, %s15822_s21 }
 0x6c8   : > { %7794 = vrot.lane.b32.xlu1 %v17198_v25, %s15822_s21 }
 0x6ca   : > { %7796 = vrot.lane.b32.xlu0 %v13433_v28, %s15822_s21 }
 0x6cc   : > { %7798 = vrot.lane.b32.xlu1 %v13434_v31, %s15822_s21  ;;  %v15213_v31 = vld [vmem:[#allocation16] ss:$8 sps:$4 sm:$0xff]  }
 0x6ce   : > { %7800 = vrot.lane.b32.xlu0 %v13435_v0, %s15822_s21 }
 0x6d0   : > { %7802 = vrot.lane.b32.xlu1 %v13436_v24, %s15822_s21  ;;  %v15222_v24 = vld [vmem:[#allocation16 + $0x10] ss:$8 sps:$4 sm:$0xff]  }
 0x6d2   : > { %7804 = vrot.lane.b32.xlu0 %v13437_v7, %s15822_s21 }
 0x6d4   : > { %7806 = vrot.lane.b32.xlu1 %v13438_v36, %s15822_s21 }
 0x6d6   : > { %7808 = vrot.lane.b32.xlu0 %v13439_v41, %s15822_s21 }
 0x6d8   : > { %7810 = vrot.lane.b32.xlu1 %v13457_v47, %s15822_s21 }
 0x707   : > { %v7556_v38 = vpop.permute.xlu0 %7555 }
 0x708   : > { %v7589_v39 = vrot.slane %v7556_v38, 4 }
 0x70a   : > { %v7606_v57 = vsel %vm17876_vm3, %v7556_v38, %v7589_v39  ;;  %v7558_v55 = vpop.permute.xlu1 %7557  ;;  %vm17882_vm3 = vmmov %vm17879_vm1 }
 0x70b   : > { %7640 = vst [vmem:[#allocation4 + $0x44] sm:$0xf] %v7606_v57  ;;  %v7590_v15 = vrot.slane %v7558_v55, 4 }
 0x70c   : > { %v7560_v4 = vpop.permute.xlu0 %7559 }
 0x70d   : > { %v7591_v62 = vrot.slane %v7560_v4, 4  ;;  %v7607_v56 = vsel %vm17877_vm14, %v7558_v55, %v7590_v15  ;;  %vm17883_vm14 = vmmov %vm17879_vm1  ;;  %v15221_v55 = vld [vmem:[#allocation16 + $0x194] ss:$8 sps:$4 sm:$0xff]  }
 0x70e   : > { %7641 = vst [vmem:[#allocation4 + $0x48] sm:$0xf] %v7607_v56  ;;  %v7562_v53 = vpop.permute.xlu1 %7561 }
 0x70f   : > { %v7608_v25 = vsel %vm17878_vm13, %v7560_v4, %v7591_v62  ;;  %v7592_v35 = vrot.slane %v7562_v53, 4  ;;  %vm17884_vm13 = vmmov %vm17879_vm1 }
 0x710   : > { %7642 = vst [vmem:[#allocation4 + $0x4c] sm:$0xf] %v7608_v25  ;;  %v7564_v61 = vpop.permute.xlu0 %7563 }
 0x711   : > { %v7609_v43 = vsel %vm17879_vm1, %v7562_v53, %v7592_v35  ;;  %v7593_v12 = vrot.slane %v7564_v61, 4  ;;  %v15238_v35 = vld [vmem:[#allocation16 + $0x30] ss:$8 sps:$4 sm:$0xff]  }
 0x712   : > { %7643 = vst [vmem:[#allocation4 + $0x50] sm:$0xf] %v7609_v43  ;;  %v7566_v28 = vpop.permute.xlu1 %7565 }
 0x713   : > { %v7610_v2 = vsel %vm17880_vm2, %v7564_v61, %v7593_v12  ;;  %v7594_v58 = vrot.slane %v7566_v28, 4  ;;  %vm17885_vm2 = vmmov %vm17879_vm1  ;;  %v15248_v61 = vld [vmem:[#allocation16 + $0x44] ss:$8 sps:$4 sm:$0xff]  }
 0x714   : > { %7644 = vst [vmem:[#allocation4 + $0x54] sm:$0xf] %v7610_v2  ;;  %v7568_v17 = vpop.permute.xlu0 %7567  ;;  %v15219_v2 = vld [vmem:[#allocation16 + $0x190] ss:$8 sps:$4 sm:$0xff]  }
 0x715   : > { %v7611_v40 = vsel %vm17881_vm6, %v7566_v28, %v7594_v58  ;;  %v7595_v42 = vrot.slane %v7568_v17, 4  ;;  %v15202_v6 = vld [vmem:[#allocation4 + $0x44] sm:$0xff]   ;;  %vm17886_vm6 = vsmask.f32 7424 }
 0x716   : > { %7645 = vst [vmem:[#allocation4 + $0x58] sm:$0xf] %v7611_v40  ;;  %v7570_v0 = vpop.permute.xlu1 %7569  ;;  %v15216_v60 = vld [vmem:[#allocation4 + $0x44] sm:$0xff]   ;;  %8106 = vmatmul.mubr.bf16.vlgmr.msra.gmra.mrb[56].mxu0 %v15202_v6 }
 0x717   : > { %v7612_v27 = vsel %vm17882_vm3, %v7568_v17, %v7595_v42  ;;  %v7596_v46 = vrot.slane %v7570_v0, 4  ;;  %8115 = vmatprep.mubr.bf16.mxu0 %v15823_v26  ;;  %v8911_v37 = vshll.u32 %v15216_v60, 16  ;;  %8315 = vmatpush1.bf16.msra.mxu0 %v15213_v31  ;;  %v8909_v63 = vshrl.u32 %v15216_v60, 16  ;;  %vm17887_vm3 = vmmov %vm17879_vm1  ;;  %v15229_v58 = vld [vmem:[#allocation16 + $0x1a4] ss:$8 sps:$4 sm:$0xff]  }
 0x718   : > { %7646 = vst [vmem:[#allocation4 + $0x5c] sm:$0xf] %v7612_v27  ;;  %v7572_v8 = vpop.permute.xlu0 %7571  ;;  %8316 = vmatprep.subr.bf16.mxu0 %v15224_v44  ;;  %v15246_v17 = vld [vmem:[#allocation16 + $0x40] ss:$8 sps:$4 sm:$0xff]   ;;  %v15256_v42 = vld [vmem:[#allocation16 + $0x54] ss:$8 sps:$4 sm:$0xff]  }
 0x719   : > { %v7613_v7 = vsel %vm17883_vm14, %v7570_v0, %v7596_v46  ;;  %v7597_v32 = vrot.slane %v7572_v8, 4  ;;  %v15217_v36 = vld [vmem:[#allocation4 + $0x4c] sm:$0xff]   ;;  %v8913_v10 = vrot.slane %v8911_v37, 1  ;;  %vm17888_vm14 = vmmov %vm17879_vm1 }
 0x71a   : > { %7647 = vst [vmem:[#allocation4 + $0x60] sm:$0xf] %v7613_v7  ;;  %v7574_v19 = vpop.permute.xlu1 %7573  ;;  %v8916_v5 = vshll.u32 %v15217_v36, 16  ;;  %v15209_v47 = vld [vmem:[#allocation4 + $0x4c] sm:$0xff]   ;;  %v8920_v40 = vshrl.u32 %v15217_v36, 16 }
 0x71b   : > { %v7614_v21 = vsel %vm17884_vm13, %v7572_v8, %v7597_v32  ;;  %v7598_v41 = vrot.slane %v7574_v19, 4  ;;  %8317 = vmatpush1.bf16.msra.mxu0 %v15222_v24  ;;  %v8914_v39 = vor.u32 %v8913_v10, %v8909_v63  ;;  %vm17889_vm13 = vmmov %vm17879_vm1  ;;  %v15227_v37 = vld [vmem:[#allocation16 + $0x1a0] ss:$8 sps:$4 sm:$0xff]   ;;  %v15237_v7 = vld [vmem:[#allocation16 + $0x1b4] ss:$8 sps:$4 sm:$0xff]  }
 0x71c   : > { %7648 = vst [vmem:[#allocation4 + $0x64] sm:$0xf] %v7614_v21  ;;  %v7576_v13 = vpop.permute.xlu0 %7575  ;;  %8318 = vmatprep.subr.bf16.mxu0 %v15232_v18  ;;  %v8918_v57 = vrot.slane %v8916_v5, 1  ;;  %v15254_v21 = vld [vmem:[#allocation16 + $0x50] ss:$8 sps:$4 sm:$0xff]  }
 0x71d   : > { %v7615_v48 = vsel %vm17879_vm1, %v7574_v19, %v7598_v41  ;;  %v7599_v30 = vrot.slane %v7576_v13, 4  ;;  %v17255_v15 = vld [vmem:[#allocation4 + $0x54] sm:$0xff]   ;;  %v15261_v41 = vld [vmem:[#allocation16 + $0x64] ss:$8 sps:$4 sm:$0xff]  }
 0x71e   : > { %7649 = vst [vmem:[#allocation4 + $0x68] sm:$0xf] %v7615_v48  ;;  %v7578_v38 = vpop.permute.xlu1 %7577  ;;  %8116 = vmatmul.mubr.bf16.gmra.mrb[60].mxu0 %v15209_v47  ;;  %v8919_v25 = vsel %vm17886_vm6, %v8914_v39, %v8918_v57  ;;  %v8924_v53 = vshll.u32 %v17255_v15, 16  ;;  %v15218_v24 = vld [vmem:[#allocation4 + $0x54] sm:$0xff]   ;;  %v8922_v8 = vor.u32 %v8920_v40, %v8918_v57  ;;  %v15259_v48 = vld [vmem:[#allocation16 + $0x60] ss:$8 sps:$4 sm:$0xff]  }
 0x71f   : > { %v7616_v4 = vsel %vm17885_vm2, %v7576_v13, %v7599_v30  ;;  %v7600_v62 = vrot.slane %v7578_v38, 4  ;;  %8125 = vmatprep.mubr.bf16.mxu0 %v15823_v26  ;;  %8319 = vmatpush1.bf16.msra.mxu0 %v15230_v29  ;;  %vm17890_vm2 = vmmov %vm17886_vm6  ;;  %v15235_v5 = vld [vmem:[#allocation16 + $0x1b0] ss:$8 sps:$4 sm:$0xff]   ;;  %v8928_v57 = vshrl.u32 %v17255_v15, 16 }
 0x720   : > { %7650 = vst [vmem:[#allocation4 + $0x6c] sm:$0xf] %v7616_v4  ;;  %v7580_v56 = vpop.permute.xlu0 %7579  ;;  %9097 = vmatmul.mubr.bf16.vlgmr.msra.gmra.mrb[64].mxu1 %v8919_v25  ;;  %8320 = vmatprep.subr.bf16.mxu0 %v15240_v51  ;;  %v8926_v0 = vrot.slane %v8924_v53, 1  ;;  %vm17891_vm6 = vmmov %vm17879_vm1  ;;  %v15245_v51 = vld [vmem:[#allocation16 + $0x1c4] ss:$8 sps:$4 sm:$0xff]  }
 0x721   : > { %v7617_v43 = vsel %vm17887_vm3, %v7578_v38, %v7600_v62  ;;  %v7601_v12 = vrot.slane %v7580_v56, 4  ;;  %9377 = vmatpush1.bf16.msra.mxu1 %v15210_v22  ;;  %9106 = vmatprep.mubr.bf16.mxu1 %v15823_v26  ;;  %v17264_v60 = vld [vmem:[#allocation4 + $0x5c] sm:$0xff]   ;;  %vm17892_vm3 = vmmov %vm17879_vm1 }
 0x722   : > { %7651 = vst [vmem:[#allocation4 + $0x70] sm:$0xf] %v7617_v43  ;;  %v7582_v28 = vpop.permute.xlu1 %7581  ;;  %9378 = vmatprep.subr.bf16.mxu1 %v15221_v55  ;;  %v8927_v10 = vsel %vm17890_vm2, %v8922_v8, %v8926_v0  ;;  %v8932_v29 = vshll.u32 %v17264_v60, 16  ;;  %v15268_v38 = vld [vmem:[#allocation16 + $0x74] ss:$8 sps:$4 sm:$0xff]  }
 0x723   : > { %v7618_v31 = vsel %vm17888_vm14, %v7580_v56, %v7601_v12  ;;  %v7602_v44 = vrot.slane %v7582_v28, 4  ;;  %8321 = vmatpush1.bf16.msra.mxu0 %v15238_v35  ;;  %vm17893_vm14 = vcmask 916480   ;;  %v15226_v25 = vld [vmem:[#allocation4 + $0x5c] sm:$0xff]   ;;  %v8930_v35 = vor.u32 %v8928_v57, %v8926_v0 }
 0x724   : > { %7652 = vst [vmem:[#allocation4 + $0x74] sm:$0xf] %v7618_v31  ;;  %v7584_v6 = vpop.permute.xlu0 %7583  ;;  %8322 = vmatprep.subr.bf16.mxu0 %v15248_v61  ;;  %v8934_v55 = vrot.slane %v8932_v29, 1  ;;  %v15243_v61 = vld [vmem:[#allocation16 + $0x1c0] ss:$8 sps:$4 sm:$0xff]  }
 0x725   : > { %v7619_v27 = vsel %vm17889_vm13, %v7582_v28, %v7602_v44  ;;  %v7603_v46 = vrot.slane %v7584_v6, 4  ;;  %9379 = vmatpush1.bf16.msra.mxu1 %v15219_v2  ;;  %v17275_v4 = vld [vmem:[#allocation4 + $0x64] sm:$0xff]   ;;  %v15253_v43 = vld [vmem:[#allocation16 + $0x1d4] ss:$8 sps:$4 sm:$0xff]   ;;  %vm17894_vm13 = vmmov %vm17893_vm14 }
 0x726   : > { %7653 = vst [vmem:[#allocation4 + $0x78] sm:$0xf] %v7619_v27  ;;  %v7586_v18 = vpop.permute.xlu1 %7585  ;;  %8126 = vmatmul.mubr.bf16.gmra.mrb[64].mxu0 %v15218_v24  ;;  %9380 = vmatprep.subr.bf16.mxu1 %v15229_v58  ;;  %v8940_v58 = vshll.u32 %v17275_v4, 16  ;;  %v15280_v31 = vld [vmem:[#allocation16 + $0x104] ss:$8 sps:$4 sm:$0xff]  }
 0x727   : > { %v7620_v32 = vsel %vm17879_vm1, %v7584_v6, %v7603_v46  ;;  %v7604_v19 = vrot.slane %v7586_v18, 4  ;;  %8135 = vmatprep.mubr.bf16.mxu0 %v15823_v26  ;;  %8323 = vmatpush1.bf16.msra.mxu0 %v15246_v17  ;;  %vm17895_vm1 = vmmov %vm17890_vm2  ;;  %v15266_v17 = vld [vmem:[#allocation16 + $0x70] ss:$8 sps:$4 sm:$0xff]   ;;  %v8936_v46 = vshrl.u32 %v17264_v60, 16  ;;  %v15264_v24 = vld [vmem:[#allocation16 + $0x1e4] ss:$8 sps:$4 sm:$0xff]  }
 0x728   : > { %7654 = vst [vmem:[#allocation4 + $0x7c] sm:$0xf] %v7620_v32  ;;  %v7588_v36 = vpop.permute.xlu0 %7587  ;;  %9107 = vmatmul.mubr.bf16.gmra.mrb[68].mxu1 %v8927_v10  ;;  %8324 = vmatprep.subr.bf16.mxu0 %v15256_v42  ;;  %v8935_v2 = vsel %vm17895_vm1, %v8930_v35, %v8934_v55  ;;  %vm17896_vm2 = vmmov %vm17894_vm13  ;;  %v15251_v6 = vld [vmem:[#allocation16 + $0x1d0] ss:$8 sps:$4 sm:$0xff]   ;;  %v8942_v8 = vrot.slane %v8940_v58, 1 }
 0x729   : > { %v7621_v13 = vsel %vm17891_vm6, %v7586_v18, %v7604_v19  ;;  %v7605_v22 = vrot.slane %v7588_v36, 4  ;;  %9116 = vmatprep.mubr.bf16.mxu1 %v15823_v26  ;;  %9381 = vmatpush1.bf16.msra.mxu1 %v15227_v37  ;;  %vm17897_vm6 = vmmov %vm17896_vm2  ;;  %v17286_v37 = vld [vmem:[#allocation4 + $0x6c] sm:$0xff]   ;;  %v15234_v19 = vld [vmem:[#allocation4 + $0x64] sm:$0xff]   ;;  %v8938_v10 = vor.u32 %v8936_v46, %v8934_v55  ;;  %v8944_v55 = vshrl.u32 %v17275_v4, 16 }
 0x72a   : > { %7655 = vst [vmem:[#allocation4 + $0x80] sm:$0xf] %v7621_v13  ;;  %v7779_v63 = vpop.permute.xlu1 %7778  ;;  %9382 = vmatprep.subr.bf16.mxu1 %v15237_v7  ;;  %v15262_v29 = vld [vmem:[#allocation16 + $0x1e0] ss:$8 sps:$4 sm:$0xff]  }
 0x72b   : > { %v7622_v30 = vsel %vm17892_vm3, %v7588_v36, %v7605_v22  ;;  %v7812_v47 = vrot.slane %v7779_v63, 4  ;;  %8325 = vmatpush1.bf16.msra.mxu0 %v15254_v21  ;;  %vm17898_vm3 = vmmov %vm17896_vm2  ;;  %v15242_v35 = vld [vmem:[#allocation4 + $0x6c] sm:$0xff]  }
 0x72c   : > { %7656 = vst [vmem:[#allocation4 + $0x84] sm:$0x1] %v7622_v30  ;;  %v7781_v39 = vpop.permute.xlu0 %7780  ;;  %8326 = vmatprep.subr.bf16.mxu0 %v15261_v41  ;;  %v15272_v41 = vld [vmem:[#allocation16 + $0x1f4] ss:$8 sps:$4 sm:$0xff]   ;;  %v15270_v30 = vld [vmem:[#allocation16 + $0x1f0] ss:$8 sps:$4 sm:$0xff]  }
 0x72d   : > { %v7829_v62 = vsel %vm17893_vm14, %v7779_v63, %v7812_v47  ;;  %v7813_v56 = vrot.slane %v7781_v39, 4  ;;  %9383 = vmatpush1.bf16.msra.mxu1 %v15235_v5  ;;  %vm17899_vm14 = vmmov %vm17896_vm2  ;;  %v8948_v63 = vshll.u32 %v17286_v37, 16  ;;  %v15277_v47 = vld [vmem:[#allocation16 + $0x284] ss:$8 sps:$4 sm:$0xff]  }
 0x72e   : > { %7863 = vst [vmem:[#allocation4 + $0x88] sm:$0xf] %v7829_v62  ;;  %v7783_v53 = vpop.permute.xlu1 %7782  ;;  %8136 = vmatmul.mubr.bf16.gmra.mrb[68].mxu0 %v15226_v25  ;;  %9384 = vmatprep.subr.bf16.mxu1 %v15245_v51 }
 0x72f   : > { %v7830_v12 = vsel %vm17894_vm13, %v7781_v39, %v7813_v56  ;;  %v7814_v28 = vrot.slane %v7783_v53, 4  ;;  %8145 = vmatprep.mubr.bf16.mxu0 %v15823_v26  ;;  %8327 = vmatpush1.bf16.msra.mxu0 %v15259_v48  ;;  %vm17900_vm13 = vmmov %vm17895_vm1  ;;  %v8950_v62 = vrot.slane %v8948_v63, 1  ;;  %v15257_v56 = vld [vmem:[#allocation4 + $0x74] sm:$0xff]  }
 0x730   : > { %7864 = vst [vmem:[#allocation4 + $0x8c] sm:$0xf] %v7830_v12  ;;  %v7785_v15 = vpop.permute.xlu0 %7784  ;;  %9117 = vmatmul.mubr.bf16.gmra.mrb[72].mxu1 %v8935_v2  ;;  %8328 = vmatprep.subr.bf16.mxu0 %v15268_v38  ;;  %v8943_v22 = vsel %vm17900_vm13, %v8938_v10, %v8942_v8  ;;  %vm17901_vm1 = vmmov %vm17896_vm2  ;;  %v8956_v4 = vshll.u32 %v15257_v56, 16 }
 0x731   : > { %v7831_v44 = vsel %vm17896_vm2, %v7783_v53, %v7814_v28  ;;  %v7815_v40 = vrot.slane %v7785_v15, 4  ;;  %9126 = vmatprep.mubr.bf16.mxu1 %v15823_v26  ;;  %9385 = vmatpush1.bf16.msra.mxu1 %v15243_v61  ;;  %vm17902_vm2 = vmmov %vm17901_vm1  ;;  %v15258_v63 = vld [vmem:[#allocation4 + $0x7c] sm:$0xff]  }
 0x732   : > { %7865 = vst [vmem:[#allocation4 + $0x90] sm:$0xf] %v7831_v44  ;;  %v7787_v42 = vpop.permute.xlu1 %7786  ;;  %9386 = vmatprep.subr.bf16.mxu1 %v15253_v43  ;;  %v8946_v43 = vor.u32 %v8944_v55, %v8942_v8  ;;  %v15282_v55 = vld [vmem:[#allocation4 + $0x8] sm:$0xff]  }
 0x733   : > { %v7832_v0 = vsel %vm17897_vm6, %v7785_v15, %v7815_v40  ;;  %v7816_v27 = vrot.slane %v7787_v42, 4  ;;  %8329 = vmatpush1.bf16.msra.mxu0 %v15266_v17  ;;  %vm17903_vm6 = vmmov %vm17901_vm1 }
 0x734   : > { %7866 = vst [vmem:[#allocation4 + $0x94] sm:$0xf] %v7832_v0  ;;  %v7789_v18 = vpop.permute.xlu0 %7788  ;;  %8588 = vmatprep.subr.bf16.mxu0 %v15280_v31  ;;  %v8958_v0 = vrot.slane %v8956_v4, 1 }
 0x735   : > { %v7833_v7 = vsel %vm17898_vm3, %v7787_v42, %v7816_v27  ;;  %v7817_v32 = vrot.slane %v7789_v18, 4  ;;  %9387 = vmatpush1.bf16.msra.mxu1 %v15251_v6  ;;  %vm17904_vm3 = vmmov %vm17901_vm1  ;;  %v8952_v6 = vshrl.u32 %v17286_v37, 16  ;;  %v15265_v27 = vld [vmem:[#allocation4 + $0x7c] sm:$0xff]  }
 0x736   : > { %7867 = vst [vmem:[#allocation4 + $0x98] sm:$0xf] %v7833_v7  ;;  %v7791_v36 = vpop.permute.xlu1 %7790  ;;  %8146 = vmatmul.mubr.bf16.gmra.mrb[72].mxu0 %v15234_v19  ;;  %9388 = vmatprep.subr.bf16.mxu1 %v15264_v24  ;;  %v8964_v37 = vshll.u32 %v15265_v27, 16 }
 0x737   : > { %v7834_v60 = vsel %vm17899_vm14, %v7789_v18, %v7817_v32  ;;  %v7818_v21 = vrot.slane %v7791_v36, 4  ;;  %8155 = vmatprep.mubr.bf16.mxu0 %v15823_v26  ;;  %vm17905_vm14 = vmmov %vm17900_vm13  ;;  %v15250_v18 = vld [vmem:[#allocation4 + $0x74] sm:$0xff]   ;;  %v8954_v7 = vor.u32 %v8952_v6, %v8950_v62 }
 0x738   : > { %7868 = vst [vmem:[#allocation4 + $0x9c] sm:$0xf] %v7834_v60  ;;  %v7793_v13 = vpop.permute.xlu0 %7792  ;;  %9127 = vmatmul.mubr.bf16.gmra.mrb[76].mxu1 %v8943_v22  ;;  %v8951_v2 = vsel %vm17905_vm14, %v8946_v43, %v8950_v62  ;;  %vm17906_vm13 = vmmov %vm17901_vm1  ;;  %v9228_v43 = vshll.u32 %v15282_v55, 16 }
 0x739   : > { %v7835_v5 = vsel %vm17901_vm1, %v7791_v36, %v7818_v21  ;;  %v7819_v51 = vrot.slane %v7793_v13, 4  ;;  %9136 = vmatprep.mubr.bf16.mxu1 %v15823_v26  ;;  %9389 = vmatpush1.bf16.msra.mxu1 %v15262_v29 }
 0x73a   : > { %7869 = vst [vmem:[#allocation4 + $0xa0] sm:$0xf] %v7835_v5  ;;  %v7795_v48 = vpop.permute.xlu1 %7794  ;;  %9390 = vmatprep.subr.bf16.mxu1 %v15272_v41  ;;  %v8960_v41 = vshrl.u32 %v15257_v56, 16  ;;  %v8966_v5 = vrot.slane %v8964_v37, 1  ;;  %v15311_v37 = vld [vmem:[#allocation16 + $0x140] ss:$8 sps:$4 sm:$0xff]  }
 0x73b   : > { %v7836_v38 = vsel %vm17902_vm2, %v7793_v13, %v7819_v51  ;;  %v7820_v39 = vrot.slane %v7795_v48, 4  ;;  %vm17907_vm2 = vmmov %vm17901_vm1  ;;  %v15273_v51 = vld [vmem:[#allocation4 + $0x84] ss:$0 sps:$4 sm:$0x11]  }
 0x73c   : > { %7870 = vst [vmem:[#allocation4 + $0xa4] sm:$0xf] %v7836_v38  ;;  %v7797_v57 = vpop.permute.xlu0 %7796  ;;  %v8972_v38 = vshll.u32 %v15273_v51, 16  ;;  %v15326_v51 = vld [vmem:[#allocation16 + $0x164] ss:$8 sps:$4 sm:$0xff]  }
 0x73d   : > { %v7837_v25 = vsel %vm17903_vm6, %v7795_v48, %v7820_v39  ;;  %v7821_v53 = vrot.slane %v7797_v57, 4  ;;  %9391 = vmatpush1.bf16.msra.mxu1 %v15270_v30  ;;  %vm17908_vm6 = vmmov %vm17901_vm1  ;;  %v8962_v30 = vor.u32 %v8960_v41, %v8958_v0  ;;  %v8968_v39 = vshrl.u32 %v15265_v27, 16 }
 0x73e   : > { %7871 = vst [vmem:[#allocation4 + $0xa8] sm:$0xf] %v7837_v25  ;;  %v7799_v61 = vpop.permute.xlu1 %7798  ;;  %8156 = vmatmul.mubr.bf16.gmra.mrb[76].mxu0 %v15242_v35  ;;  %9722 = vmatprep.subr.bf16.mxu1 %v15277_v47  ;;  %v8974_v56 = vrot.slane %v8972_v38, 1  ;;  %v15278_v25 = vld [vmem:[#allocation16 + $0x100] ss:$8 sps:$4 sm:$0xff]   ;;  %v15291_v38 = vld [vmem:[#allocation4 + $0x18] sm:$0xff]  }
 0x73f   : > { %v7838_v12 = vsel %vm17904_vm3, %v7797_v57, %v7821_v53  ;;  %v7822_v28 = vrot.slane %v7799_v61, 4  ;;  %8165 = vmatprep.mubr.bf16.mxu0 %v15823_v26  ;;  %vm17909_vm3 = vmmov %vm17905_vm14  ;;  %v15281_v57 = vld [vmem:[#allocation4] sm:$0xff]   ;;  %v8970_v62 = vor.u32 %v8968_v39, %v8966_v5 }
 0x740   : > { %7872 = vst [vmem:[#allocation4 + $0xac] sm:$0xf] %v7838_v12  ;;  %v7801_v15 = vpop.permute.xlu0 %7800  ;;  %9137 = vmatmul.mubr.bf16.gmra.mrb[80].mxu1 %v8951_v2  ;;  %v8959_v10 = vsel %vm17909_vm3, %v8954_v7, %v8958_v0  ;;  %vm17910_vm14 = vmmov %vm17901_vm1  ;;  %v15269_v53 = vld [vmem:[#allocation4] sm:$0xff]   ;;  %v9221_v4 = vshrl.u32 %v15281_v57, 16  ;;  %v15284_v7 = vld [vmem:[#allocation16 + $0x290] ss:$8 sps:$4 sm:$0xff]  }
 0x741   : > { %v7839_v58 = vsel %vm17906_vm13, %v7799_v61, %v7822_v28  ;;  %v7823_v17 = vrot.slane %v7801_v15, 4  ;;  %9146 = vmatprep.mubr.bf16.mxu1 %v15823_v26  ;;  %vm17911_vm13 = vmmov %vm17901_vm1  ;;  %v15289_v35 = vld [vmem:[#allocation16 + $0x114] ss:$8 sps:$4 sm:$0xff]   ;;  %v9223_v61 = vshll.u32 %v15281_v57, 16  ;;  %v15287_v28 = vld [vmem:[#allocation16 + $0x110] ss:$8 sps:$4 sm:$0xff]  }
 0x742   : > { %7873 = vst [vmem:[#allocation4 + $0xb0] sm:$0xf] %v7839_v58  ;;  %v7803_v31 = vpop.permute.xlu1 %7802  ;;  %v9230_v58 = vrot.slane %v9228_v43, 1  ;;  %v15286_v0 = vld [vmem:[#allocation16 + $0x294] ss:$8 sps:$4 sm:$0xff]  }
 0x743   : > { %v7840_v44 = vsel %vm17901_vm1, %v7801_v15, %v7823_v17  ;;  %v7824_v40 = vrot.slane %v7803_v31, 4  ;;  %v15297_v15 = vld [vmem:[#allocation16 + $0x124] ss:$8 sps:$4 sm:$0xff]   ;;  %v9225_v2 = vrot.slane %v9223_v61, 1  ;;  %v15324_v57 = vld [vmem:[#allocation16 + $0x160] ss:$8 sps:$4 sm:$0xff]  }
 0x744   : > { %7874 = vst [vmem:[#allocation4 + $0xb4] sm:$0xf] %v7840_v44  ;;  %v7805_v42 = vpop.permute.xlu0 %7804  ;;  %v15290_v17 = vld [vmem:[#allocation4 + $0x10] sm:$0xff]   ;;  %v15274_v44 = vld [vmem:[#allocation4 + $0x8] sm:$0xff]  }
 0x745   : > { %v7841_v46 = vsel %vm17907_vm2, %v7803_v31, %v7824_v40  ;;  %v7825_v24 = vrot.slane %v7805_v42, 4  ;;  %vm17912_vm2 = vmmov %vm17909_vm3  ;;  %v15295_v31 = vld [vmem:[#allocation16 + $0x120] ss:$8 sps:$4 sm:$0xff]   ;;  %v15305_v40 = vld [vmem:[#allocation16 + $0x134] ss:$8 sps:$4 sm:$0xff]   ;;  %v9226_v6 = vor.u32 %v9225_v2, %v9221_v4 }
 0x746   : > { %7875 = vst [vmem:[#allocation4 + $0xb8] sm:$0xf] %v7841_v46  ;;  %v7807_v8 = vpop.permute.xlu1 %7806  ;;  %8166 = vmatmul.mubr.bf16.gmra.mrb[80].mxu0 %v15250_v18  ;;  %v8967_v47 = vsel %vm17912_vm2, %v8962_v30, %v8966_v5  ;;  %vm17914_vm3 = vmmov %vm17912_vm2  ;;  %v9236_v46 = vshll.u32 %v15290_v17, 16  ;;  %v15303_v18 = vld [vmem:[#allocation16 + $0x130] ss:$8 sps:$4 sm:$0xff]   ;;  %v15314_v4 = vld [vmem:[#allocation4 + $0x28] sm:$0xff]  }
 0x747   : > { %v7842_v32 = vsel %vm17908_vm6, %v7805_v42, %v7825_v24  ;;  %v7826_v19 = vrot.slane %v7807_v8, 4  ;;  %8175 = vmatprep.mubr.bf16.mxu0 %v15823_v26  ;;  %vm17913_vm6 = vmmov %vm17912_vm2  ;;  %v15275_v42 = vld [vmem:[#allocation16 + $0x280] ss:$8 sps:$4 sm:$0xff]   ;;  %v9231_v27 = vsel %vm17914_vm3, %v9226_v6, %v9230_v58  ;;  %v17321_v24 = vld [vmem:[#allocation4 + $0x18] sm:$0xff]  }
 0x748   : > { %7876 = vst [vmem:[#allocation4 + $0xbc] sm:$0xf] %v7842_v32  ;;  %v7809_v36 = vpop.permute.xlu0 %7808  ;;  %9147 = vmatmul.mubr.bf16.gmra.mrb[84].mxu1 %v8959_v10  ;;  %v8975_v12 = vsel %vm17913_vm6, %v8970_v62, %v8974_v56  ;;  %v15283_v32 = vld [vmem:[#allocation4 + $0x10] sm:$0xff]   ;;  %v9238_v10 = vrot.slane %v9236_v46, 1  ;;  %v9244_v41 = vshll.u32 %v17321_v24, 16 }
 0x749   : > { %v7843_v29 = vsel %vm17910_vm14, %v7807_v8, %v7826_v19  ;;  %v7827_v60 = vrot.slane %v7809_v36, 4  ;;  %9156 = vmatprep.mubr.bf16.mxu1 %v15823_v26  ;;  %v15313_v8 = vld [vmem:[#allocation16 + $0x144] ss:$8 sps:$4 sm:$0xff]   ;;  %vm17915_vm14 = vmmov %vm17912_vm2  ;;  %v15319_v5 = vld [vmem:[#allocation16 + $0x150] ss:$8 sps:$4 sm:$0xff]  }
 0x74a   : > { %7877 = vst [vmem:[#allocation4 + $0xc0] sm:$0xf] %v7843_v29  ;;  %v7811_v21 = vpop.permute.xlu1 %7810  ;;  %v15294_v19 = vld [vmem:[#allocation16 + $0x2a4] ss:$8 sps:$4 sm:$0xff]   ;;  %v15321_v29 = vld [vmem:[#allocation16 + $0x154] ss:$8 sps:$4 sm:$0xff]  }
 0x74b   : > { %v7844_v13 = vsel %vm17911_vm13, %v7809_v36, %v7827_v60  ;;  %v7828_v22 = vrot.slane %v7811_v21, 4  ;;  %v9232_v36 = vshrl.u32 %v15282_v55, 16  ;;  %v15300_v30 = vld [vmem:[#allocation16 + $0x2b0] ss:$8 sps:$4 sm:$0xff]   ;;  %v15310_v39 = vld [vmem:[#allocation16 + $0x2c4] ss:$8 sps:$4 sm:$0xff]   ;;  %vm17916_vm13 = vmmov %vm17912_vm2 }
 0x74c   : > { %7878 = vst [vmem:[#allocation4 + $0xc4] sm:$0xf] %v7844_v13  ;;  %v15302_v13 = vld [vmem:[#allocation16 + $0x2b4] ss:$8 sps:$4 sm:$0xff]   ;;  %v15308_v56 = vld [vmem:[#allocation16 + $0x2c0] ss:$8 sps:$4 sm:$0xff]  }
 0x74d   : > { %v7845_v48 = vsel %vm17901_vm1, %v7811_v21, %v7828_v22  ;;  %v9234_v60 = vor.u32 %v9232_v36, %v9230_v58  ;;  %v15292_v21 = vld [vmem:[#allocation16 + $0x2a0] ss:$8 sps:$4 sm:$0xff]   ;;  %v15333_v55 = vld [vmem:[#allocation16 + $0x174] ss:$8 sps:$4 sm:$0xff]   ;;  %v15331_v61 = vld [vmem:[#allocation16 + $0x170] ss:$8 sps:$4 sm:$0xff]  }
 0x74e   : > { %7879 = vst [vmem:[#allocation4 + $0xc8] sm:$0x1] %v7845_v48  ;;  %8176 = vmatmul.mubr.bf16.gmra.mrb[84].mxu0 %v15258_v63  ;;  %v9240_v63 = vshrl.u32 %v15290_v17, 16  ;;  %v9246_v48 = vrot.slane %v9244_v41, 1  ;;  %v15347_v43 = vld [vmem:[#allocation16 + $0x384] ss:$8 sps:$4 sm:$0xff]   ;;  %vm17917_vm1 = vmmov %vm17912_vm2 }
 0x74f   : > { %8346 = vmatprep.mubr.bf16.mxu0 %v15823_v26  ;;  %v9239_v22 = vsel %vm17915_vm14, %v9234_v60, %v9238_v10  ;;  %v15299_v58 = vld [vmem:[#allocation4 + $0x20] sm:$0xff]   ;;  %v15335_v6 = vld [vmem:[#allocation16 + $0x2f0] ss:$8 sps:$4 sm:$0xff]   ;;  %vm17918_vm2 = vmmov %vm17917_vm1 }
 0x750   : > { %9157 = vmatmul.mubr.bf16.gmra.mrb[88].mxu1 %v8967_v47  ;;  %v15306_v47 = vld [vmem:[#allocation4 + $0x20] sm:$0xff]   ;;  %v9242_v62 = vor.u32 %v9240_v63, %v9238_v10  ;;  %v15330_v10 = vld [vmem:[#allocation4 + $0x38] sm:$0xff]   ;;  %vm17919_vm6 = vmmov %vm17917_vm1 }
 0x751   : > { %9166 = vmatprep.mubr.bf16.mxu1 %v15823_v26  ;;  %v15323_v63 = vld [vmem:[#allocation4 + $0x38] sm:$0xff]   ;;  %vm17920_vm3 = vmmov %vm17917_vm1 }
 0x752   : > { %vm17921_vm14 = vmmov %vm17917_vm1 }
 0x756   : > { %8347 = vmatmul.mubr.bf16.vlgmr.msra.gmra.mrb[56].mxu0 %v15269_v53  ;;  %v9247_v53 = vsel %vm17916_vm13, %v9242_v62, %v9246_v48  ;;  %v15334_v62 = vld [vmem:[#allocation4 + $0x88] sm:$0xff]   ;;  %vm17922_vm13 = vmmov %vm17917_vm1 }
 0x757   : > { %8356 = vmatprep.mubr.bf16.mxu0 %v15823_v26  ;;  %8589 = vmatpush1.bf16.msra.mxu0 %v15278_v25  ;;  %v15318_v25 = vld [vmem:[#allocation16 + $0x2d4] ss:$8 sps:$4 sm:$0xff]  }
 0x758   : > { %9167 = vmatmul.mubr.bf16.gmra.mrb[92].mxu1 %v8975_v12  ;;  %8590 = vmatprep.subr.bf16.mxu0 %v15289_v35  ;;  %v9252_v35 = vshll.u32 %v15306_v47, 16  ;;  %v15316_v12 = vld [vmem:[#allocation16 + $0x2d0] ss:$8 sps:$4 sm:$0xff]  }
 0x759   : > { %9408 = vmatprep.mubr.bf16.mxu1 %v15823_v26 }
 0x75a   : > { %v9254_v2 = vrot.slane %v9252_v35, 1 }
 0x75b   : > { %8591 = vmatpush1.bf16.msra.mxu0 %v15287_v28  ;;  %v15329_v28 = vld [vmem:[#allocation16 + $0x2e4] ss:$8 sps:$4 sm:$0xff]  }
 0x75c   : > { %8592 = vmatprep.subr.bf16.mxu0 %v15297_v15  ;;  %v9248_v15 = vshrl.u32 %v17321_v24, 16  ;;  %v15322_v24 = vld [vmem:[#allocation4 + $0x30] sm:$0xff]  }
 0x75d   : > { %v9272_v41 = vshrl.u32 %v15322_v24, 16 }
 0x75e   : > { %8357 = vmatmul.mubr.bf16.gmra.mrb[60].mxu0 %v15274_v44  ;;  %v9250_v17 = vor.u32 %v9248_v15, %v9246_v48  ;;  %v15337_v44 = vld [vmem:[#allocation16 + $0x2f4] ss:$8 sps:$4 sm:$0xff]  }
 0x75f   : > { %8366 = vmatprep.mubr.bf16.mxu0 %v15823_v26  ;;  %8593 = vmatpush1.bf16.msra.mxu0 %v15295_v31  ;;  %v15327_v31 = vld [vmem:[#allocation16 + $0x2e0] ss:$8 sps:$4 sm:$0xff]  }
 0x760   : > { %9409 = vmatmul.mubr.bf16.vlgmr.msra.gmra.mrb[64].mxu1 %v9231_v27  ;;  %8594 = vmatprep.subr.bf16.mxu0 %v15305_v40  ;;  %v9255_v40 = vsel %vm17917_vm1, %v9250_v17, %v9254_v2  ;;  %v9256_v27 = vshrl.u32 %v15306_v47, 16  ;;  %v15343_v47 = vld [vmem:[#allocation4 + $0x88] sm:$0xff]   ;;  %v15371_v17 = vld [vmem:[#allocation16 + $0x3b4] ss:$8 sps:$4 sm:$0xff]  }
 0x761   : > { %9723 = vmatpush1.bf16.msra.mxu1 %v15275_v42  ;;  %9418 = vmatprep.mubr.bf16.mxu1 %v15823_v26  ;;  %v9260_v42 = vshll.u32 %v15314_v4, 16 }
 0x762   : > { %9724 = vmatprep.subr.bf16.mxu1 %v15286_v0  ;;  %v15342_v0 = vld [vmem:[#allocation16 + $0x504] ss:$8 sps:$4 sm:$0xff]  }
 0x763   : > { %8595 = vmatpush1.bf16.msra.mxu0 %v15303_v18  ;;  %v9262_v46 = vrot.slane %v9260_v42, 1  ;;  %v15307_v18 = vld [vmem:[#allocation4 + $0x28] sm:$0xff]  }
 0x764   : > { %8596 = vmatprep.subr.bf16.mxu0 %v15313_v8  ;;  %v9258_v8 = vor.u32 %v9256_v27, %v9254_v2  ;;  %v15352_v2 = vld [vmem:[#allocation4 + $0x98] sm:$0xff]   ;;  %v15379_v27 = vld [vmem:[#allocation16 + $0x3c4] ss:$8 sps:$4 sm:$0xff]  }
 0x765   : > { %9725 = vmatpush1.bf16.msra.mxu1 %v15284_v7 }
 0x766   : > { %8367 = vmatmul.mubr.bf16.gmra.mrb[64].mxu0 %v15283_v32  ;;  %9726 = vmatprep.subr.bf16.mxu1 %v15294_v19  ;;  %v9263_v7 = vsel %vm17918_vm2, %v9258_v8, %v9262_v46  ;;  %v9268_v32 = vshll.u32 %v15322_v24, 16  ;;  %v9264_v19 = vshrl.u32 %v15314_v4, 16  ;;  %v15361_v4 = vld [vmem:[#allocation16 + $0x3a0] ss:$8 sps:$4 sm:$0xff]   ;;  %v15359_v24 = vld [vmem:[#allocation16 + $0x524] ss:$8 sps:$4 sm:$0xff]   ;;  %vm17923_vm2 = vmmov %vm17917_vm1 }
 0x767   : > { %8376 = vmatprep.mubr.bf16.mxu0 %v15823_v26  ;;  %8597 = vmatpush1.bf16.msra.mxu0 %v15311_v37  ;;  %v15315_v37 = vld [vmem:[#allocation4 + $0x30] sm:$0xff]  }
 0x768   : > { %9419 = vmatmul.mubr.bf16.gmra.mrb[68].mxu1 %v9239_v22  ;;  %8598 = vmatprep.subr.bf16.mxu0 %v15321_v29  ;;  %v9270_v36 = vrot.slane %v9268_v32, 1  ;;  %v9266_v29 = vor.u32 %v9264_v19, %v9262_v46  ;;  %v15338_v22 = vld [vmem:[#allocation4 + $0x40] ss:$0 sps:$4 sm:$0x11]   ;;  %v15349_v46 = vld [vmem:[#allocation16 + $0x510] ss:$8 sps:$4 sm:$0xff]  }
 0x769   : > { %9428 = vmatprep.mubr.bf16.mxu1 %v15823_v26  ;;  %9727 = vmatpush1.bf16.msra.mxu1 %v15292_v21  ;;  %v9276_v21 = vshll.u32 %v15330_v10, 16  ;;  %v9284_v48 = vshll.u32 %v15338_v22, 16  ;;  %v15377_v32 = vld [vmem:[#allocation16 + $0x3c0] ss:$8 sps:$4 sm:$0xff]   ;;  %v15348_v19 = vld [vmem:[#allocation4 + $0x98] sm:$0xff]  }
 0x76a   : > { %9728 = vmatprep.subr.bf16.mxu1 %v15302_v13  ;;  %v9271_v60 = vsel %vm17919_vm6, %v9266_v29, %v9270_v36  ;;  %v15367_v29 = vld [vmem:[#allocation16 + $0x534] ss:$8 sps:$4 sm:$0xff]   ;;  %v15365_v22 = vld [vmem:[#allocation16 + $0x530] ss:$8 sps:$4 sm:$0xff]   ;;  %vm17924_vm6 = vmmov %vm17917_vm1 }
 0x76b   : > { %8599 = vmatpush1.bf16.msra.mxu0 %v15319_v5  ;;  %v9278_v13 = vrot.slane %v9276_v21, 1  ;;  %v9274_v5 = vor.u32 %v9272_v41, %v9270_v36  ;;  %v15387_v36 = vld [vmem:[#allocation16 + $0x3d4] ss:$8 sps:$4 sm:$0xff]   ;;  %v15385_v41 = vld [vmem:[#allocation16 + $0x3d0] ss:$8 sps:$4 sm:$0xff]  }
 0x76c   : > { %8600 = vmatprep.subr.bf16.mxu0 %v15326_v51 }
 0x76d   : > { %9729 = vmatpush1.bf16.msra.mxu1 %v15300_v30  ;;  %v9279_v51 = vsel %vm17920_vm3, %v9274_v5, %v9278_v13  ;;  %v9280_v30 = vshrl.u32 %v15330_v10, 16  ;;  %v9586_v5 = vshrl.u32 %v15352_v2, 16  ;;  %vm17925_vm3 = vmmov %vm17917_vm1 }
 0x76e   : > { %8377 = vmatmul.mubr.bf16.gmra.mrb[68].mxu0 %v15291_v38  ;;  %9730 = vmatprep.subr.bf16.mxu1 %v15310_v39  ;;  %v9286_v39 = vrot.slane %v9284_v48, 1  ;;  %v15368_v48 = vld [vmem:[#allocation4 + $0xa8] sm:$0xff]  }
 0x76f   : > { %8386 = vmatprep.mubr.bf16.mxu0 %v15823_v26  ;;  %8601 = vmatpush1.bf16.msra.mxu0 %v15324_v57  ;;  %v9282_v38 = vor.u32 %v9280_v30, %v9278_v13  ;;  %v15344_v57 = vld [vmem:[#allocation4 + $0x90] sm:$0xff]   ;;  %v15389_v30 = vld [vmem:[#allocation16 + $0x3e0] ss:$8 sps:$4 sm:$0xff]  }
 0x770   : > { %9429 = vmatmul.mubr.bf16.gmra.mrb[72].mxu1 %v9247_v53  ;;  %8602 = vmatprep.subr.bf16.mxu0 %v15333_v55  ;;  %v15345_v55 = vld [vmem:[#allocation16 + $0x380] ss:$8 sps:$4 sm:$0xff]   ;;  %v9574_v35 = vshll.u32 %v15344_v57, 16  ;;  %v15391_v13 = vld [vmem:[#allocation16 + $0x3e4] ss:$8 sps:$4 sm:$0xff]  }
 0x771   : > { %9438 = vmatprep.mubr.bf16.mxu1 %v15823_v26  ;;  %9731 = vmatpush1.bf16.msra.mxu1 %v15308_v56  ;;  %v15355_v56 = vld [vmem:[#allocation16 + $0x394] ss:$8 sps:$4 sm:$0xff]   ;;  %v9287_v53 = vsel %vm17921_vm14, %v9282_v38, %v9286_v39  ;;  %vm17926_vm14 = vmmov %vm17917_vm1 }
 0x772   : > { %9732 = vmatprep.subr.bf16.mxu1 %v15318_v25  ;;  %v9569_v25 = vshll.u32 %v15343_v47, 16  ;;  %v9576_v15 = vrot.slane %v9574_v35, 1  ;;  %v15398_v38 = vld [vmem:[#allocation16 + $0x3f4] ss:$8 sps:$4 sm:$0xff]   ;;  %v15381_v35 = vld [vmem:[#allocation16 + $0x550] ss:$8 sps:$4 sm:$0xff]  }
 0x773   : > { %8603 = vmatpush1.bf16.msra.mxu0 %v15331_v61  ;;  %v15353_v61 = vld [vmem:[#allocation16 + $0x390] ss:$8 sps:$4 sm:$0xff]  }
 0x774   : > { %10338 = vmatprep.subr.bf16.mxu0 %v15347_v43  ;;  %v15363_v43 = vld [vmem:[#allocation16 + $0x3a4] ss:$8 sps:$4 sm:$0xff]  }
 0x775   : > { %9733 = vmatpush1.bf16.msra.mxu1 %v15316_v12  ;;  %v9571_v12 = vrot.slane %v9569_v25, 1  ;;  %v15396_v25 = vld [vmem:[#allocation16 + $0x3f0] ss:$8 sps:$4 sm:$0xff]  }
 0x776   : > { %8387 = vmatmul.mubr.bf16.gmra.mrb[72].mxu0 %v15299_v58  ;;  %9734 = vmatprep.subr.bf16.mxu1 %v15329_v28  ;;  %v9567_v28 = vshrl.u32 %v15343_v47, 16  ;;  %v15339_v58 = vld [vmem:[#allocation4 + $0x90] sm:$0xff]   ;;  %v15356_v47 = vld [vmem:[#allocation4 + $0xa0] sm:$0xff]  }
 0x777   : > { %8396 = vmatprep.mubr.bf16.mxu0 %v15823_v26 }
 0x778   : > { %9439 = vmatmul.mubr.bf16.gmra.mrb[76].mxu1 %v9255_v40  ;;  %v15351_v40 = vld [vmem:[#allocation16 + $0x514] ss:$8 sps:$4 sm:$0xff]  }
 0x779   : > { %9448 = vmatprep.mubr.bf16.mxu1 %v15823_v26  ;;  %9735 = vmatpush1.bf16.msra.mxu1 %v15327_v31  ;;  %v15340_v31 = vld [vmem:[#allocation16 + $0x500] ss:$8 sps:$4 sm:$0xff]  }
 0x77a   : > { %9736 = vmatprep.subr.bf16.mxu1 %v15337_v44  ;;  %v9572_v44 = vor.u32 %v9571_v12, %v9567_v28  ;;  %v15376_v28 = vld [vmem:[#allocation4 + $0xb0] sm:$0xff]  }
 0x77c   : > { %v9577_v42 = vsel %vm17922_vm13, %v9572_v44, %v9576_v15  ;;  %v15401_v44 = vld [vmem:[#allocation16 + $0x570] ss:$8 sps:$4 sm:$0xff]   ;;  %vm17927_vm13 = vmmov %vm17917_vm1 }
 0x77d   : > { %9737 = vmatpush1.bf16.msra.mxu1 %v15335_v6  ;;  %v9582_v6 = vshll.u32 %v15352_v2, 16 }
 0x77e   : > { %8397 = vmatmul.mubr.bf16.gmra.mrb[76].mxu0 %v15307_v18  ;;  %11389 = vmatprep.subr.bf16.mxu1 %v15342_v0  ;;  %v15369_v0 = vld [vmem:[#allocation16 + $0x3b0] ss:$8 sps:$4 sm:$0xff]   ;;  %v9578_v18 = vshrl.u32 %v15344_v57, 16  ;;  %v15373_v57 = vld [vmem:[#allocation16 + $0x540] ss:$8 sps:$4 sm:$0xff]  }
 0x77f   : > { %8406 = vmatprep.mubr.bf16.mxu0 %v15823_v26  ;;  %v9584_v8 = vrot.slane %v9582_v6, 1 }
 0x780   : > { %9449 = vmatmul.mubr.bf16.gmra.mrb[80].mxu1 %v9263_v7  ;;  %v15360_v7 = vld [vmem:[#allocation4 + $0xa0] sm:$0xff]   ;;  %v9580_v10 = vor.u32 %v9578_v18, %v9576_v15  ;;  %v15364_v15 = vld [vmem:[#allocation4 + $0xa8] sm:$0xff]  }
 0x781   : > { %9458 = vmatprep.mubr.bf16.mxu1 %v15823_v26  ;;  %v9590_v21 = vshll.u32 %v15360_v7, 16  ;;  %v9588_v39 = vor.u32 %v9586_v5, %v9584_v8 }
 0x786   : > { %8407 = vmatmul.mubr.bf16.gmra.mrb[80].mxu0 %v15315_v37  ;;  %v15357_v37 = vld [vmem:[#allocation16 + $0x520] ss:$8 sps:$4 sm:$0xff]  }
 0x787   : > { %8416 = vmatprep.mubr.bf16.mxu0 %v15823_v26 }
 0x788   : > { %9459 = vmatmul.mubr.bf16.gmra.mrb[84].mxu1 %v9271_v60  ;;  %v9585_v60 = vsel %vm17917_vm1, %v9580_v10, %v9584_v8  ;;  %v9610_v8 = vshrl.u32 %v15376_v28, 16 }
 0x789   : > { %9468 = vmatprep.mubr.bf16.mxu1 %v15823_v26 }
 0x78e   : > { %8417 = vmatmul.mubr.bf16.gmra.mrb[84].mxu0 %v15323_v63  ;;  %v15375_v63 = vld [vmem:[#allocation16 + $0x544] ss:$8 sps:$4 sm:$0xff]  }
 0x78f   : > { %8620 = vmatprep.mubr.bf16.mxu0 %v15823_v26 }
 0x790   : > { %9469 = vmatmul.mubr.bf16.gmra.mrb[88].mxu1 %v9279_v51  ;;  %v9592_v51 = vrot.slane %v9590_v21, 1 }
 0x791   : > { %9478 = vmatprep.mubr.bf16.mxu1 %v15823_v26 }
 0x796   : > { %8621 = vmatmul.mubr.bf16.vlgmr.msra.gmra.mrb[56].mxu0 %v15334_v62  ;;  %v9593_v62 = vsel %vm17923_vm2, %v9588_v39, %v9592_v51  ;;  %vm17928_vm2 = vmmov %vm17917_vm1 }
 0x797   : > { %8630 = vmatprep.mubr.bf16.mxu0 %v15823_v26  ;;  %10339 = vmatpush1.bf16.msra.mxu0 %v15345_v55  ;;  %v15383_v55 = vld [vmem:[#allocation16 + $0x554] ss:$8 sps:$4 sm:$0xff]  }
 0x798   : > { %9479 = vmatmul.mubr.bf16.gmra.mrb[92].mxu1 %v9287_v53  ;;  %10340 = vmatprep.subr.bf16.mxu0 %v15355_v56  ;;  %v9598_v56 = vshll.u32 %v15368_v48, 16  ;;  %v15411_v53 = vld [vmem:[#allocation16 + $0x304] ss:$8 sps:$4 sm:$0xff]  }
 0x799   : > { %9754 = vmatprep.mubr.bf16.mxu1 %v15823_v26 }
 0x79a   : > { %v9600_v12 = vrot.slane %v9598_v56, 1 }
 0x79b   : > { %10341 = vmatpush1.bf16.msra.mxu0 %v15353_v61  ;;  %v15394_v61 = vld [vmem:[#allocation16 + $0x564] ss:$8 sps:$4 sm:$0xff]  }
 0x79c   : > { %10342 = vmatprep.subr.bf16.mxu0 %v15363_v43  ;;  %v9594_v43 = vshrl.u32 %v15360_v7, 16 }
 0x79e   : > { %8631 = vmatmul.mubr.bf16.gmra.mrb[60].mxu0 %v15339_v58  ;;  %v9596_v2 = vor.u32 %v9594_v43, %v9592_v51  ;;  %v15403_v58 = vld [vmem:[#allocation16 + $0x574] ss:$8 sps:$4 sm:$0xff]  }
 0x79f   : > { %8640 = vmatprep.mubr.bf16.mxu0 %v15823_v26  ;;  %10343 = vmatpush1.bf16.msra.mxu0 %v15361_v4  ;;  %v15392_v4 = vld [vmem:[#allocation16 + $0x560] ss:$8 sps:$4 sm:$0xff]  }
 0x7a0   : > { %9755 = vmatmul.mubr.bf16.vlgmr.msra.gmra.mrb[64].mxu1 %v9577_v42  ;;  %10344 = vmatprep.subr.bf16.mxu0 %v15371_v17  ;;  %v9601_v17 = vsel %vm17924_vm6, %v9596_v2, %v9600_v12  ;;  %v9602_v42 = vshrl.u32 %v15368_v48, 16  ;;  %v15428_v2 = vld [vmem:[#allocation16 + $0x324] ss:$8 sps:$4 sm:$0xff]   ;;  %vm17929_vm6 = vmmov %vm17917_vm1 }
 0x7a1   : > { %11390 = vmatpush1.bf16.msra.mxu1 %v15340_v31  ;;  %9764 = vmatprep.mubr.bf16.mxu1 %v15823_v26  ;;  %v9606_v31 = vshll.u32 %v15376_v28, 16  ;;  %v15413_v28 = vld [vmem:[#allocation4 + $0x4c] sm:$0xff]  }
 0x7a2   : > { %11391 = vmatprep.subr.bf16.mxu1 %v15351_v40  ;;  %v15408_v40 = vld [vmem:[#allocation16 + $0x484] ss:$8 sps:$4 sm:$0xff]  }
 0x7a3   : > { %10345 = vmatpush1.bf16.msra.mxu0 %v15369_v0  ;;  %v9608_v6 = vrot.slane %v9606_v31, 1  ;;  %v15384_v0 = vld [vmem:[#allocation4 + $0xb8] sm:$0xff]  }
 0x7a4   : > { %10346 = vmatprep.subr.bf16.mxu0 %v15379_v27  ;;  %v15372_v27 = vld [vmem:[#allocation4 + $0xb0] sm:$0xff]   ;;  %v9614_v18 = vshll.u32 %v15384_v0, 16  ;;  %v9618_v21 = vshrl.u32 %v15384_v0, 16  ;;  %v15414_v31 = vld [vmem:[#allocation4 + $0x5c] sm:$0xff]  }
 0x7a5   : > { %11392 = vmatpush1.bf16.msra.mxu1 %v15349_v46  ;;  %v9604_v46 = vor.u32 %v9602_v42, %v9600_v12  ;;  %v15426_v42 = vld [vmem:[#allocation16 + $0x320] ss:$8 sps:$4 sm:$0xff]  }
 0x7a6   : > { %8641 = vmatmul.mubr.bf16.gmra.mrb[64].mxu0 %v15348_v19  ;;  %11393 = vmatprep.subr.bf16.mxu1 %v15359_v24  ;;  %v9616_v7 = vrot.slane %v9614_v18, 1  ;;  %v15380_v19 = vld [vmem:[#allocation4 + $0xb8] sm:$0xff]  }
 0x7a7   : > { %8650 = vmatprep.mubr.bf16.mxu0 %v15823_v26  ;;  %10347 = vmatpush1.bf16.msra.mxu0 %v15377_v32  ;;  %v9609_v24 = vsel %vm17925_vm3, %v9604_v46, %v9608_v6  ;;  %v15395_v32 = vld [vmem:[#allocation4 + $0xc0] sm:$0xff]   ;;  %vm17930_vm3 = vcmask 1046528  }
 0x7a8   : > { %9765 = vmatmul.mubr.bf16.gmra.mrb[68].mxu1 %v9585_v60  ;;  %10348 = vmatprep.subr.bf16.mxu0 %v15387_v36  ;;  %v9612_v36 = vor.u32 %v9610_v8, %v9608_v6  ;;  %v15400_v60 = vld [vmem:[#allocation4 + $0x4c] sm:$0xff]   ;;  %v9620_v5 = vor.u32 %v9618_v21, %v9616_v7  ;;  %v15436_v6 = vld [vmem:[#allocation16 + $0x334] ss:$8 sps:$4 sm:$0xff]  }
 0x7a9   : > { %9774 = vmatprep.mubr.bf16.mxu1 %v15823_v26  ;;  %11394 = vmatpush1.bf16.msra.mxu1 %v15357_v37  ;;  %v9622_v37 = vshll.u32 %v15395_v32, 16  ;;  %v10190_v51 = vshll.u32 %v15400_v60, 16  ;;  %v15417_v18 = vld [vmem:[#allocation16 + $0x494] ss:$8 sps:$4 sm:$0xff]  }
 0x7aa   : > { %11395 = vmatprep.subr.bf16.mxu1 %v15367_v29  ;;  %v9617_v10 = vsel %vm17926_vm14, %v9612_v36, %v9616_v7  ;;  %v15399_v29 = vld [vmem:[#allocation4 + $0x44] sm:$0xff]   ;;  %v15421_v7 = vld [vmem:[#allocation4 + $0x54] sm:$0xff]   ;;  %vm17931_vm14 = vmmov %vm17917_vm1 }
 0x7ab   : > { %10349 = vmatpush1.bf16.msra.mxu0 %v15385_v41  ;;  %v9624_v41 = vrot.slane %v9622_v37, 1  ;;  %v10192_v39 = vrot.slane %v10190_v51, 1  ;;  %v15415_v37 = vld [vmem:[#allocation16 + $0x490] ss:$8 sps:$4 sm:$0xff]   ;;  %v15423_v51 = vld [vmem:[#allocation16 + $0x4a0] ss:$8 sps:$4 sm:$0xff]  }
 0x7ac   : > { %10350 = vmatprep.subr.bf16.mxu0 %v15391_v13  ;;  %v10185_v13 = vshll.u32 %v15399_v29, 16 }
 0x7ad   : > { %11396 = vmatpush1.bf16.msra.mxu1 %v15365_v22  ;;  %v15404_v22 = vld [vmem:[#allocation4 + $0xc8] ss:$0 sps:$4 sm:$0x11]   ;;  %v9625_v48 = vsel %vm17927_vm13, %v9620_v5, %v9624_v41  ;;  %vm17932_vm13 = vmmov %vm17930_vm3 }
 0x7ae   : > { %8651 = vmatmul.mubr.bf16.gmra.mrb[68].mxu0 %v15356_v47  ;;  %11397 = vmatprep.subr.bf16.mxu1 %v15375_v63  ;;  %v15388_v63 = vld [vmem:[#allocation4 + $0xc0] sm:$0xff]   ;;  %v9630_v47 = vshll.u32 %v15404_v22, 16 }
 0x7af   : > { %8660 = vmatprep.mubr.bf16.mxu0 %v15823_v26  ;;  %10351 = vmatpush1.bf16.msra.mxu0 %v15389_v30  ;;  %v10187_v30 = vrot.slane %v10185_v13, 1  ;;  %v15442_v13 = vld [vmem:[#allocation16 + $0x340] ss:$8 sps:$4 sm:$0xff]   ;;  %v15452_v22 = vld [vmem:[#allocation16 + $0x354] ss:$8 sps:$4 sm:$0xff]  }
 0x7b0   : > { %9775 = vmatmul.mubr.bf16.gmra.mrb[72].mxu1 %v9593_v62  ;;  %10352 = vmatprep.subr.bf16.mxu0 %v15398_v38  ;;  %v10183_v38 = vshrl.u32 %v15399_v29, 16  ;;  %v15422_v29 = vld [vmem:[#allocation4 + $0x64] sm:$0xff]  }
 0x7b1   : > { %9784 = vmatprep.mubr.bf16.mxu1 %v15823_v26  ;;  %11398 = vmatpush1.bf16.msra.mxu1 %v15373_v57  ;;  %v9626_v57 = vshrl.u32 %v15395_v32, 16  ;;  %v15434_v32 = vld [vmem:[#allocation16 + $0x330] ss:$8 sps:$4 sm:$0xff]   ;;  %v10214_v5 = vshll.u32 %v15422_v29, 16 }
 0x7b2   : > { %11399 = vmatprep.subr.bf16.mxu1 %v15383_v55  ;;  %v15405_v55 = vld [vmem:[#allocation4 + $0x54] sm:$0xff]   ;;  %v10188_v62 = vor.u32 %v10187_v30, %v10183_v38 }
 0x7b3   : > { %10353 = vmatpush1.bf16.msra.mxu0 %v15396_v25  ;;  %v9628_v56 = vor.u32 %v9626_v57, %v9624_v41  ;;  %v9632_v25 = vrot.slane %v9630_v47, 1  ;;  %v10198_v43 = vshll.u32 %v15405_v55, 16  ;;  %v10202_v36 = vshrl.u32 %v15405_v55, 16  ;;  %v15429_v47 = vld [vmem:[#allocation4 + $0x5c] sm:$0xff]  }
 0x7b4   : > { %10650 = vmatprep.subr.bf16.mxu0 %v15411_v53  ;;  %v15409_v53 = vld [vmem:[#allocation16 + $0x300] ss:$8 sps:$4 sm:$0xff]   ;;  %v11287_v41 = vrot.slane %v15421_v7, 1  ;;  %v15450_v38 = vld [vmem:[#allocation16 + $0x350] ss:$8 sps:$4 sm:$0xff]   ;;  %v10210_v57 = vshrl.u32 %v15414_v31, 16 }
 0x7b5   : > { %11400 = vmatpush1.bf16.msra.mxu1 %v15381_v35  ;;  %v15420_v35 = vld [vmem:[#allocation16 + $0x314] ss:$8 sps:$4 sm:$0xff]   ;;  %v9633_v12 = vsel %vm17928_vm2, %v9628_v56, %v9632_v25  ;;  %v10216_v55 = vrot.slane %v10214_v5, 1  ;;  %v15431_v56 = vld [vmem:[#allocation16 + $0x4b0] ss:$8 sps:$4 sm:$0xff]   ;;  %vm17933_vm2 = vmmov %vm17930_vm3 }
 0x7b6   : > { %8661 = vmatmul.mubr.bf16.gmra.mrb[72].mxu0 %v15364_v15  ;;  %11401 = vmatprep.subr.bf16.mxu1 %v15394_v61  ;;  %v10193_v61 = vsel %vm17917_vm1, %v10188_v62, %v10192_v39  ;;  %v15418_v15 = vld [vmem:[#allocation16 + $0x310] ss:$8 sps:$4 sm:$0xff]   ;;  %v15441_v25 = vld [vmem:[#allocation16 + $0x4c4] ss:$8 sps:$4 sm:$0xff]   ;;  %v15469_v7 = vld [vmem:[#allocation16 + $0x4f4] ss:$8 sps:$4 sm:$0xff]  }
 0x7b7   : > { %8670 = vmatprep.mubr.bf16.mxu0 %v15823_v26  ;;  %v15430_v62 = vld [vmem:[#allocation4 + $0x6c] sm:$0xff]   ;;  %v15453_v5 = vld [vmem:[#allocation4 + $0x74] sm:$0xff]  }
 0x7b8   : > { %9785 = vmatmul.mubr.bf16.gmra.mrb[76].mxu1 %v9601_v17  ;;  %v15412_v17 = vld [vmem:[#allocation4 + $0x44] sm:$0xfe]  }
 0x7b9   : > { %9794 = vmatprep.mubr.bf16.mxu1 %v15823_v26  ;;  %11402 = vmatpush1.bf16.msra.mxu1 %v15392_v4  ;;  %v10194_v4 = vshrl.u32 %v15400_v60, 16  ;;  %v11284_v46 = vrot.slane %v15412_v17, 1  ;;  %v15425_v60 = vld [vmem:[#allocation16 + $0x4a4] ss:$8 sps:$4 sm:$0xff]   ;;  %v15462_v17 = vld [vmem:[#allocation16 + $0x370] ss:$8 sps:$4 sm:$0xff]  }
 0x7ba   : > { %11403 = vmatprep.subr.bf16.mxu1 %v15403_v58  ;;  %v10200_v58 = vrot.slane %v10198_v43, 1  ;;  %v15464_v43 = vld [vmem:[#allocation16 + $0x374] ss:$8 sps:$4 sm:$0xff]  }
 0x7bc   : > { %v10204_v21 = vor.u32 %v10202_v36, %v10200_v58  ;;  %v10226_v36 = vshrl.u32 %v15430_v62, 16 }
 0x7bd   : > { %11404 = vmatpush1.bf16.msra.mxu1 %v15401_v44  ;;  %v10196_v44 = vor.u32 %v10194_v4, %v10192_v39  ;;  %v15457_v39 = vld [vmem:[#allocation16 + $0x364] ss:$8 sps:$4 sm:$0xff]  }
 0x7be   : > { %8671 = vmatmul.mubr.bf16.gmra.mrb[76].mxu0 %v15372_v27  ;;  %11650 = vmatprep.subr.bf16.mxu1 %v15408_v40  ;;  %v11285_v40 = vrot.slane %v15413_v28, 1  ;;  %v15406_v27 = vld [vmem:[#allocation16 + $0x480] ss:$8 sps:$4 sm:$0xff]   ;;  %v10222_v28 = vshll.u32 %v15430_v62, 16 }
 0x7bf   : > { %8680 = vmatprep.mubr.bf16.mxu0 %v15823_v26  ;;  %v10201_v0 = vsel %vm17929_vm6, %v10196_v44, %v10200_v58  ;;  %v15437_v58 = vld [vmem:[#allocation4 + $0x64] sm:$0xff]   ;;  %v10218_v44 = vshrl.u32 %v15422_v29, 16  ;;  %vm17934_vm6 = vmmov %vm17917_vm1  ;;  %v15467_v29 = vld [vmem:[#allocation16 + $0x4f0] ss:$8 sps:$4 sm:$0xff]  }
 0x7c0   : > { %9795 = vmatmul.mubr.bf16.gmra.mrb[80].mxu1 %v9609_v24  ;;  %v10206_v24 = vshll.u32 %v15414_v31, 16  ;;  %v11286_v8 = vsel %vm17930_vm3, %v11284_v46, %v11285_v40  ;;  %v11288_v30 = vsel %vm17932_vm13, %v11285_v40, %v11287_v41  ;;  %v15477_v31 = vld [vmem:[#allocation16 + $0x404] ss:$8 sps:$4 sm:$0xff]   ;;  %v10224_v40 = vrot.slane %v10222_v28, 1  ;;  %vm17935_vm3 = vmmov %vm17933_vm2 }
 0x7c1   : > { %9804 = vmatprep.mubr.bf16.mxu1 %v15823_v26  ;;  %v11291_v46 = vrot.slane %v15437_v58, 1  ;;  %vm17937_vm13 = vmmov %vm17933_vm2  ;;  %v15470_v58 = vld [vmem:[#allocation4 + $0x84] ss:$0 sps:$4 sm:$0x11]  }
 0x7c6   : > { %8681 = vmatmul.mubr.bf16.gmra.mrb[80].mxu0 %v15380_v19  ;;  %v15444_v19 = vld [vmem:[#allocation16 + $0x344] ss:$8 sps:$4 sm:$0xff]  }
 0x7c7   : > { %8690 = vmatprep.mubr.bf16.mxu0 %v15823_v26 }
 0x7c8   : > { %9805 = vmatmul.mubr.bf16.gmra.mrb[84].mxu1 %v9617_v10  ;;  %v10208_v10 = vrot.slane %v10206_v24, 1 }
 0x7c9   : > { %9814 = vmatprep.mubr.bf16.mxu1 %v15823_v26 }
 0x7ce   : > { %8691 = vmatmul.mubr.bf16.gmra.mrb[84].mxu0 %v15388_v63  ;;  %v10209_v63 = vsel %vm17931_vm14, %v10204_v21, %v10208_v10  ;;  %v10228_v21 = vor.u32 %v10226_v36, %v10224_v40  ;;  %vm17936_vm14 = vmmov %vm17917_vm1  ;;  %v15478_v36 = vld [vmem:[#allocation4] sm:$0xfe]  }
 0x7cf   : > { %10370 = vmatprep.mubr.bf16.mxu0 %v15823_v26 }
 0x7d0   : > { %9815 = vmatmul.mubr.bf16.gmra.mrb[88].mxu1 %v9625_v48  ;;  %v15433_v48 = vld [vmem:[#allocation16 + $0x4b4] ss:$8 sps:$4 sm:$0xff]  }
 0x7d1   : > { %9824 = vmatprep.mubr.bf16.mxu1 %v15823_v26 }
 0x7d6   : > { %10371 = vmatmul.mubr.bf16.vlgmr.msra.gmra.mrb[88].mxu0 %v10193_v61  ;;  %v15455_v61 = vld [vmem:[#allocation16 + $0x360] ss:$8 sps:$4 sm:$0xff]  }
 0x7d7   : > { %10380 = vmatprep.mubr.bf16.mxu0 %v15823_v26  ;;  %10651 = vmatpush1.bf16.msra.mxu0 %v15409_v53  ;;  %v10212_v53 = vor.u32 %v10210_v57, %v10208_v10 }
 0x7d8   : > { %9825 = vmatmul.mubr.bf16.gmra.mrb[92].mxu1 %v9633_v12  ;;  %10652 = vmatprep.subr.bf16.mxu0 %v15420_v35  ;;  %v11289_v35 = vrot.slane %v15429_v47, 1 }
 0x7d9   : > { %11421 = vmatprep.mubr.bf16.mxu1 %v15823_v26  ;;  %v10217_v12 = vsel %vm17917_vm1, %v10212_v53, %v10216_v55 }
 0x7da   : > { %v11290_v4 = vsel %vm17933_vm2, %v11287_v41, %v11289_v35 }
 0x7db   : > { %10653 = vmatpush1.bf16.msra.mxu0 %v15418_v15  ;;  %v15439_v15 = vld [vmem:[#allocation16 + $0x4c0] ss:$8 sps:$4 sm:$0xff]  }
 0x7dc   : > { %10654 = vmatprep.subr.bf16.mxu0 %v15428_v2  ;;  %v15449_v2 = vld [vmem:[#allocation16 + $0x4d4] ss:$8 sps:$4 sm:$0xff]  }
 0x7de   : > { %10381 = vmatmul.mubr.bf16.gmra.mrb[92].mxu0 %v10201_v0  ;;  %v15460_v0 = vld [vmem:[#allocation16 + $0x4e4] ss:$8 sps:$4 sm:$0xff]  }
 0x7df   : > { %10390 = vmatprep.mubr.bf16.mxu0 %v15823_v26  ;;  %10655 = vmatpush1.bf16.msra.mxu0 %v15426_v42  ;;  %v15438_v42 = vld [vmem:[#allocation4 + $0x74] sm:$0xff]  }
 0x7e0   : > { %11422 = vmatmul.mubr.bf16.vlgmr.msra.gmra.mrb[96].mxu1 %v11286_v8  ;;  %10656 = vmatprep.subr.bf16.mxu0 %v15436_v6  ;;  %v15447_v6 = vld [vmem:[#allocation16 + $0x4d0] ss:$8 sps:$4 sm:$0xff]   ;;  %v15458_v8 = vld [vmem:[#allocation16 + $0x4e0] ss:$8 sps:$4 sm:$0xff]  }
 0x7e1   : > { %11651 = vmatpush1.bf16.msra.mxu1 %v15406_v27  ;;  %11431 = vmatprep.mubr.bf16.mxu1 %v15823_v26  ;;  %v10220_v27 = vor.u32 %v10218_v44, %v10216_v55  ;;  %v15471_v44 = vld [vmem:[#allocation4 + $0x10] sm:$0xff]  }
 0x7e2   : > { %11652 = vmatprep.subr.bf16.mxu1 %v15417_v18  ;;  %v10230_v18 = vshll.u32 %v15438_v42, 16 }
 0x7e3   : > { %10657 = vmatpush1.bf16.msra.mxu0 %v15434_v32  ;;  %v10225_v24 = vsel %vm17934_vm6, %v10220_v27, %v10224_v40  ;;  %v11292_v32 = vsel %vm17935_vm3, %v11289_v35, %v11291_v46  ;;  %vm17938_vm6 = vmmov %vm17917_vm1 }
 0x7e4   : > { %10658 = vmatprep.subr.bf16.mxu0 %v15444_v19  ;;  %v15445_v19 = vld [vmem:[#allocation4 + $0x6c] sm:$0xff]   ;;  %v10232_v10 = vrot.slane %v10230_v18, 1  ;;  %vm17939_vm3 = vmmov %vm17933_vm2 }
 0x7e5   : > { %11653 = vmatpush1.bf16.msra.mxu1 %v15415_v37  ;;  %v15446_v37 = vld [vmem:[#allocation4 + $0x7c] sm:$0xff]   ;;  %v11293_v41 = vrot.slane %v15445_v19, 1  ;;  %v15479_v18 = vld [vmem:[#allocation4 + $0x8] sm:$0xff]  }
 0x7e6   : > { %10391 = vmatmul.mubr.bf16.gmra.mrb[96].mxu0 %v10209_v63  ;;  %11654 = vmatprep.subr.bf16.mxu1 %v15425_v60  ;;  %v15474_v60 = vld [vmem:[#allocation16 + $0x584] ss:$8 sps:$4 sm:$0xff]   ;;  %v10242_v62 = vshrl.u32 %v15446_v37, 16 }
 0x7e7   : > { %10400 = vmatprep.mubr.bf16.mxu0 %v15823_v26  ;;  %10659 = vmatpush1.bf16.msra.mxu0 %v15442_v13  ;;  %v10233_v13 = vsel %vm17936_vm14, %v10228_v21, %v10232_v10  ;;  %v11294_v63 = vsel %vm17937_vm13, %v11291_v46, %v11293_v41  ;;  %vm17940_vm14 = vmmov %vm17917_vm1  ;;  %v10510_v46 = vshll.u32 %v15471_v44, 16  ;;  %v15502_v21 = vld [vmem:[#allocation16 + $0x434] ss:$8 sps:$4 sm:$0xff]  }
 0x7e8   : > { %11432 = vmatmul.mubr.bf16.gmra.mrb[100].mxu1 %v11288_v30  ;;  %10660 = vmatprep.subr.bf16.mxu0 %v15452_v22  ;;  %v10238_v22 = vshll.u32 %v15446_v37, 16  ;;  %v15454_v30 = vld [vmem:[#allocation4 + $0x84] ss:$0 sps:$4 sm:$0x11]   ;;  %vm17941_vm13 = vmmov %vm17933_vm2 }
 0x7e9   : > { %11441 = vmatprep.mubr.bf16.mxu1 %v15823_v26  ;;  %11655 = vmatpush1.bf16.msra.mxu1 %v15423_v51  ;;  %v10234_v51 = vshrl.u32 %v15438_v42, 16  ;;  %v10246_v57 = vshll.u32 %v15454_v30, 16  ;;  %v11299_v42 = vrot.slane %v15470_v58, 1  ;;  %v10512_v19 = vrot.slane %v10510_v46, 1  ;;  %v15500_v30 = vld [vmem:[#allocation16 + $0x430] ss:$8 sps:$4 sm:$0xff]  }
 0x7ea   : > { %11656 = vmatprep.subr.bf16.mxu1 %v15433_v48  ;;  %v10240_v48 = vrot.slane %v10238_v22, 1  ;;  %v11545_v22 = vrot.slane %v15478_v36, 1  ;;  %v15523_v58 = vld [vmem:[#allocation16 + $0x464] ss:$8 sps:$4 sm:$0xff]   ;;  %v15530_v46 = vld [vmem:[#allocation16 + $0x474] ss:$8 sps:$4 sm:$0xff]  }
 0x7eb   : > { %10661 = vmatpush1.bf16.msra.mxu0 %v15450_v38  ;;  %v10236_v47 = vor.u32 %v10234_v51, %v10232_v10  ;;  %v11295_v38 = vrot.slane %v15453_v5, 1  ;;  %v10248_v35 = vrot.slane %v10246_v57, 1  ;;  %v15480_v10 = vld [vmem:[#allocation4 + $0x18] sm:$0xff]  }
 0x7ec   : > { %10662 = vmatprep.subr.bf16.mxu0 %v15457_v39  ;;  %v10244_v53 = vor.u32 %v10242_v62, %v10240_v48  ;;  %v15483_v5 = vld [vmem:[#allocation16 + $0x594] ss:$8 sps:$4 sm:$0xff]   ;;  %v15481_v57 = vld [vmem:[#allocation16 + $0x590] ss:$8 sps:$4 sm:$0xff]   ;;  %v15491_v62 = vld [vmem:[#allocation16 + $0x5a4] ss:$8 sps:$4 sm:$0xff]  }
 0x7ed   : > { %11657 = vmatpush1.bf16.msra.mxu1 %v15431_v56  ;;  %v10241_v39 = vsel %vm17917_vm1, %v10236_v47, %v10240_v48  ;;  %v11296_v55 = vsel %vm17933_vm2, %v11293_v41, %v11295_v38  ;;  %v15461_v56 = vld [vmem:[#allocation4 + $0x7c] sm:$0xff]   ;;  %v15487_v48 = vld [vmem:[#allocation4 + $0x10] sm:$0xff]  }
 0x7ee   : > { %10401 = vmatmul.mubr.bf16.gmra.mrb[100].mxu0 %v10217_v12  ;;  %11658 = vmatprep.subr.bf16.mxu1 %v15441_v25  ;;  %v15465_v25 = vld [vmem:[#allocation4] sm:$0xff]   ;;  %v10249_v28 = vsel %vm17938_vm6, %v10244_v53, %v10248_v35  ;;  %vm17942_vm6 = vmmov %vm17917_vm1  ;;  %v15528_v36 = vld [vmem:[#allocation16 + $0x470] ss:$8 sps:$4 sm:$0xff]  }
 0x7ef   : > { %10410 = vmatprep.mubr.bf16.mxu0 %v15823_v26  ;;  %10663 = vmatpush1.bf16.msra.mxu0 %v15455_v61  ;;  %v15466_v61 = vld [vmem:[#allocation4 + $0x8] sm:$0xff]   ;;  %v10497_v12 = vshll.u32 %v15465_v25, 16  ;;  %v15518_v35 = vld [vmem:[#allocation16 + $0x454] ss:$8 sps:$4 sm:$0xff]  }
 0x7f0   : > { %11442 = vmatmul.mubr.bf16.gmra.mrb[104].mxu1 %v11290_v4  ;;  %10664 = vmatprep.subr.bf16.mxu0 %v15464_v43  ;;  %v11297_v43 = vrot.slane %v15461_v56, 1  ;;  %v15510_v47 = vld [vmem:[#allocation16 + $0x444] ss:$8 sps:$4 sm:$0xff]   ;;  %v15508_v53 = vld [vmem:[#allocation16 + $0x440] ss:$8 sps:$4 sm:$0xff]  }
 0x7f1   : > { %11451 = vmatprep.mubr.bf16.mxu1 %v15823_v26  ;;  %11659 = vmatpush1.bf16.msra.mxu1 %v15439_v15  ;;  %v10502_v15 = vshll.u32 %v15466_v61, 16  ;;  %v10499_v4 = vrot.slane %v10497_v12, 1  ;;  %v15489_v12 = vld [vmem:[#allocation16 + $0x5a0] ss:$8 sps:$4 sm:$0xff]  }
 0x7f2   : > { %11660 = vmatprep.subr.bf16.mxu1 %v15449_v2  ;;  %v11298_v2 = vsel %vm17939_vm3, %v11295_v38, %v11297_v43  ;;  %v10514_v38 = vshrl.u32 %v15471_v44, 16  ;;  %vm17943_vm3 = vmmov %vm17933_vm2  ;;  %v15496_v44 = vld [vmem:[#allocation4 + $0x28] sm:$0xff]  }
 0x7f3   : > { %10665 = vmatpush1.bf16.msra.mxu0 %v15462_v17  ;;  %v10495_v17 = vshrl.u32 %v15465_v25, 16  ;;  %v11548_v25 = vrot.slane %v15487_v48, 1 }
 0x7f4   : > { %10996 = vmatprep.subr.bf16.mxu0 %v15477_v31  ;;  %v10504_v31 = vrot.slane %v10502_v15, 1  ;;  %v10516_v56 = vor.u32 %v10514_v38, %v10512_v19 }
 0x7f5   : > { %11661 = vmatpush1.bf16.msra.mxu1 %v15447_v6  ;;  %v10500_v40 = vor.u32 %v10499_v4, %v10495_v17  ;;  %v15475_v6 = vld [vmem:[#allocation16 + $0x400] ss:$8 sps:$4 sm:$0xff]   ;;  %v15516_v4 = vld [vmem:[#allocation16 + $0x450] ss:$8 sps:$4 sm:$0xff]   ;;  %v10522_v17 = vshrl.u32 %v15480_v10, 16 }
 0x7f6   : > { %10411 = vmatmul.mubr.bf16.gmra.mrb[104].mxu0 %v10225_v24  ;;  %11662 = vmatprep.subr.bf16.mxu1 %v15460_v0  ;;  %v15486_v0 = vld [vmem:[#allocation16 + $0x414] ss:$8 sps:$4 sm:$0xff]   ;;  %v11300_v24 = vsel %vm17941_vm13, %v11297_v43, %v11299_v42  ;;  %v15507_v42 = vld [vmem:[#allocation16 + $0x5c4] ss:$8 sps:$4 sm:$0xff]   ;;  %vm17945_vm13 = vmmov %vm17933_vm2 }
 0x7f7   : > { %10420 = vmatprep.mubr.bf16.mxu0 %v15823_v26  ;;  %v10505_v27 = vsel %vm17940_vm14, %v10500_v40, %v10504_v31  ;;  %v15497_v40 = vld [vmem:[#allocation16 + $0x5b0] ss:$8 sps:$4 sm:$0xff]   ;;  %vm17944_vm14 = vmmov %vm17917_vm1 }
 0x7f8   : > { %11452 = vmatmul.mubr.bf16.gmra.mrb[108].mxu1 %v11292_v32  ;;  %v10506_v32 = vshrl.u32 %v15466_v61, 16 }
 0x7f9   : > { %11461 = vmatprep.mubr.bf16.mxu1 %v15823_v26  ;;  %11663 = vmatpush1.bf16.msra.mxu1 %v15458_v8  ;;  %v15484_v8 = vld [vmem:[#allocation16 + $0x410] ss:$8 sps:$4 sm:$0xff]  }
 0x7fa   : > { %11664 = vmatprep.subr.bf16.mxu1 %v15469_v7  ;;  %v15494_v7 = vld [vmem:[#allocation16 + $0x424] ss:$8 sps:$4 sm:$0xff]   ;;  %v10508_v37 = vor.u32 %v10506_v32, %v10504_v31 }
 0x7fc   : > { %v10513_v41 = vsel %vm17917_vm1, %v10508_v37, %v10512_v19  ;;  %v15503_v19 = vld [vmem:[#allocation4 + $0x20] sm:$0xff]  }
 0x7fd   : > { %11665 = vmatpush1.bf16.msra.mxu1 %v15467_v29  ;;  %v11546_v29 = vrot.slane %v15479_v18, 1  ;;  %v10534_v18 = vshll.u32 %v15496_v44, 16 }
 0x7fe   : > { %10421 = vmatmul.mubr.bf16.gmra.mrb[108].mxu0 %v10233_v13  ;;  %11945 = vmatprep.subr.bf16.mxu1 %v15474_v60  ;;  %v15492_v60 = vld [vmem:[#allocation16 + $0x420] ss:$8 sps:$4 sm:$0xff]  }
 0x7ff   : > { %10430 = vmatprep.mubr.bf16.mxu0 %v15823_v26  ;;  %v15472_v13 = vld [vmem:[#allocation16 + $0x580] ss:$8 sps:$4 sm:$0xff]   ;;  %v11547_v51 = vsel %vm17933_vm2, %v11545_v22, %v11546_v29  ;;  %v11549_v15 = vsel %vm17943_vm3, %v11546_v29, %v11548_v25  ;;  %v10536_v37 = vrot.slane %v10534_v18, 1  ;;  %v15504_v29 = vld [vmem:[#allocation4 + $0x30] sm:$0xff]   ;;  %vm17947_vm3 = vmmov %vm17933_vm2 }
 0x800   : > { %11462 = vmatmul.mubr.bf16.gmra.mrb[112].mxu1 %v11294_v63  ;;  %v10518_v63 = vshll.u32 %v15480_v10, 16 }
 0x801   : > { %11471 = vmatprep.mubr.bf16.mxu1 %v15823_v26 }
 0x806   : > { %10431 = vmatmul.mubr.bf16.gmra.mrb[112].mxu0 %v10241_v39  ;;  %v10520_v39 = vrot.slane %v10518_v63, 1  ;;  %v10542_v63 = vshll.u32 %v15504_v29, 16 }
 0x807   : > { %10440 = vmatprep.mubr.bf16.mxu0 %v15823_v26 }
 0x808   : > { %11472 = vmatmul.mubr.bf16.gmra.mrb[116].mxu1 %v11296_v55  ;;  %v15488_v55 = vld [vmem:[#allocation4 + $0x20] sm:$0xff]   ;;  %v10521_v61 = vsel %vm17942_vm6, %v10516_v56, %v10520_v39  ;;  %v10544_v38 = vrot.slane %v10542_v63, 1  ;;  %vm17946_vm6 = vmmov %vm17917_vm1  ;;  %v15538_v63 = vld [vmem:[#allocation4 + $0x88] sm:$0xfe]  }
 0x809   : > { %11481 = vmatprep.mubr.bf16.mxu1 %v15823_v26  ;;  %v10526_v43 = vshll.u32 %v15488_v55, 16  ;;  %v10530_v10 = vshrl.u32 %v15488_v55, 16 }
 0x80b   : > { %v10528_v31 = vrot.slane %v10526_v43, 1 }
 0x80e   : > { %10441 = vmatmul.mubr.bf16.gmra.mrb[116].mxu0 %v10249_v28  ;;  %v15499_v28 = vld [vmem:[#allocation16 + $0x5b4] ss:$8 sps:$4 sm:$0xff]  }
 0x80f   : > { %10682 = vmatprep.mubr.bf16.mxu0 %v15823_v26 }
 0x810   : > { %11482 = vmatmul.mubr.bf16.gmra.mrb[120].mxu1 %v11298_v2  ;;  %v15495_v2 = vld [vmem:[#allocation4 + $0x18] sm:$0xff]  }
 0x811   : > { %11491 = vmatprep.mubr.bf16.mxu1 %v15823_v26 }
 0x816   : > { %10683 = vmatmul.mubr.bf16.vlgmr.msra.gmra.mrb[88].mxu0 %v10505_v27  ;;  %v15521_v27 = vld [vmem:[#allocation16 + $0x460] ss:$8 sps:$4 sm:$0xff]  }
 0x817   : > { %10692 = vmatprep.mubr.bf16.mxu0 %v15823_v26  ;;  %10997 = vmatpush1.bf16.msra.mxu0 %v15475_v6  ;;  %v10524_v6 = vor.u32 %v10522_v17, %v10520_v39  ;;  %v15512_v39 = vld [vmem:[#allocation4 + $0x38] sm:$0xff]  }
 0x818   : > { %11492 = vmatmul.mubr.bf16.gmra.mrb[124].mxu1 %v11300_v24  ;;  %10998 = vmatprep.subr.bf16.mxu0 %v15486_v0  ;;  %v11550_v0 = vrot.slane %v15495_v2, 1  ;;  %v10554_v17 = vshrl.u32 %v15512_v39, 16 }
 0x819   : > { %11682 = vmatprep.mubr.bf16.mxu1 %v15823_v26  ;;  %v10529_v24 = vsel %vm17944_vm14, %v10524_v6, %v10528_v31  ;;  %vm17948_vm14 = vmmov %vm17917_vm1  ;;  %v15532_v6 = vld [vmem:[#allocation4 + $0x90] sm:$0xff]  }
 0x81a   : > { %v11551_v32 = vsel %vm17945_vm13, %v11548_v25, %v11550_v0  ;;  %v10550_v25 = vshll.u32 %v15512_v39, 16  ;;  %vm17949_vm13 = vmmov %vm17933_vm2 }
 0x81b   : > { %10999 = vmatpush1.bf16.msra.mxu0 %v15484_v8  ;;  %v15505_v8 = vld [vmem:[#allocation16 + $0x5c0] ss:$8 sps:$4 sm:$0xff]  }
 0x81c   : > { %11000 = vmatprep.subr.bf16.mxu0 %v15494_v7  ;;  %v15515_v7 = vld [vmem:[#allocation16 + $0x5d4] ss:$8 sps:$4 sm:$0xff]   ;;  %v10552_v43 = vrot.slane %v10550_v25, 1 }
 0x81e   : > { %10693 = vmatmul.mubr.bf16.gmra.mrb[92].mxu0 %v10513_v41  ;;  %v10532_v41 = vor.u32 %v10530_v10, %v10528_v31  ;;  %v15527_v31 = vld [vmem:[#allocation4 + $0x38] sm:$0xff]  }
 0x81f   : > { %10702 = vmatprep.mubr.bf16.mxu0 %v15823_v26  ;;  %11001 = vmatpush1.bf16.msra.mxu0 %v15492_v60  ;;  %v15513_v60 = vld [vmem:[#allocation16 + $0x5d0] ss:$8 sps:$4 sm:$0xff]  }
 0x820   : > { %11683 = vmatmul.mubr.bf16.vlgmr.msra.gmra.mrb[96].mxu1 %v11547_v51  ;;  %11002 = vmatprep.subr.bf16.mxu0 %v15502_v21  ;;  %v15526_v21 = vld [vmem:[#allocation16 + $0x5e4] ss:$8 sps:$4 sm:$0xff]   ;;  %v10537_v22 = vsel %vm17917_vm1, %v10532_v41, %v10536_v37  ;;  %v15535_v51 = vld [vmem:[#allocation16 + $0x5f4] ss:$8 sps:$4 sm:$0xff]  }
 0x821   : > { %11946 = vmatpush1.bf16.msra.mxu1 %v15472_v13  ;;  %11692 = vmatprep.mubr.bf16.mxu1 %v15823_v26  ;;  %v11552_v13 = vrot.slane %v15503_v19, 1  ;;  %v15539_v41 = vld [vmem:[#allocation4 + $0x90] sm:$0xff]  }
 0x822   : > { %11947 = vmatprep.subr.bf16.mxu1 %v15483_v5  ;;  %v15524_v5 = vld [vmem:[#allocation16 + $0x5e0] ss:$8 sps:$4 sm:$0xff]  }
 0x823   : > { %11003 = vmatpush1.bf16.msra.mxu0 %v15500_v30  ;;  %v11553_v48 = vsel %vm17933_vm2, %v11550_v0, %v11552_v13  ;;  %v15511_v30 = vld [vmem:[#allocation4 + $0x28] sm:$0xff]   ;;  %v11558_v0 = vrot.slane %v15527_v31, 1 }
 0x824   : > { %11004 = vmatprep.subr.bf16.mxu0 %v15510_v47  ;;  %v10538_v47 = vshrl.u32 %v15496_v44, 16  ;;  %v15531_v44 = vld [vmem:[#allocation4 + $0x88] sm:$0xff]  }
 0x825   : > { %11948 = vmatpush1.bf16.msra.mxu1 %v15481_v57  ;;  %v15533_v57 = vld [vmem:[#allocation16 + $0x5f0] ss:$8 sps:$4 sm:$0xff]  }
 0x826   : > { %10703 = vmatmul.mubr.bf16.gmra.mrb[96].mxu0 %v10521_v61  ;;  %11949 = vmatprep.subr.bf16.mxu1 %v15491_v62  ;;  %v10540_v55 = vor.u32 %v10538_v47, %v10536_v37  ;;  %v11554_v62 = vrot.slane %v15511_v30, 1  ;;  %v10546_v61 = vshrl.u32 %v15504_v29, 16  ;;  %v11840_v47 = vrot.slane %v15538_v63, 1 }
 0x827   : > { %10712 = vmatprep.mubr.bf16.mxu0 %v15823_v26  ;;  %11005 = vmatpush1.bf16.msra.mxu0 %v15508_v53 }
 0x828   : > { %11693 = vmatmul.mubr.bf16.gmra.mrb[100].mxu1 %v11549_v15  ;;  %11006 = vmatprep.subr.bf16.mxu0 %v15518_v35  ;;  %v10545_v56 = vsel %vm17946_vm6, %v10540_v55, %v10544_v38  ;;  %v11555_v53 = vsel %vm17947_vm3, %v11552_v13, %v11554_v62  ;;  %v15519_v35 = vld [vmem:[#allocation4 + $0x30] sm:$0xff]   ;;  %vm17950_vm6 = vmmov %vm17917_vm1  ;;  %v10852_v13 = vshrl.u32 %v15532_v6, 16 }
 0x829   : > { %11702 = vmatprep.mubr.bf16.mxu1 %v15823_v26  ;;  %11950 = vmatpush1.bf16.msra.mxu1 %v15489_v12  ;;  %v15520_v12 = vld [vmem:[#allocation4 + $0x40] ss:$0 sps:$4 sm:$0x11]   ;;  %v11556_v15 = vrot.slane %v15519_v35, 1  ;;  %vm17951_vm3 = vmmov %vm17933_vm2 }
 0x82a   : > { %11951 = vmatprep.subr.bf16.mxu1 %v15499_v28  ;;  %v10548_v28 = vor.u32 %v10546_v61, %v10544_v38 }
 0x82b   : > { %11007 = vmatpush1.bf16.msra.mxu0 %v15516_v4  ;;  %v10558_v4 = vshll.u32 %v15520_v12, 16  ;;  %v11559_v18 = vsel %vm17933_vm2, %v11556_v15, %v11558_v0  ;;  %v15543_v12 = vld [vmem:[#allocation4 + $0xa0] sm:$0xff]  }
 0x82c   : > { %11008 = vmatprep.subr.bf16.mxu0 %v15523_v58  ;;  %v10553_v2 = vsel %vm17948_vm14, %v10548_v28, %v10552_v43  ;;  %v11557_v58 = vsel %vm17949_vm13, %v11554_v62, %v11556_v15  ;;  %vm17952_vm14 = vmmov %vm17917_vm1 }
 0x82d   : > { %11952 = vmatpush1.bf16.msra.mxu1 %v15497_v40  ;;  %v10556_v40 = vor.u32 %v10554_v17, %v10552_v43  ;;  %vm17953_vm13 = vmmov %vm17933_vm2 }
 0x82e   : > { %10713 = vmatmul.mubr.bf16.gmra.mrb[100].mxu0 %v10529_v24  ;;  %11953 = vmatprep.subr.bf16.mxu1 %v15507_v42  ;;  %v10560_v42 = vrot.slane %v10558_v4, 1  ;;  %v10848_v24 = vshll.u32 %v15532_v6, 16  ;;  %v17444_v4 = vld [vmem:[#allocation4 + $0xb0] sm:$0xff]  }
 0x82f   : > { %10722 = vmatprep.mubr.bf16.mxu0 %v15823_v26  ;;  %11009 = vmatpush1.bf16.msra.mxu0 %v15521_v27  ;;  %v10843_v27 = vshll.u32 %v15531_v44, 16  ;;  %v10880_v6 = vshll.u32 %v17444_v4, 16 }
 0x830   : > { %11703 = vmatmul.mubr.bf16.gmra.mrb[104].mxu1 %v11551_v32  ;;  %11010 = vmatprep.subr.bf16.mxu0 %v15530_v46  ;;  %v10561_v46 = vsel %vm17917_vm1, %v10556_v40, %v10560_v42  ;;  %v10841_v32 = vshrl.u32 %v15531_v44, 16  ;;  %v10850_v19 = vrot.slane %v10848_v24, 1  ;;  %v11845_v44 = vrot.slane %v15543_v12, 1  ;;  %v9995_v24 = vld [vmem:[#allocation17] sm:$0x3] }
 0x831   : > { %11712 = vmatprep.mubr.bf16.mxu1 %v15823_v26  ;;  %11954 = vmatpush1.bf16.msra.mxu1 %v15505_v8  ;;  %v10845_v8 = vrot.slane %v10843_v27, 1  ;;  %v10884_v12 = vshrl.u32 %v17444_v4, 16 }
 0x832   : > { %11955 = vmatprep.subr.bf16.mxu1 %v15515_v7  ;;  %v15536_v7 = vld [vmem:[#allocation4 + $0x40] ss:$0 sps:$4 sm:$0x11]  }
 0x833   : > { %11011 = vmatpush1.bf16.msra.mxu0 %v15528_v36  ;;  %v15537_v36 = vld [vmem:[#allocation4 + $0x98] sm:$0xff]   ;;  %v10846_v10 = vor.u32 %v10845_v8, %v10841_v32  ;;  %v11560_v37 = vrot.slane %v15536_v7, 1  ;;  %v17452_v8 = vld [vmem:[#allocation4 + $0xa8] sm:$0xff]  }
 0x834   : > { %v10860_v55 = vshrl.u32 %v15537_v36, 16 }
 0x835   : > { %11956 = vmatpush1.bf16.msra.mxu1 %v15513_v60  ;;  %v10851_v29 = vsel %vm17950_vm6, %v10846_v10, %v10850_v19  ;;  %v10856_v60 = vshll.u32 %v15537_v36, 16  ;;  %vm17954_vm6 = vmmov %vm17917_vm1  ;;  %v17455_v36 = vld [vmem:[#allocation4 + $0xb8] sm:$0xff]  }
 0x836   : > { %10723 = vmatmul.mubr.bf16.gmra.mrb[104].mxu0 %v10537_v22  ;;  %11957 = vmatprep.subr.bf16.mxu1 %v15526_v21  ;;  %v11561_v21 = vsel %vm17951_vm3, %v11558_v0, %v11560_v37  ;;  %v17955_v0 = vld [vmem:[#allocation24_spill] sm:$0xff]  ;;  %vm17956_vm3 = vmmov %vm17933_vm2 }
 0x837   : > { %10732 = vmatprep.mubr.bf16.mxu0 %v15823_v26  ;;  %v10858_v22 = vrot.slane %v10856_v60, 1  ;;  %v9999_v27 = vsub.s32 0, %v17955_v0 }
 0x838   : > { %11713 = vmatmul.mubr.bf16.gmra.mrb[108].mxu1 %v11553_v48  ;;  %v11841_v48 = vrot.slane %v15539_v41, 1 }
 0x839   : > { %11722 = vmatprep.mubr.bf16.mxu1 %v15823_v26  ;;  %11958 = vmatpush1.bf16.msra.mxu1 %v15524_v5  ;;  %v15540_v5 = vld [vmem:[#allocation4 + $0xa0] sm:$0xff]   ;;  %v10862_v25 = vor.u32 %v10860_v55, %v10858_v22  ;;  %v17460_v37 = vrot.slane %v9995_v24, %v9999_v27 }
 0x83a   : > { %11959 = vmatprep.subr.bf16.mxu1 %v15535_v51  ;;  %v10854_v51 = vor.u32 %v10852_v13, %v10850_v19  ;;  %v10864_v38 = vshll.u32 %v15540_v5, 16  ;;  %v11842_v39 = vsel %vm17953_vm13, %v11840_v47, %v11841_v48  ;;  %v10868_v15 = vshrl.u32 %v15540_v5, 16  ;;  %vm17959_vm13 = vmmov %vm17917_vm1 }
 0x83b   : > { %v10882_v19 = vrot.slane %v10880_v6, 1 }
 0x83c   : > { %v10859_v30 = vsel %vm17952_vm14, %v10854_v51, %v10858_v22  ;;  %v10866_v62 = vrot.slane %v10864_v38, 1  ;;  %v11847_v22 = vrot.slane %v17452_v8, 1  ;;  %vm17957_vm14 = vmmov %vm17917_vm1 }
 0x83d   : > { %11960 = vmatpush1.bf16.msra.mxu1 %v15533_v57  ;;  %v15541_v57 = vld [vmem:[#allocation4 + $0x98] sm:$0xff]  }
 0x83e   : > { %10733 = vmatmul.mubr.bf16.gmra.mrb[108].mxu0 %v10545_v56  ;;  %v15542_v56 = vld [vmem:[#allocation4 + $0xa8] sm:$0xff]   ;;  %v10867_v35 = vsel %vm17917_vm1, %v10862_v25, %v10866_v62  ;;  %v10870_v31 = vor.u32 %v10868_v15, %v10866_v62  ;;  %v17490_v15 = vld [vmem:[#allocation4 + $0xc0] sm:$0xff]  }
 0x83f   : > { %10742 = vmatprep.mubr.bf16.mxu0 %v15823_v26  ;;  %v10872_v61 = vshll.u32 %v15542_v56, 16  ;;  %v10876_v32 = vshrl.u32 %v15542_v56, 16 }
 0x840   : > { %11723 = vmatmul.mubr.bf16.gmra.mrb[112].mxu1 %v11555_v53  ;;  %v11843_v53 = vrot.slane %v15541_v57, 1 }
 0x841   : > { %11732 = vmatprep.mubr.bf16.mxu1 %v15823_v26 }
 0x842   : > { %v11844_v43 = vsel %vm17933_vm2, %v11841_v48, %v11843_v53 }
 0x846   : > { %10743 = vmatmul.mubr.bf16.gmra.mrb[112].mxu0 %v10553_v2  ;;  %v10874_v2 = vrot.slane %v10872_v61, 1 }
 0x847   : > { %10752 = vmatprep.mubr.bf16.mxu0 %v15823_v26 }
 0x848   : > { %11733 = vmatmul.mubr.bf16.gmra.mrb[116].mxu1 %v11557_v58  ;;  %v10875_v42 = vsel %vm17954_vm6, %v10870_v31, %v10874_v2  ;;  %v10878_v13 = vor.u32 %v10876_v32, %v10874_v2  ;;  %vm17963_vm6 = vmmov %vm17956_vm3 }
 0x849   : > { %11742 = vmatprep.mubr.bf16.mxu1 %v15823_v26 }
 0x84a   : > { %v10883_v38 = vsel %vm17957_vm14, %v10878_v13, %v10882_v19 }
 0x84e   : > { %10753 = vmatmul.mubr.bf16.gmra.mrb[116].mxu0 %v10561_v46  ;;  %v11846_v46 = vsel %vm17956_vm3, %v11843_v53, %v11845_v44  ;;  %v17482_v53 = vld [vmem:[#allocation4 + $0xb0] sm:$0xff]  }
 0x84f   : > { %11028 = vmatprep.mubr.bf16.mxu0 %v15823_v26 }
 0x850   : > { %11743 = vmatmul.mubr.bf16.gmra.mrb[120].mxu1 %v11559_v18  ;;  %v10003_v18 = vsub.s32 1, %v17955_v0 }
 0x851   : > { %11752 = vmatprep.mubr.bf16.mxu1 %v15823_v26 }
 0x852   : > { %v17466_v41 = vrot.slane %v9995_v24, %v10003_v18 }
 0x856   : > { %11029 = vmatmul.mubr.bf16.vlgmr.msra.gmra.mrb[88].mxu0 %v10851_v29 }
 0x857   : > { %11038 = vmatprep.mubr.bf16.mxu0 %v15823_v26 }
 0x858   : > { %11753 = vmatmul.mubr.bf16.gmra.mrb[124].mxu1 %v11561_v21 }
 0x859   : > { %11977 = vmatprep.mubr.bf16.mxu1 %v15823_v26 }
 0x85e   : > { %11039 = vmatmul.mubr.bf16.gmra.mrb[92].mxu0 %v10859_v30 }
 0x85f   : > { %11048 = vmatprep.mubr.bf16.mxu0 %v15823_v26 }
 0x860   : > { %11978 = vmatmul.mubr.bf16.vlgmr.msra.gmra.mrb[96].mxu1 %v11842_v39  ;;  %v10888_v39 = vshll.u32 %v17455_v36, 16 }
 0x861   : > { %11987 = vmatprep.mubr.bf16.mxu1 %v15823_v26 }
 0x866   : > { %11049 = vmatmul.mubr.bf16.gmra.mrb[96].mxu0 %v10867_v35 }
 0x867   : > { %11058 = vmatprep.mubr.bf16.mxu0 %v15823_v26 }
 0x868   : > { %11988 = vmatmul.mubr.bf16.gmra.mrb[100].mxu1 %v11844_v43 }
 0x869   : > { %v8622_v28 = vpop.f32.mrb[56].mxu0  ;;  %11997 = vmatprep.mubr.bf16.mxu1 %v15823_v26 }
 0x86a   : > { %v8624_v58 = vpop.f32.mrb[57].mxu0  ;;  %v8733_v29 = vsel %vm16526_vm8, %v8622_v28, 0.0  ;;  %v10890_v28 = vrot.slane %v10888_v39, 1 }
 0x86b   : > { %v8626_v17 = vpop.f32.mrb[58].mxu0  ;;  %v8734_v63 = vsel %vm16526_vm8, %v8624_v58, 0.0  ;;  %vm17958_vm8 = vmmov %vm17933_vm2 }
 0x86c   : > { %v8628_v40 = vpop.f32.mrb[59].mxu0  ;;  %v11848_v25 = vsel %vm17958_vm8, %v11845_v44, %v11847_v22  ;;  %v10886_v44 = vor.u32 %v10884_v12, %v10882_v19 }
 0x86e   : > { %11059 = vmatmul.mubr.bf16.gmra.mrb[100].mxu0 %v10875_v42  ;;  %v10891_v32 = vsel %vm17959_vm13, %v10886_v44, %v10890_v28  ;;  %v10900_v44 = vshrl.u32 %v17490_v15, 16 }
 0x86f   : > { %11068 = vmatprep.mubr.bf16.mxu0 %v15823_v26 }
 0x870   : > { %11998 = vmatmul.mubr.bf16.gmra.mrb[104].mxu1 %v11846_v46 }
 0x871   : > { %v8632_v7 = vpop.f32.mrb[60].mxu0  ;;  %12007 = vmatprep.mubr.bf16.mxu1 %v15823_v26 }
 0x872   : > { %v8634_v10 = vpop.f32.mrb[61].mxu0  ;;  %v8737_v58 = vsel %vm16521_vm7, %v8632_v7, 0.0  ;;  %v10896_v7 = vshll.u32 %v17490_v15, 16 }
 0x873   : > { %v9756_v60 = vpop.f32.mrb[64].mxu1  ;;  %v8636_v21 = vpop.f32.mrb[62].mxu0  ;;  %v8738_v42 = vsel %vm16521_vm7, %v8634_v10, 0.0  ;;  %vm17960_vm7 = vmmov %vm17933_vm2 }
 0x874   : > { %v9899_v5 = vadd.f32 %v9756_v60, %v8733_v29  ;;  %v9758_v51 = vpop.f32.mrb[65].mxu1  ;;  %v8638_v48 = vpop.f32.mrb[63].mxu0 }
 0x875   : > { %v9900_v30 = vadd.f32 %v9758_v51, %v8734_v63  ;;  %v9760_v47 = vpop.f32.mrb[66].mxu1  ;;  %v17505_v63 = vld [vmem:[#allocation4 + $0xb8] sm:$0xff]  }
 0x876   : > { %v10007_v57 = vadd.f32 %v17460_v37, %v9899_v5  ;;  %v9901_v11 = vadd.f32 %v9760_v47, %v8626_v17  ;;  %v9762_v55 = vpop.f32.mrb[67].mxu1  ;;  %11069 = vmatmul.mubr.bf16.gmra.mrb[104].mxu0 %v10883_v38  ;;  %v10898_v47 = vrot.slane %v10896_v7, 1 }
 0x877   : > { %v10008_v62 = vadd.f32 %v17466_v41, %v9900_v30  ;;  %v9902_v56 = vadd.f32 %v9762_v55, %v8628_v40  ;;  %11078 = vmatprep.mubr.bf16.mxu0 %v15823_v26  ;;  %v11849_v40 = vrot.slane %v17482_v53, 1  ;;  %v10892_v30 = vshrl.u32 %v17455_v36, 16 }
 0x878   : > { %10039 = vst [vmem:[%s17474_s3] sm:$0xff] %v10007_v57  ;;  %v10009_v35 = vadd.f32 %v17460_v37, %v9901_v11  ;;  %12008 = vmatmul.mubr.bf16.gmra.mrb[108].mxu1 %v11848_v25  ;;  %v11851_v55 = vrot.slane %v17505_v63, 1 }
 0x879   : > { %10040 = vst [vmem:[%s17474_s3 + $0x8] sm:$0xff] %v10008_v62  ;;  %v10010_v61 = vadd.f32 %v17466_v41, %v9902_v56  ;;  %v8642_v43 = vpop.f32.mrb[64].mxu0  ;;  %12017 = vmatprep.mubr.bf16.mxu1 %v15823_v26  ;;  %v11850_v13 = vsel %vm17960_vm7, %v11847_v22, %v11849_v40  ;;  %v10894_v11 = vor.u32 %v10892_v30, %v10890_v28 }
 0x87a   : > { %10041 = vst [vmem:[%s17474_s3 + $0x20] sm:$0xff] %v10009_v35  ;;  %v8644_v2 = vpop.f32.mrb[65].mxu0  ;;  %v8741_v38 = vsel %vm16549_vm10, %v8642_v43, 0.0 }
 0x87b   : > { %10042 = vst [vmem:[%s17474_s3 + $0x28] sm:$0xff] %v10010_v61  ;;  %v9766_v17 = vpop.f32.mrb[68].mxu1  ;;  %v8646_v31 = vpop.f32.mrb[66].mxu0  ;;  %v8742_v62 = vsel %vm16549_vm10, %v8644_v2, 0.0  ;;  %v10899_v61 = vsel %vm17917_vm1, %v10894_v11, %v10898_v47  ;;  %vm17961_vm10 = vmmov %vm17933_vm2 }
 0x87c   : > { %v9903_v4 = vadd.f32 %v9766_v17, %v8737_v58  ;;  %v9768_v6 = vpop.f32.mrb[69].mxu1  ;;  %v8648_v46 = vpop.f32.mrb[67].mxu0  ;;  %v11852_v2 = vsel %vm17961_vm10, %v11849_v40, %v11851_v55  ;;  %vm17962_vm2 = vmmov %vm17917_vm1 }
 0x87d   : > { %v9904_v24 = vadd.f32 %v9768_v6, %v8738_v42  ;;  %v9770_v8 = vpop.f32.mrb[70].mxu1  ;;  %v15551_v42 = vld [vmem:[#allocation4 + $0xc0] sm:$0xff]  }
 0x87e   : > { %v10011_v29 = vadd.f32 %v17460_v37, %v9903_v4  ;;  %v9905_v60 = vadd.f32 %v9770_v8, %v8636_v21  ;;  %v9772_v19 = vpop.f32.mrb[71].mxu1  ;;  %11079 = vmatmul.mubr.bf16.gmra.mrb[108].mxu0 %v10891_v32  ;;  %v11853_v7 = vrot.slane %v15551_v42, 1 }
 0x87f   : > { %v10012_v9 = vadd.f32 %v17466_v41, %v9904_v24  ;;  %v9906_v10 = vadd.f32 %v9772_v19, %v8638_v48  ;;  %11088 = vmatprep.mubr.bf16.mxu0 %v15823_v26  ;;  %v15550_v48 = vld [vmem:[#allocation4 + $0xc8] ss:$0 sps:$4 sm:$0x11]   ;;  %v10902_v24 = vor.u32 %v10900_v44, %v10898_v47 }
 0x880   : > { %10043 = vst [vmem:[%s17474_s3 + $0x40] sm:$0xff] %v10011_v29  ;;  %v10013_v5 = vadd.f32 %v17460_v37, %v9905_v60  ;;  %12018 = vmatmul.mubr.bf16.gmra.mrb[112].mxu1 %v11850_v13  ;;  %v10904_v12 = vshll.u32 %v15550_v48, 16  ;;  %v11854_v47 = vsel %vm17963_vm6, %v11851_v55, %v11853_v7  ;;  %v15552_v48 = vld [vmem:[#allocation4 + $0xc8] ss:$0 sps:$4 sm:$0x11]  }
 0x881   : > { %10044 = vst [vmem:[%s17474_s3 + $0x48] sm:$0xff] %v10012_v9  ;;  %v10014_v21 = vadd.f32 %v17466_v41, %v9906_v10  ;;  %v8652_v51 = vpop.f32.mrb[68].mxu0  ;;  %12027 = vmatprep.mubr.bf16.mxu1 %v15823_v26 }
 0x882   : > { %10045 = vst [vmem:[%s17474_s3 + $0x60] sm:$0xff] %v10013_v5  ;;  %v8654_v22 = vpop.f32.mrb[69].mxu0  ;;  %v10906_v8 = vrot.slane %v10904_v12, 1 }
 0x883   : > { %10046 = vst [vmem:[%s17474_s3 + $0x68] sm:$0xff] %v10014_v21  ;;  %v9776_v39 = vpop.f32.mrb[72].mxu1  ;;  %v8656_v57 = vpop.f32.mrb[70].mxu0  ;;  %v8746_v29 = vsel %vm16545_vm9, %v8654_v22, 0.0 }
 0x884   : > { %v9907_v56 = vadd.f32 %v9776_v39, %v8741_v38  ;;  %v9778_v36 = vpop.f32.mrb[73].mxu1  ;;  %v8658_v25 = vpop.f32.mrb[71].mxu0  ;;  %v10907_v63 = vsel %vm17962_vm2, %v10902_v24, %v10906_v8 }
 0x885   : > { %v9908_v53 = vadd.f32 %v9778_v36, %v8742_v62  ;;  %v9780_v35 = vpop.f32.mrb[74].mxu1 }
 0x886   : > { %v10015_v43 = vadd.f32 %v17460_v37, %v9907_v56  ;;  %v9909_v58 = vadd.f32 %v9780_v35, %v8646_v31  ;;  %v9782_v17 = vpop.f32.mrb[75].mxu1  ;;  %11089 = vmatmul.mubr.bf16.gmra.mrb[112].mxu0 %v10899_v61  ;;  %v11855_v56 = vrot.slane %v15552_v48, 1 }
 0x887   : > { %v10016_v28 = vadd.f32 %v17466_v41, %v9908_v53  ;;  %v9910_v34 = vadd.f32 %v9782_v17, %v8648_v46  ;;  %11098 = vmatprep.mubr.bf16.mxu0 %v15823_v26  ;;  %v8745_v46 = vsel %vm16545_vm9, %v8652_v51, 0.0  ;;  %vm17964_vm9 = vmmov %vm17956_vm3 }
 0x888   : > { %10047 = vst [vmem:[%s17474_s3 + $0x80] sm:$0xff] %v10015_v43  ;;  %v10017_v4 = vadd.f32 %v17460_v37, %v9909_v58  ;;  %12028 = vmatmul.mubr.bf16.gmra.mrb[116].mxu1 %v11852_v2 }
 0x889   : > { %10048 = vst [vmem:[%s17474_s3 + $0x88] sm:$0xff] %v10016_v28  ;;  %v10018_v31 = vadd.f32 %v17466_v41, %v9910_v34  ;;  %v8662_v6 = vpop.f32.mrb[72].mxu0  ;;  %12037 = vmatprep.mubr.bf16.mxu1 %v15823_v26  ;;  %v11856_v34 = vsel %vm17964_vm9, %v11853_v7, %v11855_v56 }
 0x88a   : > { %10049 = vst [vmem:[%s17474_s3 + $0xa0] sm:$0xff] %v10017_v4  ;;  %v8664_v40 = vpop.f32.mrb[73].mxu0  ;;  %v8749_v11 = vsel %vm16569_vm12, %v8662_v6, 0.0 }
 0x88b   : > { %10050 = vst [vmem:[%s17474_s3 + $0xa8] sm:$0xff] %v10018_v31  ;;  %v9786_v15 = vpop.f32.mrb[76].mxu1  ;;  %v8666_v32 = vpop.f32.mrb[74].mxu0  ;;  %v8750_v36 = vsel %vm16569_vm12, %v8664_v40, 0.0  ;;  %vm17966_vm12 = vnez %v17782_v16 }
 0x88c   : > { %v9911_v60 = vadd.f32 %v9786_v15, %v8745_v46  ;;  %v9788_v19 = vpop.f32.mrb[77].mxu1  ;;  %v8668_v9 = vpop.f32.mrb[75].mxu0 }
 0x88d   : > { %v9912_v10 = vadd.f32 %v9788_v19, %v8746_v29  ;;  %v9790_v13 = vpop.f32.mrb[78].mxu1 }
 0x88e   : > { %v10019_v5 = vadd.f32 %v17460_v37, %v9911_v60  ;;  %v9913_v21 = vadd.f32 %v9790_v13, %v8656_v57  ;;  %v9792_v51 = vpop.f32.mrb[79].mxu1  ;;  %11099 = vmatmul.mubr.bf16.gmra.mrb[116].mxu0 %v10907_v63 }
 0x88f   : > { %v10020_v30 = vadd.f32 %v17466_v41, %v9912_v10  ;;  %v9914_v33 = vadd.f32 %v9792_v51, %v8658_v25 }
 0x890   : > { %10051 = vst [vmem:[%s17474_s3 + $0xc0] sm:$0xff] %v10019_v5  ;;  %v10021_v22 = vadd.f32 %v17460_v37, %v9913_v21  ;;  %12038 = vmatmul.mubr.bf16.gmra.mrb[120].mxu1 %v11854_v47 }
 0x891   : > { %10052 = vst [vmem:[%s17474_s3 + $0xc8] sm:$0xff] %v10020_v30  ;;  %v10022_v38 = vadd.f32 %v17466_v41, %v9914_v33  ;;  %v8672_v39 = vpop.f32.mrb[76].mxu0  ;;  %12047 = vmatprep.mubr.bf16.mxu1 %v15823_v26 }
 0x892   : > { %10053 = vst [vmem:[%s17474_s3 + $0xe0] sm:$0xff] %v10021_v22  ;;  %v8674_v57 = vpop.f32.mrb[77].mxu0  ;;  %v8753_v4 = vsel %vm16561_vm11, %v8672_v39, 0.0 }
 0x893   : > { %10054 = vst [vmem:[%s17474_s3 + $0xe8] sm:$0xff] %v10022_v38  ;;  %v9796_v62 = vpop.f32.mrb[80].mxu1  ;;  %v8676_v55 = vpop.f32.mrb[78].mxu0  ;;  %v8754_v24 = vsel %vm16561_vm11, %v8674_v57, 0.0  ;;  %vm17965_vm11 = vnez %v17784_v20 }
 0x894   : > { %v9915_v25 = vadd.f32 %v9796_v62, %v8749_v11  ;;  %v9798_v53 = vpop.f32.mrb[81].mxu1  ;;  %v8678_v35 = vpop.f32.mrb[79].mxu0 }
 0x895   : > { %v9916_v61 = vadd.f32 %v9798_v53, %v8750_v36  ;;  %v9800_v26 = vpop.f32.mrb[82].mxu1 }
 0x896   : > { %v10023_v12 = vadd.f32 %v17460_v37, %v9915_v25  ;;  %v9917_v43 = vadd.f32 %v9800_v26, %v8666_v32  ;;  %v9802_v58 = vpop.f32.mrb[83].mxu1 }
 0x897   : > { %v10024_v17 = vadd.f32 %v17466_v41, %v9916_v61  ;;  %v9918_v28 = vadd.f32 %v9802_v58, %v8668_v9 }
 0x898   : > { %10055 = vst [vmem:[%s17474_s3 + $0x100] sm:$0xff] %v10023_v12  ;;  %v10025_v1 = vadd.f32 %v17460_v37, %v9917_v43  ;;  %12048 = vmatmul.mubr.bf16.gmra.mrb[124].mxu1 %v11856_v34 }
 0x899   : > { %10056 = vst [vmem:[%s17474_s3 + $0x108] sm:$0xff] %v10024_v17  ;;  %v10026_v2 = vadd.f32 %v17466_v41, %v9918_v28  ;;  %v8682_v44 = vpop.f32.mrb[80].mxu0 }
 0x89a   : > { %10057 = vst [vmem:[%s17474_s3 + $0x120] sm:$0xff] %v10025_v1  ;;  %v8684_v42 = vpop.f32.mrb[81].mxu0  ;;  %v8757_v5 = vsel %vm17840_vm4, %v8682_v44, 0.0 }
 0x89b   : > { %10058 = vst [vmem:[%s17474_s3 + $0x128] sm:$0xff] %v10026_v2  ;;  %v9806_v31 = vpop.f32.mrb[84].mxu1  ;;  %v8686_v6 = vpop.f32.mrb[82].mxu0  ;;  %v8758_v30 = vsel %vm17840_vm4, %v8684_v42, 0.0  ;;  %vm17970_vm4 = vnez %v17790_v59 }
 0x89c   : > { %v9919_v8 = vadd.f32 %v9806_v31, %v8753_v4  ;;  %v9808_v40 = vpop.f32.mrb[85].mxu1  ;;  %v8688_v46 = vpop.f32.mrb[83].mxu0  ;;  %v12250_v31 = vld [vmem:[#allocation17] sm:$0x3] }
 0x89d   : > { %v9920_v15 = vadd.f32 %v9808_v40, %v8754_v24  ;;  %v9810_v32 = vpop.f32.mrb[86].mxu1 }
 0x89e   : > { %v10027_v7 = vadd.f32 %v17460_v37, %v9919_v8  ;;  %v9921_v29 = vadd.f32 %v9810_v32, %v8676_v55  ;;  %v9812_v60 = vpop.f32.mrb[87].mxu1  ;;  %v17599_v8 = vrot.slane %v12250_v31, %v9999_v27 }
 0x89f   : > { %v10028_v19 = vadd.f32 %v17466_v41, %v9920_v15  ;;  %v9922_v9 = vadd.f32 %v9812_v60, %v8678_v35 }
 0x8a0   : > { %10059 = vst [vmem:[%s17474_s3 + $0x140] sm:$0xff] %v10027_v7  ;;  %v10029_v10 = vadd.f32 %v17460_v37, %v9921_v29 }
 0x8a1   : > { %10060 = vst [vmem:[%s17474_s3 + $0x148] sm:$0xff] %v10028_v19  ;;  %v10030_v49 = vadd.f32 %v17466_v41, %v9922_v9  ;;  %v8692_v13 = vpop.f32.mrb[84].mxu0 }
 0x8a2   : > { %10061 = vst [vmem:[%s17474_s3 + $0x160] sm:$0xff] %v10029_v10  ;;  %v8694_v63 = vpop.f32.mrb[85].mxu0  ;;  %v8761_v36 = vsel %vm17838_vm5, %v8692_v13, 0.0 }
 0x8a3   : > { %10062 = vst [vmem:[%s17474_s3 + $0x168] sm:$0xff] %v10030_v49  ;;  %v9816_v21 = vpop.f32.mrb[88].mxu1  ;;  %v8696_v51 = vpop.f32.mrb[86].mxu0  ;;  %v8762_v53 = vsel %vm17838_vm5, %v8694_v63, 0.0  ;;  %vm17969_vm5 = vnez %v17792_v45 }
 0x8a4   : > { %v9923_v33 = vadd.f32 %v9816_v21, %v8757_v5  ;;  %v9818_v47 = vpop.f32.mrb[89].mxu1  ;;  %v8698_v48 = vpop.f32.mrb[87].mxu0 }
 0x8a5   : > { %v9924_v22 = vadd.f32 %v9818_v47, %v8758_v30  ;;  %v9820_v38 = vpop.f32.mrb[90].mxu1 }
 0x8a6   : > { %v10031_v39 = vadd.f32 %v17460_v37, %v9923_v33  ;;  %v9925_v57 = vadd.f32 %v9820_v38, %v8686_v6  ;;  %v9822_v11 = vpop.f32.mrb[91].mxu1 }
 0x8a7   : > { %v10032_v62 = vadd.f32 %v17466_v41, %v9924_v22  ;;  %v9926_v55 = vadd.f32 %v9822_v11, %v8688_v46 }
 0x8a8   : > { %10063 = vst [vmem:[%s17474_s3 + $0x180] sm:$0xff] %v10031_v39  ;;  %v10033_v56 = vadd.f32 %v17460_v37, %v9925_v57 }
 0x8a9   : > { %10064 = vst [vmem:[%s17474_s3 + $0x188] sm:$0xff] %v10032_v62  ;;  %v10034_v52 = vadd.f32 %v17466_v41, %v9926_v55 }
 0x8aa   : > { %10065 = vst [vmem:[%s17474_s3 + $0x1a0] sm:$0xff] %v10033_v56 }
 0x8ab   : > { %10066 = vst [vmem:[%s17474_s3 + $0x1a8] sm:$0xff] %v10034_v52  ;;  %v9826_v25 = vpop.f32.mrb[92].mxu1 }
 0x8ac   : > { %v9927_v35 = vadd.f32 %v9826_v25, %v8761_v36  ;;  %v9828_v61 = vpop.f32.mrb[93].mxu1 }
 0x8ad   : > { %v9928_v26 = vadd.f32 %v9828_v61, %v8762_v53  ;;  %v9830_v12 = vpop.f32.mrb[94].mxu1 }
 0x8ae   : > { %v10035_v43 = vadd.f32 %v17460_v37, %v9927_v35  ;;  %v9929_v58 = vadd.f32 %v9830_v12, %v8696_v51  ;;  %v9832_v17 = vpop.f32.mrb[95].mxu1 }
 0x8af   : > { %v10036_v28 = vadd.f32 %v17466_v41, %v9928_v26  ;;  %v9930_v34 = vadd.f32 %v9832_v17, %v8698_v48 }
 0x8b0   : > { %10067 = vst [vmem:[%s17474_s3 + $0x1c0] sm:$0xff] %v10035_v43  ;;  %v10037_v1 = vadd.f32 %v17460_v37, %v9929_v58 }
 0x8b1   : > { %10068 = vst [vmem:[%s17474_s3 + $0x1c8] sm:$0xff] %v10036_v28  ;;  %v10038_v2 = vadd.f32 %v17466_v41, %v9930_v34  ;;  %v17603_v41 = vrot.slane %v12250_v31, %v10003_v18 }
 0x8b2   : > { %10069 = vst [vmem:[%s17474_s3 + $0x1e0] sm:$0xff] %v10037_v1 }
 0x8b3   : > { %10070 = vst [vmem:[%s17474_s3 + $0x1e8] sm:$0xff] %v10038_v2 }
 0x929   : > { %v11030_v54 = vpop.f32.mrb[88].mxu0 }
 0x92a   : > { %v11032_v44 = vpop.f32.mrb[89].mxu0 }
 0x92b   : > { %v11034_v42 = vpop.f32.mrb[90].mxu0 }
 0x92c   : > { %v11036_v4 = vpop.f32.mrb[91].mxu0 }
 0x931   : > { %v11040_v6 = vpop.f32.mrb[92].mxu0 }
 0x932   : > { %v11042_v24 = vpop.f32.mrb[93].mxu0 }
 0x933   : > { %v11979_v40 = vpop.f32.mrb[96].mxu1  ;;  %v11044_v37 = vpop.f32.mrb[94].mxu0 }
 0x934   : > { %v12154_v46 = vadd.f32 %v11979_v40, %v11030_v54  ;;  %v11981_v15 = vpop.f32.mrb[97].mxu1  ;;  %v11046_v32 = vpop.f32.mrb[95].mxu0 }
 0x935   : > { %v12155_v7 = vadd.f32 %v11981_v15, %v11032_v44  ;;  %v11983_v29 = vpop.f32.mrb[98].mxu1 }
 0x936   : > { %v12262_v60 = vadd.f32 %v17599_v8, %v12154_v46  ;;  %v12092_v27 = vsel %vm16651_vm0, %v11983_v29, 0.0  ;;  %v11985_v19 = vpop.f32.mrb[99].mxu1 }
 0x937   : > { %v12263_v9 = vadd.f32 %v17603_v41, %v12155_v7  ;;  %v12156_v10 = vadd.f32 %v12092_v27, %v11034_v42  ;;  %v12093_v0 = vsel %vm16651_vm0, %v11985_v19, 0.0  ;;  %vm17968_vm0 = vnez %v17786_v23 }
 0x938   : > { %12294 = vst [vmem:[%s17474_s3 + $0x10] sm:$0xff] %v12262_v60  ;;  %v12157_v18 = vadd.f32 %v12093_v0, %v11036_v4 }
 0x939   : > { %12295 = vst [vmem:[%s17474_s3 + $0x18] sm:$0xff] %v12263_v9  ;;  %v12264_v49 = vadd.f32 %v17599_v8, %v12156_v10  ;;  %v11050_v13 = vpop.f32.mrb[96].mxu0 }
 0x93a   : > { %v12265_v63 = vadd.f32 %v17603_v41, %v12157_v18  ;;  %v11052_v5 = vpop.f32.mrb[97].mxu0 }
 0x93b   : > { %12296 = vst [vmem:[%s17474_s3 + $0x30] sm:$0xff] %v12264_v49  ;;  %v11989_v21 = vpop.f32.mrb[100].mxu1  ;;  %v11054_v51 = vpop.f32.mrb[98].mxu0 }
 0x93c   : > { %12297 = vst [vmem:[%s17474_s3 + $0x38] sm:$0xff] %v12265_v63  ;;  %v12158_v30 = vadd.f32 %v11989_v21, %v11040_v6  ;;  %v11991_v33 = vpop.f32.mrb[101].mxu1  ;;  %v11056_v47 = vpop.f32.mrb[99].mxu0 }
 0x93d   : > { %v12159_v50 = vadd.f32 %v11991_v33, %v11042_v24  ;;  %v11993_v48 = vpop.f32.mrb[102].mxu1 }
 0x93e   : > { %v12266_v22 = vadd.f32 %v17599_v8, %v12158_v30  ;;  %v12096_v38 = vsel %vm16647_vm15, %v11993_v48, 0.0  ;;  %v11995_v39 = vpop.f32.mrb[103].mxu1 }
 0x93f   : > { %v12267_v57 = vadd.f32 %v17603_v41, %v12159_v50  ;;  %v12160_v11 = vadd.f32 %v12096_v38, %v11044_v37  ;;  %v12097_v62 = vsel %vm16647_vm15, %v11995_v39, 0.0  ;;  %vm17967_vm15 = vnez %v17788_v3 }
 0x940   : > { %12298 = vst [vmem:[%s17474_s3 + $0x50] sm:$0xff] %v12266_v22  ;;  %v12161_v55 = vadd.f32 %v12097_v62, %v11046_v32 }
 0x941   : > { %12299 = vst [vmem:[%s17474_s3 + $0x58] sm:$0xff] %v12267_v57  ;;  %v12268_v56 = vadd.f32 %v17599_v8, %v12160_v11  ;;  %v11060_v52 = vpop.f32.mrb[100].mxu0 }
 0x942   : > { %v12269_v36 = vadd.f32 %v17603_v41, %v12161_v55  ;;  %v11062_v25 = vpop.f32.mrb[101].mxu0 }
 0x943   : > { %12300 = vst [vmem:[%s17474_s3 + $0x70] sm:$0xff] %v12268_v56  ;;  %v11999_v53 = vpop.f32.mrb[104].mxu1  ;;  %v11064_v35 = vpop.f32.mrb[102].mxu0 }
 0x944   : > { %12301 = vst [vmem:[%s17474_s3 + $0x78] sm:$0xff] %v12269_v36  ;;  %v12162_v61 = vadd.f32 %v11999_v53, %v11050_v13  ;;  %v12001_v26 = vpop.f32.mrb[105].mxu1  ;;  %v11066_v12 = vpop.f32.mrb[103].mxu0 }
 0x945   : > { %v12163_v14 = vadd.f32 %v12001_v26, %v11052_v5  ;;  %v12003_v43 = vpop.f32.mrb[106].mxu1 }
 0x946   : > { %v12270_v58 = vadd.f32 %v17599_v8, %v12162_v61  ;;  %v12100_v17 = vsel %vm17965_vm11, %v12003_v43, 0.0  ;;  %v12005_v28 = vpop.f32.mrb[107].mxu1 }
 0x947   : > { %v12271_v34 = vadd.f32 %v17603_v41, %v12163_v14  ;;  %v12164_v1 = vadd.f32 %v12100_v17, %v11054_v51  ;;  %v12101_v2 = vsel %vm17965_vm11, %v12005_v28, 0.0 }
 0x948   : > { %12302 = vst [vmem:[%s17474_s3 + $0x90] sm:$0xff] %v12270_v58  ;;  %v12165_v54 = vadd.f32 %v12101_v2, %v11056_v47 }
 0x949   : > { %12303 = vst [vmem:[%s17474_s3 + $0x98] sm:$0xff] %v12271_v34  ;;  %v12272_v44 = vadd.f32 %v17599_v8, %v12164_v1  ;;  %v11070_v42 = vpop.f32.mrb[104].mxu0 }
 0x94a   : > { %v12273_v4 = vadd.f32 %v17603_v41, %v12165_v54  ;;  %v11072_v31 = vpop.f32.mrb[105].mxu0 }
 0x94b   : > { %12304 = vst [vmem:[%s17474_s3 + $0xb0] sm:$0xff] %v12272_v44  ;;  %v12009_v6 = vpop.f32.mrb[108].mxu1  ;;  %v11074_v24 = vpop.f32.mrb[106].mxu0 }
 0x94c   : > { %12305 = vst [vmem:[%s17474_s3 + $0xb8] sm:$0xff] %v12273_v4  ;;  %v12166_v40 = vadd.f32 %v12009_v6, %v11060_v52  ;;  %v12011_v37 = vpop.f32.mrb[109].mxu1  ;;  %v11076_v46 = vpop.f32.mrb[107].mxu0 }
 0x94d   : > { %v12167_v20 = vadd.f32 %v12011_v37, %v11062_v25  ;;  %v12013_v15 = vpop.f32.mrb[110].mxu1 }
 0x94e   : > { %v12274_v32 = vadd.f32 %v17599_v8, %v12166_v40  ;;  %v12104_v7 = vsel %vm17966_vm12, %v12013_v15, 0.0  ;;  %v12015_v29 = vpop.f32.mrb[111].mxu1 }
 0x94f   : > { %v12275_v60 = vadd.f32 %v17603_v41, %v12167_v20  ;;  %v12168_v27 = vadd.f32 %v12104_v7, %v11064_v35  ;;  %v12105_v19 = vsel %vm17966_vm12, %v12015_v29, 0.0 }
 0x950   : > { %12306 = vst [vmem:[%s17474_s3 + $0xd0] sm:$0xff] %v12274_v32  ;;  %v12169_v9 = vadd.f32 %v12105_v19, %v11066_v12 }
 0x951   : > { %12307 = vst [vmem:[%s17474_s3 + $0xd8] sm:$0xff] %v12275_v60  ;;  %v12276_v10 = vadd.f32 %v17599_v8, %v12168_v27  ;;  %v11080_v0 = vpop.f32.mrb[108].mxu0 }
 0x952   : > { %v12277_v18 = vadd.f32 %v17603_v41, %v12169_v9  ;;  %v11082_v49 = vpop.f32.mrb[109].mxu0 }
 0x953   : > { %12308 = vst [vmem:[%s17474_s3 + $0xf0] sm:$0xff] %v12276_v10  ;;  %v12019_v13 = vpop.f32.mrb[112].mxu1  ;;  %v11084_v63 = vpop.f32.mrb[110].mxu0 }
 0x954   : > { %12309 = vst [vmem:[%s17474_s3 + $0xf8] sm:$0xff] %v12277_v18  ;;  %v12170_v5 = vadd.f32 %v12019_v13, %v11070_v42  ;;  %v12021_v21 = vpop.f32.mrb[113].mxu1  ;;  %v11086_v51 = vpop.f32.mrb[111].mxu0 }
 0x955   : > { %v12171_v16 = vadd.f32 %v12021_v21, %v11072_v31  ;;  %v12023_v30 = vpop.f32.mrb[114].mxu1 }
 0x956   : > { %v12278_v33 = vadd.f32 %v17599_v8, %v12170_v5  ;;  %v12108_v47 = vsel %vm17967_vm15, %v12023_v30, 0.0  ;;  %v12025_v50 = vpop.f32.mrb[115].mxu1 }
 0x957   : > { %v12279_v48 = vadd.f32 %v17603_v41, %v12171_v16  ;;  %v12172_v22 = vadd.f32 %v12108_v47, %v11074_v24  ;;  %v12109_v38 = vsel %vm17967_vm15, %v12025_v50, 0.0 }
 0x958   : > { %12310 = vst [vmem:[%s17474_s3 + $0x110] sm:$0xff] %v12278_v33  ;;  %v12173_v39 = vadd.f32 %v12109_v38, %v11076_v46 }
 0x959   : > { %12311 = vst [vmem:[%s17474_s3 + $0x118] sm:$0xff] %v12279_v48  ;;  %v12280_v57 = vadd.f32 %v17599_v8, %v12172_v22  ;;  %v11090_v11 = vpop.f32.mrb[112].mxu0 }
 0x95a   : > { %v12281_v62 = vadd.f32 %v17603_v41, %v12173_v39  ;;  %v11092_v55 = vpop.f32.mrb[113].mxu0 }
 0x95b   : > { %12312 = vst [vmem:[%s17474_s3 + $0x130] sm:$0xff] %v12280_v57  ;;  %v12029_v56 = vpop.f32.mrb[116].mxu1  ;;  %v11094_v52 = vpop.f32.mrb[114].mxu0 }
 0x95c   : > { %12313 = vst [vmem:[%s17474_s3 + $0x138] sm:$0xff] %v12281_v62  ;;  %v12174_v36 = vadd.f32 %v12029_v56, %v11080_v0  ;;  %v12031_v25 = vpop.f32.mrb[117].mxu1  ;;  %v11096_v53 = vpop.f32.mrb[115].mxu0 }
 0x95d   : > { %v12175_v3 = vadd.f32 %v12031_v25, %v11082_v49  ;;  %v12033_v35 = vpop.f32.mrb[118].mxu1 }
 0x95e   : > { %v12282_v61 = vadd.f32 %v17599_v8, %v12174_v36  ;;  %v12112_v26 = vsel %vm17968_vm0, %v12033_v35, 0.0  ;;  %v12035_v12 = vpop.f32.mrb[119].mxu1 }
 0x95f   : > { %v12283_v14 = vadd.f32 %v17603_v41, %v12175_v3  ;;  %v12176_v43 = vadd.f32 %v12112_v26, %v11084_v63  ;;  %v12113_v58 = vsel %vm17968_vm0, %v12035_v12, 0.0 }
 0x960   : > { %12314 = vst [vmem:[%s17474_s3 + $0x150] sm:$0xff] %v12282_v61  ;;  %v12177_v17 = vadd.f32 %v12113_v58, %v11086_v51 }
 0x961   : > { %12315 = vst [vmem:[%s17474_s3 + $0x158] sm:$0xff] %v12283_v14  ;;  %v12284_v28 = vadd.f32 %v17599_v8, %v12176_v43  ;;  %v11100_v34 = vpop.f32.mrb[116].mxu0 }
 0x962   : > { %v12285_v1 = vadd.f32 %v17603_v41, %v12177_v17  ;;  %v11102_v2 = vpop.f32.mrb[117].mxu0 }
 0x963   : > { %12316 = vst [vmem:[%s17474_s3 + $0x170] sm:$0xff] %v12284_v28  ;;  %v12039_v54 = vpop.f32.mrb[120].mxu1  ;;  %v11104_v44 = vpop.f32.mrb[118].mxu0 }
 0x964   : > { %12317 = vst [vmem:[%s17474_s3 + $0x178] sm:$0xff] %v12285_v1  ;;  %v12178_v42 = vadd.f32 %v12039_v54, %v11090_v11  ;;  %v12041_v4 = vpop.f32.mrb[121].mxu1  ;;  %v11106_v23 = vpop.f32.mrb[119].mxu0 }
 0x965   : > { %v12179_v31 = vadd.f32 %v12041_v4, %v11092_v55  ;;  %v12043_v6 = vpop.f32.mrb[122].mxu1 }
 0x966   : > { %v12286_v24 = vadd.f32 %v17599_v8, %v12178_v42  ;;  %v12116_v40 = vsel %vm17969_vm5, %v12043_v6, 0.0  ;;  %v12045_v37 = vpop.f32.mrb[123].mxu1 }
 0x967   : > { %v12287_v46 = vadd.f32 %v17603_v41, %v12179_v31  ;;  %v12180_v20 = vadd.f32 %v12116_v40, %v11094_v52  ;;  %v12117_v15 = vsel %vm17969_vm5, %v12045_v37, 0.0 }
 0x968   : > { %12318 = vst [vmem:[%s17474_s3 + $0x190] sm:$0xff] %v12286_v24  ;;  %v12181_v32 = vadd.f32 %v12117_v15, %v11096_v53 }
 0x969   : > { %12319 = vst [vmem:[%s17474_s3 + $0x198] sm:$0xff] %v12287_v46  ;;  %v12288_v7 = vadd.f32 %v17599_v8, %v12180_v20 }
 0x96a   : > { %v12289_v29 = vadd.f32 %v17603_v41, %v12181_v32 }
 0x96b   : > { %12320 = vst [vmem:[%s17474_s3 + $0x1b0] sm:$0xff] %v12288_v7  ;;  %v12049_v60 = vpop.f32.mrb[124].mxu1 }
 0x96c   : > { %12321 = vst [vmem:[%s17474_s3 + $0x1b8] sm:$0xff] %v12289_v29  ;;  %v12182_v27 = vadd.f32 %v12049_v60, %v11100_v34  ;;  %v12051_v19 = vpop.f32.mrb[125].mxu1 }
 0x96d   : > { %v12183_v9 = vadd.f32 %v12051_v19, %v11102_v2  ;;  %v12053_v10 = vpop.f32.mrb[126].mxu1 }
 0x96e   : > { %v12290_v45 = vadd.f32 %v17599_v8, %v12182_v27  ;;  %v12120_v0 = vsel %vm17970_vm4, %v12053_v10, 0.0  ;;  %v12055_v18 = vpop.f32.mrb[127].mxu1 }
 0x96f   : > { %v12291_v49 = vadd.f32 %v17603_v41, %v12183_v9  ;;  %v12184_v13 = vadd.f32 %v12120_v0, %v11104_v44  ;;  %v12121_v63 = vsel %vm17970_vm4, %v12055_v18, 0.0 }
 0x970   : > { %12322 = vst [vmem:[%s17474_s3 + $0x1d0] sm:$0xff] %v12290_v45  ;;  %v12185_v5 = vadd.f32 %v12121_v63, %v11106_v23 }
 0x971   : > { %12323 = vst [vmem:[%s17474_s3 + $0x1d8] sm:$0xff] %v12291_v49  ;;  %v12292_v21 = vadd.f32 %v17599_v8, %v12184_v13 }
 0x972   : > { %v12293_v51 = vadd.f32 %v17603_v41, %v12185_v5 }
 0x973   : > { %12324 = vst [vmem:[%s17474_s3 + $0x1f0] sm:$0xff] %v12292_v21 }
 0x974   : > { %12325 = vst [vmem:[%s17474_s3 + $0x1f8] sm:$0xff] %v12293_v51 }
 0x975 PF: > { %s25_s13 = sadd.s32 1, %s15803_s13  }
 0x976   : > { %p22_p7 = scmp.ge.s32.totalorder %s25_s13, 4  }
 0x978   :  { %24 = sbr.rel (!%p22_p7) target bundleno = 7 (0x7), region = 155 }
 0x97f   :  { %12350 = vsyncpa [#allocation7], 1 }
 0x980   :  { %12352 = vsyncpa [#allocation7 + $0x1], 1 }
 0x981   :  { %12353 = vsyncpa [#allocation9], 1 }
 0x982   :  { %12354 = vsyncpa [#allocation12], 1 }
 0x983   :  { %12355 = vsyncpa [#allocation15], 1 }
 0x984   :  { %12356 = vsyncpa [#allocation18], 1 }

</bundles_post_ra>
